<compile_context>
chip_gen: v7x
topology: tpu7x:2x2x1
jax: 0.10.0
libtpu: 0.0.40
codegen_flags: <defaults>
</compile_context>

<pallas_src>
import math
from functools import partial

import jax
import jax.numpy as jnp
from jax.experimental import pallas as pl
from jax.experimental.pallas import tpu as pltpu


# --------------------------------------------------------------------------
# small helpers
# --------------------------------------------------------------------------

def _k_tile(c):
    """Channel (reduction) tile: 512 for big channel counts, else full C."""
    return 512 if (c > 512 and c % 512 == 0) else c


def _largest_divisor_leq(n, cap):
    cap = max(1, min(n, cap))
    for d in range(cap, 0, -1):
        if n % d == 0:
            return d
    return 1


def _ln_rows(x, g, b, eps):
    """Channel LayerNorm over the last (lane) axis.  x: f32 (..., C)."""
    mu = jnp.mean(x, axis=-1, keepdims=True)
    xc = x - mu
    var = jnp.mean(xc * xc, axis=-1, keepdims=True)
    return xc * jax.lax.rsqrt(var + eps) * g + b


# --------------------------------------------------------------------------
# Kernel 1: fused ConvTranspose2d(k=2, s=2, p=0) + LN1+ReLU (h) + LN3 (skip)
# --------------------------------------------------------------------------

def _deconv2x2_fused_kernel(x_ref, w_ref, b_ref, g1_ref, be1_ref, g3_ref,
                            be3_ref, h_ref, s_ref, acc_ref, *, eps):
    k = pl.program_id(1)

    @pl.when(k == 0)
    def _init():
        acc_ref[...] = jnp.zeros_like(acc_ref)

    t_nh, w_sp, tk = x_ref.shape
    x2d = x_ref[...].reshape(t_nh * w_sp, tk)            # (rows, tk) bf16
    for p in range(4):                                   # 4 patch positions
        acc_ref[p] = acc_ref[p] + jnp.dot(
            x2d, w_ref[p], preferred_element_type=jnp.float32)

    @pl.when(k == pl.num_programs(1) - 1)
    def _finalize():
        bias = b_ref[...]
        g1, be1 = g1_ref[...], be1_ref[...]
        g3, be3 = g3_ref[...], be3_ref[...]
        cout = bias.shape[-1]
        for a in range(2):
            h_parts, s_parts = [], []
            for b in range(2):
                c1 = acc_ref[2 * a + b] + bias           # (rows, Cout) f32
                mu = jnp.mean(c1, axis=-1, keepdims=True)
                xc = c1 - mu
                var = jnp.mean(xc * xc, axis=-1, keepdims=True)
                inv = jax.lax.rsqrt(var + eps)
                h_parts.append(jnp.maximum(xc * inv * g1 + be1, 0.0))
                s_parts.append(xc * inv * g3 + be3)
            hrow = jnp.concatenate(h_parts, -1).reshape(t_nh, w_sp, 2 * cout)
            srow = jnp.concatenate(s_parts, -1).reshape(t_nh, w_sp, 2 * cout)
            h_ref[:, a, :, :] = hrow.astype(h_ref.dtype)
            s_ref[:, a, :, :] = srow.astype(s_ref.dtype)


def deconv2x2_ln_fused(x, w1, bias, g1, be1, g3, be3, *, eps=1e-6):
    """ConvTranspose2d(Cin,Cout,2,2,0) with fused LN1+ReLU and LN3 epilogues.

    x: (N, H, W, Cin) NHWC.  w1: (Cin, Cout, 2, 2) torch layout.
    Returns (h, skip), both (N, 2H, 2W, Cout) bf16.
    """
    n, hh, ww, cin = x.shape
    cout = w1.shape[1]
    nh = n * hh

    w4 = jnp.transpose(w1, (2, 3, 0, 1)).reshape(4, cin, cout)
    w4 = w4.astype(jnp.bfloat16)
    x2 = x.reshape(nh, ww, cin).astype(jnp.bfloat16)

    tk = _k_tile(cin)
    t_nh = _largest_divisor_leq(nh, max(1, 256 // ww))   # ~256 matmul rows/step
    rows = t_nh * ww
    grid = (nh // t_nh, cin // tk)

    flops = 2 * nh * ww * cin * 4 * cout
    bytes_accessed = (nh * ww * cin * 2 + 4 * cin * cout * 2
                      + 2 * nh * 2 * ww * 2 * cout * 2)

    def vec(v):
        return v.reshape(1, cout).astype(jnp.float32)

    vec_spec = pl.BlockSpec((1, cout), lambda i, k: (0, 0))
    out_spec = pl.BlockSpec((t_nh, 2, ww, 2 * cout), lambda i, k: (i, 0, 0, 0))

    h5, s5 = pl.pallas_call(
        partial(_deconv2x2_fused_kernel, eps=eps),
        out_shape=(jax.ShapeDtypeStruct((nh, 2, ww, 2 * cout), jnp.bfloat16),
                   jax.ShapeDtypeStruct((nh, 2, ww, 2 * cout), jnp.bfloat16)),
        grid=grid,
        in_specs=[
            pl.BlockSpec((t_nh, ww, tk), lambda i, k: (i, 0, k)),
            pl.BlockSpec((4, tk, cout), lambda i, k: (0, k, 0)),
            vec_spec, vec_spec, vec_spec, vec_spec, vec_spec,
        ],
        out_specs=(out_spec, out_spec),
        scratch_shapes=[pltpu.VMEM((4, rows, cout), jnp.float32)],
        compiler_params=pltpu.CompilerParams(
            dimension_semantics=("parallel", "arbitrary")),
        cost_estimate=pl.CostEstimate(flops=int(flops), transcendentals=0,
                                      bytes_accessed=int(bytes_accessed)),
    )(x2, w4, vec(bias), vec(g1), vec(be1), vec(g3), vec(be3))

    # (NH, 2, W, 2*Cout) -> (N, 2H, 2W, Cout): pure (free) reshape.
    h = h5.reshape(n, 2 * hh, 2 * ww, cout)
    s = s5.reshape(n, 2 * hh, 2 * ww, cout)
    return h, s


# --------------------------------------------------------------------------
# Kernel 2: fused 3x3 / stride 1 / pad 1 conv with selectable epilogue
# --------------------------------------------------------------------------

def _conv3x3_accumulate(x_ref, w_ref, acc_ref):
    @pl.when(pl.program_id(1) == 0)
    def _init():
        acc_ref[...] = jnp.zeros_like(acc_ref)

    _, hp, wp, tk = x_ref.shape
    h, w = hp - 2, wp - 2
    for a in range(3):
        for b in range(3):
            xs = x_ref[0, a:a + h, b:b + w, :].reshape(h * w, tk)
            acc_ref[...] += jnp.dot(xs, w_ref[a * 3 + b],
                                    preferred_element_type=jnp.float32)


def _conv3x3_ln_relu_kernel(x_ref, w_ref, b_ref, g_ref, be_ref, o_ref,
                            acc_ref, *, eps, relu):
    _conv3x3_accumulate(x_ref, w_ref, acc_ref)

    @pl.when(pl.program_id(1) == pl.num_programs(1) - 1)
    def _finalize():
        _, hp, wp, _ = x_ref.shape
        h, w = hp - 2, wp - 2
        cout = o_ref.shape[-1]
        c = acc_ref[...] + b_ref[...]
        y = _ln_rows(c, g_ref[...], be_ref[...], eps)
        if relu:
            y = jnp.maximum(y, 0.0)
        o_ref[...] = y.reshape(1, h, w, cout).astype(o_ref.dtype)


def _conv3x3_ln_add_relu_kernel(x_ref, skip_ref, w_ref, b_ref, g_ref, be_ref,
                                o_ref, acc_ref, *, eps):
    _conv3x3_accumulate(x_ref, w_ref, acc_ref)

    @pl.when(pl.program_id(1) == pl.num_programs(1) - 1)
    def _finalize():
        _, hp, wp, _ = x_ref.shape
        h, w = hp - 2, wp - 2
        cout = o_ref.shape[-1]
        c = acc_ref[...] + b_ref[...]
        y = _ln_rows(c, g_ref[...], be_ref[...], eps).reshape(1, h, w, cout)
        out = jnp.maximum(y + skip_ref[...].astype(jnp.float32), 0.0)
        o_ref[...] = out.astype(o_ref.dtype)


def _conv3x3_bias_kernel(x_ref, w_ref, b_ref, o_ref, acc_ref):
    _conv3x3_accumulate(x_ref, w_ref, acc_ref)

    @pl.when(pl.program_id(1) == pl.num_programs(1) - 1)
    def _finalize():
        _, hp, wp, _ = x_ref.shape
        h, w = hp - 2, wp - 2
        cout = o_ref.shape[-1]
        c = acc_ref[...] + b_ref[...]
        o_ref[...] = c.reshape(1, h, w, cout).astype(o_ref.dtype)


def conv3x3_fused(x, taps, bias, *, gamma=None, beta=None, skip=None,
                  relu=False, eps=1e-6, out_dtype=jnp.bfloat16):
    """3x3 / stride 1 / pad 1 conv (NHWC) with a fused epilogue.

    taps: (3, 3, Cin, Cout) tap weights (already flipped for ConvTranspose).
      gamma is None                -> bias only                    (out_conv)
      gamma given, skip is None    -> bias + LN (+ReLU if relu)    (conv1, k=3)
      gamma and skip given         -> bias + LN + skip-add + ReLU  (conv2)
    """
    n, hh, ww, cin = x.shape
    cout = taps.shape[-1]

    xp = jnp.pad(x.astype(jnp.bfloat16), ((0, 0), (1, 1), (1, 1), (0, 0)))
    w9 = taps.reshape(9, cin, cout).astype(jnp.bfloat16)
    tk = _k_tile(cin)
    grid = (n, cin // tk)

    x_spec = pl.BlockSpec((1, hh + 2, ww + 2, tk), lambda i, k: (i, 0, 0, k))
    w_spec = pl.BlockSpec((9, tk, cout), lambda i, k: (0, k, 0))
    vec_spec = pl.BlockSpec((1, cout), lambda i, k: (0, 0))
    o_spec = pl.BlockSpec((1, hh, ww, cout), lambda i, k: (i, 0, 0, 0))
    acc = pltpu.VMEM((hh * ww, cout), jnp.float32)
    cp = pltpu.CompilerParams(dimension_semantics=("parallel", "arbitrary"))

    out_itemsize = jnp.dtype(out_dtype).itemsize
    flops = 2 * n * hh * ww * 9 * cin * cout
    bytes_accessed = (n * (hh + 2) * (ww + 2) * cin * 2 + 9 * cin * cout * 2
                      + n * hh * ww * cout * out_itemsize)
    if skip is not None:
        bytes_accessed += n * hh * ww * cout * 2
    ce = pl.CostEstimate(flops=int(flops), transcendentals=0,
                         bytes_accessed=int(bytes_accessed))

    bias2 = bias.reshape(1, cout).astype(jnp.float32)
    out_shape = jax.ShapeDtypeStruct((n, hh, ww, cout), out_dtype)

    if gamma is None:
        return pl.pallas_call(
            _conv3x3_bias_kernel,
            out_shape=out_shape, grid=grid,
            in_specs=[x_spec, w_spec, vec_spec],
            out_specs=o_spec, scratch_shapes=[acc],
            compiler_params=cp, cost_estimate=ce,
        )(xp, w9, bias2)

    g2 = gamma.reshape(1, cout).astype(jnp.float32)
    be2 = beta.reshape(1, cout).astype(jnp.float32)

    if skip is None:
        return pl.pallas_call(
            partial(_conv3x3_ln_relu_kernel, eps=eps, relu=relu),
            out_shape=out_shape, grid=grid,
            in_specs=[x_spec, w_spec, vec_spec, vec_spec, vec_spec],
            out_specs=o_spec, scratch_shapes=[acc],
            compiler_params=cp, cost_estimate=ce,
        )(xp, w9, bias2, g2, be2)

    skip_spec = pl.BlockSpec((1, hh, ww, cout), lambda i, k: (i, 0, 0, 0))
    return pl.pallas_call(
        partial(_conv3x3_ln_add_relu_kernel, eps=eps),
        out_shape=out_shape, grid=grid,
        in_specs=[x_spec, skip_spec, w_spec, vec_spec, vec_spec, vec_spec],
        out_specs=o_spec, scratch_shapes=[acc],
        compiler_params=cp, cost_estimate=ce,
    )(xp, skip.astype(jnp.bfloat16), w9, bias2, g2, be2)


# --------------------------------------------------------------------------
# Weight-layout helpers (glue)
# --------------------------------------------------------------------------

def _convT3x3_taps(w_t):
    # ConvTranspose2d weight (Cin, Cout, 3, 3) -> conv taps (3, 3, Cin, Cout):
    # out[y,x,co] = sum_{a,b,ci} x_pad[y+a, x+b, ci] * W[ci, co, 2-a, 2-b]
    return jnp.flip(w_t, axis=(2, 3)).transpose(2, 3, 0, 1)


def _conv2d3x3_taps(w_c):
    # Conv2d weight (Cout, Cin, 3, 3) -> conv taps (3, 3, Cin, Cout)
    return w_c.transpose(2, 3, 1, 0)


# --------------------------------------------------------------------------
# Model forward (NCHW in / NCHW out, matching the PyTorch module)
# --------------------------------------------------------------------------

def res_block_decode(x, p, cfg):
    k, resize = cfg
    if k == 2:
        # conv1 + LN1 + ReLU (-> h) and conv1 + LN3 (-> skip), one fused kernel
        h, skip = deconv2x2_ln_fused(x, p["w1"], p["b1"], p["ln1_g"],
                                     p["ln1_b"], p["ln3_g"], p["ln3_b"])
    else:
        h = conv3x3_fused(x, _convT3x3_taps(p["w1"]), p["b1"],
                          gamma=p["ln1_g"], beta=p["ln1_b"], relu=True)
        if resize:   # not hit by DecoderMoreToken's configs, kept for fidelity
            skip = conv3x3_fused(x, _convT3x3_taps(p["w1"]), p["b1"],
                                 gamma=p["ln3_g"], beta=p["ln3_b"], relu=False)
        else:
            skip = x
    # conv2 + LN2 + residual add + ReLU, one fused kernel
    return conv3x3_fused(h, _convT3x3_taps(p["w2"]), p["b2"],
                         gamma=p["ln2_g"], beta=p["ln2_b"], skip=skip)


def decoder_more_token(x_nchw, params, cfgs):
    x = jnp.transpose(x_nchw, (0, 2, 3, 1)).astype(jnp.bfloat16)  # NCHW -> NHWC
    for p, cfg in zip(params["blocks"], cfgs):
        x = res_block_decode(x, p, cfg)
    out = conv3x3_fused(x, _conv2d3x3_taps(params["out_w"]), params["out_b"],
                        out_dtype=jnp.float32)
    # TODO(synk): final nearest x2 upsample is pure data replication (XLA glue);
    # the Cout=1 out_conv store is lane-sparse but carries negligible traffic.
    out = jnp.repeat(jnp.repeat(out, 2, axis=1), 2, axis=2)
    return jnp.transpose(out, (0, 3, 1, 2))                       # NHWC -> NCHW


# --------------------------------------------------------------------------
# Deterministic parameter initialization (same shapes as the nn.Module)
# --------------------------------------------------------------------------

def _init_resblock(key, c_in, c_out, k):
    ks = jax.random.split(key, 4)
    s1 = 1.0 / math.sqrt(c_in * k * k)
    s2 = 1.0 / math.sqrt(c_out * 9)
    p = {
        "w1": jax.random.normal(ks[0], (c_in, c_out, k, k), jnp.float32) * s1,
        "b1": jax.random.normal(ks[1], (c_out,), jnp.float32) * 0.01,
        "w2": jax.random.normal(ks[2], (c_out, c_out, 3, 3), jnp.float32) * s2,
        "b2": jax.random.normal(ks[3], (c_out,), jnp.float32) * 0.01,
        "ln1_g": jnp.ones((c_out,), jnp.float32),
        "ln1_b": jnp.zeros((c_out,), jnp.float32),
        "ln2_g": jnp.ones((c_out,), jnp.float32),
        "ln2_b": jnp.zeros((c_out,), jnp.float32),
    }
    resize = (k == 2) or (c_in != c_out)
    if resize:
        p["ln3_g"] = jnp.ones((c_out,), jnp.float32)
        p["ln3_b"] = jnp.zeros((c_out,), jnp.float32)
    return p, (k, resize)


def init_params(key, dim_in):
    num_layers = int(math.log2(dim_in // 4)) // 2
    blocks, cfgs = [], []
    cur = dim_in
    keys = jax.random.split(key, 2 * num_layers + 2)
    ki = 0
    for _ in range(num_layers):
        p, c = _init_resblock(keys[ki], cur, cur // 4, 2)        # ResBlock(c, c//4, 2,2,0)
        blocks.append(p); cfgs.append(c); ki += 1
        p, c = _init_resblock(keys[ki], cur // 4, cur // 4, 3)   # ResBlock(c//4, c//4, 3,1,1)
        blocks.append(p); cfgs.append(c); ki += 1
        cur //= 4
    assert cur == 4, "decoder must end with 4 channels for out_conv"
    out_w = jax.random.normal(keys[ki], (1, 4, 3, 3), jnp.float32) / math.sqrt(36.0)
    out_b = jax.random.normal(keys[ki + 1], (1,), jnp.float32) * 0.01
    return {"blocks": blocks, "out_w": out_w, "out_b": out_b}, tuple(cfgs)


# --------------------------------------------------------------------------

if __name__ == "__main__":
    key = jax.random.PRNGKey(0)
    kx, kp = jax.random.split(key)

    dim_in = 64            # small analogue of the default 4096 (-> 2 decoder stages)
    N, H, W = 2, 2, 2
    x = jax.random.normal(kx, (N, dim_in, H, W), jnp.float32)   # NCHW like PyTorch

    params, cfgs = init_params(kp, dim_in)

    fwd = jax.jit(partial(decoder_more_token, cfgs=cfgs))
    out = jax.block_until_ready(fwd(x, params))

    n_stages = len(cfgs) // 2
    expected = (N, 1, H * (2 ** (n_stages + 1)), W * (2 ** (n_stages + 1)))
    assert out.shape == expected, (out.shape, expected)
    assert out.dtype == jnp.float32
    assert bool(jnp.all(jnp.isfinite(out)))
    print("KERNEL_OK")
</pallas_src>

<mosaic_0001>
module attributes {stable_mosaic.version = 11 : i64} {
  func.func @_deconv2x2_fused_kernel(%arg0: i32, %arg1: i32, %arg2: memref<4x2x64xbf16, #tpu.memory_space<vmem>>, %arg3: memref<4x64x16xbf16, #tpu.memory_space<vmem>>, %arg4: memref<1x16xf32, #tpu.memory_space<vmem>>, %arg5: memref<1x16xf32, #tpu.memory_space<vmem>>, %arg6: memref<1x16xf32, #tpu.memory_space<vmem>>, %arg7: memref<1x16xf32, #tpu.memory_space<vmem>>, %arg8: memref<1x16xf32, #tpu.memory_space<vmem>>, %arg9: memref<4x2x2x32xbf16, #tpu.memory_space<vmem>>, %arg10: memref<4x2x2x32xbf16, #tpu.memory_space<vmem>>, %arg11: memref<4x8x16xf32, #tpu.memory_space<vmem>>) attributes {dimension_semantics = [#tpu.dimension_semantics<parallel>, #tpu.dimension_semantics<arbitrary>], iteration_bounds = array<i64: 1, 1>, scalar_prefetch = 0 : i64, scratch_operands = 1 : i64, tpu.core_type = #tpu.core_type<tc>, window_params = [{transform_indices = @transform_0, window_bounds = array<i64: 4, 2, 64>}, {transform_indices = @transform_1, window_bounds = array<i64: 4, 64, 16>}, {pipeline_mode = #tpu.pipeline_mode<synchronous>, transform_indices = @transform_2, window_bounds = array<i64: 1, 16>}, {pipeline_mode = #tpu.pipeline_mode<synchronous>, transform_indices = @transform_3, window_bounds = array<i64: 1, 16>}, {pipeline_mode = #tpu.pipeline_mode<synchronous>, transform_indices = @transform_4, window_bounds = array<i64: 1, 16>}, {pipeline_mode = #tpu.pipeline_mode<synchronous>, transform_indices = @transform_5, window_bounds = array<i64: 1, 16>}, {pipeline_mode = #tpu.pipeline_mode<synchronous>, transform_indices = @transform_6, window_bounds = array<i64: 1, 16>}, {transform_indices = @transform_7, window_bounds = array<i64: 4, 2, 2, 32>}, {transform_indices = @transform_8, window_bounds = array<i64: 4, 2, 2, 32>}]} {
    %c0_i32 = arith.constant 0 : i32
    %0 = arith.cmpi eq, %arg1, %c0_i32 : i32
    %1 = arith.extui %0 : i1 to i32
    %c0_i32_0 = arith.constant 0 : i32
    %2 = arith.cmpi ne, %1, %c0_i32_0 : i32
    scf.if %2 {
      %cst_41 = arith.constant 0.000000e+00 : f32
      %44 = vector.broadcast %cst_41 : f32 to vector<4x8x16xf32>
      %c0_42 = arith.constant 0 : index
      %c0_43 = arith.constant 0 : index
      %c0_44 = arith.constant 0 : index
      %45 = vector.load %arg11[%c0_42, %c0_43, %c0_44] : memref<4x8x16xf32, #tpu.memory_space<vmem>>, vector<4x8x16xf32>
      tpu.vector_store %arg11[%c0_42, %c0_43, %c0_44], %44 {strides = array<i32>} : memref<4x8x16xf32, #tpu.memory_space<vmem>>, vector<4x8x16xf32>,
    } else {
    }
    %c0 = arith.constant 0 : index
    %c0_1 = arith.constant 0 : index
    %c0_2 = arith.constant 0 : index
    %3 = vector.load %arg2[%c0, %c0_1, %c0_2] : memref<4x2x64xbf16, #tpu.memory_space<vmem>>, vector<4x2x64xbf16>
    %4 = vector.shape_cast %3 : vector<4x2x64xbf16> to vector<8x64xbf16>
    %c0_3 = arith.constant 0 : index
    %c0_4 = arith.constant 0 : index
    %c0_5 = arith.constant 0 : index
    %5 = vector.load %arg11[%c0_3, %c0_4, %c0_5] : memref<4x8x16xf32, #tpu.memory_space<vmem>>, vector<1x8x16xf32>
    %6 = vector.shape_cast %5 : vector<1x8x16xf32> to vector<8x16xf32>
    %c0_6 = arith.constant 0 : index
    %c0_7 = arith.constant 0 : index
    %c0_8 = arith.constant 0 : index
    %7 = vector.load %arg3[%c0_6, %c0_7, %c0_8] : memref<4x64x16xbf16, #tpu.memory_space<vmem>>, vector<1x64x16xbf16>
    %8 = vector.shape_cast %7 : vector<1x64x16xbf16> to vector<64x16xbf16>
    %cst = arith.constant dense<0.000000e+00> : vector<8x16xf32>
    %9 = tpu.matmul %4, %8, %cst {dimension_numbers = #tpu.dot_dimension_numbers<[1], [0], [0], [1], [0, 0, 1, 1], [], []>} : vector<8x64xbf16>, vector<64x16xbf16>, vector<8x16xf32> -> vector<8x16xf32>
    %10 = arith.addf %6, %9 : vector<8x16xf32>
    %c0_9 = arith.constant 0 : index
    %c0_10 = arith.constant 0 : index
    %c0_11 = arith.constant 0 : index
    %11 = vector.load %arg11[%c0_9, %c0_10, %c0_11] : memref<4x8x16xf32, #tpu.memory_space<vmem>>, vector<1x8x16xf32>
    %12 = vector.shape_cast %11 : vector<1x8x16xf32> to vector<8x16xf32>
    %13 = vector.shape_cast %10 : vector<8x16xf32> to vector<1x8x16xf32>
    tpu.vector_store %arg11[%c0_9, %c0_10, %c0_11], %13 {strides = array<i32>} : memref<4x8x16xf32, #tpu.memory_space<vmem>>, vector<1x8x16xf32>,
    %c1 = arith.constant 1 : index
    %c0_12 = arith.constant 0 : index
    %c0_13 = arith.constant 0 : index
    %14 = vector.load %arg11[%c1, %c0_12, %c0_13] : memref<4x8x16xf32, #tpu.memory_space<vmem>>, vector<1x8x16xf32>
    %15 = vector.shape_cast %14 : vector<1x8x16xf32> to vector<8x16xf32>
    %c1_14 = arith.constant 1 : index
    %c0_15 = arith.constant 0 : index
    %c0_16 = arith.constant 0 : index
    %16 = vector.load %arg3[%c1_14, %c0_15, %c0_16] : memref<4x64x16xbf16, #tpu.memory_space<vmem>>, vector<1x64x16xbf16>
    %17 = vector.shape_cast %16 : vector<1x64x16xbf16> to vector<64x16xbf16>
    %cst_17 = arith.constant dense<0.000000e+00> : vector<8x16xf32>
    %18 = tpu.matmul %4, %17, %cst_17 {dimension_numbers = #tpu.dot_dimension_numbers<[1], [0], [0], [1], [0, 0, 1, 1], [], []>} : vector<8x64xbf16>, vector<64x16xbf16>, vector<8x16xf32> -> vector<8x16xf32>
    %19 = arith.addf %15, %18 : vector<8x16xf32>
    %c1_18 = arith.constant 1 : index
    %c0_19 = arith.constant 0 : index
    %c0_20 = arith.constant 0 : index
    %20 = vector.load %arg11[%c1_18, %c0_19, %c0_20] : memref<4x8x16xf32, #tpu.memory_space<vmem>>, vector<1x8x16xf32>
    %21 = vector.shape_cast %20 : vector<1x8x16xf32> to vector<8x16xf32>
    %22 = vector.shape_cast %19 : vector<8x16xf32> to vector<1x8x16xf32>
    tpu.vector_store %arg11[%c1_18, %c0_19, %c0_20], %22 {strides = array<i32>} : memref<4x8x16xf32, #tpu.memory_space<vmem>>, vector<1x8x16xf32>,
    %c2 = arith.constant 2 : index
    %c0_21 = arith.constant 0 : index
    %c0_22 = arith.constant 0 : index
    %23 = vector.load %arg11[%c2, %c0_21, %c0_22] : memref<4x8x16xf32, #tpu.memory_space<vmem>>, vector<1x8x16xf32>
    %24 = vector.shape_cast %23 : vector<1x8x16xf32> to vector<8x16xf32>
    %c2_23 = arith.constant 2 : index
    %c0_24 = arith.constant 0 : index
    %c0_25 = arith.constant 0 : index
    %25 = vector.load %arg3[%c2_23, %c0_24, %c0_25] : memref<4x64x16xbf16, #tpu.memory_space<vmem>>, vector<1x64x16xbf16>
    %26 = vector.shape_cast %25 : vector<1x64x16xbf16> to vector<64x16xbf16>
    %cst_26 = arith.constant dense<0.000000e+00> : vector<8x16xf32>
    %27 = tpu.matmul %4, %26, %cst_26 {dimension_numbers = #tpu.dot_dimension_numbers<[1], [0], [0], [1], [0, 0, 1, 1], [], []>} : vector<8x64xbf16>, vector<64x16xbf16>, vector<8x16xf32> -> vector<8x16xf32>
    %28 = arith.addf %24, %27 : vector<8x16xf32>
    %c2_27 = arith.constant 2 : index
    %c0_28 = arith.constant 0 : index
    %c0_29 = arith.constant 0 : index
    %29 = vector.load %arg11[%c2_27, %c0_28, %c0_29] : memref<4x8x16xf32, #tpu.memory_space<vmem>>, vector<1x8x16xf32>
    %30 = vector.shape_cast %29 : vector<1x8x16xf32> to vector<8x16xf32>
    %31 = vector.shape_cast %28 : vector<8x16xf32> to vector<1x8x16xf32>
    tpu.vector_store %arg11[%c2_27, %c0_28, %c0_29], %31 {strides = array<i32>} : memref<4x8x16xf32, #tpu.memory_space<vmem>>, vector<1x8x16xf32>,
    %c3 = arith.constant 3 : index
    %c0_30 = arith.constant 0 : index
    %c0_31 = arith.constant 0 : index
    %32 = vector.load %arg11[%c3, %c0_30, %c0_31] : memref<4x8x16xf32, #tpu.memory_space<vmem>>, vector<1x8x16xf32>
    %33 = vector.shape_cast %32 : vector<1x8x16xf32> to vector<8x16xf32>
    %c3_32 = arith.constant 3 : index
    %c0_33 = arith.constant 0 : index
    %c0_34 = arith.constant 0 : index
    %34 = vector.load %arg3[%c3_32, %c0_33, %c0_34] : memref<4x64x16xbf16, #tpu.memory_space<vmem>>, vector<1x64x16xbf16>
    %35 = vector.shape_cast %34 : vector<1x64x16xbf16> to vector<64x16xbf16>
    %cst_35 = arith.constant dense<0.000000e+00> : vector<8x16xf32>
    %36 = tpu.matmul %4, %35, %cst_35 {dimension_numbers = #tpu.dot_dimension_numbers<[1], [0], [0], [1], [0, 0, 1, 1], [], []>} : vector<8x64xbf16>, vector<64x16xbf16>, vector<8x16xf32> -> vector<8x16xf32>
    %37 = arith.addf %33, %36 : vector<8x16xf32>
    %c3_36 = arith.constant 3 : index
    %c0_37 = arith.constant 0 : index
    %c0_38 = arith.constant 0 : index
    %38 = vector.load %arg11[%c3_36, %c0_37, %c0_38] : memref<4x8x16xf32, #tpu.memory_space<vmem>>, vector<1x8x16xf32>
    %39 = vector.shape_cast %38 : vector<1x8x16xf32> to vector<8x16xf32>
    %40 = vector.shape_cast %37 : vector<8x16xf32> to vector<1x8x16xf32>
    tpu.vector_store %arg11[%c3_36, %c0_37, %c0_38], %40 {strides = array<i32>} : memref<4x8x16xf32, #tpu.memory_space<vmem>>, vector<1x8x16xf32>,
    %c0_i32_39 = arith.constant 0 : i32
    %41 = arith.cmpi eq, %arg1, %c0_i32_39 : i32
    %42 = arith.extui %41 : i1 to i32
    %c0_i32_40 = arith.constant 0 : i32
    %43 = arith.cmpi ne, %42, %c0_i32_40 : i32
    scf.if %43 {
      %c0_41 = arith.constant 0 : index
      %c0_42 = arith.constant 0 : index
      %44 = vector.load %arg4[%c0_41, %c0_42] : memref<1x16xf32, #tpu.memory_space<vmem>>, vector<1x16xf32>
      %c0_43 = arith.constant 0 : index
      %c0_44 = arith.constant 0 : index
      %45 = vector.load %arg5[%c0_43, %c0_44] : memref<1x16xf32, #tpu.memory_space<vmem>>, vector<1x16xf32>
      %c0_45 = arith.constant 0 : index
      %c0_46 = arith.constant 0 : index
      %46 = vector.load %arg6[%c0_45, %c0_46] : memref<1x16xf32, #tpu.memory_space<vmem>>, vector<1x16xf32>
      %c0_47 = arith.constant 0 : index
      %c0_48 = arith.constant 0 : index
      %47 = vector.load %arg7[%c0_47, %c0_48] : memref<1x16xf32, #tpu.memory_space<vmem>>, vector<1x16xf32>
      %c0_49 = arith.constant 0 : index
      %c0_50 = arith.constant 0 : index
      %48 = vector.load %arg8[%c0_49, %c0_50] : memref<1x16xf32, #tpu.memory_space<vmem>>, vector<1x16xf32>
      %c0_51 = arith.constant 0 : index
      %c0_52 = arith.constant 0 : index
      %c0_53 = arith.constant 0 : index
      %49 = vector.load %arg11[%c0_51, %c0_52, %c0_53] : memref<4x8x16xf32, #tpu.memory_space<vmem>>, vector<1x8x16xf32>
      %50 = vector.shape_cast %49 : vector<1x8x16xf32> to vector<8x16xf32>
      %51 = vector.broadcast %44 : vector<1x16xf32> to vector<8x16xf32>
      %52 = arith.addf %50, %51 : vector<8x16xf32>
      %cst_54 = arith.constant dense<0.000000e+00> : vector<8xf32>
      %53 = vector.multi_reduction <add>, %52, %cst_54 [1] : vector<8x16xf32> to vector<8xf32>
      %54 = vector.shape_cast %53 : vector<8xf32> to vector<8x1xf32>
      %cst_55 = arith.constant 1.600000e+01 : f32
      %55 = vector.broadcast %cst_55 : f32 to vector<8x1xf32>
      %56 = arith.divf %54, %55 : vector<8x1xf32>
      %57 = vector.broadcast %56 : vector<8x1xf32> to vector<8x16xf32>
      %58 = arith.subf %52, %57 : vector<8x16xf32>
      %59 = arith.mulf %58, %58 : vector<8x16xf32>
      %cst_56 = arith.constant dense<0.000000e+00> : vector<8xf32>
      %60 = vector.multi_reduction <add>, %59, %cst_56 [1] : vector<8x16xf32> to vector<8xf32>
      %61 = vector.shape_cast %60 : vector<8xf32> to vector<8x1xf32>
      %cst_57 = arith.constant 1.600000e+01 : f32
      %62 = vector.broadcast %cst_57 : f32 to vector<8x1xf32>
      %63 = arith.divf %61, %62 : vector<8x1xf32>
      %cst_58 = arith.constant 9.99999997E-7 : f32
      %64 = vector.broadcast %cst_58 : f32 to vector<8x1xf32>
      %65 = arith.addf %63, %64 : vector<8x1xf32>
      %66 = math.rsqrt %65 : vector<8x1xf32>
      %67 = vector.broadcast %66 : vector<8x1xf32> to vector<8x16xf32>
      %68 = arith.mulf %58, %67 : vector<8x16xf32>
      %69 = vector.broadcast %45 : vector<1x16xf32> to vector<8x16xf32>
      %70 = arith.mulf %68, %69 : vector<8x16xf32>
      %71 = vector.broadcast %46 : vector<1x16xf32> to vector<8x16xf32>
      %72 = arith.addf %70, %71 : vector<8x16xf32>
      %cst_59 = arith.constant 0.000000e+00 : f32
      %73 = vector.broadcast %cst_59 : f32 to vector<8x16xf32>
      %74 = arith.maximumf %72, %73 : vector<8x16xf32>
      %75 = vector.broadcast %66 : vector<8x1xf32> to vector<8x16xf32>
      %76 = arith.mulf %58, %75 : vector<8x16xf32>
      %77 = vector.broadcast %47 : vector<1x16xf32> to vector<8x16xf32>
      %78 = arith.mulf %76, %77 : vector<8x16xf32>
      %79 = vector.broadcast %48 : vector<1x16xf32> to vector<8x16xf32>
      %80 = arith.addf %78, %79 : vector<8x16xf32>
      %c1_60 = arith.constant 1 : index
      %c0_61 = arith.constant 0 : index
      %c0_62 = arith.constant 0 : index
      %81 = vector.load %arg11[%c1_60, %c0_61, %c0_62] : memref<4x8x16xf32, #tpu.memory_space<vmem>>, vector<1x8x16xf32>
      %82 = vector.shape_cast %81 : vector<1x8x16xf32> to vector<8x16xf32>
      %83 = vector.broadcast %44 : vector<1x16xf32> to vector<8x16xf32>
      %84 = arith.addf %82, %83 : vector<8x16xf32>
      %cst_63 = arith.constant dense<0.000000e+00> : vector<8xf32>
      %85 = vector.multi_reduction <add>, %84, %cst_63 [1] : vector<8x16xf32> to vector<8xf32>
      %86 = vector.shape_cast %85 : vector<8xf32> to vector<8x1xf32>
      %cst_64 = arith.constant 1.600000e+01 : f32
      %87 = vector.broadcast %cst_64 : f32 to vector<8x1xf32>
      %88 = arith.divf %86, %87 : vector<8x1xf32>
      %89 = vector.broadcast %88 : vector<8x1xf32> to vector<8x16xf32>
      %90 = arith.subf %84, %89 : vector<8x16xf32>
      %91 = arith.mulf %90, %90 : vector<8x16xf32>
      %cst_65 = arith.constant dense<0.000000e+00> : vector<8xf32>
      %92 = vector.multi_reduction <add>, %91, %cst_65 [1] : vector<8x16xf32> to vector<8xf32>
      %93 = vector.shape_cast %92 : vector<8xf32> to vector<8x1xf32>
      %cst_66 = arith.constant 1.600000e+01 : f32
      %94 = vector.broadcast %cst_66 : f32 to vector<8x1xf32>
      %95 = arith.divf %93, %94 : vector<8x1xf32>
      %cst_67 = arith.constant 9.99999997E-7 : f32
      %96 = vector.broadcast %cst_67 : f32 to vector<8x1xf32>
      %97 = arith.addf %95, %96 : vector<8x1xf32>
      %98 = math.rsqrt %97 : vector<8x1xf32>
      %99 = vector.broadcast %98 : vector<8x1xf32> to vector<8x16xf32>
      %100 = arith.mulf %90, %99 : vector<8x16xf32>
      %101 = vector.broadcast %45 : vector<1x16xf32> to vector<8x16xf32>
      %102 = arith.mulf %100, %101 : vector<8x16xf32>
      %103 = vector.broadcast %46 : vector<1x16xf32> to vector<8x16xf32>
      %104 = arith.addf %102, %103 : vector<8x16xf32>
      %cst_68 = arith.constant 0.000000e+00 : f32
      %105 = vector.broadcast %cst_68 : f32 to vector<8x16xf32>
      %106 = arith.maximumf %104, %105 : vector<8x16xf32>
      %107 = vector.broadcast %98 : vector<8x1xf32> to vector<8x16xf32>
      %108 = arith.mulf %90, %107 : vector<8x16xf32>
      %109 = vector.broadcast %47 : vector<1x16xf32> to vector<8x16xf32>
      %110 = arith.mulf %108, %109 : vector<8x16xf32>
      %111 = vector.broadcast %48 : vector<1x16xf32> to vector<8x16xf32>
      %112 = arith.addf %110, %111 : vector<8x16xf32>
      %113 = tpu.concatenate %74, %106 in 1 : vector<8x16xf32>, vector<8x16xf32> -> vector<8x32xf32>
      %114 = vector.shape_cast %113 : vector<8x32xf32> to vector<4x2x32xf32>
      %115 = tpu.concatenate %80, %112 in 1 : vector<8x16xf32>, vector<8x16xf32> -> vector<8x32xf32>
      %116 = vector.shape_cast %115 : vector<8x32xf32> to vector<4x2x32xf32>
      %117 = arith.truncf %114 : vector<4x2x32xf32> to vector<4x2x32xbf16>
      %c0_69 = arith.constant 0 : index
      %c0_70 = arith.constant 0 : index
      %c0_71 = arith.constant 0 : index
      %c0_72 = arith.constant 0 : index
      %118 = vector.load %arg9[%c0_69, %c0_70, %c0_71, %c0_72] : memref<4x2x2x32xbf16, #tpu.memory_space<vmem>>, vector<4x1x2x32xbf16>
      %119 = vector.shape_cast %118 : vector<4x1x2x32xbf16> to vector<4x2x32xbf16>
      %120 = vector.shape_cast %117 : vector<4x2x32xbf16> to vector<4x1x2x32xbf16>
      tpu.vector_store %arg9[%c0_69, %c0_70, %c0_71, %c0_72], %120 {strides = array<i32>} : memref<4x2x2x32xbf16, #tpu.memory_space<vmem>>, vector<4x1x2x32xbf16>,
      %121 = arith.truncf %116 : vector<4x2x32xf32> to vector<4x2x32xbf16>
      %c0_73 = arith.constant 0 : index
      %c0_74 = arith.constant 0 : index
      %c0_75 = arith.constant 0 : index
      %c0_76 = arith.constant 0 : index
      %122 = vector.load %arg10[%c0_73, %c0_74, %c0_75, %c0_76] : memref<4x2x2x32xbf16, #tpu.memory_space<vmem>>, vector<4x1x2x32xbf16>
      %123 = vector.shape_cast %122 : vector<4x1x2x32xbf16> to vector<4x2x32xbf16>
      %124 = vector.shape_cast %121 : vector<4x2x32xbf16> to vector<4x1x2x32xbf16>
      tpu.vector_store %arg10[%c0_73, %c0_74, %c0_75, %c0_76], %124 {strides = array<i32>} : memref<4x2x2x32xbf16, #tpu.memory_space<vmem>>, vector<4x1x2x32xbf16>,
      %c2_77 = arith.constant 2 : index
      %c0_78 = arith.constant 0 : index
      %c0_79 = arith.constant 0 : index
      %125 = vector.load %arg11[%c2_77, %c0_78, %c0_79] : memref<4x8x16xf32, #tpu.memory_space<vmem>>, vector<1x8x16xf32>
      %126 = vector.shape_cast %125 : vector<1x8x16xf32> to vector<8x16xf32>
      %127 = vector.broadcast %44 : vector<1x16xf32> to vector<8x16xf32>
      %128 = arith.addf %126, %127 : vector<8x16xf32>
      %cst_80 = arith.constant dense<0.000000e+00> : vector<8xf32>
      %129 = vector.multi_reduction <add>, %128, %cst_80 [1] : vector<8x16xf32> to vector<8xf32>
      %130 = vector.shape_cast %129 : vector<8xf32> to vector<8x1xf32>
      %cst_81 = arith.constant 1.600000e+01 : f32
      %131 = vector.broadcast %cst_81 : f32 to vector<8x1xf32>
      %132 = arith.divf %130, %131 : vector<8x1xf32>
      %133 = vector.broadcast %132 : vector<8x1xf32> to vector<8x16xf32>
      %134 = arith.subf %128, %133 : vector<8x16xf32>
      %135 = arith.mulf %134, %134 : vector<8x16xf32>
      %cst_82 = arith.constant dense<0.000000e+00> : vector<8xf32>
      %136 = vector.multi_reduction <add>, %135, %cst_82 [1] : vector<8x16xf32> to vector<8xf32>
      %137 = vector.shape_cast %136 : vector<8xf32> to vector<8x1xf32>
      %cst_83 = arith.constant 1.600000e+01 : f32
      %138 = vector.broadcast %cst_83 : f32 to vector<8x1xf32>
      %139 = arith.divf %137, %138 : vector<8x1xf32>
      %cst_84 = arith.constant 9.99999997E-7 : f32
      %140 = vector.broadcast %cst_84 : f32 to vector<8x1xf32>
      %141 = arith.addf %139, %140 : vector<8x1xf32>
      %142 = math.rsqrt %141 : vector<8x1xf32>
      %143 = vector.broadcast %142 : vector<8x1xf32> to vector<8x16xf32>
      %144 = arith.mulf %134, %143 : vector<8x16xf32>
      %145 = vector.broadcast %45 : vector<1x16xf32> to vector<8x16xf32>
      %146 = arith.mulf %144, %145 : vector<8x16xf32>
      %147 = vector.broadcast %46 : vector<1x16xf32> to vector<8x16xf32>
      %148 = arith.addf %146, %147 : vector<8x16xf32>
      %cst_85 = arith.constant 0.000000e+00 : f32
      %149 = vector.broadcast %cst_85 : f32 to vector<8x16xf32>
      %150 = arith.maximumf %148, %149 : vector<8x16xf32>
      %151 = vector.broadcast %142 : vector<8x1xf32> to vector<8x16xf32>
      %152 = arith.mulf %134, %151 : vector<8x16xf32>
      %153 = vector.broadcast %47 : vector<1x16xf32> to vector<8x16xf32>
      %154 = arith.mulf %152, %153 : vector<8x16xf32>
      %155 = vector.broadcast %48 : vector<1x16xf32> to vector<8x16xf32>
      %156 = arith.addf %154, %155 : vector<8x16xf32>
      %c3_86 = arith.constant 3 : index
      %c0_87 = arith.constant 0 : index
      %c0_88 = arith.constant 0 : index
      %157 = vector.load %arg11[%c3_86, %c0_87, %c0_88] : memref<4x8x16xf32, #tpu.memory_space<vmem>>, vector<1x8x16xf32>
      %158 = vector.shape_cast %157 : vector<1x8x16xf32> to vector<8x16xf32>
      %159 = vector.broadcast %44 : vector<1x16xf32> to vector<8x16xf32>
      %160 = arith.addf %158, %159 : vector<8x16xf32>
      %cst_89 = arith.constant dense<0.000000e+00> : vector<8xf32>
      %161 = vector.multi_reduction <add>, %160, %cst_89 [1] : vector<8x16xf32> to vector<8xf32>
      %162 = vector.shape_cast %161 : vector<8xf32> to vector<8x1xf32>
      %cst_90 = arith.constant 1.600000e+01 : f32
      %163 = vector.broadcast %cst_90 : f32 to vector<8x1xf32>
      %164 = arith.divf %162, %163 : vector<8x1xf32>
      %165 = vector.broadcast %164 : vector<8x1xf32> to vector<8x16xf32>
      %166 = arith.subf %160, %165 : vector<8x16xf32>
      %167 = arith.mulf %166, %166 : vector<8x16xf32>
      %cst_91 = arith.constant dense<0.000000e+00> : vector<8xf32>
      %168 = vector.multi_reduction <add>, %167, %cst_91 [1] : vector<8x16xf32> to vector<8xf32>
      %169 = vector.shape_cast %168 : vector<8xf32> to vector<8x1xf32>
      %cst_92 = arith.constant 1.600000e+01 : f32
      %170 = vector.broadcast %cst_92 : f32 to vector<8x1xf32>
      %171 = arith.divf %169, %170 : vector<8x1xf32>
      %cst_93 = arith.constant 9.99999997E-7 : f32
      %172 = vector.broadcast %cst_93 : f32 to vector<8x1xf32>
      %173 = arith.addf %171, %172 : vector<8x1xf32>
      %174 = math.rsqrt %173 : vector<8x1xf32>
      %175 = vector.broadcast %174 : vector<8x1xf32> to vector<8x16xf32>
      %176 = arith.mulf %166, %175 : vector<8x16xf32>
      %177 = vector.broadcast %45 : vector<1x16xf32> to vector<8x16xf32>
      %178 = arith.mulf %176, %177 : vector<8x16xf32>
      %179 = vector.broadcast %46 : vector<1x16xf32> to vector<8x16xf32>
      %180 = arith.addf %178, %179 : vector<8x16xf32>
      %cst_94 = arith.constant 0.000000e+00 : f32
      %181 = vector.broadcast %cst_94 : f32 to vector<8x16xf32>
      %182 = arith.maximumf %180, %181 : vector<8x16xf32>
      %183 = vector.broadcast %174 : vector<8x1xf32> to vector<8x16xf32>
      %184 = arith.mulf %166, %183 : vector<8x16xf32>
      %185 = vector.broadcast %47 : vector<1x16xf32> to vector<8x16xf32>
      %186 = arith.mulf %184, %185 : vector<8x16xf32>
      %187 = vector.broadcast %48 : vector<1x16xf32> to vector<8x16xf32>
      %188 = arith.addf %186, %187 : vector<8x16xf32>
      %189 = tpu.concatenate %150, %182 in 1 : vector<8x16xf32>, vector<8x16xf32> -> vector<8x32xf32>
      %190 = vector.shape_cast %189 : vector<8x32xf32> to vector<4x2x32xf32>
      %191 = tpu.concatenate %156, %188 in 1 : vector<8x16xf32>, vector<8x16xf32> -> vector<8x32xf32>
      %192 = vector.shape_cast %191 : vector<8x32xf32> to vector<4x2x32xf32>
      %193 = arith.truncf %190 : vector<4x2x32xf32> to vector<4x2x32xbf16>
      %c0_95 = arith.constant 0 : index
      %c1_96 = arith.constant 1 : index
      %c0_97 = arith.constant 0 : index
      %c0_98 = arith.constant 0 : index
      %194 = vector.load %arg9[%c0_95, %c1_96, %c0_97, %c0_98] : memref<4x2x2x32xbf16, #tpu.memory_space<vmem>>, vector<4x1x2x32xbf16>
      %195 = vector.shape_cast %194 : vector<4x1x2x32xbf16> to vector<4x2x32xbf16>
      %196 = vector.shape_cast %193 : vector<4x2x32xbf16> to vector<4x1x2x32xbf16>
      tpu.vector_store %arg9[%c0_95, %c1_96, %c0_97, %c0_98], %196 {strides = array<i32>} : memref<4x2x2x32xbf16, #tpu.memory_space<vmem>>, vector<4x1x2x32xbf16>,
      %197 = arith.truncf %192 : vector<4x2x32xf32> to vector<4x2x32xbf16>
      %c0_99 = arith.constant 0 : index
      %c1_100 = arith.constant 1 : index
      %c0_101 = arith.constant 0 : index
      %c0_102 = arith.constant 0 : index
      %198 = vector.load %arg10[%c0_99, %c1_100, %c0_101, %c0_102] : memref<4x2x2x32xbf16, #tpu.memory_space<vmem>>, vector<4x1x2x32xbf16>
      %199 = vector.shape_cast %198 : vector<4x1x2x32xbf16> to vector<4x2x32xbf16>
      %200 = vector.shape_cast %197 : vector<4x2x32xbf16> to vector<4x1x2x32xbf16>
      tpu.vector_store %arg10[%c0_99, %c1_100, %c0_101, %c0_102], %200 {strides = array<i32>} : memref<4x2x2x32xbf16, #tpu.memory_space<vmem>>, vector<4x1x2x32xbf16>,
    } else {
    }
    return
  }
  func.func @transform_0(%arg0: i32, %arg1: i32) -> (i32, i32, i32) {
    %c0_i32 = arith.constant 0 : i32
    %c0_i32_0 = arith.constant 0 : i32
    return %arg0, %c0_i32, %arg1 : i32, i32, i32
  }
  func.func @transform_1(%arg0: i32, %arg1: i32) -> (i32, i32, i32) {
    %c0_i32 = arith.constant 0 : i32
    %c0_i32_0 = arith.constant 0 : i32
    %c0_i32_1 = arith.constant 0 : i32
    return %c0_i32, %arg1, %c0_i32_0 : i32, i32, i32
  }
  func.func @transform_2(%arg0: i32, %arg1: i32) -> (i32, i32) {
    %c0_i32 = arith.constant 0 : i32
    %c0_i32_0 = arith.constant 0 : i32
    %c0_i32_1 = arith.constant 0 : i32
    return %c0_i32, %c0_i32_0 : i32, i32
  }
  func.func @transform_3(%arg0: i32, %arg1: i32) -> (i32, i32) {
    %c0_i32 = arith.constant 0 : i32
    %c0_i32_0 = arith.constant 0 : i32
    %c0_i32_1 = arith.constant 0 : i32
    return %c0_i32, %c0_i32_0 : i32, i32
  }
  func.func @transform_4(%arg0: i32, %arg1: i32) -> (i32, i32) {
    %c0_i32 = arith.constant 0 : i32
    %c0_i32_0 = arith.constant 0 : i32
    %c0_i32_1 = arith.constant 0 : i32
    return %c0_i32, %c0_i32_0 : i32, i32
  }
  func.func @transform_5(%arg0: i32, %arg1: i32) -> (i32, i32) {
    %c0_i32 = arith.constant 0 : i32
    %c0_i32_0 = arith.constant 0 : i32
    %c0_i32_1 = arith.constant 0 : i32
    return %c0_i32, %c0_i32_0 : i32, i32
  }
  func.func @transform_6(%arg0: i32, %arg1: i32) -> (i32, i32) {
    %c0_i32 = arith.constant 0 : i32
    %c0_i32_0 = arith.constant 0 : i32
    %c0_i32_1 = arith.constant 0 : i32
    return %c0_i32, %c0_i32_0 : i32, i32
  }
  func.func @transform_7(%arg0: i32, %arg1: i32) -> (i32, i32, i32, i32) {
    %c0_i32 = arith.constant 0 : i32
    %c0_i32_0 = arith.constant 0 : i32
    %c0_i32_1 = arith.constant 0 : i32
    %c0_i32_2 = arith.constant 0 : i32
    return %arg0, %c0_i32, %c0_i32_0, %c0_i32_1 : i32, i32, i32, i32
  }
  func.func @transform_8(%arg0: i32, %arg1: i32) -> (i32, i32, i32, i32) {
    %c0_i32 = arith.constant 0 : i32
    %c0_i32_0 = arith.constant 0 : i32
    %c0_i32_1 = arith.constant 0 : i32
    %c0_i32_2 = arith.constant 0 : i32
    return %arg0, %c0_i32, %c0_i32_0, %c0_i32_1 : i32, i32, i32, i32
  }
}

module attributes {stable_mosaic.version = 11 : i64} {
  func.func @_conv3x3_ln_add_relu_kernel(%arg0: i32, %arg1: i32, %arg2: memref<1x6x6x16xbf16, #tpu.memory_space<vmem>>, %arg3: memref<1x4x4x16xbf16, #tpu.memory_space<vmem>>, %arg4: memref<9x16x16xbf16, #tpu.memory_space<vmem>>, %arg5: memref<1x16xf32, #tpu.memory_space<vmem>>, %arg6: memref<1x16xf32, #tpu.memory_space<vmem>>, %arg7: memref<1x16xf32, #tpu.memory_space<vmem>>, %arg8: memref<1x4x4x16xbf16, #tpu.memory_space<vmem>>, %arg9: memref<16x16xf32, #tpu.memory_space<vmem>>) attributes {dimension_semantics = [#tpu.dimension_semantics<parallel>, #tpu.dimension_semantics<arbitrary>], iteration_bounds = array<i64: 2, 1>, scalar_prefetch = 0 : i64, scratch_operands = 1 : i64, tpu.core_type = #tpu.core_type<tc>, window_params = [{transform_indices = @transform_0, window_bounds = array<i64: 1, 6, 6, 16>}, {transform_indices = @transform_1, window_bounds = array<i64: 1, 4, 4, 16>}, {transform_indices = @transform_2, window_bounds = array<i64: 9, 16, 16>}, {pipeline_mode = #tpu.pipeline_mode<synchronous>, transform_indices = @transform_3, window_bounds = array<i64: 1, 16>}, {pipeline_mode = #tpu.pipeline_mode<synchronous>, transform_indices = @transform_4, window_bounds = array<i64: 1, 16>}, {pipeline_mode = #tpu.pipeline_mode<synchronous>, transform_indices = @transform_5, window_bounds = array<i64: 1, 16>}, {transform_indices = @transform_6, window_bounds = array<i64: 1, 4, 4, 16>}]} {
    %c0_i32 = arith.constant 0 : i32
    %0 = arith.cmpi eq, %arg1, %c0_i32 : i32
    %1 = arith.extui %0 : i1 to i32
    %c0_i32_0 = arith.constant 0 : i32
    %2 = arith.cmpi ne, %1, %c0_i32_0 : i32
    scf.if %2 {
      %cst_101 = arith.constant 0.000000e+00 : f32
      %87 = vector.broadcast %cst_101 : f32 to vector<16x16xf32>
      %c0_102 = arith.constant 0 : index
      %c0_103 = arith.constant 0 : index
      %88 = vector.load %arg9[%c0_102, %c0_103] : memref<16x16xf32, #tpu.memory_space<vmem>>, vector<16x16xf32>
      tpu.vector_store %arg9[%c0_102, %c0_103], %87 {strides = array<i32>} : memref<16x16xf32, #tpu.memory_space<vmem>>, vector<16x16xf32>,
    } else {
    }
    %c0 = arith.constant 0 : index
    %c0_1 = arith.constant 0 : index
    %c0_2 = arith.constant 0 : index
    %c0_3 = arith.constant 0 : index
    %3 = vector.load %arg2[%c0, %c0_1, %c0_2, %c0_3] : memref<1x6x6x16xbf16, #tpu.memory_space<vmem>>, vector<1x4x4x16xbf16>
    %4 = vector.shape_cast %3 : vector<1x4x4x16xbf16> to vector<4x4x16xbf16>
    %5 = vector.shape_cast %4 : vector<4x4x16xbf16> to vector<16x16xbf16>
    %c0_4 = arith.constant 0 : index
    %c0_5 = arith.constant 0 : index
    %6 = vector.load %arg9[%c0_4, %c0_5] : memref<16x16xf32, #tpu.memory_space<vmem>>, vector<16x16xf32>
    %c0_6 = arith.constant 0 : index
    %c0_7 = arith.constant 0 : index
    %c0_8 = arith.constant 0 : index
    %7 = vector.load %arg4[%c0_6, %c0_7, %c0_8] : memref<9x16x16xbf16, #tpu.memory_space<vmem>>, vector<1x16x16xbf16>
    %8 = vector.shape_cast %7 : vector<1x16x16xbf16> to vector<16x16xbf16>
    %cst = arith.constant dense<0.000000e+00> : vector<16x16xf32>
    %9 = tpu.matmul %5, %8, %cst {dimension_numbers = #tpu.dot_dimension_numbers<[1], [0], [0], [1], [0, 0, 1, 1], [], []>} : vector<16x16xbf16>, vector<16x16xbf16>, vector<16x16xf32> -> vector<16x16xf32>
    %10 = arith.addf %6, %9 : vector<16x16xf32>
    %c0_9 = arith.constant 0 : index
    %c0_10 = arith.constant 0 : index
    %11 = vector.load %arg9[%c0_9, %c0_10] : memref<16x16xf32, #tpu.memory_space<vmem>>, vector<16x16xf32>
    tpu.vector_store %arg9[%c0_9, %c0_10], %10 {strides = array<i32>} : memref<16x16xf32, #tpu.memory_space<vmem>>, vector<16x16xf32>,
    %c0_11 = arith.constant 0 : index
    %c0_12 = arith.constant 0 : index
    %c1 = arith.constant 1 : index
    %c0_13 = arith.constant 0 : index
    %12 = vector.load %arg2[%c0_11, %c0_12, %c1, %c0_13] : memref<1x6x6x16xbf16, #tpu.memory_space<vmem>>, vector<1x4x4x16xbf16>
    %13 = vector.shape_cast %12 : vector<1x4x4x16xbf16> to vector<4x4x16xbf16>
    %14 = vector.shape_cast %13 : vector<4x4x16xbf16> to vector<16x16xbf16>
    %c0_14 = arith.constant 0 : index
    %c0_15 = arith.constant 0 : index
    %15 = vector.load %arg9[%c0_14, %c0_15] : memref<16x16xf32, #tpu.memory_space<vmem>>, vector<16x16xf32>
    %c1_16 = arith.constant 1 : index
    %c0_17 = arith.constant 0 : index
    %c0_18 = arith.constant 0 : index
    %16 = vector.load %arg4[%c1_16, %c0_17, %c0_18] : memref<9x16x16xbf16, #tpu.memory_space<vmem>>, vector<1x16x16xbf16>
    %17 = vector.shape_cast %16 : vector<1x16x16xbf16> to vector<16x16xbf16>
    %cst_19 = arith.constant dense<0.000000e+00> : vector<16x16xf32>
    %18 = tpu.matmul %14, %17, %cst_19 {dimension_numbers = #tpu.dot_dimension_numbers<[1], [0], [0], [1], [0, 0, 1, 1], [], []>} : vector<16x16xbf16>, vector<16x16xbf16>, vector<16x16xf32> -> vector<16x16xf32>
    %19 = arith.addf %15, %18 : vector<16x16xf32>
    %c0_20 = arith.constant 0 : index
    %c0_21 = arith.constant 0 : index
    %20 = vector.load %arg9[%c0_20, %c0_21] : memref<16x16xf32, #tpu.memory_space<vmem>>, vector<16x16xf32>
    tpu.vector_store %arg9[%c0_20, %c0_21], %19 {strides = array<i32>} : memref<16x16xf32, #tpu.memory_space<vmem>>, vector<16x16xf32>,
    %c0_22 = arith.constant 0 : index
    %c0_23 = arith.constant 0 : index
    %c2 = arith.constant 2 : index
    %c0_24 = arith.constant 0 : index
    %21 = vector.load %arg2[%c0_22, %c0_23, %c2, %c0_24] : memref<1x6x6x16xbf16, #tpu.memory_space<vmem>>, vector<1x4x4x16xbf16>
    %22 = vector.shape_cast %21 : vector<1x4x4x16xbf16> to vector<4x4x16xbf16>
    %23 = vector.shape_cast %22 : vector<4x4x16xbf16> to vector<16x16xbf16>
    %c0_25 = arith.constant 0 : index
    %c0_26 = arith.constant 0 : index
    %24 = vector.load %arg9[%c0_25, %c0_26] : memref<16x16xf32, #tpu.memory_space<vmem>>, vector<16x16xf32>
    %c2_27 = arith.constant 2 : index
    %c0_28 = arith.constant 0 : index
    %c0_29 = arith.constant 0 : index
    %25 = vector.load %arg4[%c2_27, %c0_28, %c0_29] : memref<9x16x16xbf16, #tpu.memory_space<vmem>>, vector<1x16x16xbf16>
    %26 = vector.shape_cast %25 : vector<1x16x16xbf16> to vector<16x16xbf16>
    %cst_30 = arith.constant dense<0.000000e+00> : vector<16x16xf32>
    %27 = tpu.matmul %23, %26, %cst_30 {dimension_numbers = #tpu.dot_dimension_numbers<[1], [0], [0], [1], [0, 0, 1, 1], [], []>} : vector<16x16xbf16>, vector<16x16xbf16>, vector<16x16xf32> -> vector<16x16xf32>
    %28 = arith.addf %24, %27 : vector<16x16xf32>
    %c0_31 = arith.constant 0 : index
    %c0_32 = arith.constant 0 : index
    %29 = vector.load %arg9[%c0_31, %c0_32] : memref<16x16xf32, #tpu.memory_space<vmem>>, vector<16x16xf32>
    tpu.vector_store %arg9[%c0_31, %c0_32], %28 {strides = array<i32>} : memref<16x16xf32, #tpu.memory_space<vmem>>, vector<16x16xf32>,
    %c0_33 = arith.constant 0 : index
    %c1_34 = arith.constant 1 : index
    %c0_35 = arith.constant 0 : index
    %c0_36 = arith.constant 0 : index
    %30 = vector.load %arg2[%c0_33, %c1_34, %c0_35, %c0_36] : memref<1x6x6x16xbf16, #tpu.memory_space<vmem>>, vector<1x4x4x16xbf16>
    %31 = vector.shape_cast %30 : vector<1x4x4x16xbf16> to vector<4x4x16xbf16>
    %32 = vector.shape_cast %31 : vector<4x4x16xbf16> to vector<16x16xbf16>
    %c0_37 = arith.constant 0 : index
    %c0_38 = arith.constant 0 : index
    %33 = vector.load %arg9[%c0_37, %c0_38] : memref<16x16xf32, #tpu.memory_space<vmem>>, vector<16x16xf32>
    %c3 = arith.constant 3 : index
    %c0_39 = arith.constant 0 : index
    %c0_40 = arith.constant 0 : index
    %34 = vector.load %arg4[%c3, %c0_39, %c0_40] : memref<9x16x16xbf16, #tpu.memory_space<vmem>>, vector<1x16x16xbf16>
    %35 = vector.shape_cast %34 : vector<1x16x16xbf16> to vector<16x16xbf16>
    %cst_41 = arith.constant dense<0.000000e+00> : vector<16x16xf32>
    %36 = tpu.matmul %32, %35, %cst_41 {dimension_numbers = #tpu.dot_dimension_numbers<[1], [0], [0], [1], [0, 0, 1, 1], [], []>} : vector<16x16xbf16>, vector<16x16xbf16>, vector<16x16xf32> -> vector<16x16xf32>
    %37 = arith.addf %33, %36 : vector<16x16xf32>
    %c0_42 = arith.constant 0 : index
    %c0_43 = arith.constant 0 : index
    %38 = vector.load %arg9[%c0_42, %c0_43] : memref<16x16xf32, #tpu.memory_space<vmem>>, vector<16x16xf32>
    tpu.vector_store %arg9[%c0_42, %c0_43], %37 {strides = array<i32>} : memref<16x16xf32, #tpu.memory_space<vmem>>, vector<16x16xf32>,
    %c0_44 = arith.constant 0 : index
    %c1_45 = arith.constant 1 : index
    %c1_46 = arith.constant 1 : index
    %c0_47 = arith.constant 0 : index
    %39 = vector.load %arg2[%c0_44, %c1_45, %c1_46, %c0_47] : memref<1x6x6x16xbf16, #tpu.memory_space<vmem>>, vector<1x4x4x16xbf16>
    %40 = vector.shape_cast %39 : vector<1x4x4x16xbf16> to vector<4x4x16xbf16>
    %41 = vector.shape_cast %40 : vector<4x4x16xbf16> to vector<16x16xbf16>
    %c0_48 = arith.constant 0 : index
    %c0_49 = arith.constant 0 : index
    %42 = vector.load %arg9[%c0_48, %c0_49] : memref<16x16xf32, #tpu.memory_space<vmem>>, vector<16x16xf32>
    %c4 = arith.constant 4 : index
    %c0_50 = arith.constant 0 : index
    %c0_51 = arith.constant 0 : index
    %43 = vector.load %arg4[%c4, %c0_50, %c0_51] : memref<9x16x16xbf16, #tpu.memory_space<vmem>>, vector<1x16x16xbf16>
    %44 = vector.shape_cast %43 : vector<1x16x16xbf16> to vector<16x16xbf16>
    %cst_52 = arith.constant dense<0.000000e+00> : vector<16x16xf32>
    %45 = tpu.matmul %41, %44, %cst_52 {dimension_numbers = #tpu.dot_dimension_numbers<[1], [0], [0], [1], [0, 0, 1, 1], [], []>} : vector<16x16xbf16>, vector<16x16xbf16>, vector<16x16xf32> -> vector<16x16xf32>
    %46 = arith.addf %42, %45 : vector<16x16xf32>
    %c0_53 = arith.constant 0 : index
    %c0_54 = arith.constant 0 : index
    %47 = vector.load %arg9[%c0_53, %c0_54] : memref<16x16xf32, #tpu.memory_space<vmem>>, vector<16x16xf32>
    tpu.vector_store %arg9[%c0_53, %c0_54], %46 {strides = array<i32>} : memref<16x16xf32, #tpu.memory_space<vmem>>, vector<16x16xf32>,
    %c0_55 = arith.constant 0 : index
    %c1_56 = arith.constant 1 : index
    %c2_57 = arith.constant 2 : index
    %c0_58 = arith.constant 0 : index
    %48 = vector.load %arg2[%c0_55, %c1_56, %c2_57, %c0_58] : memref<1x6x6x16xbf16, #tpu.memory_space<vmem>>, vector<1x4x4x16xbf16>
    %49 = vector.shape_cast %48 : vector<1x4x4x16xbf16> to vector<4x4x16xbf16>
    %50 = vector.shape_cast %49 : vector<4x4x16xbf16> to vector<16x16xbf16>
    %c0_59 = arith.constant 0 : index
    %c0_60 = arith.constant 0 : index
    %51 = vector.load %arg9[%c0_59, %c0_60] : memref<16x16xf32, #tpu.memory_space<vmem>>, vector<16x16xf32>
    %c5 = arith.constant 5 : index
    %c0_61 = arith.constant 0 : index
    %c0_62 = arith.constant 0 : index
    %52 = vector.load %arg4[%c5, %c0_61, %c0_62] : memref<9x16x16xbf16, #tpu.memory_space<vmem>>, vector<1x16x16xbf16>
    %53 = vector.shape_cast %52 : vector<1x16x16xbf16> to vector<16x16xbf16>
    %cst_63 = arith.constant dense<0.000000e+00> : vector<16x16xf32>
    %54 = tpu.matmul %50, %53, %cst_63 {dimension_numbers = #tpu.dot_dimension_numbers<[1], [0], [0], [1], [0, 0, 1, 1], [], []>} : vector<16x16xbf16>, vector<16x16xbf16>, vector<16x16xf32> -> vector<16x16xf32>
    %55 = arith.addf %51, %54 : vector<16x16xf32>
    %c0_64 = arith.constant 0 : index
    %c0_65 = arith.constant 0 : index
    %56 = vector.load %arg9[%c0_64, %c0_65] : memref<16x16xf32, #tpu.memory_space<vmem>>, vector<16x16xf32>
    tpu.vector_store %arg9[%c0_64, %c0_65], %55 {strides = array<i32>} : memref<16x16xf32, #tpu.memory_space<vmem>>, vector<16x16xf32>,
    %c0_66 = arith.constant 0 : index
    %c2_67 = arith.constant 2 : index
    %c0_68 = arith.constant 0 : index
    %c0_69 = arith.constant 0 : index
    %57 = vector.load %arg2[%c0_66, %c2_67, %c0_68, %c0_69] : memref<1x6x6x16xbf16, #tpu.memory_space<vmem>>, vector<1x4x4x16xbf16>
    %58 = vector.shape_cast %57 : vector<1x4x4x16xbf16> to vector<4x4x16xbf16>
    %59 = vector.shape_cast %58 : vector<4x4x16xbf16> to vector<16x16xbf16>
    %c0_70 = arith.constant 0 : index
    %c0_71 = arith.constant 0 : index
    %60 = vector.load %arg9[%c0_70, %c0_71] : memref<16x16xf32, #tpu.memory_space<vmem>>, vector<16x16xf32>
    %c6 = arith.constant 6 : index
    %c0_72 = arith.constant 0 : index
    %c0_73 = arith.constant 0 : index
    %61 = vector.load %arg4[%c6, %c0_72, %c0_73] : memref<9x16x16xbf16, #tpu.memory_space<vmem>>, vector<1x16x16xbf16>
    %62 = vector.shape_cast %61 : vector<1x16x16xbf16> to vector<16x16xbf16>
    %cst_74 = arith.constant dense<0.000000e+00> : vector<16x16xf32>
    %63 = tpu.matmul %59, %62, %cst_74 {dimension_numbers = #tpu.dot_dimension_numbers<[1], [0], [0], [1], [0, 0, 1, 1], [], []>} : vector<16x16xbf16>, vector<16x16xbf16>, vector<16x16xf32> -> vector<16x16xf32>
    %64 = arith.addf %60, %63 : vector<16x16xf32>
    %c0_75 = arith.constant 0 : index
    %c0_76 = arith.constant 0 : index
    %65 = vector.load %arg9[%c0_75, %c0_76] : memref<16x16xf32, #tpu.memory_space<vmem>>, vector<16x16xf32>
    tpu.vector_store %arg9[%c0_75, %c0_76], %64 {strides = array<i32>} : memref<16x16xf32, #tpu.memory_space<vmem>>, vector<16x16xf32>,
    %c0_77 = arith.constant 0 : index
    %c2_78 = arith.constant 2 : index
    %c1_79 = arith.constant 1 : index
    %c0_80 = arith.constant 0 : index
    %66 = vector.load %arg2[%c0_77, %c2_78, %c1_79, %c0_80] : memref<1x6x6x16xbf16, #tpu.memory_space<vmem>>, vector<1x4x4x16xbf16>
    %67 = vector.shape_cast %66 : vector<1x4x4x16xbf16> to vector<4x4x16xbf16>
    %68 = vector.shape_cast %67 : vector<4x4x16xbf16> to vector<16x16xbf16>
    %c0_81 = arith.constant 0 : index
    %c0_82 = arith.constant 0 : index
    %69 = vector.load %arg9[%c0_81, %c0_82] : memref<16x16xf32, #tpu.memory_space<vmem>>, vector<16x16xf32>
    %c7 = arith.constant 7 : index
    %c0_83 = arith.constant 0 : index
    %c0_84 = arith.constant 0 : index
    %70 = vector.load %arg4[%c7, %c0_83, %c0_84] : memref<9x16x16xbf16, #tpu.memory_space<vmem>>, vector<1x16x16xbf16>
    %71 = vector.shape_cast %70 : vector<1x16x16xbf16> to vector<16x16xbf16>
    %cst_85 = arith.constant dense<0.000000e+00> : vector<16x16xf32>
    %72 = tpu.matmul %68, %71, %cst_85 {dimension_numbers = #tpu.dot_dimension_numbers<[1], [0], [0], [1], [0, 0, 1, 1], [], []>} : vector<16x16xbf16>, vector<16x16xbf16>, vector<16x16xf32> -> vector<16x16xf32>
    %73 = arith.addf %69, %72 : vector<16x16xf32>
    %c0_86 = arith.constant 0 : index
    %c0_87 = arith.constant 0 : index
    %74 = vector.load %arg9[%c0_86, %c0_87] : memref<16x16xf32, #tpu.memory_space<vmem>>, vector<16x16xf32>
    tpu.vector_store %arg9[%c0_86, %c0_87], %73 {strides = array<i32>} : memref<16x16xf32, #tpu.memory_space<vmem>>, vector<16x16xf32>,
    %c0_88 = arith.constant 0 : index
    %c2_89 = arith.constant 2 : index
    %c2_90 = arith.constant 2 : index
    %c0_91 = arith.constant 0 : index
    %75 = vector.load %arg2[%c0_88, %c2_89, %c2_90, %c0_91] : memref<1x6x6x16xbf16, #tpu.memory_space<vmem>>, vector<1x4x4x16xbf16>
    %76 = vector.shape_cast %75 : vector<1x4x4x16xbf16> to vector<4x4x16xbf16>
    %77 = vector.shape_cast %76 : vector<4x4x16xbf16> to vector<16x16xbf16>
    %c0_92 = arith.constant 0 : index
    %c0_93 = arith.constant 0 : index
    %78 = vector.load %arg9[%c0_92, %c0_93] : memref<16x16xf32, #tpu.memory_space<vmem>>, vector<16x16xf32>
    %c8 = arith.constant 8 : index
    %c0_94 = arith.constant 0 : index
    %c0_95 = arith.constant 0 : index
    %79 = vector.load %arg4[%c8, %c0_94, %c0_95] : memref<9x16x16xbf16, #tpu.memory_space<vmem>>, vector<1x16x16xbf16>
    %80 = vector.shape_cast %79 : vector<1x16x16xbf16> to vector<16x16xbf16>
    %cst_96 = arith.constant dense<0.000000e+00> : vector<16x16xf32>
    %81 = tpu.matmul %77, %80, %cst_96 {dimension_numbers = #tpu.dot_dimension_numbers<[1], [0], [0], [1], [0, 0, 1, 1], [], []>} : vector<16x16xbf16>, vector<16x16xbf16>, vector<16x16xf32> -> vector<16x16xf32>
    %82 = arith.addf %78, %81 : vector<16x16xf32>
    %c0_97 = arith.constant 0 : index
    %c0_98 = arith.constant 0 : index
    %83 = vector.load %arg9[%c0_97, %c0_98] : memref<16x16xf32, #tpu.memory_space<vmem>>, vector<16x16xf32>
    tpu.vector_store %arg9[%c0_97, %c0_98], %82 {strides = array<i32>} : memref<16x16xf32, #tpu.memory_space<vmem>>, vector<16x16xf32>,
    %c0_i32_99 = arith.constant 0 : i32
    %84 = arith.cmpi eq, %arg1, %c0_i32_99 : i32
    %85 = arith.extui %84 : i1 to i32
    %c0_i32_100 = arith.constant 0 : i32
    %86 = arith.cmpi ne, %85, %c0_i32_100 : i32
    scf.if %86 {
      %c0_101 = arith.constant 0 : index
      %c0_102 = arith.constant 0 : index
      %87 = vector.load %arg9[%c0_101, %c0_102] : memref<16x16xf32, #tpu.memory_space<vmem>>, vector<16x16xf32>
      %c0_103 = arith.constant 0 : index
      %c0_104 = arith.constant 0 : index
      %88 = vector.load %arg5[%c0_103, %c0_104] : memref<1x16xf32, #tpu.memory_space<vmem>>, vector<1x16xf32>
      %89 = vector.broadcast %88 : vector<1x16xf32> to vector<16x16xf32>
      %90 = arith.addf %87, %89 : vector<16x16xf32>
      %c0_105 = arith.constant 0 : index
      %c0_106 = arith.constant 0 : index
      %91 = vector.load %arg6[%c0_105, %c0_106] : memref<1x16xf32, #tpu.memory_space<vmem>>, vector<1x16xf32>
      %c0_107 = arith.constant 0 : index
      %c0_108 = arith.constant 0 : index
      %92 = vector.load %arg7[%c0_107, %c0_108] : memref<1x16xf32, #tpu.memory_space<vmem>>, vector<1x16xf32>
      %cst_109 = arith.constant dense<0.000000e+00> : vector<16xf32>
      %93 = vector.multi_reduction <add>, %90, %cst_109 [1] : vector<16x16xf32> to vector<16xf32>
      %94 = vector.shape_cast %93 : vector<16xf32> to vector<16x1xf32>
      %cst_110 = arith.constant 1.600000e+01 : f32
      %95 = vector.broadcast %cst_110 : f32 to vector<16x1xf32>
      %96 = arith.divf %94, %95 : vector<16x1xf32>
      %97 = vector.broadcast %96 : vector<16x1xf32> to vector<16x16xf32>
      %98 = arith.subf %90, %97 : vector<16x16xf32>
      %99 = arith.mulf %98, %98 : vector<16x16xf32>
      %cst_111 = arith.constant dense<0.000000e+00> : vector<16xf32>
      %100 = vector.multi_reduction <add>, %99, %cst_111 [1] : vector<16x16xf32> to vector<16xf32>
      %101 = vector.shape_cast %100 : vector<16xf32> to vector<16x1xf32>
      %cst_112 = arith.constant 1.600000e+01 : f32
      %102 = vector.broadcast %cst_112 : f32 to vector<16x1xf32>
      %103 = arith.divf %101, %102 : vector<16x1xf32>
      %cst_113 = arith.constant 9.99999997E-7 : f32
      %104 = vector.broadcast %cst_113 : f32 to vector<16x1xf32>
      %105 = arith.addf %103, %104 : vector<16x1xf32>
      %106 = math.rsqrt %105 : vector<16x1xf32>
      %107 = vector.broadcast %106 : vector<16x1xf32> to vector<16x16xf32>
      %108 = arith.mulf %98, %107 : vector<16x16xf32>
      %109 = vector.broadcast %91 : vector<1x16xf32> to vector<16x16xf32>
      %110 = arith.mulf %108, %109 : vector<16x16xf32>
      %111 = vector.broadcast %92 : vector<1x16xf32> to vector<16x16xf32>
      %112 = arith.addf %110, %111 : vector<16x16xf32>
      %113 = vector.shape_cast %112 : vector<16x16xf32> to vector<1x4x4x16xf32>
      %c0_114 = arith.constant 0 : index
      %c0_115 = arith.constant 0 : index
      %c0_116 = arith.constant 0 : index
      %c0_117 = arith.constant 0 : index
      %114 = vector.load %arg3[%c0_114, %c0_115, %c0_116, %c0_117] : memref<1x4x4x16xbf16, #tpu.memory_space<vmem>>, vector<1x4x4x16xbf16>
      %115 = arith.extf %114 : vector<1x4x4x16xbf16> to vector<1x4x4x16xf32>
      %116 = arith.addf %113, %115 : vector<1x4x4x16xf32>
      %cst_118 = arith.constant 0.000000e+00 : f32
      %117 = vector.broadcast %cst_118 : f32 to vector<1x4x4x16xf32>
      %118 = arith.maximumf %116, %117 : vector<1x4x4x16xf32>
      %119 = arith.truncf %118 : vector<1x4x4x16xf32> to vector<1x4x4x16xbf16>
      %c0_119 = arith.constant 0 : index
      %c0_120 = arith.constant 0 : index
      %c0_121 = arith.constant 0 : index
      %c0_122 = arith.constant 0 : index
      %120 = vector.load %arg8[%c0_119, %c0_120, %c0_121, %c0_122] : memref<1x4x4x16xbf16, #tpu.memory_space<vmem>>, vector<1x4x4x16xbf16>
      tpu.vector_store %arg8[%c0_119, %c0_120, %c0_121, %c0_122], %119 {strides = array<i32>} : memref<1x4x4x16xbf16, #tpu.memory_space<vmem>>, vector<1x4x4x16xbf16>,
    } else {
    }
    return
  }
  func.func @transform_0(%arg0: i32, %arg1: i32) -> (i32, i32, i32, i32) {
    %c0_i32 = arith.constant 0 : i32
    %c0_i32_0 = arith.constant 0 : i32
    %c0_i32_1 = arith.constant 0 : i32
    return %arg0, %c0_i32, %c0_i32_0, %arg1 : i32, i32, i32, i32
  }
  func.func @transform_1(%arg0: i32, %arg1: i32) -> (i32, i32, i32, i32) {
    %c0_i32 = arith.constant 0 : i32
    %c0_i32_0 = arith.constant 0 : i32
    %c0_i32_1 = arith.constant 0 : i32
    %c0_i32_2 = arith.constant 0 : i32
    return %arg0, %c0_i32, %c0_i32_0, %c0_i32_1 : i32, i32, i32, i32
  }
  func.func @transform_2(%arg0: i32, %arg1: i32) -> (i32, i32, i32) {
    %c0_i32 = arith.constant 0 : i32
    %c0_i32_0 = arith.constant 0 : i32
    %c0_i32_1 = arith.constant 0 : i32
    return %c0_i32, %arg1, %c0_i32_0 : i32, i32, i32
  }
  func.func @transform_3(%arg0: i32, %arg1: i32) -> (i32, i32) {
    %c0_i32 = arith.constant 0 : i32
    %c0_i32_0 = arith.constant 0 : i32
    %c0_i32_1 = arith.constant 0 : i32
    return %c0_i32, %c0_i32_0 : i32, i32
  }
  func.func @transform_4(%arg0: i32, %arg1: i32) -> (i32, i32) {
    %c0_i32 = arith.constant 0 : i32
    %c0_i32_0 = arith.constant 0 : i32
    %c0_i32_1 = arith.constant 0 : i32
    return %c0_i32, %c0_i32_0 : i32, i32
  }
  func.func @transform_5(%arg0: i32, %arg1: i32) -> (i32, i32) {
    %c0_i32 = arith.constant 0 : i32
    %c0_i32_0 = arith.constant 0 : i32
    %c0_i32_1 = arith.constant 0 : i32
    return %c0_i32, %c0_i32_0 : i32, i32
  }
  func.func @transform_6(%arg0: i32, %arg1: i32) -> (i32, i32, i32, i32) {
    %c0_i32 = arith.constant 0 : i32
    %c0_i32_0 = arith.constant 0 : i32
    %c0_i32_1 = arith.constant 0 : i32
    %c0_i32_2 = arith.constant 0 : i32
    return %arg0, %c0_i32, %c0_i32_0, %c0_i32_1 : i32, i32, i32, i32
  }
}

module attributes {stable_mosaic.version = 11 : i64} {
  func.func @_conv3x3_ln_relu_kernel(%arg0: i32, %arg1: i32, %arg2: memref<1x6x6x16xbf16, #tpu.memory_space<vmem>>, %arg3: memref<9x16x16xbf16, #tpu.memory_space<vmem>>, %arg4: memref<1x16xf32, #tpu.memory_space<vmem>>, %arg5: memref<1x16xf32, #tpu.memory_space<vmem>>, %arg6: memref<1x16xf32, #tpu.memory_space<vmem>>, %arg7: memref<1x4x4x16xbf16, #tpu.memory_space<vmem>>, %arg8: memref<16x16xf32, #tpu.memory_space<vmem>>) attributes {dimension_semantics = [#tpu.dimension_semantics<parallel>, #tpu.dimension_semantics<arbitrary>], iteration_bounds = array<i64: 2, 1>, scalar_prefetch = 0 : i64, scratch_operands = 1 : i64, tpu.core_type = #tpu.core_type<tc>, window_params = [{transform_indices = @transform_0, window_bounds = array<i64: 1, 6, 6, 16>}, {transform_indices = @transform_1, window_bounds = array<i64: 9, 16, 16>}, {pipeline_mode = #tpu.pipeline_mode<synchronous>, transform_indices = @transform_2, window_bounds = array<i64: 1, 16>}, {pipeline_mode = #tpu.pipeline_mode<synchronous>, transform_indices = @transform_3, window_bounds = array<i64: 1, 16>}, {pipeline_mode = #tpu.pipeline_mode<synchronous>, transform_indices = @transform_4, window_bounds = array<i64: 1, 16>}, {transform_indices = @transform_5, window_bounds = array<i64: 1, 4, 4, 16>}]} {
    %c0_i32 = arith.constant 0 : i32
    %0 = arith.cmpi eq, %arg1, %c0_i32 : i32
    %1 = arith.extui %0 : i1 to i32
    %c0_i32_0 = arith.constant 0 : i32
    %2 = arith.cmpi ne, %1, %c0_i32_0 : i32
    scf.if %2 {
      %cst_101 = arith.constant 0.000000e+00 : f32
      %87 = vector.broadcast %cst_101 : f32 to vector<16x16xf32>
      %c0_102 = arith.constant 0 : index
      %c0_103 = arith.constant 0 : index
      %88 = vector.load %arg8[%c0_102, %c0_103] : memref<16x16xf32, #tpu.memory_space<vmem>>, vector<16x16xf32>
      tpu.vector_store %arg8[%c0_102, %c0_103], %87 {strides = array<i32>} : memref<16x16xf32, #tpu.memory_space<vmem>>, vector<16x16xf32>,
    } else {
    }
    %c0 = arith.constant 0 : index
    %c0_1 = arith.constant 0 : index
    %c0_2 = arith.constant 0 : index
    %c0_3 = arith.constant 0 : index
    %3 = vector.load %arg2[%c0, %c0_1, %c0_2, %c0_3] : memref<1x6x6x16xbf16, #tpu.memory_space<vmem>>, vector<1x4x4x16xbf16>
    %4 = vector.shape_cast %3 : vector<1x4x4x16xbf16> to vector<4x4x16xbf16>
    %5 = vector.shape_cast %4 : vector<4x4x16xbf16> to vector<16x16xbf16>
    %c0_4 = arith.constant 0 : index
    %c0_5 = arith.constant 0 : index
    %6 = vector.load %arg8[%c0_4, %c0_5] : memref<16x16xf32, #tpu.memory_space<vmem>>, vector<16x16xf32>
    %c0_6 = arith.constant 0 : index
    %c0_7 = arith.constant 0 : index
    %c0_8 = arith.constant 0 : index
    %7 = vector.load %arg3[%c0_6, %c0_7, %c0_8] : memref<9x16x16xbf16, #tpu.memory_space<vmem>>, vector<1x16x16xbf16>
    %8 = vector.shape_cast %7 : vector<1x16x16xbf16> to vector<16x16xbf16>
    %cst = arith.constant dense<0.000000e+00> : vector<16x16xf32>
    %9 = tpu.matmul %5, %8, %cst {dimension_numbers = #tpu.dot_dimension_numbers<[1], [0], [0], [1], [0, 0, 1, 1], [], []>} : vector<16x16xbf16>, vector<16x16xbf16>, vector<16x16xf32> -> vector<16x16xf32>
    %10 = arith.addf %6, %9 : vector<16x16xf32>
    %c0_9 = arith.constant 0 : index
    %c0_10 = arith.constant 0 : index
    %11 = vector.load %arg8[%c0_9, %c0_10] : memref<16x16xf32, #tpu.memory_space<vmem>>, vector<16x16xf32>
    tpu.vector_store %arg8[%c0_9, %c0_10], %10 {strides = array<i32>} : memref<16x16xf32, #tpu.memory_space<vmem>>, vector<16x16xf32>,
    %c0_11 = arith.constant 0 : index
    %c0_12 = arith.constant 0 : index
    %c1 = arith.constant 1 : index
    %c0_13 = arith.constant 0 : index
    %12 = vector.load %arg2[%c0_11, %c0_12, %c1, %c0_13] : memref<1x6x6x16xbf16, #tpu.memory_space<vmem>>, vector<1x4x4x16xbf16>
    %13 = vector.shape_cast %12 : vector<1x4x4x16xbf16> to vector<4x4x16xbf16>
    %14 = vector.shape_cast %13 : vector<4x4x16xbf16> to vector<16x16xbf16>
    %c0_14 = arith.constant 0 : index
    %c0_15 = arith.constant 0 : index
    %15 = vector.load %arg8[%c0_14, %c0_15] : memref<16x16xf32, #tpu.memory_space<vmem>>, vector<16x16xf32>
    %c1_16 = arith.constant 1 : index
    %c0_17 = arith.constant 0 : index
    %c0_18 = arith.constant 0 : index
    %16 = vector.load %arg3[%c1_16, %c0_17, %c0_18] : memref<9x16x16xbf16, #tpu.memory_space<vmem>>, vector<1x16x16xbf16>
    %17 = vector.shape_cast %16 : vector<1x16x16xbf16> to vector<16x16xbf16>
    %cst_19 = arith.constant dense<0.000000e+00> : vector<16x16xf32>
    %18 = tpu.matmul %14, %17, %cst_19 {dimension_numbers = #tpu.dot_dimension_numbers<[1], [0], [0], [1], [0, 0, 1, 1], [], []>} : vector<16x16xbf16>, vector<16x16xbf16>, vector<16x16xf32> -> vector<16x16xf32>
    %19 = arith.addf %15, %18 : vector<16x16xf32>
    %c0_20 = arith.constant 0 : index
    %c0_21 = arith.constant 0 : index
    %20 = vector.load %arg8[%c0_20, %c0_21] : memref<16x16xf32, #tpu.memory_space<vmem>>, vector<16x16xf32>
    tpu.vector_store %arg8[%c0_20, %c0_21], %19 {strides = array<i32>} : memref<16x16xf32, #tpu.memory_space<vmem>>, vector<16x16xf32>,
    %c0_22 = arith.constant 0 : index
    %c0_23 = arith.constant 0 : index
    %c2 = arith.constant 2 : index
    %c0_24 = arith.constant 0 : index
    %21 = vector.load %arg2[%c0_22, %c0_23, %c2, %c0_24] : memref<1x6x6x16xbf16, #tpu.memory_space<vmem>>, vector<1x4x4x16xbf16>
    %22 = vector.shape_cast %21 : vector<1x4x4x16xbf16> to vector<4x4x16xbf16>
    %23 = vector.shape_cast %22 : vector<4x4x16xbf16> to vector<16x16xbf16>
    %c0_25 = arith.constant 0 : index
    %c0_26 = arith.constant 0 : index
    %24 = vector.load %arg8[%c0_25, %c0_26] : memref<16x16xf32, #tpu.memory_space<vmem>>, vector<16x16xf32>
    %c2_27 = arith.constant 2 : index
    %c0_28 = arith.constant 0 : index
    %c0_29 = arith.constant 0 : index
    %25 = vector.load %arg3[%c2_27, %c0_28, %c0_29] : memref<9x16x16xbf16, #tpu.memory_space<vmem>>, vector<1x16x16xbf16>
    %26 = vector.shape_cast %25 : vector<1x16x16xbf16> to vector<16x16xbf16>
    %cst_30 = arith.constant dense<0.000000e+00> : vector<16x16xf32>
    %27 = tpu.matmul %23, %26, %cst_30 {dimension_numbers = #tpu.dot_dimension_numbers<[1], [0], [0], [1], [0, 0, 1, 1], [], []>} : vector<16x16xbf16>, vector<16x16xbf16>, vector<16x16xf32> -> vector<16x16xf32>
    %28 = arith.addf %24, %27 : vector<16x16xf32>
    %c0_31 = arith.constant 0 : index
    %c0_32 = arith.constant 0 : index
    %29 = vector.load %arg8[%c0_31, %c0_32] : memref<16x16xf32, #tpu.memory_space<vmem>>, vector<16x16xf32>
    tpu.vector_store %arg8[%c0_31, %c0_32], %28 {strides = array<i32>} : memref<16x16xf32, #tpu.memory_space<vmem>>, vector<16x16xf32>,
    %c0_33 = arith.constant 0 : index
    %c1_34 = arith.constant 1 : index
    %c0_35 = arith.constant 0 : index
    %c0_36 = arith.constant 0 : index
    %30 = vector.load %arg2[%c0_33, %c1_34, %c0_35, %c0_36] : memref<1x6x6x16xbf16, #tpu.memory_space<vmem>>, vector<1x4x4x16xbf16>
    %31 = vector.shape_cast %30 : vector<1x4x4x16xbf16> to vector<4x4x16xbf16>
    %32 = vector.shape_cast %31 : vector<4x4x16xbf16> to vector<16x16xbf16>
    %c0_37 = arith.constant 0 : index
    %c0_38 = arith.constant 0 : index
    %33 = vector.load %arg8[%c0_37, %c0_38] : memref<16x16xf32, #tpu.memory_space<vmem>>, vector<16x16xf32>
    %c3 = arith.constant 3 : index
    %c0_39 = arith.constant 0 : index
    %c0_40 = arith.constant 0 : index
    %34 = vector.load %arg3[%c3, %c0_39, %c0_40] : memref<9x16x16xbf16, #tpu.memory_space<vmem>>, vector<1x16x16xbf16>
    %35 = vector.shape_cast %34 : vector<1x16x16xbf16> to vector<16x16xbf16>
    %cst_41 = arith.constant dense<0.000000e+00> : vector<16x16xf32>
    %36 = tpu.matmul %32, %35, %cst_41 {dimension_numbers = #tpu.dot_dimension_numbers<[1], [0], [0], [1], [0, 0, 1, 1], [], []>} : vector<16x16xbf16>, vector<16x16xbf16>, vector<16x16xf32> -> vector<16x16xf32>
    %37 = arith.addf %33, %36 : vector<16x16xf32>
    %c0_42 = arith.constant 0 : index
    %c0_43 = arith.constant 0 : index
    %38 = vector.load %arg8[%c0_42, %c0_43] : memref<16x16xf32, #tpu.memory_space<vmem>>, vector<16x16xf32>
    tpu.vector_store %arg8[%c0_42, %c0_43], %37 {strides = array<i32>} : memref<16x16xf32, #tpu.memory_space<vmem>>, vector<16x16xf32>,
    %c0_44 = arith.constant 0 : index
    %c1_45 = arith.constant 1 : index
    %c1_46 = arith.constant 1 : index
    %c0_47 = arith.constant 0 : index
    %39 = vector.load %arg2[%c0_44, %c1_45, %c1_46, %c0_47] : memref<1x6x6x16xbf16, #tpu.memory_space<vmem>>, vector<1x4x4x16xbf16>
    %40 = vector.shape_cast %39 : vector<1x4x4x16xbf16> to vector<4x4x16xbf16>
    %41 = vector.shape_cast %40 : vector<4x4x16xbf16> to vector<16x16xbf16>
    %c0_48 = arith.constant 0 : index
    %c0_49 = arith.constant 0 : index
    %42 = vector.load %arg8[%c0_48, %c0_49] : memref<16x16xf32, #tpu.memory_space<vmem>>, vector<16x16xf32>
    %c4 = arith.constant 4 : index
    %c0_50 = arith.constant 0 : index
    %c0_51 = arith.constant 0 : index
    %43 = vector.load %arg3[%c4, %c0_50, %c0_51] : memref<9x16x16xbf16, #tpu.memory_space<vmem>>, vector<1x16x16xbf16>
    %44 = vector.shape_cast %43 : vector<1x16x16xbf16> to vector<16x16xbf16>
    %cst_52 = arith.constant dense<0.000000e+00> : vector<16x16xf32>
    %45 = tpu.matmul %41, %44, %cst_52 {dimension_numbers = #tpu.dot_dimension_numbers<[1], [0], [0], [1], [0, 0, 1, 1], [], []>} : vector<16x16xbf16>, vector<16x16xbf16>, vector<16x16xf32> -> vector<16x16xf32>
    %46 = arith.addf %42, %45 : vector<16x16xf32>
    %c0_53 = arith.constant 0 : index
    %c0_54 = arith.constant 0 : index
    %47 = vector.load %arg8[%c0_53, %c0_54] : memref<16x16xf32, #tpu.memory_space<vmem>>, vector<16x16xf32>
    tpu.vector_store %arg8[%c0_53, %c0_54], %46 {strides = array<i32>} : memref<16x16xf32, #tpu.memory_space<vmem>>, vector<16x16xf32>,
    %c0_55 = arith.constant 0 : index
    %c1_56 = arith.constant 1 : index
    %c2_57 = arith.constant 2 : index
    %c0_58 = arith.constant 0 : index
    %48 = vector.load %arg2[%c0_55, %c1_56, %c2_57, %c0_58] : memref<1x6x6x16xbf16, #tpu.memory_space<vmem>>, vector<1x4x4x16xbf16>
    %49 = vector.shape_cast %48 : vector<1x4x4x16xbf16> to vector<4x4x16xbf16>
    %50 = vector.shape_cast %49 : vector<4x4x16xbf16> to vector<16x16xbf16>
    %c0_59 = arith.constant 0 : index
    %c0_60 = arith.constant 0 : index
    %51 = vector.load %arg8[%c0_59, %c0_60] : memref<16x16xf32, #tpu.memory_space<vmem>>, vector<16x16xf32>
    %c5 = arith.constant 5 : index
    %c0_61 = arith.constant 0 : index
    %c0_62 = arith.constant 0 : index
    %52 = vector.load %arg3[%c5, %c0_61, %c0_62] : memref<9x16x16xbf16, #tpu.memory_space<vmem>>, vector<1x16x16xbf16>
    %53 = vector.shape_cast %52 : vector<1x16x16xbf16> to vector<16x16xbf16>
    %cst_63 = arith.constant dense<0.000000e+00> : vector<16x16xf32>
    %54 = tpu.matmul %50, %53, %cst_63 {dimension_numbers = #tpu.dot_dimension_numbers<[1], [0], [0], [1], [0, 0, 1, 1], [], []>} : vector<16x16xbf16>, vector<16x16xbf16>, vector<16x16xf32> -> vector<16x16xf32>
    %55 = arith.addf %51, %54 : vector<16x16xf32>
    %c0_64 = arith.constant 0 : index
    %c0_65 = arith.constant 0 : index
    %56 = vector.load %arg8[%c0_64, %c0_65] : memref<16x16xf32, #tpu.memory_space<vmem>>, vector<16x16xf32>
    tpu.vector_store %arg8[%c0_64, %c0_65], %55 {strides = array<i32>} : memref<16x16xf32, #tpu.memory_space<vmem>>, vector<16x16xf32>,
    %c0_66 = arith.constant 0 : index
    %c2_67 = arith.constant 2 : index
    %c0_68 = arith.constant 0 : index
    %c0_69 = arith.constant 0 : index
    %57 = vector.load %arg2[%c0_66, %c2_67, %c0_68, %c0_69] : memref<1x6x6x16xbf16, #tpu.memory_space<vmem>>, vector<1x4x4x16xbf16>
    %58 = vector.shape_cast %57 : vector<1x4x4x16xbf16> to vector<4x4x16xbf16>
    %59 = vector.shape_cast %58 : vector<4x4x16xbf16> to vector<16x16xbf16>
    %c0_70 = arith.constant 0 : index
    %c0_71 = arith.constant 0 : index
    %60 = vector.load %arg8[%c0_70, %c0_71] : memref<16x16xf32, #tpu.memory_space<vmem>>, vector<16x16xf32>
    %c6 = arith.constant 6 : index
    %c0_72 = arith.constant 0 : index
    %c0_73 = arith.constant 0 : index
    %61 = vector.load %arg3[%c6, %c0_72, %c0_73] : memref<9x16x16xbf16, #tpu.memory_space<vmem>>, vector<1x16x16xbf16>
    %62 = vector.shape_cast %61 : vector<1x16x16xbf16> to vector<16x16xbf16>
    %cst_74 = arith.constant dense<0.000000e+00> : vector<16x16xf32>
    %63 = tpu.matmul %59, %62, %cst_74 {dimension_numbers = #tpu.dot_dimension_numbers<[1], [0], [0], [1], [0, 0, 1, 1], [], []>} : vector<16x16xbf16>, vector<16x16xbf16>, vector<16x16xf32> -> vector<16x16xf32>
    %64 = arith.addf %60, %63 : vector<16x16xf32>
    %c0_75 = arith.constant 0 : index
    %c0_76 = arith.constant 0 : index
    %65 = vector.load %arg8[%c0_75, %c0_76] : memref<16x16xf32, #tpu.memory_space<vmem>>, vector<16x16xf32>
    tpu.vector_store %arg8[%c0_75, %c0_76], %64 {strides = array<i32>} : memref<16x16xf32, #tpu.memory_space<vmem>>, vector<16x16xf32>,
    %c0_77 = arith.constant 0 : index
    %c2_78 = arith.constant 2 : index
    %c1_79 = arith.constant 1 : index
    %c0_80 = arith.constant 0 : index
    %66 = vector.load %arg2[%c0_77, %c2_78, %c1_79, %c0_80] : memref<1x6x6x16xbf16, #tpu.memory_space<vmem>>, vector<1x4x4x16xbf16>
    %67 = vector.shape_cast %66 : vector<1x4x4x16xbf16> to vector<4x4x16xbf16>
    %68 = vector.shape_cast %67 : vector<4x4x16xbf16> to vector<16x16xbf16>
    %c0_81 = arith.constant 0 : index
    %c0_82 = arith.constant 0 : index
    %69 = vector.load %arg8[%c0_81, %c0_82] : memref<16x16xf32, #tpu.memory_space<vmem>>, vector<16x16xf32>
    %c7 = arith.constant 7 : index
    %c0_83 = arith.constant 0 : index
    %c0_84 = arith.constant 0 : index
    %70 = vector.load %arg3[%c7, %c0_83, %c0_84] : memref<9x16x16xbf16, #tpu.memory_space<vmem>>, vector<1x16x16xbf16>
    %71 = vector.shape_cast %70 : vector<1x16x16xbf16> to vector<16x16xbf16>
    %cst_85 = arith.constant dense<0.000000e+00> : vector<16x16xf32>
    %72 = tpu.matmul %68, %71, %cst_85 {dimension_numbers = #tpu.dot_dimension_numbers<[1], [0], [0], [1], [0, 0, 1, 1], [], []>} : vector<16x16xbf16>, vector<16x16xbf16>, vector<16x16xf32> -> vector<16x16xf32>
    %73 = arith.addf %69, %72 : vector<16x16xf32>
    %c0_86 = arith.constant 0 : index
    %c0_87 = arith.constant 0 : index
    %74 = vector.load %arg8[%c0_86, %c0_87] : memref<16x16xf32, #tpu.memory_space<vmem>>, vector<16x16xf32>
    tpu.vector_store %arg8[%c0_86, %c0_87], %73 {strides = array<i32>} : memref<16x16xf32, #tpu.memory_space<vmem>>, vector<16x16xf32>,
    %c0_88 = arith.constant 0 : index
    %c2_89 = arith.constant 2 : index
    %c2_90 = arith.constant 2 : index
    %c0_91 = arith.constant 0 : index
    %75 = vector.load %arg2[%c0_88, %c2_89, %c2_90, %c0_91] : memref<1x6x6x16xbf16, #tpu.memory_space<vmem>>, vector<1x4x4x16xbf16>
    %76 = vector.shape_cast %75 : vector<1x4x4x16xbf16> to vector<4x4x16xbf16>
    %77 = vector.shape_cast %76 : vector<4x4x16xbf16> to vector<16x16xbf16>
    %c0_92 = arith.constant 0 : index
    %c0_93 = arith.constant 0 : index
    %78 = vector.load %arg8[%c0_92, %c0_93] : memref<16x16xf32, #tpu.memory_space<vmem>>, vector<16x16xf32>
    %c8 = arith.constant 8 : index
    %c0_94 = arith.constant 0 : index
    %c0_95 = arith.constant 0 : index
    %79 = vector.load %arg3[%c8, %c0_94, %c0_95] : memref<9x16x16xbf16, #tpu.memory_space<vmem>>, vector<1x16x16xbf16>
    %80 = vector.shape_cast %79 : vector<1x16x16xbf16> to vector<16x16xbf16>
    %cst_96 = arith.constant dense<0.000000e+00> : vector<16x16xf32>
    %81 = tpu.matmul %77, %80, %cst_96 {dimension_numbers = #tpu.dot_dimension_numbers<[1], [0], [0], [1], [0, 0, 1, 1], [], []>} : vector<16x16xbf16>, vector<16x16xbf16>, vector<16x16xf32> -> vector<16x16xf32>
    %82 = arith.addf %78, %81 : vector<16x16xf32>
    %c0_97 = arith.constant 0 : index
    %c0_98 = arith.constant 0 : index
    %83 = vector.load %arg8[%c0_97, %c0_98] : memref<16x16xf32, #tpu.memory_space<vmem>>, vector<16x16xf32>
    tpu.vector_store %arg8[%c0_97, %c0_98], %82 {strides = array<i32>} : memref<16x16xf32, #tpu.memory_space<vmem>>, vector<16x16xf32>,
    %c0_i32_99 = arith.constant 0 : i32
    %84 = arith.cmpi eq, %arg1, %c0_i32_99 : i32
    %85 = arith.extui %84 : i1 to i32
    %c0_i32_100 = arith.constant 0 : i32
    %86 = arith.cmpi ne, %85, %c0_i32_100 : i32
    scf.if %86 {
      %c0_101 = arith.constant 0 : index
      %c0_102 = arith.constant 0 : index
      %87 = vector.load %arg8[%c0_101, %c0_102] : memref<16x16xf32, #tpu.memory_space<vmem>>, vector<16x16xf32>
      %c0_103 = arith.constant 0 : index
      %c0_104 = arith.constant 0 : index
      %88 = vector.load %arg4[%c0_103, %c0_104] : memref<1x16xf32, #tpu.memory_space<vmem>>, vector<1x16xf32>
      %89 = vector.broadcast %88 : vector<1x16xf32> to vector<16x16xf32>
      %90 = arith.addf %87, %89 : vector<16x16xf32>
      %c0_105 = arith.constant 0 : index
      %c0_106 = arith.constant 0 : index
      %91 = vector.load %arg5[%c0_105, %c0_106] : memref<1x16xf32, #tpu.memory_space<vmem>>, vector<1x16xf32>
      %c0_107 = arith.constant 0 : index
      %c0_108 = arith.constant 0 : index
      %92 = vector.load %arg6[%c0_107, %c0_108] : memref<1x16xf32, #tpu.memory_space<vmem>>, vector<1x16xf32>
      %cst_109 = arith.constant dense<0.000000e+00> : vector<16xf32>
      %93 = vector.multi_reduction <add>, %90, %cst_109 [1] : vector<16x16xf32> to vector<16xf32>
      %94 = vector.shape_cast %93 : vector<16xf32> to vector<16x1xf32>
      %cst_110 = arith.constant 1.600000e+01 : f32
      %95 = vector.broadcast %cst_110 : f32 to vector<16x1xf32>
      %96 = arith.divf %94, %95 : vector<16x1xf32>
      %97 = vector.broadcast %96 : vector<16x1xf32> to vector<16x16xf32>
      %98 = arith.subf %90, %97 : vector<16x16xf32>
      %99 = arith.mulf %98, %98 : vector<16x16xf32>
      %cst_111 = arith.constant dense<0.000000e+00> : vector<16xf32>
      %100 = vector.multi_reduction <add>, %99, %cst_111 [1] : vector<16x16xf32> to vector<16xf32>
      %101 = vector.shape_cast %100 : vector<16xf32> to vector<16x1xf32>
      %cst_112 = arith.constant 1.600000e+01 : f32
      %102 = vector.broadcast %cst_112 : f32 to vector<16x1xf32>
      %103 = arith.divf %101, %102 : vector<16x1xf32>
      %cst_113 = arith.constant 9.99999997E-7 : f32
      %104 = vector.broadcast %cst_113 : f32 to vector<16x1xf32>
      %105 = arith.addf %103, %104 : vector<16x1xf32>
      %106 = math.rsqrt %105 : vector<16x1xf32>
      %107 = vector.broadcast %106 : vector<16x1xf32> to vector<16x16xf32>
      %108 = arith.mulf %98, %107 : vector<16x16xf32>
      %109 = vector.broadcast %91 : vector<1x16xf32> to vector<16x16xf32>
      %110 = arith.mulf %108, %109 : vector<16x16xf32>
      %111 = vector.broadcast %92 : vector<1x16xf32> to vector<16x16xf32>
      %112 = arith.addf %110, %111 : vector<16x16xf32>
      %cst_114 = arith.constant 0.000000e+00 : f32
      %113 = vector.broadcast %cst_114 : f32 to vector<16x16xf32>
      %114 = arith.maximumf %112, %113 : vector<16x16xf32>
      %115 = vector.shape_cast %114 : vector<16x16xf32> to vector<1x4x4x16xf32>
      %116 = arith.truncf %115 : vector<1x4x4x16xf32> to vector<1x4x4x16xbf16>
      %c0_115 = arith.constant 0 : index
      %c0_116 = arith.constant 0 : index
      %c0_117 = arith.constant 0 : index
      %c0_118 = arith.constant 0 : index
      %117 = vector.load %arg7[%c0_115, %c0_116, %c0_117, %c0_118] : memref<1x4x4x16xbf16, #tpu.memory_space<vmem>>, vector<1x4x4x16xbf16>
      tpu.vector_store %arg7[%c0_115, %c0_116, %c0_117, %c0_118], %116 {strides = array<i32>} : memref<1x4x4x16xbf16, #tpu.memory_space<vmem>>, vector<1x4x4x16xbf16>,
    } else {
    }
    return
  }
  func.func @transform_0(%arg0: i32, %arg1: i32) -> (i32, i32, i32, i32) {
    %c0_i32 = arith.constant 0 : i32
    %c0_i32_0 = arith.constant 0 : i32
    %c0_i32_1 = arith.constant 0 : i32
    return %arg0, %c0_i32, %c0_i32_0, %arg1 : i32, i32, i32, i32
  }
  func.func @transform_1(%arg0: i32, %arg1: i32) -> (i32, i32, i32) {
    %c0_i32 = arith.constant 0 : i32
    %c0_i32_0 = arith.constant 0 : i32
    %c0_i32_1 = arith.constant 0 : i32
    return %c0_i32, %arg1, %c0_i32_0 : i32, i32, i32
  }
  func.func @transform_2(%arg0: i32, %arg1: i32) -> (i32, i32) {
    %c0_i32 = arith.constant 0 : i32
    %c0_i32_0 = arith.constant 0 : i32
    %c0_i32_1 = arith.constant 0 : i32
    return %c0_i32, %c0_i32_0 : i32, i32
  }
  func.func @transform_3(%arg0: i32, %arg1: i32) -> (i32, i32) {
    %c0_i32 = arith.constant 0 : i32
    %c0_i32_0 = arith.constant 0 : i32
    %c0_i32_1 = arith.constant 0 : i32
    return %c0_i32, %c0_i32_0 : i32, i32
  }
  func.func @transform_4(%arg0: i32, %arg1: i32) -> (i32, i32) {
    %c0_i32 = arith.constant 0 : i32
    %c0_i32_0 = arith.constant 0 : i32
    %c0_i32_1 = arith.constant 0 : i32
    return %c0_i32, %c0_i32_0 : i32, i32
  }
  func.func @transform_5(%arg0: i32, %arg1: i32) -> (i32, i32, i32, i32) {
    %c0_i32 = arith.constant 0 : i32
    %c0_i32_0 = arith.constant 0 : i32
    %c0_i32_1 = arith.constant 0 : i32
    %c0_i32_2 = arith.constant 0 : i32
    return %arg0, %c0_i32, %c0_i32_0, %c0_i32_1 : i32, i32, i32, i32
  }
}

module attributes {stable_mosaic.version = 11 : i64} {
  func.func @_deconv2x2_fused_kernel(%arg0: i32, %arg1: i32, %arg2: memref<8x4x16xbf16, #tpu.memory_space<vmem>>, %arg3: memref<4x16x4xbf16, #tpu.memory_space<vmem>>, %arg4: memref<1x4xf32, #tpu.memory_space<vmem>>, %arg5: memref<1x4xf32, #tpu.memory_space<vmem>>, %arg6: memref<1x4xf32, #tpu.memory_space<vmem>>, %arg7: memref<1x4xf32, #tpu.memory_space<vmem>>, %arg8: memref<1x4xf32, #tpu.memory_space<vmem>>, %arg9: memref<8x2x4x8xbf16, #tpu.memory_space<vmem>>, %arg10: memref<8x2x4x8xbf16, #tpu.memory_space<vmem>>, %arg11: memref<4x32x4xf32, #tpu.memory_space<vmem>>) attributes {dimension_semantics = [#tpu.dimension_semantics<parallel>, #tpu.dimension_semantics<arbitrary>], iteration_bounds = array<i64: 1, 1>, scalar_prefetch = 0 : i64, scratch_operands = 1 : i64, tpu.core_type = #tpu.core_type<tc>, window_params = [{transform_indices = @transform_0, window_bounds = array<i64: 8, 4, 16>}, {transform_indices = @transform_1, window_bounds = array<i64: 4, 16, 4>}, {pipeline_mode = #tpu.pipeline_mode<synchronous>, transform_indices = @transform_2, window_bounds = array<i64: 1, 4>}, {pipeline_mode = #tpu.pipeline_mode<synchronous>, transform_indices = @transform_3, window_bounds = array<i64: 1, 4>}, {pipeline_mode = #tpu.pipeline_mode<synchronous>, transform_indices = @transform_4, window_bounds = array<i64: 1, 4>}, {pipeline_mode = #tpu.pipeline_mode<synchronous>, transform_indices = @transform_5, window_bounds = array<i64: 1, 4>}, {pipeline_mode = #tpu.pipeline_mode<synchronous>, transform_indices = @transform_6, window_bounds = array<i64: 1, 4>}, {transform_indices = @transform_7, window_bounds = array<i64: 8, 2, 4, 8>}, {transform_indices = @transform_8, window_bounds = array<i64: 8, 2, 4, 8>}]} {
    %c0_i32 = arith.constant 0 : i32
    %0 = arith.cmpi eq, %arg1, %c0_i32 : i32
    %1 = arith.extui %0 : i1 to i32
    %c0_i32_0 = arith.constant 0 : i32
    %2 = arith.cmpi ne, %1, %c0_i32_0 : i32
    scf.if %2 {
      %cst_41 = arith.constant 0.000000e+00 : f32
      %44 = vector.broadcast %cst_41 : f32 to vector<4x32x4xf32>
      %c0_42 = arith.constant 0 : index
      %c0_43 = arith.constant 0 : index
      %c0_44 = arith.constant 0 : index
      %45 = vector.load %arg11[%c0_42, %c0_43, %c0_44] : memref<4x32x4xf32, #tpu.memory_space<vmem>>, vector<4x32x4xf32>
      tpu.vector_store %arg11[%c0_42, %c0_43, %c0_44], %44 {strides = array<i32>} : memref<4x32x4xf32, #tpu.memory_space<vmem>>, vector<4x32x4xf32>,
    } else {
    }
    %c0 = arith.constant 0 : index
    %c0_1 = arith.constant 0 : index
    %c0_2 = arith.constant 0 : index
    %3 = vector.load %arg2[%c0, %c0_1, %c0_2] : memref<8x4x16xbf16, #tpu.memory_space<vmem>>, vector<8x4x16xbf16>
    %4 = vector.shape_cast %3 : vector<8x4x16xbf16> to vector<32x16xbf16>
    %c0_3 = arith.constant 0 : index
    %c0_4 = arith.constant 0 : index
    %c0_5 = arith.constant 0 : index
    %5 = vector.load %arg11[%c0_3, %c0_4, %c0_5] : memref<4x32x4xf32, #tpu.memory_space<vmem>>, vector<1x32x4xf32>
    %6 = vector.shape_cast %5 : vector<1x32x4xf32> to vector<32x4xf32>
    %c0_6 = arith.constant 0 : index
    %c0_7 = arith.constant 0 : index
    %c0_8 = arith.constant 0 : index
    %7 = vector.load %arg3[%c0_6, %c0_7, %c0_8] : memref<4x16x4xbf16, #tpu.memory_space<vmem>>, vector<1x16x4xbf16>
    %8 = vector.shape_cast %7 : vector<1x16x4xbf16> to vector<16x4xbf16>
    %cst = arith.constant dense<0.000000e+00> : vector<32x4xf32>
    %9 = tpu.matmul %4, %8, %cst {dimension_numbers = #tpu.dot_dimension_numbers<[1], [0], [0], [1], [0, 0, 1, 1], [], []>} : vector<32x16xbf16>, vector<16x4xbf16>, vector<32x4xf32> -> vector<32x4xf32>
    %10 = arith.addf %6, %9 : vector<32x4xf32>
    %c0_9 = arith.constant 0 : index
    %c0_10 = arith.constant 0 : index
    %c0_11 = arith.constant 0 : index
    %11 = vector.load %arg11[%c0_9, %c0_10, %c0_11] : memref<4x32x4xf32, #tpu.memory_space<vmem>>, vector<1x32x4xf32>
    %12 = vector.shape_cast %11 : vector<1x32x4xf32> to vector<32x4xf32>
    %13 = vector.shape_cast %10 : vector<32x4xf32> to vector<1x32x4xf32>
    tpu.vector_store %arg11[%c0_9, %c0_10, %c0_11], %13 {strides = array<i32>} : memref<4x32x4xf32, #tpu.memory_space<vmem>>, vector<1x32x4xf32>,
    %c1 = arith.constant 1 : index
    %c0_12 = arith.constant 0 : index
    %c0_13 = arith.constant 0 : index
    %14 = vector.load %arg11[%c1, %c0_12, %c0_13] : memref<4x32x4xf32, #tpu.memory_space<vmem>>, vector<1x32x4xf32>
    %15 = vector.shape_cast %14 : vector<1x32x4xf32> to vector<32x4xf32>
    %c1_14 = arith.constant 1 : index
    %c0_15 = arith.constant 0 : index
    %c0_16 = arith.constant 0 : index
    %16 = vector.load %arg3[%c1_14, %c0_15, %c0_16] : memref<4x16x4xbf16, #tpu.memory_space<vmem>>, vector<1x16x4xbf16>
    %17 = vector.shape_cast %16 : vector<1x16x4xbf16> to vector<16x4xbf16>
    %cst_17 = arith.constant dense<0.000000e+00> : vector<32x4xf32>
    %18 = tpu.matmul %4, %17, %cst_17 {dimension_numbers = #tpu.dot_dimension_numbers<[1], [0], [0], [1], [0, 0, 1, 1], [], []>} : vector<32x16xbf16>, vector<16x4xbf16>, vector<32x4xf32> -> vector<32x4xf32>
    %19 = arith.addf %15, %18 : vector<32x4xf32>
    %c1_18 = arith.constant 1 : index
    %c0_19 = arith.constant 0 : index
    %c0_20 = arith.constant 0 : index
    %20 = vector.load %arg11[%c1_18, %c0_19, %c0_20] : memref<4x32x4xf32, #tpu.memory_space<vmem>>, vector<1x32x4xf32>
    %21 = vector.shape_cast %20 : vector<1x32x4xf32> to vector<32x4xf32>
    %22 = vector.shape_cast %19 : vector<32x4xf32> to vector<1x32x4xf32>
    tpu.vector_store %arg11[%c1_18, %c0_19, %c0_20], %22 {strides = array<i32>} : memref<4x32x4xf32, #tpu.memory_space<vmem>>, vector<1x32x4xf32>,
    %c2 = arith.constant 2 : index
    %c0_21 = arith.constant 0 : index
    %c0_22 = arith.constant 0 : index
    %23 = vector.load %arg11[%c2, %c0_21, %c0_22] : memref<4x32x4xf32, #tpu.memory_space<vmem>>, vector<1x32x4xf32>
    %24 = vector.shape_cast %23 : vector<1x32x4xf32> to vector<32x4xf32>
    %c2_23 = arith.constant 2 : index
    %c0_24 = arith.constant 0 : index
    %c0_25 = arith.constant 0 : index
    %25 = vector.load %arg3[%c2_23, %c0_24, %c0_25] : memref<4x16x4xbf16, #tpu.memory_space<vmem>>, vector<1x16x4xbf16>
    %26 = vector.shape_cast %25 : vector<1x16x4xbf16> to vector<16x4xbf16>
    %cst_26 = arith.constant dense<0.000000e+00> : vector<32x4xf32>
    %27 = tpu.matmul %4, %26, %cst_26 {dimension_numbers = #tpu.dot_dimension_numbers<[1], [0], [0], [1], [0, 0, 1, 1], [], []>} : vector<32x16xbf16>, vector<16x4xbf16>, vector<32x4xf32> -> vector<32x4xf32>
    %28 = arith.addf %24, %27 : vector<32x4xf32>
    %c2_27 = arith.constant 2 : index
    %c0_28 = arith.constant 0 : index
    %c0_29 = arith.constant 0 : index
    %29 = vector.load %arg11[%c2_27, %c0_28, %c0_29] : memref<4x32x4xf32, #tpu.memory_space<vmem>>, vector<1x32x4xf32>
    %30 = vector.shape_cast %29 : vector<1x32x4xf32> to vector<32x4xf32>
    %31 = vector.shape_cast %28 : vector<32x4xf32> to vector<1x32x4xf32>
    tpu.vector_store %arg11[%c2_27, %c0_28, %c0_29], %31 {strides = array<i32>} : memref<4x32x4xf32, #tpu.memory_space<vmem>>, vector<1x32x4xf32>,
    %c3 = arith.constant 3 : index
    %c0_30 = arith.constant 0 : index
    %c0_31 = arith.constant 0 : index
    %32 = vector.load %arg11[%c3, %c0_30, %c0_31] : memref<4x32x4xf32, #tpu.memory_space<vmem>>, vector<1x32x4xf32>
    %33 = vector.shape_cast %32 : vector<1x32x4xf32> to vector<32x4xf32>
    %c3_32 = arith.constant 3 : index
    %c0_33 = arith.constant 0 : index
    %c0_34 = arith.constant 0 : index
    %34 = vector.load %arg3[%c3_32, %c0_33, %c0_34] : memref<4x16x4xbf16, #tpu.memory_space<vmem>>, vector<1x16x4xbf16>
    %35 = vector.shape_cast %34 : vector<1x16x4xbf16> to vector<16x4xbf16>
    %cst_35 = arith.constant dense<0.000000e+00> : vector<32x4xf32>
    %36 = tpu.matmul %4, %35, %cst_35 {dimension_numbers = #tpu.dot_dimension_numbers<[1], [0], [0], [1], [0, 0, 1, 1], [], []>} : vector<32x16xbf16>, vector<16x4xbf16>, vector<32x4xf32> -> vector<32x4xf32>
    %37 = arith.addf %33, %36 : vector<32x4xf32>
    %c3_36 = arith.constant 3 : index
    %c0_37 = arith.constant 0 : index
    %c0_38 = arith.constant 0 : index
    %38 = vector.load %arg11[%c3_36, %c0_37, %c0_38] : memref<4x32x4xf32, #tpu.memory_space<vmem>>, vector<1x32x4xf32>
    %39 = vector.shape_cast %38 : vector<1x32x4xf32> to vector<32x4xf32>
    %40 = vector.shape_cast %37 : vector<32x4xf32> to vector<1x32x4xf32>
    tpu.vector_store %arg11[%c3_36, %c0_37, %c0_38], %40 {strides = array<i32>} : memref<4x32x4xf32, #tpu.memory_space<vmem>>, vector<1x32x4xf32>,
    %c0_i32_39 = arith.constant 0 : i32
    %41 = arith.cmpi eq, %arg1, %c0_i32_39 : i32
    %42 = arith.extui %41 : i1 to i32
    %c0_i32_40 = arith.constant 0 : i32
    %43 = arith.cmpi ne, %42, %c0_i32_40 : i32
    scf.if %43 {
      %c0_41 = arith.constant 0 : index
      %c0_42 = arith.constant 0 : index
      %44 = vector.load %arg4[%c0_41, %c0_42] : memref<1x4xf32, #tpu.memory_space<vmem>>, vector<1x4xf32>
      %c0_43 = arith.constant 0 : index
      %c0_44 = arith.constant 0 : index
      %45 = vector.load %arg5[%c0_43, %c0_44] : memref<1x4xf32, #tpu.memory_space<vmem>>, vector<1x4xf32>
      %c0_45 = arith.constant 0 : index
      %c0_46 = arith.constant 0 : index
      %46 = vector.load %arg6[%c0_45, %c0_46] : memref<1x4xf32, #tpu.memory_space<vmem>>, vector<1x4xf32>
      %c0_47 = arith.constant 0 : index
      %c0_48 = arith.constant 0 : index
      %47 = vector.load %arg7[%c0_47, %c0_48] : memref<1x4xf32, #tpu.memory_space<vmem>>, vector<1x4xf32>
      %c0_49 = arith.constant 0 : index
      %c0_50 = arith.constant 0 : index
      %48 = vector.load %arg8[%c0_49, %c0_50] : memref<1x4xf32, #tpu.memory_space<vmem>>, vector<1x4xf32>
      %c0_51 = arith.constant 0 : index
      %c0_52 = arith.constant 0 : index
      %c0_53 = arith.constant 0 : index
      %49 = vector.load %arg11[%c0_51, %c0_52, %c0_53] : memref<4x32x4xf32, #tpu.memory_space<vmem>>, vector<1x32x4xf32>
      %50 = vector.shape_cast %49 : vector<1x32x4xf32> to vector<32x4xf32>
      %51 = vector.broadcast %44 : vector<1x4xf32> to vector<32x4xf32>
      %52 = arith.addf %50, %51 : vector<32x4xf32>
      %cst_54 = arith.constant dense<0.000000e+00> : vector<32xf32>
      %53 = vector.multi_reduction <add>, %52, %cst_54 [1] : vector<32x4xf32> to vector<32xf32>
      %54 = vector.shape_cast %53 : vector<32xf32> to vector<32x1xf32>
      %cst_55 = arith.constant 4.000000e+00 : f32
      %55 = vector.broadcast %cst_55 : f32 to vector<32x1xf32>
      %56 = arith.divf %54, %55 : vector<32x1xf32>
      %57 = vector.broadcast %56 : vector<32x1xf32> to vector<32x4xf32>
      %58 = arith.subf %52, %57 : vector<32x4xf32>
      %59 = arith.mulf %58, %58 : vector<32x4xf32>
      %cst_56 = arith.constant dense<0.000000e+00> : vector<32xf32>
      %60 = vector.multi_reduction <add>, %59, %cst_56 [1] : vector<32x4xf32> to vector<32xf32>
      %61 = vector.shape_cast %60 : vector<32xf32> to vector<32x1xf32>
      %cst_57 = arith.constant 4.000000e+00 : f32
      %62 = vector.broadcast %cst_57 : f32 to vector<32x1xf32>
      %63 = arith.divf %61, %62 : vector<32x1xf32>
      %cst_58 = arith.constant 9.99999997E-7 : f32
      %64 = vector.broadcast %cst_58 : f32 to vector<32x1xf32>
      %65 = arith.addf %63, %64 : vector<32x1xf32>
      %66 = math.rsqrt %65 : vector<32x1xf32>
      %67 = vector.broadcast %66 : vector<32x1xf32> to vector<32x4xf32>
      %68 = arith.mulf %58, %67 : vector<32x4xf32>
      %69 = vector.broadcast %45 : vector<1x4xf32> to vector<32x4xf32>
      %70 = arith.mulf %68, %69 : vector<32x4xf32>
      %71 = vector.broadcast %46 : vector<1x4xf32> to vector<32x4xf32>
      %72 = arith.addf %70, %71 : vector<32x4xf32>
      %cst_59 = arith.constant 0.000000e+00 : f32
      %73 = vector.broadcast %cst_59 : f32 to vector<32x4xf32>
      %74 = arith.maximumf %72, %73 : vector<32x4xf32>
      %75 = vector.broadcast %66 : vector<32x1xf32> to vector<32x4xf32>
      %76 = arith.mulf %58, %75 : vector<32x4xf32>
      %77 = vector.broadcast %47 : vector<1x4xf32> to vector<32x4xf32>
      %78 = arith.mulf %76, %77 : vector<32x4xf32>
      %79 = vector.broadcast %48 : vector<1x4xf32> to vector<32x4xf32>
      %80 = arith.addf %78, %79 : vector<32x4xf32>
      %c1_60 = arith.constant 1 : index
      %c0_61 = arith.constant 0 : index
      %c0_62 = arith.constant 0 : index
      %81 = vector.load %arg11[%c1_60, %c0_61, %c0_62] : memref<4x32x4xf32, #tpu.memory_space<vmem>>, vector<1x32x4xf32>
      %82 = vector.shape_cast %81 : vector<1x32x4xf32> to vector<32x4xf32>
      %83 = vector.broadcast %44 : vector<1x4xf32> to vector<32x4xf32>
      %84 = arith.addf %82, %83 : vector<32x4xf32>
      %cst_63 = arith.constant dense<0.000000e+00> : vector<32xf32>
      %85 = vector.multi_reduction <add>, %84, %cst_63 [1] : vector<32x4xf32> to vector<32xf32>
      %86 = vector.shape_cast %85 : vector<32xf32> to vector<32x1xf32>
      %cst_64 = arith.constant 4.000000e+00 : f32
      %87 = vector.broadcast %cst_64 : f32 to vector<32x1xf32>
      %88 = arith.divf %86, %87 : vector<32x1xf32>
      %89 = vector.broadcast %88 : vector<32x1xf32> to vector<32x4xf32>
      %90 = arith.subf %84, %89 : vector<32x4xf32>
      %91 = arith.mulf %90, %90 : vector<32x4xf32>
      %cst_65 = arith.constant dense<0.000000e+00> : vector<32xf32>
      %92 = vector.multi_reduction <add>, %91, %cst_65 [1] : vector<32x4xf32> to vector<32xf32>
      %93 = vector.shape_cast %92 : vector<32xf32> to vector<32x1xf32>
      %cst_66 = arith.constant 4.000000e+00 : f32
      %94 = vector.broadcast %cst_66 : f32 to vector<32x1xf32>
      %95 = arith.divf %93, %94 : vector<32x1xf32>
      %cst_67 = arith.constant 9.99999997E-7 : f32
      %96 = vector.broadcast %cst_67 : f32 to vector<32x1xf32>
      %97 = arith.addf %95, %96 : vector<32x1xf32>
      %98 = math.rsqrt %97 : vector<32x1xf32>
      %99 = vector.broadcast %98 : vector<32x1xf32> to vector<32x4xf32>
      %100 = arith.mulf %90, %99 : vector<32x4xf32>
      %101 = vector.broadcast %45 : vector<1x4xf32> to vector<32x4xf32>
      %102 = arith.mulf %100, %101 : vector<32x4xf32>
      %103 = vector.broadcast %46 : vector<1x4xf32> to vector<32x4xf32>
      %104 = arith.addf %102, %103 : vector<32x4xf32>
      %cst_68 = arith.constant 0.000000e+00 : f32
      %105 = vector.broadcast %cst_68 : f32 to vector<32x4xf32>
      %106 = arith.maximumf %104, %105 : vector<32x4xf32>
      %107 = vector.broadcast %98 : vector<32x1xf32> to vector<32x4xf32>
      %108 = arith.mulf %90, %107 : vector<32x4xf32>
      %109 = vector.broadcast %47 : vector<1x4xf32> to vector<32x4xf32>
      %110 = arith.mulf %108, %109 : vector<32x4xf32>
      %111 = vector.broadcast %48 : vector<1x4xf32> to vector<32x4xf32>
      %112 = arith.addf %110, %111 : vector<32x4xf32>
      %113 = tpu.concatenate %74, %106 in 1 : vector<32x4xf32>, vector<32x4xf32> -> vector<32x8xf32>
      %114 = vector.shape_cast %113 : vector<32x8xf32> to vector<8x4x8xf32>
      %115 = tpu.concatenate %80, %112 in 1 : vector<32x4xf32>, vector<32x4xf32> -> vector<32x8xf32>
      %116 = vector.shape_cast %115 : vector<32x8xf32> to vector<8x4x8xf32>
      %117 = arith.truncf %114 : vector<8x4x8xf32> to vector<8x4x8xbf16>
      %c0_69 = arith.constant 0 : index
      %c0_70 = arith.constant 0 : index
      %c0_71 = arith.constant 0 : index
      %c0_72 = arith.constant 0 : index
      %118 = vector.load %arg9[%c0_69, %c0_70, %c0_71, %c0_72] : memref<8x2x4x8xbf16, #tpu.memory_space<vmem>>, vector<8x1x4x8xbf16>
      %119 = vector.shape_cast %118 : vector<8x1x4x8xbf16> to vector<8x4x8xbf16>
      %120 = vector.shape_cast %117 : vector<8x4x8xbf16> to vector<8x1x4x8xbf16>
      tpu.vector_store %arg9[%c0_69, %c0_70, %c0_71, %c0_72], %120 {strides = array<i32>} : memref<8x2x4x8xbf16, #tpu.memory_space<vmem>>, vector<8x1x4x8xbf16>,
      %121 = arith.truncf %116 : vector<8x4x8xf32> to vector<8x4x8xbf16>
      %c0_73 = arith.constant 0 : index
      %c0_74 = arith.constant 0 : index
      %c0_75 = arith.constant 0 : index
      %c0_76 = arith.constant 0 : index
      %122 = vector.load %arg10[%c0_73, %c0_74, %c0_75, %c0_76] : memref<8x2x4x8xbf16, #tpu.memory_space<vmem>>, vector<8x1x4x8xbf16>
      %123 = vector.shape_cast %122 : vector<8x1x4x8xbf16> to vector<8x4x8xbf16>
      %124 = vector.shape_cast %121 : vector<8x4x8xbf16> to vector<8x1x4x8xbf16>
      tpu.vector_store %arg10[%c0_73, %c0_74, %c0_75, %c0_76], %124 {strides = array<i32>} : memref<8x2x4x8xbf16, #tpu.memory_space<vmem>>, vector<8x1x4x8xbf16>,
      %c2_77 = arith.constant 2 : index
      %c0_78 = arith.constant 0 : index
      %c0_79 = arith.constant 0 : index
      %125 = vector.load %arg11[%c2_77, %c0_78, %c0_79] : memref<4x32x4xf32, #tpu.memory_space<vmem>>, vector<1x32x4xf32>
      %126 = vector.shape_cast %125 : vector<1x32x4xf32> to vector<32x4xf32>
      %127 = vector.broadcast %44 : vector<1x4xf32> to vector<32x4xf32>
      %128 = arith.addf %126, %127 : vector<32x4xf32>
      %cst_80 = arith.constant dense<0.000000e+00> : vector<32xf32>
      %129 = vector.multi_reduction <add>, %128, %cst_80 [1] : vector<32x4xf32> to vector<32xf32>
      %130 = vector.shape_cast %129 : vector<32xf32> to vector<32x1xf32>
      %cst_81 = arith.constant 4.000000e+00 : f32
      %131 = vector.broadcast %cst_81 : f32 to vector<32x1xf32>
      %132 = arith.divf %130, %131 : vector<32x1xf32>
      %133 = vector.broadcast %132 : vector<32x1xf32> to vector<32x4xf32>
      %134 = arith.subf %128, %133 : vector<32x4xf32>
      %135 = arith.mulf %134, %134 : vector<32x4xf32>
      %cst_82 = arith.constant dense<0.000000e+00> : vector<32xf32>
      %136 = vector.multi_reduction <add>, %135, %cst_82 [1] : vector<32x4xf32> to vector<32xf32>
      %137 = vector.shape_cast %136 : vector<32xf32> to vector<32x1xf32>
      %cst_83 = arith.constant 4.000000e+00 : f32
      %138 = vector.broadcast %cst_83 : f32 to vector<32x1xf32>
      %139 = arith.divf %137, %138 : vector<32x1xf32>
      %cst_84 = arith.constant 9.99999997E-7 : f32
      %140 = vector.broadcast %cst_84 : f32 to vector<32x1xf32>
      %141 = arith.addf %139, %140 : vector<32x1xf32>
      %142 = math.rsqrt %141 : vector<32x1xf32>
      %143 = vector.broadcast %142 : vector<32x1xf32> to vector<32x4xf32>
      %144 = arith.mulf %134, %143 : vector<32x4xf32>
      %145 = vector.broadcast %45 : vector<1x4xf32> to vector<32x4xf32>
      %146 = arith.mulf %144, %145 : vector<32x4xf32>
      %147 = vector.broadcast %46 : vector<1x4xf32> to vector<32x4xf32>
      %148 = arith.addf %146, %147 : vector<32x4xf32>
      %cst_85 = arith.constant 0.000000e+00 : f32
      %149 = vector.broadcast %cst_85 : f32 to vector<32x4xf32>
      %150 = arith.maximumf %148, %149 : vector<32x4xf32>
      %151 = vector.broadcast %142 : vector<32x1xf32> to vector<32x4xf32>
      %152 = arith.mulf %134, %151 : vector<32x4xf32>
      %153 = vector.broadcast %47 : vector<1x4xf32> to vector<32x4xf32>
      %154 = arith.mulf %152, %153 : vector<32x4xf32>
      %155 = vector.broadcast %48 : vector<1x4xf32> to vector<32x4xf32>
      %156 = arith.addf %154, %155 : vector<32x4xf32>
      %c3_86 = arith.constant 3 : index
      %c0_87 = arith.constant 0 : index
      %c0_88 = arith.constant 0 : index
      %157 = vector.load %arg11[%c3_86, %c0_87, %c0_88] : memref<4x32x4xf32, #tpu.memory_space<vmem>>, vector<1x32x4xf32>
      %158 = vector.shape_cast %157 : vector<1x32x4xf32> to vector<32x4xf32>
      %159 = vector.broadcast %44 : vector<1x4xf32> to vector<32x4xf32>
      %160 = arith.addf %158, %159 : vector<32x4xf32>
      %cst_89 = arith.constant dense<0.000000e+00> : vector<32xf32>
      %161 = vector.multi_reduction <add>, %160, %cst_89 [1] : vector<32x4xf32> to vector<32xf32>
      %162 = vector.shape_cast %161 : vector<32xf32> to vector<32x1xf32>
      %cst_90 = arith.constant 4.000000e+00 : f32
      %163 = vector.broadcast %cst_90 : f32 to vector<32x1xf32>
      %164 = arith.divf %162, %163 : vector<32x1xf32>
      %165 = vector.broadcast %164 : vector<32x1xf32> to vector<32x4xf32>
      %166 = arith.subf %160, %165 : vector<32x4xf32>
      %167 = arith.mulf %166, %166 : vector<32x4xf32>
      %cst_91 = arith.constant dense<0.000000e+00> : vector<32xf32>
      %168 = vector.multi_reduction <add>, %167, %cst_91 [1] : vector<32x4xf32> to vector<32xf32>
      %169 = vector.shape_cast %168 : vector<32xf32> to vector<32x1xf32>
      %cst_92 = arith.constant 4.000000e+00 : f32
      %170 = vector.broadcast %cst_92 : f32 to vector<32x1xf32>
      %171 = arith.divf %169, %170 : vector<32x1xf32>
      %cst_93 = arith.constant 9.99999997E-7 : f32
      %172 = vector.broadcast %cst_93 : f32 to vector<32x1xf32>
      %173 = arith.addf %171, %172 : vector<32x1xf32>
      %174 = math.rsqrt %173 : vector<32x1xf32>
      %175 = vector.broadcast %174 : vector<32x1xf32> to vector<32x4xf32>
      %176 = arith.mulf %166, %175 : vector<32x4xf32>
      %177 = vector.broadcast %45 : vector<1x4xf32> to vector<32x4xf32>
      %178 = arith.mulf %176, %177 : vector<32x4xf32>
      %179 = vector.broadcast %46 : vector<1x4xf32> to vector<32x4xf32>
      %180 = arith.addf %178, %179 : vector<32x4xf32>
      %cst_94 = arith.constant 0.000000e+00 : f32
      %181 = vector.broadcast %cst_94 : f32 to vector<32x4xf32>
      %182 = arith.maximumf %180, %181 : vector<32x4xf32>
      %183 = vector.broadcast %174 : vector<32x1xf32> to vector<32x4xf32>
      %184 = arith.mulf %166, %183 : vector<32x4xf32>
      %185 = vector.broadcast %47 : vector<1x4xf32> to vector<32x4xf32>
      %186 = arith.mulf %184, %185 : vector<32x4xf32>
      %187 = vector.broadcast %48 : vector<1x4xf32> to vector<32x4xf32>
      %188 = arith.addf %186, %187 : vector<32x4xf32>
      %189 = tpu.concatenate %150, %182 in 1 : vector<32x4xf32>, vector<32x4xf32> -> vector<32x8xf32>
      %190 = vector.shape_cast %189 : vector<32x8xf32> to vector<8x4x8xf32>
      %191 = tpu.concatenate %156, %188 in 1 : vector<32x4xf32>, vector<32x4xf32> -> vector<32x8xf32>
      %192 = vector.shape_cast %191 : vector<32x8xf32> to vector<8x4x8xf32>
      %193 = arith.truncf %190 : vector<8x4x8xf32> to vector<8x4x8xbf16>
      %c0_95 = arith.constant 0 : index
      %c1_96 = arith.constant 1 : index
      %c0_97 = arith.constant 0 : index
      %c0_98 = arith.constant 0 : index
      %194 = vector.load %arg9[%c0_95, %c1_96, %c0_97, %c0_98] : memref<8x2x4x8xbf16, #tpu.memory_space<vmem>>, vector<8x1x4x8xbf16>
      %195 = vector.shape_cast %194 : vector<8x1x4x8xbf16> to vector<8x4x8xbf16>
      %196 = vector.shape_cast %193 : vector<8x4x8xbf16> to vector<8x1x4x8xbf16>
      tpu.vector_store %arg9[%c0_95, %c1_96, %c0_97, %c0_98], %196 {strides = array<i32>} : memref<8x2x4x8xbf16, #tpu.memory_space<vmem>>, vector<8x1x4x8xbf16>,
      %197 = arith.truncf %192 : vector<8x4x8xf32> to vector<8x4x8xbf16>
      %c0_99 = arith.constant 0 : index
      %c1_100 = arith.constant 1 : index
      %c0_101 = arith.constant 0 : index
      %c0_102 = arith.constant 0 : index
      %198 = vector.load %arg10[%c0_99, %c1_100, %c0_101, %c0_102] : memref<8x2x4x8xbf16, #tpu.memory_space<vmem>>, vector<8x1x4x8xbf16>
      %199 = vector.shape_cast %198 : vector<8x1x4x8xbf16> to vector<8x4x8xbf16>
      %200 = vector.shape_cast %197 : vector<8x4x8xbf16> to vector<8x1x4x8xbf16>
      tpu.vector_store %arg10[%c0_99, %c1_100, %c0_101, %c0_102], %200 {strides = array<i32>} : memref<8x2x4x8xbf16, #tpu.memory_space<vmem>>, vector<8x1x4x8xbf16>,
    } else {
    }
    return
  }
  func.func @transform_0(%arg0: i32, %arg1: i32) -> (i32, i32, i32) {
    %c0_i32 = arith.constant 0 : i32
    %c0_i32_0 = arith.constant 0 : i32
    return %arg0, %c0_i32, %arg1 : i32, i32, i32
  }
  func.func @transform_1(%arg0: i32, %arg1: i32) -> (i32, i32, i32) {
    %c0_i32 = arith.constant 0 : i32
    %c0_i32_0 = arith.constant 0 : i32
    %c0_i32_1 = arith.constant 0 : i32
    return %c0_i32, %arg1, %c0_i32_0 : i32, i32, i32
  }
  func.func @transform_2(%arg0: i32, %arg1: i32) -> (i32, i32) {
    %c0_i32 = arith.constant 0 : i32
    %c0_i32_0 = arith.constant 0 : i32
    %c0_i32_1 = arith.constant 0 : i32
    return %c0_i32, %c0_i32_0 : i32, i32
  }
  func.func @transform_3(%arg0: i32, %arg1: i32) -> (i32, i32) {
    %c0_i32 = arith.constant 0 : i32
    %c0_i32_0 = arith.constant 0 : i32
    %c0_i32_1 = arith.constant 0 : i32
    return %c0_i32, %c0_i32_0 : i32, i32
  }
  func.func @transform_4(%arg0: i32, %arg1: i32) -> (i32, i32) {
    %c0_i32 = arith.constant 0 : i32
    %c0_i32_0 = arith.constant 0 : i32
    %c0_i32_1 = arith.constant 0 : i32
    return %c0_i32, %c0_i32_0 : i32, i32
  }
  func.func @transform_5(%arg0: i32, %arg1: i32) -> (i32, i32) {
    %c0_i32 = arith.constant 0 : i32
    %c0_i32_0 = arith.constant 0 : i32
    %c0_i32_1 = arith.constant 0 : i32
    return %c0_i32, %c0_i32_0 : i32, i32
  }
  func.func @transform_6(%arg0: i32, %arg1: i32) -> (i32, i32) {
    %c0_i32 = arith.constant 0 : i32
    %c0_i32_0 = arith.constant 0 : i32
    %c0_i32_1 = arith.constant 0 : i32
    return %c0_i32, %c0_i32_0 : i32, i32
  }
  func.func @transform_7(%arg0: i32, %arg1: i32) -> (i32, i32, i32, i32) {
    %c0_i32 = arith.constant 0 : i32
    %c0_i32_0 = arith.constant 0 : i32
    %c0_i32_1 = arith.constant 0 : i32
    %c0_i32_2 = arith.constant 0 : i32
    return %arg0, %c0_i32, %c0_i32_0, %c0_i32_1 : i32, i32, i32, i32
  }
  func.func @transform_8(%arg0: i32, %arg1: i32) -> (i32, i32, i32, i32) {
    %c0_i32 = arith.constant 0 : i32
    %c0_i32_0 = arith.constant 0 : i32
    %c0_i32_1 = arith.constant 0 : i32
    %c0_i32_2 = arith.constant 0 : i32
    return %arg0, %c0_i32, %c0_i32_0, %c0_i32_1 : i32, i32, i32, i32
  }
}

module attributes {stable_mosaic.version = 11 : i64} {
  func.func @_conv3x3_ln_add_relu_kernel(%arg0: i32, %arg1: i32, %arg2: memref<1x10x10x4xbf16, #tpu.memory_space<vmem>>, %arg3: memref<1x8x8x4xbf16, #tpu.memory_space<vmem>>, %arg4: memref<9x4x4xbf16, #tpu.memory_space<vmem>>, %arg5: memref<1x4xf32, #tpu.memory_space<vmem>>, %arg6: memref<1x4xf32, #tpu.memory_space<vmem>>, %arg7: memref<1x4xf32, #tpu.memory_space<vmem>>, %arg8: memref<1x8x8x4xbf16, #tpu.memory_space<vmem>>, %arg9: memref<64x4xf32, #tpu.memory_space<vmem>>) attributes {dimension_semantics = [#tpu.dimension_semantics<parallel>, #tpu.dimension_semantics<arbitrary>], iteration_bounds = array<i64: 2, 1>, scalar_prefetch = 0 : i64, scratch_operands = 1 : i64, tpu.core_type = #tpu.core_type<tc>, window_params = [{transform_indices = @transform_0, window_bounds = array<i64: 1, 10, 10, 4>}, {transform_indices = @transform_1, window_bounds = array<i64: 1, 8, 8, 4>}, {transform_indices = @transform_2, window_bounds = array<i64: 9, 4, 4>}, {pipeline_mode = #tpu.pipeline_mode<synchronous>, transform_indices = @transform_3, window_bounds = array<i64: 1, 4>}, {pipeline_mode = #tpu.pipeline_mode<synchronous>, transform_indices = @transform_4, window_bounds = array<i64: 1, 4>}, {pipeline_mode = #tpu.pipeline_mode<synchronous>, transform_indices = @transform_5, window_bounds = array<i64: 1, 4>}, {transform_indices = @transform_6, window_bounds = array<i64: 1, 8, 8, 4>}]} {
    %c0_i32 = arith.constant 0 : i32
    %0 = arith.cmpi eq, %arg1, %c0_i32 : i32
    %1 = arith.extui %0 : i1 to i32
    %c0_i32_0 = arith.constant 0 : i32
    %2 = arith.cmpi ne, %1, %c0_i32_0 : i32
    scf.if %2 {
      %cst_101 = arith.constant 0.000000e+00 : f32
      %87 = vector.broadcast %cst_101 : f32 to vector<64x4xf32>
      %c0_102 = arith.constant 0 : index
      %c0_103 = arith.constant 0 : index
      %88 = vector.load %arg9[%c0_102, %c0_103] : memref<64x4xf32, #tpu.memory_space<vmem>>, vector<64x4xf32>
      tpu.vector_store %arg9[%c0_102, %c0_103], %87 {strides = array<i32>} : memref<64x4xf32, #tpu.memory_space<vmem>>, vector<64x4xf32>,
    } else {
    }
    %c0 = arith.constant 0 : index
    %c0_1 = arith.constant 0 : index
    %c0_2 = arith.constant 0 : index
    %c0_3 = arith.constant 0 : index
    %3 = vector.load %arg2[%c0, %c0_1, %c0_2, %c0_3] : memref<1x10x10x4xbf16, #tpu.memory_space<vmem>>, vector<1x8x8x4xbf16>
    %4 = vector.shape_cast %3 : vector<1x8x8x4xbf16> to vector<8x8x4xbf16>
    %5 = vector.shape_cast %4 : vector<8x8x4xbf16> to vector<64x4xbf16>
    %c0_4 = arith.constant 0 : index
    %c0_5 = arith.constant 0 : index
    %6 = vector.load %arg9[%c0_4, %c0_5] : memref<64x4xf32, #tpu.memory_space<vmem>>, vector<64x4xf32>
    %c0_6 = arith.constant 0 : index
    %c0_7 = arith.constant 0 : index
    %c0_8 = arith.constant 0 : index
    %7 = vector.load %arg4[%c0_6, %c0_7, %c0_8] : memref<9x4x4xbf16, #tpu.memory_space<vmem>>, vector<1x4x4xbf16>
    %8 = vector.shape_cast %7 : vector<1x4x4xbf16> to vector<4x4xbf16>
    %cst = arith.constant dense<0.000000e+00> : vector<64x4xf32>
    %9 = tpu.matmul %5, %8, %cst {dimension_numbers = #tpu.dot_dimension_numbers<[1], [0], [0], [1], [0, 0, 1, 1], [], []>} : vector<64x4xbf16>, vector<4x4xbf16>, vector<64x4xf32> -> vector<64x4xf32>
    %10 = arith.addf %6, %9 : vector<64x4xf32>
    %c0_9 = arith.constant 0 : index
    %c0_10 = arith.constant 0 : index
    %11 = vector.load %arg9[%c0_9, %c0_10] : memref<64x4xf32, #tpu.memory_space<vmem>>, vector<64x4xf32>
    tpu.vector_store %arg9[%c0_9, %c0_10], %10 {strides = array<i32>} : memref<64x4xf32, #tpu.memory_space<vmem>>, vector<64x4xf32>,
    %c0_11 = arith.constant 0 : index
    %c0_12 = arith.constant 0 : index
    %c1 = arith.constant 1 : index
    %c0_13 = arith.constant 0 : index
    %12 = vector.load %arg2[%c0_11, %c0_12, %c1, %c0_13] : memref<1x10x10x4xbf16, #tpu.memory_space<vmem>>, vector<1x8x8x4xbf16>
    %13 = vector.shape_cast %12 : vector<1x8x8x4xbf16> to vector<8x8x4xbf16>
    %14 = vector.shape_cast %13 : vector<8x8x4xbf16> to vector<64x4xbf16>
    %c0_14 = arith.constant 0 : index
    %c0_15 = arith.constant 0 : index
    %15 = vector.load %arg9[%c0_14, %c0_15] : memref<64x4xf32, #tpu.memory_space<vmem>>, vector<64x4xf32>
    %c1_16 = arith.constant 1 : index
    %c0_17 = arith.constant 0 : index
    %c0_18 = arith.constant 0 : index
    %16 = vector.load %arg4[%c1_16, %c0_17, %c0_18] : memref<9x4x4xbf16, #tpu.memory_space<vmem>>, vector<1x4x4xbf16>
    %17 = vector.shape_cast %16 : vector<1x4x4xbf16> to vector<4x4xbf16>
    %cst_19 = arith.constant dense<0.000000e+00> : vector<64x4xf32>
    %18 = tpu.matmul %14, %17, %cst_19 {dimension_numbers = #tpu.dot_dimension_numbers<[1], [0], [0], [1], [0, 0, 1, 1], [], []>} : vector<64x4xbf16>, vector<4x4xbf16>, vector<64x4xf32> -> vector<64x4xf32>
    %19 = arith.addf %15, %18 : vector<64x4xf32>
    %c0_20 = arith.constant 0 : index
    %c0_21 = arith.constant 0 : index
    %20 = vector.load %arg9[%c0_20, %c0_21] : memref<64x4xf32, #tpu.memory_space<vmem>>, vector<64x4xf32>
    tpu.vector_store %arg9[%c0_20, %c0_21], %19 {strides = array<i32>} : memref<64x4xf32, #tpu.memory_space<vmem>>, vector<64x4xf32>,
    %c0_22 = arith.constant 0 : index
    %c0_23 = arith.constant 0 : index
    %c2 = arith.constant 2 : index
    %c0_24 = arith.constant 0 : index
    %21 = vector.load %arg2[%c0_22, %c0_23, %c2, %c0_24] : memref<1x10x10x4xbf16, #tpu.memory_space<vmem>>, vector<1x8x8x4xbf16>
    %22 = vector.shape_cast %21 : vector<1x8x8x4xbf16> to vector<8x8x4xbf16>
    %23 = vector.shape_cast %22 : vector<8x8x4xbf16> to vector<64x4xbf16>
    %c0_25 = arith.constant 0 : index
    %c0_26 = arith.constant 0 : index
    %24 = vector.load %arg9[%c0_25, %c0_26] : memref<64x4xf32, #tpu.memory_space<vmem>>, vector<64x4xf32>
    %c2_27 = arith.constant 2 : index
    %c0_28 = arith.constant 0 : index
    %c0_29 = arith.constant 0 : index
    %25 = vector.load %arg4[%c2_27, %c0_28, %c0_29] : memref<9x4x4xbf16, #tpu.memory_space<vmem>>, vector<1x4x4xbf16>
    %26 = vector.shape_cast %25 : vector<1x4x4xbf16> to vector<4x4xbf16>
    %cst_30 = arith.constant dense<0.000000e+00> : vector<64x4xf32>
    %27 = tpu.matmul %23, %26, %cst_30 {dimension_numbers = #tpu.dot_dimension_numbers<[1], [0], [0], [1], [0, 0, 1, 1], [], []>} : vector<64x4xbf16>, vector<4x4xbf16>, vector<64x4xf32> -> vector<64x4xf32>
    %28 = arith.addf %24, %27 : vector<64x4xf32>
    %c0_31 = arith.constant 0 : index
    %c0_32 = arith.constant 0 : index
    %29 = vector.load %arg9[%c0_31, %c0_32] : memref<64x4xf32, #tpu.memory_space<vmem>>, vector<64x4xf32>
    tpu.vector_store %arg9[%c0_31, %c0_32], %28 {strides = array<i32>} : memref<64x4xf32, #tpu.memory_space<vmem>>, vector<64x4xf32>,
    %c0_33 = arith.constant 0 : index
    %c1_34 = arith.constant 1 : index
    %c0_35 = arith.constant 0 : index
    %c0_36 = arith.constant 0 : index
    %30 = vector.load %arg2[%c0_33, %c1_34, %c0_35, %c0_36] : memref<1x10x10x4xbf16, #tpu.memory_space<vmem>>, vector<1x8x8x4xbf16>
    %31 = vector.shape_cast %30 : vector<1x8x8x4xbf16> to vector<8x8x4xbf16>
    %32 = vector.shape_cast %31 : vector<8x8x4xbf16> to vector<64x4xbf16>
    %c0_37 = arith.constant 0 : index
    %c0_38 = arith.constant 0 : index
    %33 = vector.load %arg9[%c0_37, %c0_38] : memref<64x4xf32, #tpu.memory_space<vmem>>, vector<64x4xf32>
    %c3 = arith.constant 3 : index
    %c0_39 = arith.constant 0 : index
    %c0_40 = arith.constant 0 : index
    %34 = vector.load %arg4[%c3, %c0_39, %c0_40] : memref<9x4x4xbf16, #tpu.memory_space<vmem>>, vector<1x4x4xbf16>
    %35 = vector.shape_cast %34 : vector<1x4x4xbf16> to vector<4x4xbf16>
    %cst_41 = arith.constant dense<0.000000e+00> : vector<64x4xf32>
    %36 = tpu.matmul %32, %35, %cst_41 {dimension_numbers = #tpu.dot_dimension_numbers<[1], [0], [0], [1], [0, 0, 1, 1], [], []>} : vector<64x4xbf16>, vector<4x4xbf16>, vector<64x4xf32> -> vector<64x4xf32>
    %37 = arith.addf %33, %36 : vector<64x4xf32>
    %c0_42 = arith.constant 0 : index
    %c0_43 = arith.constant 0 : index
    %38 = vector.load %arg9[%c0_42, %c0_43] : memref<64x4xf32, #tpu.memory_space<vmem>>, vector<64x4xf32>
    tpu.vector_store %arg9[%c0_42, %c0_43], %37 {strides = array<i32>} : memref<64x4xf32, #tpu.memory_space<vmem>>, vector<64x4xf32>,
    %c0_44 = arith.constant 0 : index
    %c1_45 = arith.constant 1 : index
    %c1_46 = arith.constant 1 : index
    %c0_47 = arith.constant 0 : index
    %39 = vector.load %arg2[%c0_44, %c1_45, %c1_46, %c0_47] : memref<1x10x10x4xbf16, #tpu.memory_space<vmem>>, vector<1x8x8x4xbf16>
    %40 = vector.shape_cast %39 : vector<1x8x8x4xbf16> to vector<8x8x4xbf16>
    %41 = vector.shape_cast %40 : vector<8x8x4xbf16> to vector<64x4xbf16>
    %c0_48 = arith.constant 0 : index
    %c0_49 = arith.constant 0 : index
    %42 = vector.load %arg9[%c0_48, %c0_49] : memref<64x4xf32, #tpu.memory_space<vmem>>, vector<64x4xf32>
    %c4 = arith.constant 4 : index
    %c0_50 = arith.constant 0 : index
    %c0_51 = arith.constant 0 : index
    %43 = vector.load %arg4[%c4, %c0_50, %c0_51] : memref<9x4x4xbf16, #tpu.memory_space<vmem>>, vector<1x4x4xbf16>
    %44 = vector.shape_cast %43 : vector<1x4x4xbf16> to vector<4x4xbf16>
    %cst_52 = arith.constant dense<0.000000e+00> : vector<64x4xf32>
    %45 = tpu.matmul %41, %44, %cst_52 {dimension_numbers = #tpu.dot_dimension_numbers<[1], [0], [0], [1], [0, 0, 1, 1], [], []>} : vector<64x4xbf16>, vector<4x4xbf16>, vector<64x4xf32> -> vector<64x4xf32>
    %46 = arith.addf %42, %45 : vector<64x4xf32>
    %c0_53 = arith.constant 0 : index
    %c0_54 = arith.constant 0 : index
    %47 = vector.load %arg9[%c0_53, %c0_54] : memref<64x4xf32, #tpu.memory_space<vmem>>, vector<64x4xf32>
    tpu.vector_store %arg9[%c0_53, %c0_54], %46 {strides = array<i32>} : memref<64x4xf32, #tpu.memory_space<vmem>>, vector<64x4xf32>,
    %c0_55 = arith.constant 0 : index
    %c1_56 = arith.constant 1 : index
    %c2_57 = arith.constant 2 : index
    %c0_58 = arith.constant 0 : index
    %48 = vector.load %arg2[%c0_55, %c1_56, %c2_57, %c0_58] : memref<1x10x10x4xbf16, #tpu.memory_space<vmem>>, vector<1x8x8x4xbf16>
    %49 = vector.shape_cast %48 : vector<1x8x8x4xbf16> to vector<8x8x4xbf16>
    %50 = vector.shape_cast %49 : vector<8x8x4xbf16> to vector<64x4xbf16>
    %c0_59 = arith.constant 0 : index
    %c0_60 = arith.constant 0 : index
    %51 = vector.load %arg9[%c0_59, %c0_60] : memref<64x4xf32, #tpu.memory_space<vmem>>, vector<64x4xf32>
    %c5 = arith.constant 5 : index
    %c0_61 = arith.constant 0 : index
    %c0_62 = arith.constant 0 : index
    %52 = vector.load %arg4[%c5, %c0_61, %c0_62] : memref<9x4x4xbf16, #tpu.memory_space<vmem>>, vector<1x4x4xbf16>
    %53 = vector.shape_cast %52 : vector<1x4x4xbf16> to vector<4x4xbf16>
    %cst_63 = arith.constant dense<0.000000e+00> : vector<64x4xf32>
    %54 = tpu.matmul %50, %53, %cst_63 {dimension_numbers = #tpu.dot_dimension_numbers<[1], [0], [0], [1], [0, 0, 1, 1], [], []>} : vector<64x4xbf16>, vector<4x4xbf16>, vector<64x4xf32> -> vector<64x4xf32>
    %55 = arith.addf %51, %54 : vector<64x4xf32>
    %c0_64 = arith.constant 0 : index
    %c0_65 = arith.constant 0 : index
    %56 = vector.load %arg9[%c0_64, %c0_65] : memref<64x4xf32, #tpu.memory_space<vmem>>, vector<64x4xf32>
    tpu.vector_store %arg9[%c0_64, %c0_65], %55 {strides = array<i32>} : memref<64x4xf32, #tpu.memory_space<vmem>>, vector<64x4xf32>,
    %c0_66 = arith.constant 0 : index
    %c2_67 = arith.constant 2 : index
    %c0_68 = arith.constant 0 : index
    %c0_69 = arith.constant 0 : index
    %57 = vector.load %arg2[%c0_66, %c2_67, %c0_68, %c0_69] : memref<1x10x10x4xbf16, #tpu.memory_space<vmem>>, vector<1x8x8x4xbf16>
    %58 = vector.shape_cast %57 : vector<1x8x8x4xbf16> to vector<8x8x4xbf16>
    %59 = vector.shape_cast %58 : vector<8x8x4xbf16> to vector<64x4xbf16>
    %c0_70 = arith.constant 0 : index
    %c0_71 = arith.constant 0 : index
    %60 = vector.load %arg9[%c0_70, %c0_71] : memref<64x4xf32, #tpu.memory_space<vmem>>, vector<64x4xf32>
    %c6 = arith.constant 6 : index
    %c0_72 = arith.constant 0 : index
    %c0_73 = arith.constant 0 : index
    %61 = vector.load %arg4[%c6, %c0_72, %c0_73] : memref<9x4x4xbf16, #tpu.memory_space<vmem>>, vector<1x4x4xbf16>
    %62 = vector.shape_cast %61 : vector<1x4x4xbf16> to vector<4x4xbf16>
    %cst_74 = arith.constant dense<0.000000e+00> : vector<64x4xf32>
    %63 = tpu.matmul %59, %62, %cst_74 {dimension_numbers = #tpu.dot_dimension_numbers<[1], [0], [0], [1], [0, 0, 1, 1], [], []>} : vector<64x4xbf16>, vector<4x4xbf16>, vector<64x4xf32> -> vector<64x4xf32>
    %64 = arith.addf %60, %63 : vector<64x4xf32>
    %c0_75 = arith.constant 0 : index
    %c0_76 = arith.constant 0 : index
    %65 = vector.load %arg9[%c0_75, %c0_76] : memref<64x4xf32, #tpu.memory_space<vmem>>, vector<64x4xf32>
    tpu.vector_store %arg9[%c0_75, %c0_76], %64 {strides = array<i32>} : memref<64x4xf32, #tpu.memory_space<vmem>>, vector<64x4xf32>,
    %c0_77 = arith.constant 0 : index
    %c2_78 = arith.constant 2 : index
    %c1_79 = arith.constant 1 : index
    %c0_80 = arith.constant 0 : index
    %66 = vector.load %arg2[%c0_77, %c2_78, %c1_79, %c0_80] : memref<1x10x10x4xbf16, #tpu.memory_space<vmem>>, vector<1x8x8x4xbf16>
    %67 = vector.shape_cast %66 : vector<1x8x8x4xbf16> to vector<8x8x4xbf16>
    %68 = vector.shape_cast %67 : vector<8x8x4xbf16> to vector<64x4xbf16>
    %c0_81 = arith.constant 0 : index
    %c0_82 = arith.constant 0 : index
    %69 = vector.load %arg9[%c0_81, %c0_82] : memref<64x4xf32, #tpu.memory_space<vmem>>, vector<64x4xf32>
    %c7 = arith.constant 7 : index
    %c0_83 = arith.constant 0 : index
    %c0_84 = arith.constant 0 : index
    %70 = vector.load %arg4[%c7, %c0_83, %c0_84] : memref<9x4x4xbf16, #tpu.memory_space<vmem>>, vector<1x4x4xbf16>
    %71 = vector.shape_cast %70 : vector<1x4x4xbf16> to vector<4x4xbf16>
    %cst_85 = arith.constant dense<0.000000e+00> : vector<64x4xf32>
    %72 = tpu.matmul %68, %71, %cst_85 {dimension_numbers = #tpu.dot_dimension_numbers<[1], [0], [0], [1], [0, 0, 1, 1], [], []>} : vector<64x4xbf16>, vector<4x4xbf16>, vector<64x4xf32> -> vector<64x4xf32>
    %73 = arith.addf %69, %72 : vector<64x4xf32>
    %c0_86 = arith.constant 0 : index
    %c0_87 = arith.constant 0 : index
    %74 = vector.load %arg9[%c0_86, %c0_87] : memref<64x4xf32, #tpu.memory_space<vmem>>, vector<64x4xf32>
    tpu.vector_store %arg9[%c0_86, %c0_87], %73 {strides = array<i32>} : memref<64x4xf32, #tpu.memory_space<vmem>>, vector<64x4xf32>,
    %c0_88 = arith.constant 0 : index
    %c2_89 = arith.constant 2 : index
    %c2_90 = arith.constant 2 : index
    %c0_91 = arith.constant 0 : index
    %75 = vector.load %arg2[%c0_88, %c2_89, %c2_90, %c0_91] : memref<1x10x10x4xbf16, #tpu.memory_space<vmem>>, vector<1x8x8x4xbf16>
    %76 = vector.shape_cast %75 : vector<1x8x8x4xbf16> to vector<8x8x4xbf16>
    %77 = vector.shape_cast %76 : vector<8x8x4xbf16> to vector<64x4xbf16>
    %c0_92 = arith.constant 0 : index
    %c0_93 = arith.constant 0 : index
    %78 = vector.load %arg9[%c0_92, %c0_93] : memref<64x4xf32, #tpu.memory_space<vmem>>, vector<64x4xf32>
    %c8 = arith.constant 8 : index
    %c0_94 = arith.constant 0 : index
    %c0_95 = arith.constant 0 : index
    %79 = vector.load %arg4[%c8, %c0_94, %c0_95] : memref<9x4x4xbf16, #tpu.memory_space<vmem>>, vector<1x4x4xbf16>
    %80 = vector.shape_cast %79 : vector<1x4x4xbf16> to vector<4x4xbf16>
    %cst_96 = arith.constant dense<0.000000e+00> : vector<64x4xf32>
    %81 = tpu.matmul %77, %80, %cst_96 {dimension_numbers = #tpu.dot_dimension_numbers<[1], [0], [0], [1], [0, 0, 1, 1], [], []>} : vector<64x4xbf16>, vector<4x4xbf16>, vector<64x4xf32> -> vector<64x4xf32>
    %82 = arith.addf %78, %81 : vector<64x4xf32>
    %c0_97 = arith.constant 0 : index
    %c0_98 = arith.constant 0 : index
    %83 = vector.load %arg9[%c0_97, %c0_98] : memref<64x4xf32, #tpu.memory_space<vmem>>, vector<64x4xf32>
    tpu.vector_store %arg9[%c0_97, %c0_98], %82 {strides = array<i32>} : memref<64x4xf32, #tpu.memory_space<vmem>>, vector<64x4xf32>,
    %c0_i32_99 = arith.constant 0 : i32
    %84 = arith.cmpi eq, %arg1, %c0_i32_99 : i32
    %85 = arith.extui %84 : i1 to i32
    %c0_i32_100 = arith.constant 0 : i32
    %86 = arith.cmpi ne, %85, %c0_i32_100 : i32
    scf.if %86 {
      %c0_101 = arith.constant 0 : index
      %c0_102 = arith.constant 0 : index
      %87 = vector.load %arg9[%c0_101, %c0_102] : memref<64x4xf32, #tpu.memory_space<vmem>>, vector<64x4xf32>
      %c0_103 = arith.constant 0 : index
      %c0_104 = arith.constant 0 : index
      %88 = vector.load %arg5[%c0_103, %c0_104] : memref<1x4xf32, #tpu.memory_space<vmem>>, vector<1x4xf32>
      %89 = vector.broadcast %88 : vector<1x4xf32> to vector<64x4xf32>
      %90 = arith.addf %87, %89 : vector<64x4xf32>
      %c0_105 = arith.constant 0 : index
      %c0_106 = arith.constant 0 : index
      %91 = vector.load %arg6[%c0_105, %c0_106] : memref<1x4xf32, #tpu.memory_space<vmem>>, vector<1x4xf32>
      %c0_107 = arith.constant 0 : index
      %c0_108 = arith.constant 0 : index
      %92 = vector.load %arg7[%c0_107, %c0_108] : memref<1x4xf32, #tpu.memory_space<vmem>>, vector<1x4xf32>
      %cst_109 = arith.constant dense<0.000000e+00> : vector<64xf32>
      %93 = vector.multi_reduction <add>, %90, %cst_109 [1] : vector<64x4xf32> to vector<64xf32>
      %94 = vector.shape_cast %93 : vector<64xf32> to vector<64x1xf32>
      %cst_110 = arith.constant 4.000000e+00 : f32
      %95 = vector.broadcast %cst_110 : f32 to vector<64x1xf32>
      %96 = arith.divf %94, %95 : vector<64x1xf32>
      %97 = vector.broadcast %96 : vector<64x1xf32> to vector<64x4xf32>
      %98 = arith.subf %90, %97 : vector<64x4xf32>
      %99 = arith.mulf %98, %98 : vector<64x4xf32>
      %cst_111 = arith.constant dense<0.000000e+00> : vector<64xf32>
      %100 = vector.multi_reduction <add>, %99, %cst_111 [1] : vector<64x4xf32> to vector<64xf32>
      %101 = vector.shape_cast %100 : vector<64xf32> to vector<64x1xf32>
      %cst_112 = arith.constant 4.000000e+00 : f32
      %102 = vector.broadcast %cst_112 : f32 to vector<64x1xf32>
      %103 = arith.divf %101, %102 : vector<64x1xf32>
      %cst_113 = arith.constant 9.99999997E-7 : f32
      %104 = vector.broadcast %cst_113 : f32 to vector<64x1xf32>
      %105 = arith.addf %103, %104 : vector<64x1xf32>
      %106 = math.rsqrt %105 : vector<64x1xf32>
      %107 = vector.broadcast %106 : vector<64x1xf32> to vector<64x4xf32>
      %108 = arith.mulf %98, %107 : vector<64x4xf32>
      %109 = vector.broadcast %91 : vector<1x4xf32> to vector<64x4xf32>
      %110 = arith.mulf %108, %109 : vector<64x4xf32>
      %111 = vector.broadcast %92 : vector<1x4xf32> to vector<64x4xf32>
      %112 = arith.addf %110, %111 : vector<64x4xf32>
      %113 = vector.shape_cast %112 : vector<64x4xf32> to vector<1x8x8x4xf32>
      %c0_114 = arith.constant 0 : index
      %c0_115 = arith.constant 0 : index
      %c0_116 = arith.constant 0 : index
      %c0_117 = arith.constant 0 : index
      %114 = vector.load %arg3[%c0_114, %c0_115, %c0_116, %c0_117] : memref<1x8x8x4xbf16, #tpu.memory_space<vmem>>, vector<1x8x8x4xbf16>
      %115 = arith.extf %114 : vector<1x8x8x4xbf16> to vector<1x8x8x4xf32>
      %116 = arith.addf %113, %115 : vector<1x8x8x4xf32>
      %cst_118 = arith.constant 0.000000e+00 : f32
      %117 = vector.broadcast %cst_118 : f32 to vector<1x8x8x4xf32>
      %118 = arith.maximumf %116, %117 : vector<1x8x8x4xf32>
      %119 = arith.truncf %118 : vector<1x8x8x4xf32> to vector<1x8x8x4xbf16>
      %c0_119 = arith.constant 0 : index
      %c0_120 = arith.constant 0 : index
      %c0_121 = arith.constant 0 : index
      %c0_122 = arith.constant 0 : index
      %120 = vector.load %arg8[%c0_119, %c0_120, %c0_121, %c0_122] : memref<1x8x8x4xbf16, #tpu.memory_space<vmem>>, vector<1x8x8x4xbf16>
      tpu.vector_store %arg8[%c0_119, %c0_120, %c0_121, %c0_122], %119 {strides = array<i32>} : memref<1x8x8x4xbf16, #tpu.memory_space<vmem>>, vector<1x8x8x4xbf16>,
    } else {
    }
    return
  }
  func.func @transform_0(%arg0: i32, %arg1: i32) -> (i32, i32, i32, i32) {
    %c0_i32 = arith.constant 0 : i32
    %c0_i32_0 = arith.constant 0 : i32
    %c0_i32_1 = arith.constant 0 : i32
    return %arg0, %c0_i32, %c0_i32_0, %arg1 : i32, i32, i32, i32
  }
  func.func @transform_1(%arg0: i32, %arg1: i32) -> (i32, i32, i32, i32) {
    %c0_i32 = arith.constant 0 : i32
    %c0_i32_0 = arith.constant 0 : i32
    %c0_i32_1 = arith.constant 0 : i32
    %c0_i32_2 = arith.constant 0 : i32
    return %arg0, %c0_i32, %c0_i32_0, %c0_i32_1 : i32, i32, i32, i32
  }
  func.func @transform_2(%arg0: i32, %arg1: i32) -> (i32, i32, i32) {
    %c0_i32 = arith.constant 0 : i32
    %c0_i32_0 = arith.constant 0 : i32
    %c0_i32_1 = arith.constant 0 : i32
    return %c0_i32, %arg1, %c0_i32_0 : i32, i32, i32
  }
  func.func @transform_3(%arg0: i32, %arg1: i32) -> (i32, i32) {
    %c0_i32 = arith.constant 0 : i32
    %c0_i32_0 = arith.constant 0 : i32
    %c0_i32_1 = arith.constant 0 : i32
    return %c0_i32, %c0_i32_0 : i32, i32
  }
  func.func @transform_4(%arg0: i32, %arg1: i32) -> (i32, i32) {
    %c0_i32 = arith.constant 0 : i32
    %c0_i32_0 = arith.constant 0 : i32
    %c0_i32_1 = arith.constant 0 : i32
    return %c0_i32, %c0_i32_0 : i32, i32
  }
  func.func @transform_5(%arg0: i32, %arg1: i32) -> (i32, i32) {
    %c0_i32 = arith.constant 0 : i32
    %c0_i32_0 = arith.constant 0 : i32
    %c0_i32_1 = arith.constant 0 : i32
    return %c0_i32, %c0_i32_0 : i32, i32
  }
  func.func @transform_6(%arg0: i32, %arg1: i32) -> (i32, i32, i32, i32) {
    %c0_i32 = arith.constant 0 : i32
    %c0_i32_0 = arith.constant 0 : i32
    %c0_i32_1 = arith.constant 0 : i32
    %c0_i32_2 = arith.constant 0 : i32
    return %arg0, %c0_i32, %c0_i32_0, %c0_i32_1 : i32, i32, i32, i32
  }
}

module attributes {stable_mosaic.version = 11 : i64} {
  func.func @_conv3x3_ln_relu_kernel(%arg0: i32, %arg1: i32, %arg2: memref<1x10x10x4xbf16, #tpu.memory_space<vmem>>, %arg3: memref<9x4x4xbf16, #tpu.memory_space<vmem>>, %arg4: memref<1x4xf32, #tpu.memory_space<vmem>>, %arg5: memref<1x4xf32, #tpu.memory_space<vmem>>, %arg6: memref<1x4xf32, #tpu.memory_space<vmem>>, %arg7: memref<1x8x8x4xbf16, #tpu.memory_space<vmem>>, %arg8: memref<64x4xf32, #tpu.memory_space<vmem>>) attributes {dimension_semantics = [#tpu.dimension_semantics<parallel>, #tpu.dimension_semantics<arbitrary>], iteration_bounds = array<i64: 2, 1>, scalar_prefetch = 0 : i64, scratch_operands = 1 : i64, tpu.core_type = #tpu.core_type<tc>, window_params = [{transform_indices = @transform_0, window_bounds = array<i64: 1, 10, 10, 4>}, {transform_indices = @transform_1, window_bounds = array<i64: 9, 4, 4>}, {pipeline_mode = #tpu.pipeline_mode<synchronous>, transform_indices = @transform_2, window_bounds = array<i64: 1, 4>}, {pipeline_mode = #tpu.pipeline_mode<synchronous>, transform_indices = @transform_3, window_bounds = array<i64: 1, 4>}, {pipeline_mode = #tpu.pipeline_mode<synchronous>, transform_indices = @transform_4, window_bounds = array<i64: 1, 4>}, {transform_indices = @transform_5, window_bounds = array<i64: 1, 8, 8, 4>}]} {
    %c0_i32 = arith.constant 0 : i32
    %0 = arith.cmpi eq, %arg1, %c0_i32 : i32
    %1 = arith.extui %0 : i1 to i32
    %c0_i32_0 = arith.constant 0 : i32
    %2 = arith.cmpi ne, %1, %c0_i32_0 : i32
    scf.if %2 {
      %cst_101 = arith.constant 0.000000e+00 : f32
      %87 = vector.broadcast %cst_101 : f32 to vector<64x4xf32>
      %c0_102 = arith.constant 0 : index
      %c0_103 = arith.constant 0 : index
      %88 = vector.load %arg8[%c0_102, %c0_103] : memref<64x4xf32, #tpu.memory_space<vmem>>, vector<64x4xf32>
      tpu.vector_store %arg8[%c0_102, %c0_103], %87 {strides = array<i32>} : memref<64x4xf32, #tpu.memory_space<vmem>>, vector<64x4xf32>,
    } else {
    }
    %c0 = arith.constant 0 : index
    %c0_1 = arith.constant 0 : index
    %c0_2 = arith.constant 0 : index
    %c0_3 = arith.constant 0 : index
    %3 = vector.load %arg2[%c0, %c0_1, %c0_2, %c0_3] : memref<1x10x10x4xbf16, #tpu.memory_space<vmem>>, vector<1x8x8x4xbf16>
    %4 = vector.shape_cast %3 : vector<1x8x8x4xbf16> to vector<8x8x4xbf16>
    %5 = vector.shape_cast %4 : vector<8x8x4xbf16> to vector<64x4xbf16>
    %c0_4 = arith.constant 0 : index
    %c0_5 = arith.constant 0 : index
    %6 = vector.load %arg8[%c0_4, %c0_5] : memref<64x4xf32, #tpu.memory_space<vmem>>, vector<64x4xf32>
    %c0_6 = arith.constant 0 : index
    %c0_7 = arith.constant 0 : index
    %c0_8 = arith.constant 0 : index
    %7 = vector.load %arg3[%c0_6, %c0_7, %c0_8] : memref<9x4x4xbf16, #tpu.memory_space<vmem>>, vector<1x4x4xbf16>
    %8 = vector.shape_cast %7 : vector<1x4x4xbf16> to vector<4x4xbf16>
    %cst = arith.constant dense<0.000000e+00> : vector<64x4xf32>
    %9 = tpu.matmul %5, %8, %cst {dimension_numbers = #tpu.dot_dimension_numbers<[1], [0], [0], [1], [0, 0, 1, 1], [], []>} : vector<64x4xbf16>, vector<4x4xbf16>, vector<64x4xf32> -> vector<64x4xf32>
    %10 = arith.addf %6, %9 : vector<64x4xf32>
    %c0_9 = arith.constant 0 : index
    %c0_10 = arith.constant 0 : index
    %11 = vector.load %arg8[%c0_9, %c0_10] : memref<64x4xf32, #tpu.memory_space<vmem>>, vector<64x4xf32>
    tpu.vector_store %arg8[%c0_9, %c0_10], %10 {strides = array<i32>} : memref<64x4xf32, #tpu.memory_space<vmem>>, vector<64x4xf32>,
    %c0_11 = arith.constant 0 : index
    %c0_12 = arith.constant 0 : index
    %c1 = arith.constant 1 : index
    %c0_13 = arith.constant 0 : index
    %12 = vector.load %arg2[%c0_11, %c0_12, %c1, %c0_13] : memref<1x10x10x4xbf16, #tpu.memory_space<vmem>>, vector<1x8x8x4xbf16>
    %13 = vector.shape_cast %12 : vector<1x8x8x4xbf16> to vector<8x8x4xbf16>
    %14 = vector.shape_cast %13 : vector<8x8x4xbf16> to vector<64x4xbf16>
    %c0_14 = arith.constant 0 : index
    %c0_15 = arith.constant 0 : index
    %15 = vector.load %arg8[%c0_14, %c0_15] : memref<64x4xf32, #tpu.memory_space<vmem>>, vector<64x4xf32>
    %c1_16 = arith.constant 1 : index
    %c0_17 = arith.constant 0 : index
    %c0_18 = arith.constant 0 : index
    %16 = vector.load %arg3[%c1_16, %c0_17, %c0_18] : memref<9x4x4xbf16, #tpu.memory_space<vmem>>, vector<1x4x4xbf16>
    %17 = vector.shape_cast %16 : vector<1x4x4xbf16> to vector<4x4xbf16>
    %cst_19 = arith.constant dense<0.000000e+00> : vector<64x4xf32>
    %18 = tpu.matmul %14, %17, %cst_19 {dimension_numbers = #tpu.dot_dimension_numbers<[1], [0], [0], [1], [0, 0, 1, 1], [], []>} : vector<64x4xbf16>, vector<4x4xbf16>, vector<64x4xf32> -> vector<64x4xf32>
    %19 = arith.addf %15, %18 : vector<64x4xf32>
    %c0_20 = arith.constant 0 : index
    %c0_21 = arith.constant 0 : index
    %20 = vector.load %arg8[%c0_20, %c0_21] : memref<64x4xf32, #tpu.memory_space<vmem>>, vector<64x4xf32>
    tpu.vector_store %arg8[%c0_20, %c0_21], %19 {strides = array<i32>} : memref<64x4xf32, #tpu.memory_space<vmem>>, vector<64x4xf32>,
    %c0_22 = arith.constant 0 : index
    %c0_23 = arith.constant 0 : index
    %c2 = arith.constant 2 : index
    %c0_24 = arith.constant 0 : index
    %21 = vector.load %arg2[%c0_22, %c0_23, %c2, %c0_24] : memref<1x10x10x4xbf16, #tpu.memory_space<vmem>>, vector<1x8x8x4xbf16>
    %22 = vector.shape_cast %21 : vector<1x8x8x4xbf16> to vector<8x8x4xbf16>
    %23 = vector.shape_cast %22 : vector<8x8x4xbf16> to vector<64x4xbf16>
    %c0_25 = arith.constant 0 : index
    %c0_26 = arith.constant 0 : index
    %24 = vector.load %arg8[%c0_25, %c0_26] : memref<64x4xf32, #tpu.memory_space<vmem>>, vector<64x4xf32>
    %c2_27 = arith.constant 2 : index
    %c0_28 = arith.constant 0 : index
    %c0_29 = arith.constant 0 : index
    %25 = vector.load %arg3[%c2_27, %c0_28, %c0_29] : memref<9x4x4xbf16, #tpu.memory_space<vmem>>, vector<1x4x4xbf16>
    %26 = vector.shape_cast %25 : vector<1x4x4xbf16> to vector<4x4xbf16>
    %cst_30 = arith.constant dense<0.000000e+00> : vector<64x4xf32>
    %27 = tpu.matmul %23, %26, %cst_30 {dimension_numbers = #tpu.dot_dimension_numbers<[1], [0], [0], [1], [0, 0, 1, 1], [], []>} : vector<64x4xbf16>, vector<4x4xbf16>, vector<64x4xf32> -> vector<64x4xf32>
    %28 = arith.addf %24, %27 : vector<64x4xf32>
    %c0_31 = arith.constant 0 : index
    %c0_32 = arith.constant 0 : index
    %29 = vector.load %arg8[%c0_31, %c0_32] : memref<64x4xf32, #tpu.memory_space<vmem>>, vector<64x4xf32>
    tpu.vector_store %arg8[%c0_31, %c0_32], %28 {strides = array<i32>} : memref<64x4xf32, #tpu.memory_space<vmem>>, vector<64x4xf32>,
    %c0_33 = arith.constant 0 : index
    %c1_34 = arith.constant 1 : index
    %c0_35 = arith.constant 0 : index
    %c0_36 = arith.constant 0 : index
    %30 = vector.load %arg2[%c0_33, %c1_34, %c0_35, %c0_36] : memref<1x10x10x4xbf16, #tpu.memory_space<vmem>>, vector<1x8x8x4xbf16>
    %31 = vector.shape_cast %30 : vector<1x8x8x4xbf16> to vector<8x8x4xbf16>
    %32 = vector.shape_cast %31 : vector<8x8x4xbf16> to vector<64x4xbf16>
    %c0_37 = arith.constant 0 : index
    %c0_38 = arith.constant 0 : index
    %33 = vector.load %arg8[%c0_37, %c0_38] : memref<64x4xf32, #tpu.memory_space<vmem>>, vector<64x4xf32>
    %c3 = arith.constant 3 : index
    %c0_39 = arith.constant 0 : index
    %c0_40 = arith.constant 0 : index
    %34 = vector.load %arg3[%c3, %c0_39, %c0_40] : memref<9x4x4xbf16, #tpu.memory_space<vmem>>, vector<1x4x4xbf16>
    %35 = vector.shape_cast %34 : vector<1x4x4xbf16> to vector<4x4xbf16>
    %cst_41 = arith.constant dense<0.000000e+00> : vector<64x4xf32>
    %36 = tpu.matmul %32, %35, %cst_41 {dimension_numbers = #tpu.dot_dimension_numbers<[1], [0], [0], [1], [0, 0, 1, 1], [], []>} : vector<64x4xbf16>, vector<4x4xbf16>, vector<64x4xf32> -> vector<64x4xf32>
    %37 = arith.addf %33, %36 : vector<64x4xf32>
    %c0_42 = arith.constant 0 : index
    %c0_43 = arith.constant 0 : index
    %38 = vector.load %arg8[%c0_42, %c0_43] : memref<64x4xf32, #tpu.memory_space<vmem>>, vector<64x4xf32>
    tpu.vector_store %arg8[%c0_42, %c0_43], %37 {strides = array<i32>} : memref<64x4xf32, #tpu.memory_space<vmem>>, vector<64x4xf32>,
    %c0_44 = arith.constant 0 : index
    %c1_45 = arith.constant 1 : index
    %c1_46 = arith.constant 1 : index
    %c0_47 = arith.constant 0 : index
    %39 = vector.load %arg2[%c0_44, %c1_45, %c1_46, %c0_47] : memref<1x10x10x4xbf16, #tpu.memory_space<vmem>>, vector<1x8x8x4xbf16>
    %40 = vector.shape_cast %39 : vector<1x8x8x4xbf16> to vector<8x8x4xbf16>
    %41 = vector.shape_cast %40 : vector<8x8x4xbf16> to vector<64x4xbf16>
    %c0_48 = arith.constant 0 : index
    %c0_49 = arith.constant 0 : index
    %42 = vector.load %arg8[%c0_48, %c0_49] : memref<64x4xf32, #tpu.memory_space<vmem>>, vector<64x4xf32>
    %c4 = arith.constant 4 : index
    %c0_50 = arith.constant 0 : index
    %c0_51 = arith.constant 0 : index
    %43 = vector.load %arg3[%c4, %c0_50, %c0_51] : memref<9x4x4xbf16, #tpu.memory_space<vmem>>, vector<1x4x4xbf16>
    %44 = vector.shape_cast %43 : vector<1x4x4xbf16> to vector<4x4xbf16>
    %cst_52 = arith.constant dense<0.000000e+00> : vector<64x4xf32>
    %45 = tpu.matmul %41, %44, %cst_52 {dimension_numbers = #tpu.dot_dimension_numbers<[1], [0], [0], [1], [0, 0, 1, 1], [], []>} : vector<64x4xbf16>, vector<4x4xbf16>, vector<64x4xf32> -> vector<64x4xf32>
    %46 = arith.addf %42, %45 : vector<64x4xf32>
    %c0_53 = arith.constant 0 : index
    %c0_54 = arith.constant 0 : index
    %47 = vector.load %arg8[%c0_53, %c0_54] : memref<64x4xf32, #tpu.memory_space<vmem>>, vector<64x4xf32>
    tpu.vector_store %arg8[%c0_53, %c0_54], %46 {strides = array<i32>} : memref<64x4xf32, #tpu.memory_space<vmem>>, vector<64x4xf32>,
    %c0_55 = arith.constant 0 : index
    %c1_56 = arith.constant 1 : index
    %c2_57 = arith.constant 2 : index
    %c0_58 = arith.constant 0 : index
    %48 = vector.load %arg2[%c0_55, %c1_56, %c2_57, %c0_58] : memref<1x10x10x4xbf16, #tpu.memory_space<vmem>>, vector<1x8x8x4xbf16>
    %49 = vector.shape_cast %48 : vector<1x8x8x4xbf16> to vector<8x8x4xbf16>
    %50 = vector.shape_cast %49 : vector<8x8x4xbf16> to vector<64x4xbf16>
    %c0_59 = arith.constant 0 : index
    %c0_60 = arith.constant 0 : index
    %51 = vector.load %arg8[%c0_59, %c0_60] : memref<64x4xf32, #tpu.memory_space<vmem>>, vector<64x4xf32>
    %c5 = arith.constant 5 : index
    %c0_61 = arith.constant 0 : index
    %c0_62 = arith.constant 0 : index
    %52 = vector.load %arg3[%c5, %c0_61, %c0_62] : memref<9x4x4xbf16, #tpu.memory_space<vmem>>, vector<1x4x4xbf16>
    %53 = vector.shape_cast %52 : vector<1x4x4xbf16> to vector<4x4xbf16>
    %cst_63 = arith.constant dense<0.000000e+00> : vector<64x4xf32>
    %54 = tpu.matmul %50, %53, %cst_63 {dimension_numbers = #tpu.dot_dimension_numbers<[1], [0], [0], [1], [0, 0, 1, 1], [], []>} : vector<64x4xbf16>, vector<4x4xbf16>, vector<64x4xf32> -> vector<64x4xf32>
    %55 = arith.addf %51, %54 : vector<64x4xf32>
    %c0_64 = arith.constant 0 : index
    %c0_65 = arith.constant 0 : index
    %56 = vector.load %arg8[%c0_64, %c0_65] : memref<64x4xf32, #tpu.memory_space<vmem>>, vector<64x4xf32>
    tpu.vector_store %arg8[%c0_64, %c0_65], %55 {strides = array<i32>} : memref<64x4xf32, #tpu.memory_space<vmem>>, vector<64x4xf32>,
    %c0_66 = arith.constant 0 : index
    %c2_67 = arith.constant 2 : index
    %c0_68 = arith.constant 0 : index
    %c0_69 = arith.constant 0 : index
    %57 = vector.load %arg2[%c0_66, %c2_67, %c0_68, %c0_69] : memref<1x10x10x4xbf16, #tpu.memory_space<vmem>>, vector<1x8x8x4xbf16>
    %58 = vector.shape_cast %57 : vector<1x8x8x4xbf16> to vector<8x8x4xbf16>
    %59 = vector.shape_cast %58 : vector<8x8x4xbf16> to vector<64x4xbf16>
    %c0_70 = arith.constant 0 : index
    %c0_71 = arith.constant 0 : index
    %60 = vector.load %arg8[%c0_70, %c0_71] : memref<64x4xf32, #tpu.memory_space<vmem>>, vector<64x4xf32>
    %c6 = arith.constant 6 : index
    %c0_72 = arith.constant 0 : index
    %c0_73 = arith.constant 0 : index
    %61 = vector.load %arg3[%c6, %c0_72, %c0_73] : memref<9x4x4xbf16, #tpu.memory_space<vmem>>, vector<1x4x4xbf16>
    %62 = vector.shape_cast %61 : vector<1x4x4xbf16> to vector<4x4xbf16>
    %cst_74 = arith.constant dense<0.000000e+00> : vector<64x4xf32>
    %63 = tpu.matmul %59, %62, %cst_74 {dimension_numbers = #tpu.dot_dimension_numbers<[1], [0], [0], [1], [0, 0, 1, 1], [], []>} : vector<64x4xbf16>, vector<4x4xbf16>, vector<64x4xf32> -> vector<64x4xf32>
    %64 = arith.addf %60, %63 : vector<64x4xf32>
    %c0_75 = arith.constant 0 : index
    %c0_76 = arith.constant 0 : index
    %65 = vector.load %arg8[%c0_75, %c0_76] : memref<64x4xf32, #tpu.memory_space<vmem>>, vector<64x4xf32>
    tpu.vector_store %arg8[%c0_75, %c0_76], %64 {strides = array<i32>} : memref<64x4xf32, #tpu.memory_space<vmem>>, vector<64x4xf32>,
    %c0_77 = arith.constant 0 : index
    %c2_78 = arith.constant 2 : index
    %c1_79 = arith.constant 1 : index
    %c0_80 = arith.constant 0 : index
    %66 = vector.load %arg2[%c0_77, %c2_78, %c1_79, %c0_80] : memref<1x10x10x4xbf16, #tpu.memory_space<vmem>>, vector<1x8x8x4xbf16>
    %67 = vector.shape_cast %66 : vector<1x8x8x4xbf16> to vector<8x8x4xbf16>
    %68 = vector.shape_cast %67 : vector<8x8x4xbf16> to vector<64x4xbf16>
    %c0_81 = arith.constant 0 : index
    %c0_82 = arith.constant 0 : index
    %69 = vector.load %arg8[%c0_81, %c0_82] : memref<64x4xf32, #tpu.memory_space<vmem>>, vector<64x4xf32>
    %c7 = arith.constant 7 : index
    %c0_83 = arith.constant 0 : index
    %c0_84 = arith.constant 0 : index
    %70 = vector.load %arg3[%c7, %c0_83, %c0_84] : memref<9x4x4xbf16, #tpu.memory_space<vmem>>, vector<1x4x4xbf16>
    %71 = vector.shape_cast %70 : vector<1x4x4xbf16> to vector<4x4xbf16>
    %cst_85 = arith.constant dense<0.000000e+00> : vector<64x4xf32>
    %72 = tpu.matmul %68, %71, %cst_85 {dimension_numbers = #tpu.dot_dimension_numbers<[1], [0], [0], [1], [0, 0, 1, 1], [], []>} : vector<64x4xbf16>, vector<4x4xbf16>, vector<64x4xf32> -> vector<64x4xf32>
    %73 = arith.addf %69, %72 : vector<64x4xf32>
    %c0_86 = arith.constant 0 : index
    %c0_87 = arith.constant 0 : index
    %74 = vector.load %arg8[%c0_86, %c0_87] : memref<64x4xf32, #tpu.memory_space<vmem>>, vector<64x4xf32>
    tpu.vector_store %arg8[%c0_86, %c0_87], %73 {strides = array<i32>} : memref<64x4xf32, #tpu.memory_space<vmem>>, vector<64x4xf32>,
    %c0_88 = arith.constant 0 : index
    %c2_89 = arith.constant 2 : index
    %c2_90 = arith.constant 2 : index
    %c0_91 = arith.constant 0 : index
    %75 = vector.load %arg2[%c0_88, %c2_89, %c2_90, %c0_91] : memref<1x10x10x4xbf16, #tpu.memory_space<vmem>>, vector<1x8x8x4xbf16>
    %76 = vector.shape_cast %75 : vector<1x8x8x4xbf16> to vector<8x8x4xbf16>
    %77 = vector.shape_cast %76 : vector<8x8x4xbf16> to vector<64x4xbf16>
    %c0_92 = arith.constant 0 : index
    %c0_93 = arith.constant 0 : index
    %78 = vector.load %arg8[%c0_92, %c0_93] : memref<64x4xf32, #tpu.memory_space<vmem>>, vector<64x4xf32>
    %c8 = arith.constant 8 : index
    %c0_94 = arith.constant 0 : index
    %c0_95 = arith.constant 0 : index
    %79 = vector.load %arg3[%c8, %c0_94, %c0_95] : memref<9x4x4xbf16, #tpu.memory_space<vmem>>, vector<1x4x4xbf16>
    %80 = vector.shape_cast %79 : vector<1x4x4xbf16> to vector<4x4xbf16>
    %cst_96 = arith.constant dense<0.000000e+00> : vector<64x4xf32>
    %81 = tpu.matmul %77, %80, %cst_96 {dimension_numbers = #tpu.dot_dimension_numbers<[1], [0], [0], [1], [0, 0, 1, 1], [], []>} : vector<64x4xbf16>, vector<4x4xbf16>, vector<64x4xf32> -> vector<64x4xf32>
    %82 = arith.addf %78, %81 : vector<64x4xf32>
    %c0_97 = arith.constant 0 : index
    %c0_98 = arith.constant 0 : index
    %83 = vector.load %arg8[%c0_97, %c0_98] : memref<64x4xf32, #tpu.memory_space<vmem>>, vector<64x4xf32>
    tpu.vector_store %arg8[%c0_97, %c0_98], %82 {strides = array<i32>} : memref<64x4xf32, #tpu.memory_space<vmem>>, vector<64x4xf32>,
    %c0_i32_99 = arith.constant 0 : i32
    %84 = arith.cmpi eq, %arg1, %c0_i32_99 : i32
    %85 = arith.extui %84 : i1 to i32
    %c0_i32_100 = arith.constant 0 : i32
    %86 = arith.cmpi ne, %85, %c0_i32_100 : i32
    scf.if %86 {
      %c0_101 = arith.constant 0 : index
      %c0_102 = arith.constant 0 : index
      %87 = vector.load %arg8[%c0_101, %c0_102] : memref<64x4xf32, #tpu.memory_space<vmem>>, vector<64x4xf32>
      %c0_103 = arith.constant 0 : index
      %c0_104 = arith.constant 0 : index
      %88 = vector.load %arg4[%c0_103, %c0_104] : memref<1x4xf32, #tpu.memory_space<vmem>>, vector<1x4xf32>
      %89 = vector.broadcast %88 : vector<1x4xf32> to vector<64x4xf32>
      %90 = arith.addf %87, %89 : vector<64x4xf32>
      %c0_105 = arith.constant 0 : index
      %c0_106 = arith.constant 0 : index
      %91 = vector.load %arg5[%c0_105, %c0_106] : memref<1x4xf32, #tpu.memory_space<vmem>>, vector<1x4xf32>
      %c0_107 = arith.constant 0 : index
      %c0_108 = arith.constant 0 : index
      %92 = vector.load %arg6[%c0_107, %c0_108] : memref<1x4xf32, #tpu.memory_space<vmem>>, vector<1x4xf32>
      %cst_109 = arith.constant dense<0.000000e+00> : vector<64xf32>
      %93 = vector.multi_reduction <add>, %90, %cst_109 [1] : vector<64x4xf32> to vector<64xf32>
      %94 = vector.shape_cast %93 : vector<64xf32> to vector<64x1xf32>
      %cst_110 = arith.constant 4.000000e+00 : f32
      %95 = vector.broadcast %cst_110 : f32 to vector<64x1xf32>
      %96 = arith.divf %94, %95 : vector<64x1xf32>
      %97 = vector.broadcast %96 : vector<64x1xf32> to vector<64x4xf32>
      %98 = arith.subf %90, %97 : vector<64x4xf32>
      %99 = arith.mulf %98, %98 : vector<64x4xf32>
      %cst_111 = arith.constant dense<0.000000e+00> : vector<64xf32>
      %100 = vector.multi_reduction <add>, %99, %cst_111 [1] : vector<64x4xf32> to vector<64xf32>
      %101 = vector.shape_cast %100 : vector<64xf32> to vector<64x1xf32>
      %cst_112 = arith.constant 4.000000e+00 : f32
      %102 = vector.broadcast %cst_112 : f32 to vector<64x1xf32>
      %103 = arith.divf %101, %102 : vector<64x1xf32>
      %cst_113 = arith.constant 9.99999997E-7 : f32
      %104 = vector.broadcast %cst_113 : f32 to vector<64x1xf32>
      %105 = arith.addf %103, %104 : vector<64x1xf32>
      %106 = math.rsqrt %105 : vector<64x1xf32>
      %107 = vector.broadcast %106 : vector<64x1xf32> to vector<64x4xf32>
      %108 = arith.mulf %98, %107 : vector<64x4xf32>
      %109 = vector.broadcast %91 : vector<1x4xf32> to vector<64x4xf32>
      %110 = arith.mulf %108, %109 : vector<64x4xf32>
      %111 = vector.broadcast %92 : vector<1x4xf32> to vector<64x4xf32>
      %112 = arith.addf %110, %111 : vector<64x4xf32>
      %cst_114 = arith.constant 0.000000e+00 : f32
      %113 = vector.broadcast %cst_114 : f32 to vector<64x4xf32>
      %114 = arith.maximumf %112, %113 : vector<64x4xf32>
      %115 = vector.shape_cast %114 : vector<64x4xf32> to vector<1x8x8x4xf32>
      %116 = arith.truncf %115 : vector<1x8x8x4xf32> to vector<1x8x8x4xbf16>
      %c0_115 = arith.constant 0 : index
      %c0_116 = arith.constant 0 : index
      %c0_117 = arith.constant 0 : index
      %c0_118 = arith.constant 0 : index
      %117 = vector.load %arg7[%c0_115, %c0_116, %c0_117, %c0_118] : memref<1x8x8x4xbf16, #tpu.memory_space<vmem>>, vector<1x8x8x4xbf16>
      tpu.vector_store %arg7[%c0_115, %c0_116, %c0_117, %c0_118], %116 {strides = array<i32>} : memref<1x8x8x4xbf16, #tpu.memory_space<vmem>>, vector<1x8x8x4xbf16>,
    } else {
    }
    return
  }
  func.func @transform_0(%arg0: i32, %arg1: i32) -> (i32, i32, i32, i32) {
    %c0_i32 = arith.constant 0 : i32
    %c0_i32_0 = arith.constant 0 : i32
    %c0_i32_1 = arith.constant 0 : i32
    return %arg0, %c0_i32, %c0_i32_0, %arg1 : i32, i32, i32, i32
  }
  func.func @transform_1(%arg0: i32, %arg1: i32) -> (i32, i32, i32) {
    %c0_i32 = arith.constant 0 : i32
    %c0_i32_0 = arith.constant 0 : i32
    %c0_i32_1 = arith.constant 0 : i32
    return %c0_i32, %arg1, %c0_i32_0 : i32, i32, i32
  }
  func.func @transform_2(%arg0: i32, %arg1: i32) -> (i32, i32) {
    %c0_i32 = arith.constant 0 : i32
    %c0_i32_0 = arith.constant 0 : i32
    %c0_i32_1 = arith.constant 0 : i32
    return %c0_i32, %c0_i32_0 : i32, i32
  }
  func.func @transform_3(%arg0: i32, %arg1: i32) -> (i32, i32) {
    %c0_i32 = arith.constant 0 : i32
    %c0_i32_0 = arith.constant 0 : i32
    %c0_i32_1 = arith.constant 0 : i32
    return %c0_i32, %c0_i32_0 : i32, i32
  }
  func.func @transform_4(%arg0: i32, %arg1: i32) -> (i32, i32) {
    %c0_i32 = arith.constant 0 : i32
    %c0_i32_0 = arith.constant 0 : i32
    %c0_i32_1 = arith.constant 0 : i32
    return %c0_i32, %c0_i32_0 : i32, i32
  }
  func.func @transform_5(%arg0: i32, %arg1: i32) -> (i32, i32, i32, i32) {
    %c0_i32 = arith.constant 0 : i32
    %c0_i32_0 = arith.constant 0 : i32
    %c0_i32_1 = arith.constant 0 : i32
    %c0_i32_2 = arith.constant 0 : i32
    return %arg0, %c0_i32, %c0_i32_0, %c0_i32_1 : i32, i32, i32, i32
  }
}

module attributes {stable_mosaic.version = 11 : i64} {
  func.func @_conv3x3_bias_kernel(%arg0: i32, %arg1: i32, %arg2: memref<1x10x10x4xbf16, #tpu.memory_space<vmem>>, %arg3: memref<9x4x1xbf16, #tpu.memory_space<vmem>>, %arg4: memref<1x1xf32, #tpu.memory_space<vmem>>, %arg5: memref<1x8x8x1xf32, #tpu.memory_space<vmem>>, %arg6: memref<64x1xf32, #tpu.memory_space<vmem>>) attributes {dimension_semantics = [#tpu.dimension_semantics<parallel>, #tpu.dimension_semantics<arbitrary>], iteration_bounds = array<i64: 2, 1>, scalar_prefetch = 0 : i64, scratch_operands = 1 : i64, tpu.core_type = #tpu.core_type<tc>, window_params = [{transform_indices = @transform_0, window_bounds = array<i64: 1, 10, 10, 4>}, {transform_indices = @transform_1, window_bounds = array<i64: 9, 4, 1>}, {pipeline_mode = #tpu.pipeline_mode<synchronous>, transform_indices = @transform_2, window_bounds = array<i64: 1, 1>}, {transform_indices = @transform_3, window_bounds = array<i64: 1, 8, 8, 1>}]} {
    %c0_i32 = arith.constant 0 : i32
    %0 = arith.cmpi eq, %arg1, %c0_i32 : i32
    %1 = arith.extui %0 : i1 to i32
    %c0_i32_0 = arith.constant 0 : i32
    %2 = arith.cmpi ne, %1, %c0_i32_0 : i32
    scf.if %2 {
      %cst_101 = arith.constant 0.000000e+00 : f32
      %87 = vector.broadcast %cst_101 : f32 to vector<64x1xf32>
      %c0_102 = arith.constant 0 : index
      %c0_103 = arith.constant 0 : index
      %88 = vector.load %arg6[%c0_102, %c0_103] : memref<64x1xf32, #tpu.memory_space<vmem>>, vector<64x1xf32>
      tpu.vector_store %arg6[%c0_102, %c0_103], %87 {strides = array<i32>} : memref<64x1xf32, #tpu.memory_space<vmem>>, vector<64x1xf32>,
    } else {
    }
    %c0 = arith.constant 0 : index
    %c0_1 = arith.constant 0 : index
    %c0_2 = arith.constant 0 : index
    %c0_3 = arith.constant 0 : index
    %3 = vector.load %arg2[%c0, %c0_1, %c0_2, %c0_3] : memref<1x10x10x4xbf16, #tpu.memory_space<vmem>>, vector<1x8x8x4xbf16>
    %4 = vector.shape_cast %3 : vector<1x8x8x4xbf16> to vector<8x8x4xbf16>
    %5 = vector.shape_cast %4 : vector<8x8x4xbf16> to vector<64x4xbf16>
    %c0_4 = arith.constant 0 : index
    %c0_5 = arith.constant 0 : index
    %6 = vector.load %arg6[%c0_4, %c0_5] : memref<64x1xf32, #tpu.memory_space<vmem>>, vector<64x1xf32>
    %c0_6 = arith.constant 0 : index
    %c0_7 = arith.constant 0 : index
    %c0_8 = arith.constant 0 : index
    %7 = vector.load %arg3[%c0_6, %c0_7, %c0_8] : memref<9x4x1xbf16, #tpu.memory_space<vmem>>, vector<1x4x1xbf16>
    %8 = vector.shape_cast %7 : vector<1x4x1xbf16> to vector<4x1xbf16>
    %cst = arith.constant dense<0.000000e+00> : vector<64x1xf32>
    %9 = tpu.matmul %5, %8, %cst {dimension_numbers = #tpu.dot_dimension_numbers<[1], [0], [0], [1], [0, 0, 1, 1], [], []>} : vector<64x4xbf16>, vector<4x1xbf16>, vector<64x1xf32> -> vector<64x1xf32>
    %10 = arith.addf %6, %9 : vector<64x1xf32>
    %c0_9 = arith.constant 0 : index
    %c0_10 = arith.constant 0 : index
    %11 = vector.load %arg6[%c0_9, %c0_10] : memref<64x1xf32, #tpu.memory_space<vmem>>, vector<64x1xf32>
    tpu.vector_store %arg6[%c0_9, %c0_10], %10 {strides = array<i32>} : memref<64x1xf32, #tpu.memory_space<vmem>>, vector<64x1xf32>,
    %c0_11 = arith.constant 0 : index
    %c0_12 = arith.constant 0 : index
    %c1 = arith.constant 1 : index
    %c0_13 = arith.constant 0 : index
    %12 = vector.load %arg2[%c0_11, %c0_12, %c1, %c0_13] : memref<1x10x10x4xbf16, #tpu.memory_space<vmem>>, vector<1x8x8x4xbf16>
    %13 = vector.shape_cast %12 : vector<1x8x8x4xbf16> to vector<8x8x4xbf16>
    %14 = vector.shape_cast %13 : vector<8x8x4xbf16> to vector<64x4xbf16>
    %c0_14 = arith.constant 0 : index
    %c0_15 = arith.constant 0 : index
    %15 = vector.load %arg6[%c0_14, %c0_15] : memref<64x1xf32, #tpu.memory_space<vmem>>, vector<64x1xf32>
    %c1_16 = arith.constant 1 : index
    %c0_17 = arith.constant 0 : index
    %c0_18 = arith.constant 0 : index
    %16 = vector.load %arg3[%c1_16, %c0_17, %c0_18] : memref<9x4x1xbf16, #tpu.memory_space<vmem>>, vector<1x4x1xbf16>
    %17 = vector.shape_cast %16 : vector<1x4x1xbf16> to vector<4x1xbf16>
    %cst_19 = arith.constant dense<0.000000e+00> : vector<64x1xf32>
    %18 = tpu.matmul %14, %17, %cst_19 {dimension_numbers = #tpu.dot_dimension_numbers<[1], [0], [0], [1], [0, 0, 1, 1], [], []>} : vector<64x4xbf16>, vector<4x1xbf16>, vector<64x1xf32> -> vector<64x1xf32>
    %19 = arith.addf %15, %18 : vector<64x1xf32>
    %c0_20 = arith.constant 0 : index
    %c0_21 = arith.constant 0 : index
    %20 = vector.load %arg6[%c0_20, %c0_21] : memref<64x1xf32, #tpu.memory_space<vmem>>, vector<64x1xf32>
    tpu.vector_store %arg6[%c0_20, %c0_21], %19 {strides = array<i32>} : memref<64x1xf32, #tpu.memory_space<vmem>>, vector<64x1xf32>,
    %c0_22 = arith.constant 0 : index
    %c0_23 = arith.constant 0 : index
    %c2 = arith.constant 2 : index
    %c0_24 = arith.constant 0 : index
    %21 = vector.load %arg2[%c0_22, %c0_23, %c2, %c0_24] : memref<1x10x10x4xbf16, #tpu.memory_space<vmem>>, vector<1x8x8x4xbf16>
    %22 = vector.shape_cast %21 : vector<1x8x8x4xbf16> to vector<8x8x4xbf16>
    %23 = vector.shape_cast %22 : vector<8x8x4xbf16> to vector<64x4xbf16>
    %c0_25 = arith.constant 0 : index
    %c0_26 = arith.constant 0 : index
    %24 = vector.load %arg6[%c0_25, %c0_26] : memref<64x1xf32, #tpu.memory_space<vmem>>, vector<64x1xf32>
    %c2_27 = arith.constant 2 : index
    %c0_28 = arith.constant 0 : index
    %c0_29 = arith.constant 0 : index
    %25 = vector.load %arg3[%c2_27, %c0_28, %c0_29] : memref<9x4x1xbf16, #tpu.memory_space<vmem>>, vector<1x4x1xbf16>
    %26 = vector.shape_cast %25 : vector<1x4x1xbf16> to vector<4x1xbf16>
    %cst_30 = arith.constant dense<0.000000e+00> : vector<64x1xf32>
    %27 = tpu.matmul %23, %26, %cst_30 {dimension_numbers = #tpu.dot_dimension_numbers<[1], [0], [0], [1], [0, 0, 1, 1], [], []>} : vector<64x4xbf16>, vector<4x1xbf16>, vector<64x1xf32> -> vector<64x1xf32>
    %28 = arith.addf %24, %27 : vector<64x1xf32>
    %c0_31 = arith.constant 0 : index
    %c0_32 = arith.constant 0 : index
    %29 = vector.load %arg6[%c0_31, %c0_32] : memref<64x1xf32, #tpu.memory_space<vmem>>, vector<64x1xf32>
    tpu.vector_store %arg6[%c0_31, %c0_32], %28 {strides = array<i32>} : memref<64x1xf32, #tpu.memory_space<vmem>>, vector<64x1xf32>,
    %c0_33 = arith.constant 0 : index
    %c1_34 = arith.constant 1 : index
    %c0_35 = arith.constant 0 : index
    %c0_36 = arith.constant 0 : index
    %30 = vector.load %arg2[%c0_33, %c1_34, %c0_35, %c0_36] : memref<1x10x10x4xbf16, #tpu.memory_space<vmem>>, vector<1x8x8x4xbf16>
    %31 = vector.shape_cast %30 : vector<1x8x8x4xbf16> to vector<8x8x4xbf16>
    %32 = vector.shape_cast %31 : vector<8x8x4xbf16> to vector<64x4xbf16>
    %c0_37 = arith.constant 0 : index
    %c0_38 = arith.constant 0 : index
    %33 = vector.load %arg6[%c0_37, %c0_38] : memref<64x1xf32, #tpu.memory_space<vmem>>, vector<64x1xf32>
    %c3 = arith.constant 3 : index
    %c0_39 = arith.constant 0 : index
    %c0_40 = arith.constant 0 : index
    %34 = vector.load %arg3[%c3, %c0_39, %c0_40] : memref<9x4x1xbf16, #tpu.memory_space<vmem>>, vector<1x4x1xbf16>
    %35 = vector.shape_cast %34 : vector<1x4x1xbf16> to vector<4x1xbf16>
    %cst_41 = arith.constant dense<0.000000e+00> : vector<64x1xf32>
    %36 = tpu.matmul %32, %35, %cst_41 {dimension_numbers = #tpu.dot_dimension_numbers<[1], [0], [0], [1], [0, 0, 1, 1], [], []>} : vector<64x4xbf16>, vector<4x1xbf16>, vector<64x1xf32> -> vector<64x1xf32>
    %37 = arith.addf %33, %36 : vector<64x1xf32>
    %c0_42 = arith.constant 0 : index
    %c0_43 = arith.constant 0 : index
    %38 = vector.load %arg6[%c0_42, %c0_43] : memref<64x1xf32, #tpu.memory_space<vmem>>, vector<64x1xf32>
    tpu.vector_store %arg6[%c0_42, %c0_43], %37 {strides = array<i32>} : memref<64x1xf32, #tpu.memory_space<vmem>>, vector<64x1xf32>,
    %c0_44 = arith.constant 0 : index
    %c1_45 = arith.constant 1 : index
    %c1_46 = arith.constant 1 : index
    %c0_47 = arith.constant 0 : index
    %39 = vector.load %arg2[%c0_44, %c1_45, %c1_46, %c0_47] : memref<1x10x10x4xbf16, #tpu.memory_space<vmem>>, vector<1x8x8x4xbf16>
    %40 = vector.shape_cast %39 : vector<1x8x8x4xbf16> to vector<8x8x4xbf16>
    %41 = vector.shape_cast %40 : vector<8x8x4xbf16> to vector<64x4xbf16>
    %c0_48 = arith.constant 0 : index
    %c0_49 = arith.constant 0 : index
    %42 = vector.load %arg6[%c0_48, %c0_49] : memref<64x1xf32, #tpu.memory_space<vmem>>, vector<64x1xf32>
    %c4 = arith.constant 4 : index
    %c0_50 = arith.constant 0 : index
    %c0_51 = arith.constant 0 : index
    %43 = vector.load %arg3[%c4, %c0_50, %c0_51] : memref<9x4x1xbf16, #tpu.memory_space<vmem>>, vector<1x4x1xbf16>
    %44 = vector.shape_cast %43 : vector<1x4x1xbf16> to vector<4x1xbf16>
    %cst_52 = arith.constant dense<0.000000e+00> : vector<64x1xf32>
    %45 = tpu.matmul %41, %44, %cst_52 {dimension_numbers = #tpu.dot_dimension_numbers<[1], [0], [0], [1], [0, 0, 1, 1], [], []>} : vector<64x4xbf16>, vector<4x1xbf16>, vector<64x1xf32> -> vector<64x1xf32>
    %46 = arith.addf %42, %45 : vector<64x1xf32>
    %c0_53 = arith.constant 0 : index
    %c0_54 = arith.constant 0 : index
    %47 = vector.load %arg6[%c0_53, %c0_54] : memref<64x1xf32, #tpu.memory_space<vmem>>, vector<64x1xf32>
    tpu.vector_store %arg6[%c0_53, %c0_54], %46 {strides = array<i32>} : memref<64x1xf32, #tpu.memory_space<vmem>>, vector<64x1xf32>,
    %c0_55 = arith.constant 0 : index
    %c1_56 = arith.constant 1 : index
    %c2_57 = arith.constant 2 : index
    %c0_58 = arith.constant 0 : index
    %48 = vector.load %arg2[%c0_55, %c1_56, %c2_57, %c0_58] : memref<1x10x10x4xbf16, #tpu.memory_space<vmem>>, vector<1x8x8x4xbf16>
    %49 = vector.shape_cast %48 : vector<1x8x8x4xbf16> to vector<8x8x4xbf16>
    %50 = vector.shape_cast %49 : vector<8x8x4xbf16> to vector<64x4xbf16>
    %c0_59 = arith.constant 0 : index
    %c0_60 = arith.constant 0 : index
    %51 = vector.load %arg6[%c0_59, %c0_60] : memref<64x1xf32, #tpu.memory_space<vmem>>, vector<64x1xf32>
    %c5 = arith.constant 5 : index
    %c0_61 = arith.constant 0 : index
    %c0_62 = arith.constant 0 : index
    %52 = vector.load %arg3[%c5, %c0_61, %c0_62] : memref<9x4x1xbf16, #tpu.memory_space<vmem>>, vector<1x4x1xbf16>
    %53 = vector.shape_cast %52 : vector<1x4x1xbf16> to vector<4x1xbf16>
    %cst_63 = arith.constant dense<0.000000e+00> : vector<64x1xf32>
    %54 = tpu.matmul %50, %53, %cst_63 {dimension_numbers = #tpu.dot_dimension_numbers<[1], [0], [0], [1], [0, 0, 1, 1], [], []>} : vector<64x4xbf16>, vector<4x1xbf16>, vector<64x1xf32> -> vector<64x1xf32>
    %55 = arith.addf %51, %54 : vector<64x1xf32>
    %c0_64 = arith.constant 0 : index
    %c0_65 = arith.constant 0 : index
    %56 = vector.load %arg6[%c0_64, %c0_65] : memref<64x1xf32, #tpu.memory_space<vmem>>, vector<64x1xf32>
    tpu.vector_store %arg6[%c0_64, %c0_65], %55 {strides = array<i32>} : memref<64x1xf32, #tpu.memory_space<vmem>>, vector<64x1xf32>,
    %c0_66 = arith.constant 0 : index
    %c2_67 = arith.constant 2 : index
    %c0_68 = arith.constant 0 : index
    %c0_69 = arith.constant 0 : index
    %57 = vector.load %arg2[%c0_66, %c2_67, %c0_68, %c0_69] : memref<1x10x10x4xbf16, #tpu.memory_space<vmem>>, vector<1x8x8x4xbf16>
    %58 = vector.shape_cast %57 : vector<1x8x8x4xbf16> to vector<8x8x4xbf16>
    %59 = vector.shape_cast %58 : vector<8x8x4xbf16> to vector<64x4xbf16>
    %c0_70 = arith.constant 0 : index
    %c0_71 = arith.constant 0 : index
    %60 = vector.load %arg6[%c0_70, %c0_71] : memref<64x1xf32, #tpu.memory_space<vmem>>, vector<64x1xf32>
    %c6 = arith.constant 6 : index
    %c0_72 = arith.constant 0 : index
    %c0_73 = arith.constant 0 : index
    %61 = vector.load %arg3[%c6, %c0_72, %c0_73] : memref<9x4x1xbf16, #tpu.memory_space<vmem>>, vector<1x4x1xbf16>
    %62 = vector.shape_cast %61 : vector<1x4x1xbf16> to vector<4x1xbf16>
    %cst_74 = arith.constant dense<0.000000e+00> : vector<64x1xf32>
    %63 = tpu.matmul %59, %62, %cst_74 {dimension_numbers = #tpu.dot_dimension_numbers<[1], [0], [0], [1], [0, 0, 1, 1], [], []>} : vector<64x4xbf16>, vector<4x1xbf16>, vector<64x1xf32> -> vector<64x1xf32>
    %64 = arith.addf %60, %63 : vector<64x1xf32>
    %c0_75 = arith.constant 0 : index
    %c0_76 = arith.constant 0 : index
    %65 = vector.load %arg6[%c0_75, %c0_76] : memref<64x1xf32, #tpu.memory_space<vmem>>, vector<64x1xf32>
    tpu.vector_store %arg6[%c0_75, %c0_76], %64 {strides = array<i32>} : memref<64x1xf32, #tpu.memory_space<vmem>>, vector<64x1xf32>,
    %c0_77 = arith.constant 0 : index
    %c2_78 = arith.constant 2 : index
    %c1_79 = arith.constant 1 : index
    %c0_80 = arith.constant 0 : index
    %66 = vector.load %arg2[%c0_77, %c2_78, %c1_79, %c0_80] : memref<1x10x10x4xbf16, #tpu.memory_space<vmem>>, vector<1x8x8x4xbf16>
    %67 = vector.shape_cast %66 : vector<1x8x8x4xbf16> to vector<8x8x4xbf16>
    %68 = vector.shape_cast %67 : vector<8x8x4xbf16> to vector<64x4xbf16>
    %c0_81 = arith.constant 0 : index
    %c0_82 = arith.constant 0 : index
    %69 = vector.load %arg6[%c0_81, %c0_82] : memref<64x1xf32, #tpu.memory_space<vmem>>, vector<64x1xf32>
    %c7 = arith.constant 7 : index
    %c0_83 = arith.constant 0 : index
    %c0_84 = arith.constant 0 : index
    %70 = vector.load %arg3[%c7, %c0_83, %c0_84] : memref<9x4x1xbf16, #tpu.memory_space<vmem>>, vector<1x4x1xbf16>
    %71 = vector.shape_cast %70 : vector<1x4x1xbf16> to vector<4x1xbf16>
    %cst_85 = arith.constant dense<0.000000e+00> : vector<64x1xf32>
    %72 = tpu.matmul %68, %71, %cst_85 {dimension_numbers = #tpu.dot_dimension_numbers<[1], [0], [0], [1], [0, 0, 1, 1], [], []>} : vector<64x4xbf16>, vector<4x1xbf16>, vector<64x1xf32> -> vector<64x1xf32>
    %73 = arith.addf %69, %72 : vector<64x1xf32>
    %c0_86 = arith.constant 0 : index
    %c0_87 = arith.constant 0 : index
    %74 = vector.load %arg6[%c0_86, %c0_87] : memref<64x1xf32, #tpu.memory_space<vmem>>, vector<64x1xf32>
    tpu.vector_store %arg6[%c0_86, %c0_87], %73 {strides = array<i32>} : memref<64x1xf32, #tpu.memory_space<vmem>>, vector<64x1xf32>,
    %c0_88 = arith.constant 0 : index
    %c2_89 = arith.constant 2 : index
    %c2_90 = arith.constant 2 : index
    %c0_91 = arith.constant 0 : index
    %75 = vector.load %arg2[%c0_88, %c2_89, %c2_90, %c0_91] : memref<1x10x10x4xbf16, #tpu.memory_space<vmem>>, vector<1x8x8x4xbf16>
    %76 = vector.shape_cast %75 : vector<1x8x8x4xbf16> to vector<8x8x4xbf16>
    %77 = vector.shape_cast %76 : vector<8x8x4xbf16> to vector<64x4xbf16>
    %c0_92 = arith.constant 0 : index
    %c0_93 = arith.constant 0 : index
    %78 = vector.load %arg6[%c0_92, %c0_93] : memref<64x1xf32, #tpu.memory_space<vmem>>, vector<64x1xf32>
    %c8 = arith.constant 8 : index
    %c0_94 = arith.constant 0 : index
    %c0_95 = arith.constant 0 : index
    %79 = vector.load %arg3[%c8, %c0_94, %c0_95] : memref<9x4x1xbf16, #tpu.memory_space<vmem>>, vector<1x4x1xbf16>
    %80 = vector.shape_cast %79 : vector<1x4x1xbf16> to vector<4x1xbf16>
    %cst_96 = arith.constant dense<0.000000e+00> : vector<64x1xf32>
    %81 = tpu.matmul %77, %80, %cst_96 {dimension_numbers = #tpu.dot_dimension_numbers<[1], [0], [0], [1], [0, 0, 1, 1], [], []>} : vector<64x4xbf16>, vector<4x1xbf16>, vector<64x1xf32> -> vector<64x1xf32>
    %82 = arith.addf %78, %81 : vector<64x1xf32>
    %c0_97 = arith.constant 0 : index
    %c0_98 = arith.constant 0 : index
    %83 = vector.load %arg6[%c0_97, %c0_98] : memref<64x1xf32, #tpu.memory_space<vmem>>, vector<64x1xf32>
    tpu.vector_store %arg6[%c0_97, %c0_98], %82 {strides = array<i32>} : memref<64x1xf32, #tpu.memory_space<vmem>>, vector<64x1xf32>,
    %c0_i32_99 = arith.constant 0 : i32
    %84 = arith.cmpi eq, %arg1, %c0_i32_99 : i32
    %85 = arith.extui %84 : i1 to i32
    %c0_i32_100 = arith.constant 0 : i32
    %86 = arith.cmpi ne, %85, %c0_i32_100 : i32
    scf.if %86 {
      %c0_101 = arith.constant 0 : index
      %c0_102 = arith.constant 0 : index
      %87 = vector.load %arg6[%c0_101, %c0_102] : memref<64x1xf32, #tpu.memory_space<vmem>>, vector<64x1xf32>
      %c0_103 = arith.constant 0 : index
      %c0_104 = arith.constant 0 : index
      %88 = vector.load %arg4[%c0_103, %c0_104] : memref<1x1xf32, #tpu.memory_space<vmem>>, vector<1x1xf32>
      %89 = vector.broadcast %88 : vector<1x1xf32> to vector<64x1xf32>
      %90 = arith.addf %87, %89 : vector<64x1xf32>
      %91 = vector.shape_cast %90 : vector<64x1xf32> to vector<1x8x8x1xf32>
      %c0_105 = arith.constant 0 : index
      %c0_106 = arith.constant 0 : index
      %c0_107 = arith.constant 0 : index
      %c0_108 = arith.constant 0 : index
      %92 = vector.load %arg5[%c0_105, %c0_106, %c0_107, %c0_108] : memref<1x8x8x1xf32, #tpu.memory_space<vmem>>, vector<1x8x8x1xf32>
      tpu.vector_store %arg5[%c0_105, %c0_106, %c0_107, %c0_108], %91 {strides = array<i32>} : memref<1x8x8x1xf32, #tpu.memory_space<vmem>>, vector<1x8x8x1xf32>,
    } else {
    }
    return
  }
  func.func @transform_0(%arg0: i32, %arg1: i32) -> (i32, i32, i32, i32) {
    %c0_i32 = arith.constant 0 : i32
    %c0_i32_0 = arith.constant 0 : i32
    %c0_i32_1 = arith.constant 0 : i32
    return %arg0, %c0_i32, %c0_i32_0, %arg1 : i32, i32, i32, i32
  }
  func.func @transform_1(%arg0: i32, %arg1: i32) -> (i32, i32, i32) {
    %c0_i32 = arith.constant 0 : i32
    %c0_i32_0 = arith.constant 0 : i32
    %c0_i32_1 = arith.constant 0 : i32
    return %c0_i32, %arg1, %c0_i32_0 : i32, i32, i32
  }
  func.func @transform_2(%arg0: i32, %arg1: i32) -> (i32, i32) {
    %c0_i32 = arith.constant 0 : i32
    %c0_i32_0 = arith.constant 0 : i32
    %c0_i32_1 = arith.constant 0 : i32
    return %c0_i32, %c0_i32_0 : i32, i32
  }
  func.func @transform_3(%arg0: i32, %arg1: i32) -> (i32, i32, i32, i32) {
    %c0_i32 = arith.constant 0 : i32
    %c0_i32_0 = arith.constant 0 : i32
    %c0_i32_1 = arith.constant 0 : i32
    %c0_i32_2 = arith.constant 0 : i32
    return %arg0, %c0_i32, %c0_i32_0, %c0_i32_1 : i32, i32, i32, i32
  }
}

</mosaic_0001>

<bundles_post_ra>
// kernel: decoder_more_token.9
= control target key start
LH: loop header
LB: loop body
LE: loop exit
PB: predicated region body
PF: predicated region fallthrough
CT: control target
= control target key end

     0   :  { %v60_v0 = vlaneseq  ;;  %v805_v1 = vmov 0.0   ;;  %v806_v3 = vmov 1966171168   ;;  %vm807_vm0 = vmmov 0   ;;  %s1050_s1 = inlined_call_operand.vmem [shape: bf16[4,64,16], index: 1, kind: input, shape index: {}]   ;;  %s1051_s0 = inlined_call_operand.vmem [shape: bf16[4,2,64], index: 0, kind: input, shape index: {}]   ;;  %s1052_s2 = inlined_call_operand.vmem [shape: f32[1,16], index: 2, kind: input, shape index: {}]   ;;  %s1053_s5 = inlined_call_operand.vmem [shape: f32[1,16], index: 5, kind: input, shape index: {}]   ;;  %s1054_s3 = inlined_call_operand.vmem [shape: f32[1,16], index: 3, kind: input, shape index: {}]   ;;  %s1055_s6 = inlined_call_operand.vmem [shape: f32[1,16], index: 6, kind: input, shape index: {}]   ;;  %s1056_s4 = inlined_call_operand.vmem [shape: f32[1,16], index: 4, kind: input, shape index: {}]   ;;  %s1057_s8 = inlined_call_operand.vmem [shape: bf16[4,2,2,32], index: 8, kind: output, shape index: {1}]   ;;  %s1058_s7 = inlined_call_operand.vmem [shape: bf16[4,2,2,32], index: 7, kind: output, shape index: {0}]  }
   0x1   :  { %728 = vmatprep.subr.bf16.mxu0 %v805_v1  ;;  %740 = vmatprep.subr.bf16.mxu1 %v805_v1  ;;  %v781_v2 = vld [vmem:[%s1050_s1] sm:$0xff]   ;;  %v58_v4 = vunpack.c.l.s4 %v806_v3  ;;  %v783_v6 = vld [vmem:[%s1050_s1 + $0x8] sm:$0xff]   ;;  %vm33_vm1 = vcmask 130048   ;;  %v785_v10 = vld [vmem:[%s1050_s1 + $0x10] sm:$0xff]   ;;  %vm103_vm2 = vcmask 523264   ;;  %vm518_vm3 = vcmask 253952  }
   0x2   :  { %v782_v5 = vld [vmem:[%s1050_s1 + $0x20] sm:$0xff]   ;;  %736 = vmatprep.mubr.msk.bf16.mxu0 %vm807_vm0, %v805_v1  ;;  %748 = vmatprep.mubr.msk.bf16.mxu1 %vm807_vm0, %v805_v1  ;;  %v784_v7 = vld [vmem:[%s1050_s1 + $0x28] sm:$0xff]   ;;  %v874_v9 = vshrl.u32 %v60_v0, 7  ;;  %34 = vst.msk [vmem:[#allocation2] sm:$0xff] %vm33_vm1, %v805_v1  ;;  %35 = vst.msk [vmem:[#allocation2 + $0x8] sm:$0xff] %vm33_vm1, %v805_v1 }
   0x3   :  { %729 = vmatpush3.bf16.msra.mxu0 %v781_v2  ;;  %741 = vmatpush3.bf16.msra.mxu1 %v782_v5  ;;  %v59_v8 = vunpack.c.0.s8 %v58_v4  ;;  %36 = vst.msk [vmem:[#allocation2 + $0x10] sm:$0xff] %vm33_vm1, %v805_v1  ;;  %37 = vst.msk [vmem:[#allocation2 + $0x18] sm:$0xff] %vm33_vm1, %v805_v1  ;;  %v786_v11 = vld [vmem:[%s1050_s1 + $0x30] sm:$0xff]   ;;  %v38_v13 = vld [vmem:[%s1051_s0] sm:$0x1] }
   0x4   :  { %730 = vmatprep.subr.bf16.mxu0 %v805_v1  ;;  %742 = vmatprep.subr.bf16.mxu1 %v805_v1  ;;  %v39_v14 = vld [vmem:[%s1051_s0 + $0x1] sm:$0x1]  ;;  %v40_v15 = vld [vmem:[%s1051_s0 + $0x2] sm:$0x1]  ;;  %v41_v16 = vld [vmem:[%s1051_s0 + $0x3] sm:$0x1] }
   0x5   :  { %v62_v12 = vsub.s32 %v59_v8, %v874_v9  ;;  %v55_v17 = vcombine.low %v38_v13, %v39_v14  ;;  %v787_v18 = vld [vmem:[%s1050_s1 + $0x18] sm:$0xff]   ;;  %v56_v19 = vcombine.low %v40_v15, %v41_v16  ;;  %v789_v24 = vld [vmem:[%s1050_s1 + $0x40] sm:$0xff]   ;;  %v791_v27 = vld [vmem:[%s1050_s1 + $0x48] sm:$0xff]  }
   0x6   :  { %v788_v20 = vld [vmem:[%s1050_s1 + $0x38] sm:$0xff]   ;;  %v790_v25 = vld [vmem:[%s1050_s1 + $0x60] sm:$0xff]   ;;  %v792_v28 = vld [vmem:[%s1050_s1 + $0x68] sm:$0xff]  }
   0x7   :  { %731 = vmatpush3.bf16.msra.mxu0 %v783_v6  ;;  %743 = vmatpush3.bf16.msra.mxu1 %v784_v7  ;;  %v63_v21 = vrot.slane %v55_v17, %v62_v12  ;;  %v70_v22 = vrot.slane %v56_v19, %v62_v12  ;;  %v793_v29 = vld [vmem:[%s1050_s1 + $0x50] sm:$0xff]   ;;  %v795_v31 = vld [vmem:[%s1050_s1 + $0x58] sm:$0xff]   ;;  %v695_v45 = vld [vmem:[%s1052_s2] ss:$0 sm:$0xff] }
   0x8   :  { %732 = vmatprep.subr.bf16.mxu0 %v805_v1  ;;  %744 = vmatprep.subr.bf16.mxu1 %v805_v1  ;;  %v794_v30 = vld [vmem:[%s1050_s1 + $0x70] sm:$0xff]   ;;  %v796_v32 = vld [vmem:[%s1050_s1 + $0x78] sm:$0xff]  }
   0x9   :  { %v71_v23 = vcombine.low %v63_v21, %v70_v22  ;;  %v42_v33 = vld [vmem:[#allocation2] sm:$0xff]  ;;  %v151_v34 = vld [vmem:[#allocation2 + $0x8] sm:$0xff] }
   0xa   :  { %v228_v52 = vld [vmem:[#allocation2 + $0x10] sm:$0xff]  ;;  %v305_v53 = vld [vmem:[#allocation2 + $0x18] sm:$0xff] }
   0xb   :  { %733 = vmatpush3.bf16.msra.mxu0 %v785_v10  ;;  %745 = vmatpush3.bf16.msra.mxu1 %v786_v11  ;;  %v78_v26 = vrot.slane %v71_v23, %v62_v12 }
   0xc   :  { %734 = vmatprep.subr.bf16.mxu0 %v805_v1  ;;  %746 = vmatprep.subr.bf16.mxu1 %v805_v1 }
   0xf   :  { %735 = vmatpush3.bf16.msra.mxu0 %v787_v18  ;;  %747 = vmatpush3.bf16.msra.mxu1 %v788_v20 }
  0x10   :  { %752 = vmatprep.subr.bf16.mxu0 %v805_v1  ;;  %764 = vmatprep.subr.bf16.mxu1 %v805_v1 }
  0x12   :  { %737 = vmatmul.mubr.msk.bf16.vlgmr.msra.gmra.mrb[0].mxu0 %vm103_vm2, %v78_v26  ;;  %749 = vmatmul.mubr.msk.bf16.vlgmr.msra.gmra.mrb[0].mxu1 %vm103_vm2, %v78_v26 }
  0x13   :  { %753 = vmatpush3.bf16.msra.mxu0 %v789_v24  ;;  %765 = vmatpush3.bf16.msra.mxu1 %v790_v25 }
  0x14   :  { %754 = vmatprep.subr.bf16.mxu0 %v805_v1  ;;  %766 = vmatprep.subr.bf16.mxu1 %v805_v1 }
  0x15   :  { %760 = vmatprep.mubr.msk.bf16.mxu0 %vm807_vm0, %v805_v1  ;;  %772 = vmatprep.mubr.msk.bf16.mxu1 %vm807_vm0, %v805_v1 }
  0x17   :  { %755 = vmatpush3.bf16.msra.mxu0 %v791_v27  ;;  %767 = vmatpush3.bf16.msra.mxu1 %v792_v28 }
  0x18   :  { %756 = vmatprep.subr.bf16.mxu0 %v805_v1  ;;  %768 = vmatprep.subr.bf16.mxu1 %v805_v1 }
  0x1b   :  { %757 = vmatpush3.bf16.msra.mxu0 %v793_v29  ;;  %769 = vmatpush3.bf16.msra.mxu1 %v794_v30 }
  0x1c   :  { %758 = vmatprep.subr.bf16.mxu0 %v805_v1  ;;  %770 = vmatprep.subr.bf16.mxu1 %v805_v1 }
  0x1f   :  { %759 = vmatpush3.bf16.msra.mxu0 %v795_v31  ;;  %771 = vmatpush3.bf16.msra.mxu1 %v796_v32 }
  0x22   :  { %761 = vmatmul.mubr.msk.bf16.vlgmr.msra.gmra.mrb[4].mxu0 %vm103_vm2, %v78_v26  ;;  %773 = vmatmul.mubr.msk.bf16.vlgmr.msra.gmra.mrb[4].mxu1 %vm103_vm2, %v78_v26 }
  0xe5   :  { %v141_v35 = vpop.f32.mrb[0].mxu0  ;;  %v219_v36 = vpop.f32.mrb[0].mxu1 }
  0xe6   :  { %v147_v37 = vadd.f32 %v141_v35, %v42_v33  ;;  %v225_v38 = vadd.f32 %v219_v36, %v151_v34  ;;  %v750_v39 = vpop.f32.mrb[1].mxu1  ;;  %v738_v40 = vpop.f32.mrb[1].mxu0  ;;  %v698_v34 = vld [vmem:[%s1053_s5] ss:$0 sm:$0xff] }
  0xe7   :  { %v222_v41 = vpop.f32.mrb[2].mxu1  ;;  %v144_v42 = vpop.f32.mrb[2].mxu0  ;;  %v696_v35 = vld [vmem:[%s1054_s3] ss:$0 sm:$0xff]  ;;  %s808_s3 = smov 16  }
  0xe8   :  { %149 = vst.msk [vmem:[#allocation2] sm:$0xff] %vm33_vm1, %v147_v37  ;;  %226 = vst.msk [vmem:[#allocation2 + $0x8] sm:$0xff] %vm33_vm1, %v225_v38  ;;  %v751_v43 = vpop.f32.mrb[3].mxu1  ;;  %v739_v44 = vpop.f32.mrb[3].mxu0  ;;  %v699_v39 = vld [vmem:[%s1055_s6] ss:$0 sm:$0xff] }
  0xe9   :  { %v697_v40 = vld [vmem:[%s1056_s4] ss:$0 sm:$0xff] }
  0xef   :  { %v440_v46 = vld [vmem:[#allocation2 + $0x8] sm:$0xff]  ;;  %v389_v47 = vld [vmem:[#allocation2] sm:$0xff] }
  0xf0   :  { %v441_v48 = vadd.f32 %v695_v45, %v440_v46  ;;  %v396_v49 = vadd.f32 %v695_v45, %v389_v47 }
  0xf2   :  { %v442_v50 = vsel %vm33_vm1, %v441_v48, 0.0  ;;  %v397_v51 = vsel %vm33_vm1, %v396_v49, 0.0 }
  0xf3   :  { %443 = vadd.xlane.f32.xlu0 %v442_v50  ;;  %398 = vadd.xlane.f32.xlu1 %v397_v51 }
  0xf5   :  { %v296_v54 = vpop.f32.mrb[4].mxu0  ;;  %v373_v55 = vpop.f32.mrb[4].mxu1 }
  0xf6   :  { %v302_v56 = vadd.f32 %v296_v54, %v228_v52  ;;  %v379_v57 = vadd.f32 %v373_v55, %v305_v53  ;;  %v774_v58 = vpop.f32.mrb[5].mxu1  ;;  %v762_v59 = vpop.f32.mrb[5].mxu0 }
  0xf7   :  { %v376_v60 = vpop.f32.mrb[6].mxu1  ;;  %v299_v61 = vpop.f32.mrb[6].mxu0 }
  0xf8   :  { %303 = vst.msk [vmem:[#allocation2 + $0x10] sm:$0xff] %vm33_vm1, %v302_v56  ;;  %380 = vst.msk [vmem:[#allocation2 + $0x18] sm:$0xff] %vm33_vm1, %v379_v57  ;;  %v775_v62 = vpop.f32.mrb[7].mxu1  ;;  %v763_v63 = vpop.f32.mrb[7].mxu0 }
  0xff   :  { %v551_v0 = vld [vmem:[#allocation2 + $0x18] sm:$0xff]  ;;  %v531_v1 = vld [vmem:[#allocation2 + $0x10] sm:$0xff] }
 0x100   :  { %v552_v2 = vadd.f32 %v695_v45, %v551_v0  ;;  %v532_v3 = vadd.f32 %v695_v45, %v531_v1 }
 0x102   :  { %v553_v4 = vsel %vm33_vm1, %v552_v2, 0.0  ;;  %v533_v5 = vsel %vm33_vm1, %v532_v3, 0.0 }
 0x103   :  { %554 = vadd.xlane.f32.xlu0 %v553_v4  ;;  %534 = vadd.xlane.f32.xlu1 %v533_v5  ;;  %v809_v5 = vmov 1983009808  }
 0x180   :  { %v444_v6 = vpop.xlane.xlu0 %443  ;;  %v399_v7 = vpop.xlane.xlu1 %398 }
 0x181   :  { %v445_v8 = vmul.f32 0.0625, %v444_v6  ;;  %v401_v10 = vmul.f32 0.0625, %v399_v7  ;;  %v468_v6 = vunpack.c.l.s4 %v809_v5 }
 0x183   :  { %v446_v11 = vsub.f32 %v441_v48, %v445_v8  ;;  %v402_v12 = vsub.f32 %v396_v49, %v401_v10  ;;  %v469_v7 = vunpack.c.0.s8 %v468_v6 }
 0x185   :  { %v447_v13 = vmul.f32 %v446_v11, %v446_v11  ;;  %v403_v15 = vmul.f32 %v402_v12, %v402_v12  ;;  %v472_v8 = vsub.s32 %v469_v7, %v874_v9 }
 0x187   :  { %v448_v14 = vsel %vm33_vm1, %v447_v13, 0.0  ;;  %v404_v16 = vsel %vm33_vm1, %v403_v15, 0.0 }
 0x188   :  { %449 = vadd.xlane.f32.xlu0 %v448_v14 }
 0x18c   :  { %405 = vadd.xlane.f32.xlu0 %v404_v16 }
 0x190   :  { %v555_v17 = vpop.xlane.xlu0 %554  ;;  %v535_v18 = vpop.xlane.xlu1 %534 }
 0x191   :  { %v556_v19 = vmul.f32 0.0625, %v555_v17  ;;  %v536_v20 = vmul.f32 0.0625, %v535_v18 }
 0x193   :  { %v557_v21 = vsub.f32 %v552_v2, %v556_v19  ;;  %v537_v22 = vsub.f32 %v532_v3, %v536_v20 }
 0x195   :  { %v558_v23 = vmul.f32 %v557_v21, %v557_v21  ;;  %v538_v25 = vmul.f32 %v537_v22, %v537_v22 }
 0x197   :  { %v559_v24 = vsel %vm33_vm1, %v558_v23, 0.0  ;;  %v539_v26 = vsel %vm33_vm1, %v538_v25, 0.0 }
 0x198   :  { %560 = vadd.xlane.f32.xlu1 %v559_v24 }
 0x19c   :  { %540 = vadd.xlane.f32.xlu1 %v539_v26 }
 0x215   :  { %v450_v27 = vpop.xlane.xlu0 %449 }
 0x216   :  { %v451_v28 = vmul.f32 0.0625, %v450_v27 }
 0x218   :  { %v452_v29 = vadd.f32 1e-06, %v451_v28 }
 0x219   :  { %v406_v30 = vpop.xlane.xlu0 %405 }
 0x21a   :  { %797 = vrsqrt.f32 %v452_v29  ;;  %v407_v31 = vmul.f32 0.0625, %v406_v30 }
 0x21c   :  { %v408_v32 = vadd.f32 1e-06, %v407_v31 }
 0x21e   :  { %799 = vrsqrt.f32 %v408_v32 }
 0x224   :  { %v798_v33 = vpop.eup %797 }
 0x225   :  { %v561_v36 = vpop.xlane.xlu1 %560  ;;  %v454_v37 = vmul.f32 %v798_v33, %v446_v11 }
 0x226   :  { %v562_v38 = vmul.f32 0.0625, %v561_v36 }
 0x227   :  { %v458_v41 = vmul.f32 %v698_v34, %v454_v37  ;;  %v455_v42 = vmul.f32 %v696_v35, %v454_v37 }
 0x228   :  { %v800_v43 = vpop.eup %799  ;;  %v563_v44 = vadd.f32 1e-06, %v562_v38 }
 0x229   :  { %v541_v45 = vpop.xlane.xlu1 %540  ;;  %v459_v46 = vadd.f32 %v699_v39, %v458_v41  ;;  %v456_v47 = vadd.f32 %v697_v40, %v455_v42  ;;  %v410_v48 = vmul.f32 %v800_v43, %v402_v12 }
 0x22a   :  { %801 = vrsqrt.f32 %v563_v44  ;;  %v542_v49 = vmul.f32 0.0625, %v541_v45 }
 0x22b   :  { %488 = vrot.lane.b32.xlu1 %v459_v46, %s808_s3  ;;  %v457_v50 = vmax.f32 %v456_v47, 0.0  ;;  %v432_v51 = vmul.f32 %v698_v34, %v410_v48  ;;  %v417_v52 = vmul.f32 %v696_v35, %v410_v48 }
 0x22c   :  { %v543_v53 = vadd.f32 1e-06, %v542_v49 }
 0x22d   :  { %461 = vrot.lane.b32.xlu0 %v457_v50, %s808_s3  ;;  %v439_v54 = vadd.f32 %v699_v39, %v432_v51  ;;  %v424_v55 = vadd.f32 %v697_v40, %v417_v52 }
 0x22e   :  { %803 = vrsqrt.f32 %v543_v53 }
 0x22f   :  { %v425_v12 = vmax.f32 %v424_v55, 0.0 }
 0x234   :  { %v802_v56 = vpop.eup %801 }
 0x235   :  { %v565_v57 = vmul.f32 %v802_v56, %v557_v21 }
 0x237   :  { %v566_v58 = vmul.f32 %v696_v35, %v565_v57  ;;  %v569_v63 = vmul.f32 %v698_v34, %v565_v57 }
 0x238   :  { %v804_v59 = vpop.eup %803 }
 0x239   :  { %v567_v60 = vadd.f32 %v697_v40, %v566_v58  ;;  %v545_v61 = vmul.f32 %v804_v59, %v537_v22  ;;  %v570_v4 = vadd.f32 %v699_v39, %v569_v63 }
 0x23b   :  { %v568_v62 = vmax.f32 %v567_v60, 0.0  ;;  %v546_v0 = vmul.f32 %v696_v35, %v545_v61  ;;  %v549_v1 = vmul.f32 %v698_v34, %v545_v61 }
 0x23d   :  { %572 = vrot.lane.b32.xlu1 %v568_v62, %s808_s3  ;;  %v547_v2 = vadd.f32 %v697_v40, %v546_v0  ;;  %v550_v3 = vadd.f32 %v699_v39, %v549_v1 }
 0x23f   :  { %v548_v32 = vmax.f32 %v547_v2, 0.0 }
 0x241   :  { %599 = vrot.lane.b32.xlu1 %v570_v4, %s808_s3 }
 0x29d   :  { %v489_v10 = vpop.permute.xlu1 %488 }
 0x29e   :  { %v491_v11 = vsel %vm33_vm1, %v439_v54, %v489_v10 }
 0x29f   :  { %v493_v13 = vcombine.high %v491_v11, %v491_v11  ;;  %v500_v14 = vrot.slane %v491_v11, %v472_v8  ;;  %v462_v15 = vpop.permute.xlu0 %461 }
 0x2a0   :  { %v464_v16 = vsel %vm33_vm1, %v425_v12, %v462_v15 }
 0x2a1   :  { %v507_v17 = vrot.slane %v493_v13, %v472_v8  ;;  %v508_v18 = vcombine.high %v500_v14, %v500_v14  ;;  %v523_v19 = vpack.c.bf16 %v500_v14, %v500_v14  ;;  %v466_v20 = vcombine.high %v464_v16, %v464_v16 }
 0x2a2   :  { %v473_v21 = vrot.slane %v464_v16, %v472_v8 }
 0x2a3   :  { %v509_v22 = vcombine.high %v507_v17, %v507_v17  ;;  %v524_v23 = vpack.c.bf16 %v508_v18, %v508_v18  ;;  %v525_v24 = vpack.c.bf16 %v507_v17, %v507_v17  ;;  %527 = vst.msk [vmem:[%s1057_s8] sm:$0x1] %vm518_vm3, %v523_v19  ;;  %v480_v9 = vrot.slane %v466_v20, %v472_v8 }
 0x2a4   :  { %v481_v25 = vcombine.high %v473_v21, %v473_v21  ;;  %v514_v26 = vpack.c.bf16 %v473_v21, %v473_v21 }
 0x2a5   :  { %v526_v27 = vpack.c.bf16 %v509_v22, %v509_v22  ;;  %528 = vst.msk [vmem:[%s1057_s8 + $0x2] sm:$0x1] %vm518_vm3, %v524_v23  ;;  %529 = vst.msk [vmem:[%s1057_s8 + $0x4] sm:$0x1] %vm518_vm3, %v525_v24  ;;  %v482_v28 = vcombine.high %v480_v9, %v480_v9  ;;  %v516_v29 = vpack.c.bf16 %v480_v9, %v480_v9 }
 0x2a6   :  { %v515_v30 = vpack.c.bf16 %v481_v25, %v481_v25  ;;  %519 = vst.msk [vmem:[%s1058_s7] sm:$0x1] %vm518_vm3, %v514_v26 }
 0x2a7   :  { %530 = vst.msk [vmem:[%s1057_s8 + $0x6] sm:$0x1] %vm518_vm3, %v526_v27  ;;  %v517_v31 = vpack.c.bf16 %v482_v28, %v482_v28  ;;  %521 = vst.msk [vmem:[%s1058_s7 + $0x4] sm:$0x1] %vm518_vm3, %v516_v29 }
 0x2a8   :  { %520 = vst.msk [vmem:[%s1058_s7 + $0x2] sm:$0x1] %vm518_vm3, %v515_v30 }
 0x2a9   :  { %522 = vst.msk [vmem:[%s1058_s7 + $0x6] sm:$0x1] %vm518_vm3, %v517_v31 }
 0x2af   :  { %v573_v33 = vpop.permute.xlu1 %572 }
 0x2b0   :  { %v575_v34 = vsel %vm33_vm1, %v548_v32, %v573_v33 }
 0x2b1   :  { %v577_v35 = vcombine.high %v575_v34, %v575_v34  ;;  %v584_v36 = vrot.slane %v575_v34, %v472_v8 }
 0x2b3   :  { %v591_v37 = vrot.slane %v577_v35, %v472_v8  ;;  %v592_v38 = vcombine.high %v584_v36, %v584_v36  ;;  %v625_v39 = vpack.c.bf16 %v584_v36, %v584_v36  ;;  %v600_v40 = vpop.permute.xlu1 %599 }
 0x2b4   :  { %v602_v41 = vsel %vm33_vm1, %v550_v3, %v600_v40 }
 0x2b5   :  { %v593_v42 = vcombine.high %v591_v37, %v591_v37  ;;  %v626_v43 = vpack.c.bf16 %v592_v38, %v592_v38  ;;  %v627_v44 = vpack.c.bf16 %v591_v37, %v591_v37  ;;  %700 = vst.msk [vmem:[%s1058_s7 + $0x1] sm:$0x1] %vm518_vm3, %v625_v39  ;;  %v604_v45 = vcombine.high %v602_v41, %v602_v41 }
 0x2b6   :  { %v611_v46 = vrot.slane %v602_v41, %v472_v8 }
 0x2b7   :  { %v628_v47 = vpack.c.bf16 %v593_v42, %v593_v42  ;;  %701 = vst.msk [vmem:[%s1058_s7 + $0x3] sm:$0x1] %vm518_vm3, %v626_v43  ;;  %702 = vst.msk [vmem:[%s1058_s7 + $0x5] sm:$0x1] %vm518_vm3, %v627_v44  ;;  %v618_v48 = vrot.slane %v604_v45, %v472_v8 }
 0x2b8   :  { %v619_v49 = vcombine.high %v611_v46, %v611_v46  ;;  %v634_v50 = vpack.c.bf16 %v611_v46, %v611_v46 }
 0x2b9   :  { %703 = vst.msk [vmem:[%s1058_s7 + $0x7] sm:$0x1] %vm518_vm3, %v628_v47  ;;  %v620_v51 = vcombine.high %v618_v48, %v618_v48  ;;  %v636_v52 = vpack.c.bf16 %v618_v48, %v618_v48 }
 0x2ba   :  { %v635_v53 = vpack.c.bf16 %v619_v49, %v619_v49  ;;  %704 = vst.msk [vmem:[%s1057_s8 + $0x1] sm:$0x1] %vm518_vm3, %v634_v50 }
 0x2bb   :  { %v637_v54 = vpack.c.bf16 %v620_v51, %v620_v51  ;;  %706 = vst.msk [vmem:[%s1057_s8 + $0x5] sm:$0x1] %vm518_vm3, %v636_v52 }
 0x2bc   :  { %705 = vst.msk [vmem:[%s1057_s8 + $0x3] sm:$0x1] %vm518_vm3, %v635_v53 }
 0x2bd   :  { %707 = vst.msk [vmem:[%s1057_s8 + $0x7] sm:$0x1] %vm518_vm3, %v637_v54 }

// kernel: decoder_more_token.10
= control target key start
LH: loop header
LB: loop body
LE: loop exit
PB: predicated region body
PF: predicated region fallthrough
CT: control target
= control target key end

     0   :  { %s1991_s21 = smov 0   ;;  %s1993_s22 = smov 0   ;;  %s2237_s0 = inlined_call_operand.vmem [shape: bf16[2,6,6,16], index: 0, kind: input, shape index: {}]   ;;  %s2238_s1 = inlined_call_operand.vmem [shape: bf16[2,4,4,16], index: 1, kind: input, shape index: {}]   ;;  %s2239_s2 = inlined_call_operand.vmem [shape: bf16[9,16,16], index: 2, kind: input, shape index: {}]   ;;  %s2240_s3 = inlined_call_operand.vmem [shape: f32[1,16], index: 3, kind: input, shape index: {}]   ;;  %s2241_s4 = inlined_call_operand.vmem [shape: f32[1,16], index: 4, kind: input, shape index: {}]   ;;  %s2242_s5 = inlined_call_operand.vmem [shape: f32[1,16], index: 5, kind: input, shape index: {}]   ;;  %s2243_s6 = inlined_call_operand.vmem [shape: bf16[2,4,4,16], index: 6, kind: output, shape index: {}]  }
   0x1   :  { %s1995_s23 = smov 0  }
   0x2 LB: > { %s28_s24 = sadd.s32 1, %s1947_s22  ;;  %p1697_p0 = scmp.ge.s32.totalorder %s1951_s23, 1  ;;  %s1951_s23 = sphi %s1995_s23, %s16_s23   ;;  %s1947_s22 = sphi %s1993_s22, %s2255_s22   ;;  %s1943_s21 = sphi %s1991_s21, %s2254_s21  }
   0x3   : > { %p30_p1 = scmp.ge.s32.totalorder %s28_s24, 2  ;;  %p250_p2 = scmp.lt.s32.totalorder %s1951_s23, 3 }
   0x5   : > { %s2257_s24 = smov (%p30_p1, %s28_s24), 0  ;;  %p251_p3 = pnand %p1697_p0, %p250_p2 }
   0x6   : > { %v1904_v0 = vld [vmem:[%s2239_s2] sm:$0xff] (!%p251_p3)   ;;  %v342_v1 = vlaneseq (!%p251_p3)  ;;  %v1953_v2 = vmov (!%p251_p3), 0.0   ;;  %p293_p4 = scmp.lt.s32.totalorder (!%p251_p3), %s1943_s21, 1  ;;  %vm322_vm0 = vcmask (!%p251_p3), 130048   ;;  %v1907_v3 = vld [vmem:[%s2239_s2 + $0x8] sm:$0xff] (!%p251_p3)   ;;  %vm1954_vm1 = vmmov (!%p251_p3), 0  }
   0x7   : > { %254 = sbr.rel (%p251_p3) target bundleno = 662 (0x296), region = 44  ;;  %1822 = vmatprep.subr.bf16.mxu0 (!%p251_p3), %v1953_v2  ;;  %1828 = vmatprep.subr.bf16.mxu1 (!%p251_p3), %v1953_v2  ;;  %v1955_v4 = vmov (!%p251_p3), 1983009808   ;;  %323 = vst.msk [vmem:[#allocation2] sm:$0xff] (!%p251_p3), %vm322_vm0, %v1953_v2  ;;  %324 = vst.msk [vmem:[#allocation2 + $0x8] sm:$0xff] (!%p251_p3), %vm322_vm0, %v1953_v2  ;;  %vm628_vm4 = vcmask (!%p251_p3), 1040384  }
   0x8   : > { %1823 = vmatpush3.bf16.msra.mxu0 (!%p251_p3), %v1904_v0  ;;  %1824 = vmatprep.mubr.msk.bf16.mxu0 (!%p251_p3), %vm1954_vm1, %v1953_v2  ;;  %v340_v5 = vunpack.c.l.s4 (!%p251_p3), %v1955_v4  ;;  %v343_v6 = vshrl.u32 (!%p251_p3), %v342_v1, 7  ;;  %vm449_vm2 = vsmask.f32 (!%p251_p3), 1280  ;;  %vm450_vm3 = vsmask.f32 (!%p251_p3), 3336  ;;  %v1908_v15 = vld [vmem:[%s2239_s2 + $0x10] sm:$0xff] (!%p251_p3)  }
   0x9   : > { %1829 = vmatpush3.bf16.msra.mxu1 (!%p251_p3), %v1907_v3  ;;  %1830 = vmatprep.mubr.msk.bf16.mxu1 (!%p251_p3), %vm1954_vm1, %v1953_v2  ;;  %vm452_vm5 = vsmask.f32 (!%p251_p3), 5392  ;;  %vm454_vm6 = vsmask.f32 (!%p251_p3), 7448  ;;  %vm629_vm7 = vcmask (!%p251_p3), 1042434   ;;  %vm631_vm8 = vcmask (!%p251_p3), 1044484   ;;  %vm451_vm10 = vmor (!%p251_p3), %vm449_vm2, %vm450_vm3 }
   0xa   : > { %v341_v7 = vunpack.c.0.s8 (!%p251_p3), %v340_v5  ;;  %1834 = vmatprep.subr.bf16.mxu0 (!%p251_p3), %v1953_v2  ;;  %1840 = vmatprep.subr.bf16.mxu1 (!%p251_p3), %v1953_v2  ;;  %vm633_vm9 = vcmask (!%p251_p3), 1046534   ;;  %vm2048_vm11 = vmor (!%p251_p3), %vm451_vm10, %vm452_vm5  ;;  %v1909_v34 = vld [vmem:[%s2239_s2 + $0x18] sm:$0xff] (!%p251_p3)  }
   0xb   : > { %vm2055_vm12 = vmor (!%p251_p3), %vm628_vm4, %vm629_vm7 }
   0xc   : > { %v2035_v8 = vsub.s32 (!%p251_p3), %v341_v7, %v343_v6  ;;  %vm2064_vm13 = vmor (!%p251_p3), %vm2048_vm11, %vm454_vm6 }
   0xd   : > { %vm2072_vm14 = vmor (!%p251_p3), %vm2055_vm12, %vm631_vm8 }
   0xe   : > { %s2259_s21 = smov (!%p293_p4, %s1943_s21), 1  ;;  %vm2084_vm15 = vmor %vm2072_vm14, %vm633_vm9 }
   0xf   : > { %s1876_s29 = smul.u32 24, %s2259_s21 }
  0x11   : > { %s2033_s8 = scalar_lea.vmem %s2237_s0, %s1876_s29  ;;  %s1802_s29 = sshll.u32 %s2259_s21, 3 }
  0x12   : > { %v1923_v9 = vld.sshfl [vmem:[%s2033_s8] sm:$0xf pattern:$0x76325410]  ;;  %s316_s14 = scalar_lea.vmem %s2243_s6, %s1802_s29 }
  0x13   : > { %v1924_v10 = vld.sshfl [vmem:[%s2033_s8 + $0x8] sm:$0xf pattern:$0x76325410] }
  0x14   : > { %v1705_v11 = vld.sshfl [vmem:[%s2033_s8] sm:$0x13 pattern:$0x76325410]  ;;  %v353_v20 = vcombine.low %v1923_v9, %v1924_v10 }
  0x15   : > { %v1706_v12 = vld.sshfl [vmem:[%s2033_s8 + $0x4] sm:$0x13 pattern:$0x76325410]  ;;  %v424_v13 = vcombine.high %v1705_v11, %v1705_v11  ;;  %v457_v14 = vshrl.u32 %v1705_v11, 16  ;;  %v460_v18 = vshll.u32 %v1705_v11, 16 }
  0x16   : > { %v1707_v16 = vld.sshfl [vmem:[%s2033_s8 + $0x8] sm:$0x13 pattern:$0x76325410]  ;;  %v432_v17 = vcombine.high %v1706_v12, %v1706_v12  ;;  %v471_v19 = vshrl.u32 %v1706_v12, 16  ;;  %v474_v29 = vshll.u32 %v1706_v12, 16  ;;  %1825 = vmatmul.mubr.msk.bf16.vlgmr.msra.gmra.mrb[0].mxu0 %vm322_vm0, %v353_v20 }
  0x17   : > { %v1708_v21 = vld.sshfl [vmem:[%s2033_s8 + $0xc] sm:$0x13 pattern:$0x76325410]  ;;  %v440_v22 = vcombine.high %v1707_v16, %v1707_v16  ;;  %v459_v23 = vrot.slane %v457_v14, 6  ;;  %v466_v24 = vshll.u32 %v424_v13, 16  ;;  %1835 = vmatpush3.bf16.msra.mxu0 %v1908_v15  ;;  %1836 = vmatprep.mubr.msk.bf16.mxu0 %vm1954_vm1, %v1953_v2 }
  0x18   : > { %v448_v25 = vcombine.high %v1708_v21, %v1708_v21  ;;  %v462_v27 = vrot.slane %v460_v18, 7  ;;  %v473_v28 = vrot.slane %v471_v19, 6  ;;  %v480_v31 = vshll.u32 %v432_v17, 16  ;;  %1846 = vmatprep.subr.bf16.mxu0 %v1953_v2 }
  0x19   : > { %v468_v30 = vrot.slane %v466_v24, 7  ;;  %v485_v32 = vshrl.u32 %v1707_v16, 16  ;;  %v488_v33 = vshll.u32 %v1707_v16, 16  ;;  %v476_v36 = vrot.slane %v474_v29, 7 }
  0x1a   : > { %v463_v35 = vor.u32 %v462_v27, %v459_v23  ;;  %v494_v37 = vshll.u32 %v440_v22, 16  ;;  %v499_v38 = vshrl.u32 %v1708_v21, 16  ;;  %v482_v40 = vrot.slane %v480_v31, 7 }
  0x1b   : > { %v487_v41 = vrot.slane %v485_v32, 6  ;;  %v490_v42 = vrot.slane %v488_v33, 7  ;;  %v502_v43 = vshll.u32 %v1708_v21, 16  ;;  %v477_v45 = vor.u32 %v476_v36, %v473_v28 }
  0x1c   : > { %v464_v44 = vrot.slane %v463_v35, 2  ;;  %v496_v46 = vrot.slane %v494_v37, 7  ;;  %v501_v47 = vrot.slane %v499_v38, 6  ;;  %v508_v51 = vshll.u32 %v448_v25, 16 }
  0x1d   : > { %v491_v49 = vor.u32 %v490_v42, %v487_v41  ;;  %v504_v50 = vrot.slane %v502_v43, 7  ;;  %v1713_v52 = vld.sshfl [vmem:[%s2033_s8] sm:$0x12 pattern:$0x76325410]  ;;  %v478_v54 = vrot.slane %v477_v45, 2 }
  0x1e   : > { %v469_v53 = vsel %vm2064_vm13, %v464_v44, %v468_v30  ;;  %v1714_v55 = vld.sshfl [vmem:[%s2033_s8 + $0x4] sm:$0x12 pattern:$0x76325410]  ;;  %v603_v56 = vcombine.high %v1713_v52, %v1713_v52  ;;  %v1717_v57 = vrot.slane %v1713_v52, 9  ;;  %v510_v60 = vrot.slane %v508_v51, 7 }
  0x1f   : > { %v492_v58 = vrot.slane %v491_v49, 2  ;;  %v505_v59 = vor.u32 %v504_v50, %v501_v47  ;;  %v1715_v61 = vld.sshfl [vmem:[%s2033_s8 + $0x8] sm:$0x12 pattern:$0x76325410]  ;;  %v611_v62 = vcombine.high %v1714_v55, %v1714_v55  ;;  %v2090_v0 = vsel %vm2064_vm13, %v478_v54, %v482_v40  ;;  %v1912_v42 = vld [vmem:[%s2239_s2 + $0x20] sm:$0xff]  }
  0x20   : > { %v1716_v1 = vld.sshfl [vmem:[%s2033_s8 + $0xc] sm:$0x12 pattern:$0x76325410]  ;;  %v619_v3 = vcombine.high %v1715_v61, %v1715_v61  ;;  %v637_v4 = vrot.slane %v603_v56, 7  ;;  %v1718_v5 = vrot.slane %v1714_v55, 9  ;;  %v517_v9 = vcombine.low %v469_v53, %v2090_v0 }
  0x21   : > { %v2095_v6 = vsel %vm2064_vm13, %v492_v58, %v496_v46  ;;  %v506_v7 = vrot.slane %v505_v59, 2  ;;  %v627_v10 = vcombine.high %v1716_v1, %v1716_v1  ;;  %v641_v12 = vrot.slane %v611_v62, 7  ;;  %v2103_v18 = vld.sshfl [vmem:[%s2033_s8 + $0x4] sm:$0xf pattern:$0x76325410] }
  0x22   : > { %v638_v11 = vsel %vm2084_vm15, %v1717_v57, %v637_v4  ;;  %v1719_v13 = vrot.slane %v1715_v61, 9  ;;  %v645_v14 = vrot.slane %v619_v3, 7  ;;  %v1720_v16 = vrot.slane %v1716_v1, 9  ;;  %v1913_v4 = vld [vmem:[%s2239_s2 + $0x28] sm:$0xff]  }
  0x23   : > { %v511_v15 = vsel %vm2064_vm13, %v506_v7, %v510_v60  ;;  %v649_v17 = vrot.slane %v627_v10, 7  ;;  %v1926_v19 = vld.sshfl [vmem:[%s2033_s8 + $0xc] sm:$0xf pattern:$0x76325410]  ;;  %v525_v22 = vrot.slane %v517_v9, %v2035_v8  ;;  %v642_v23 = vsel %vm2084_vm15, %v1718_v5, %v641_v12 }
  0x24   : > { %v1740_v20 = vld.sshfl [vmem:[%s2033_s8 + $0x10] sm:$0x13 pattern:$0x76325410]  ;;  %v518_v21 = vcombine.low %v2095_v6, %v511_v15  ;;  %v646_v24 = vsel %vm2084_vm15, %v1719_v13, %v645_v14  ;;  %v656_v27 = vcombine.low %v638_v11, %v642_v23  ;;  %v913_v49 = vcombine.low %v2090_v0, %v2095_v6 }
  0x25   : > { %v1752_v25 = vld.sshfl [vmem:[%s2033_s8 + $0x10] sm:$0x12 pattern:$0x76325410]  ;;  %v650_v26 = vsel %vm2084_vm15, %v1720_v16, %v649_v17  ;;  %v851_v28 = vcombine.high %v1740_v20, %v1740_v20  ;;  %v895_v29 = vshrl.u32 %v1740_v20, 16  ;;  %v898_v32 = vshll.u32 %v1740_v20, 16 }
  0x26   : > { %v2117_v30 = vrot.slane %v518_v21, %v2035_v8  ;;  %v657_v31 = vcombine.low %v646_v24, %v650_v26  ;;  %v664_v33 = vrot.slane %v656_v27, %v2035_v8  ;;  %v1023_v41 = vcombine.high %v1752_v25, %v1752_v25  ;;  %v1776_v48 = vld.sshfl [vmem:[%s2033_s8 + $0x14] sm:$0x13 pattern:$0x76325410] }
  0x27   : > { %v897_v35 = vrot.slane %v895_v29, 6  ;;  %v904_v36 = vshll.u32 %v851_v28, 16  ;;  %v900_v40 = vrot.slane %v898_v32, 7  ;;  %v1756_v43 = vrot.slane %v1752_v25, 9  ;;  %v1914_v13 = vld [vmem:[%s2239_s2 + $0x30] sm:$0xff]   ;;  %v1918_v25 = vld [vmem:[%s2239_s2 + $0x40] sm:$0xff]  }
  0x28   : > { %v533_v37 = vcombine.low %v525_v22, %v2117_v30  ;;  %v2125_v38 = vrot.slane %v657_v31, %v2035_v8  ;;  %v1038_v47 = vrot.slane %v1023_v41, 7  ;;  %v1240_v50 = vcombine.high %v1776_v48, %v1776_v48  ;;  %v1788_v55 = vld.sshfl [vmem:[%s2033_s8 + $0x14] sm:$0x12 pattern:$0x76325410]  ;;  %v1917_v22 = vld [vmem:[%s2239_s2 + $0x38] sm:$0xff]  }
  0x29   : > { %v901_v45 = vor.u32 %v900_v40, %v897_v35  ;;  %v906_v46 = vrot.slane %v904_v36, 7  ;;  %v1284_v51 = vshrl.u32 %v1776_v48, 16  ;;  %v1287_v54 = vshll.u32 %v1776_v48, 16  ;;  %v329_v28 = vld [vmem:[#allocation2] sm:$0xff]  ;;  %v330_v31 = vld [vmem:[#allocation2 + $0x8] sm:$0xff] }
  0x2a   : > { %1831 = vmatmul.mubr.msk.bf16.vlgmr.msra.gmra.mrb[0].mxu1 %vm322_vm0, %v533_v37  ;;  %v672_v44 = vcombine.low %v664_v33, %v2125_v38  ;;  %v1039_v53 = vsel %vm2084_vm15, %v1756_v43, %v1038_v47  ;;  %v757_v56 = vcombine.low %v2103_v18, %v1926_v19  ;;  %v1045_v57 = vcombine.low %v642_v23, %v646_v24  ;;  %v1927_v10 = vld.sshfl [vmem:[%s2033_s8 + $0x8] sm:$0xf pattern:$0x76325410] }
  0x2b   : > { %1841 = vmatpush3.bf16.msra.mxu1 %v1909_v34  ;;  %1842 = vmatprep.mubr.msk.bf16.mxu1 %vm1954_vm1, %v1953_v2  ;;  %v902_v52 = vrot.slane %v901_v45, 2  ;;  %v1286_v58 = vrot.slane %v1284_v51, 6  ;;  %v1293_v59 = vshll.u32 %v1240_v50, 16  ;;  %v1046_v61 = vcombine.low %v650_v26, %v1039_v53 }
  0x2c   : > { %1837 = vmatmul.mubr.msk.bf16.vlgmr.msra.gmra.mrb[4].mxu0 %vm322_vm0, %v672_v44  ;;  %1852 = vmatprep.subr.bf16.mxu1 %v1953_v2  ;;  %v1289_v62 = vrot.slane %v1287_v54, 7  ;;  %v1412_v0 = vcombine.high %v1788_v55, %v1788_v55  ;;  %v921_v3 = vrot.slane %v913_v49, %v2035_v8  ;;  %v1053_v9 = vrot.slane %v1045_v57, %v2035_v8  ;;  %v1928_v11 = vld.sshfl [vmem:[%s2033_s8 + $0x10] sm:$0xf pattern:$0x76325410]  ;;  %s305_s8 = scalar_lea.vmem %s2238_s1, %s1802_s29 }
  0x2d   : > { %1847 = vmatpush3.bf16.msra.mxu0 %v1912_v42  ;;  %1848 = vmatprep.mubr.msk.bf16.mxu0 %vm1954_vm1, %v1953_v2  ;;  %v907_v60 = vsel %vm2064_vm13, %v902_v52, %v906_v46  ;;  %v1295_v6 = vrot.slane %v1293_v59, 7  ;;  %v1060_v12 = vrot.slane %v1046_v61, %v2035_v8  ;;  %v1146_v23 = vcombine.low %v1927_v10, %v1928_v11 }
  0x2e   : > { %1858 = vmatprep.subr.bf16.mxu0 %v1953_v2  ;;  %v914_v1 = vcombine.low %v511_v15, %v907_v60  ;;  %v1290_v5 = vor.u32 %v1289_v62, %v1286_v58  ;;  %v1792_v15 = vrot.slane %v1788_v55, 9  ;;  %v1427_v16 = vrot.slane %v1412_v0, 7 }
  0x2f   : > { %v1061_v19 = vcombine.low %v1053_v9, %v1060_v12 }
  0x30   : > { %v928_v7 = vrot.slane %v914_v1, %v2035_v8  ;;  %v1291_v14 = vrot.slane %v1290_v5, 2  ;;  %v1428_v21 = vsel %vm2084_vm15, %v1792_v15, %v1427_v16 }
  0x31   : > { %v1435_v39 = vcombine.low %v1039_v53, %v1428_v21 }
  0x32   : > { %1843 = vmatmul.mubr.msk.bf16.vlgmr.msra.gmra.mrb[4].mxu1 %vm322_vm0, %v757_v56  ;;  %v929_v17 = vcombine.low %v921_v3, %v928_v7  ;;  %v1296_v18 = vsel %vm2064_vm13, %v1291_v14, %v1295_v6 }
  0x33   : > { %1853 = vmatpush3.bf16.msra.mxu1 %v1913_v4  ;;  %1854 = vmatprep.mubr.msk.bf16.mxu1 %vm1954_vm1, %v1953_v2  ;;  %v1303_v20 = vcombine.low %v907_v60, %v1296_v18  ;;  %v1449_v63 = vrot.slane %v1435_v39, %v2035_v8 }
  0x34   : > { %1864 = vmatprep.subr.bf16.mxu1 %v1953_v2  ;;  %1849 = vmatmul.mubr.msk.bf16.vlgmr.msra.gmra.mrb[8].mxu0 %vm322_vm0, %v929_v17 }
  0x35   : > { %1859 = vmatpush3.bf16.msra.mxu0 %v1914_v13  ;;  %1860 = vmatprep.mubr.msk.bf16.mxu0 %vm1954_vm1, %v1953_v2  ;;  %v1317_v24 = vrot.slane %v1303_v20, %v2035_v8  ;;  %v1450_v27 = vcombine.low %v2125_v38, %v1449_v63 }
  0x36   : > { %1870 = vmatprep.subr.bf16.mxu0 %v1953_v2 }
  0x37   : > { %v1318_v26 = vcombine.low %v2117_v30, %v1317_v24 }
  0x3a   : > { %1855 = vmatmul.mubr.msk.bf16.vlgmr.msra.gmra.mrb[8].mxu1 %vm322_vm0, %v1061_v19 }
  0x3b   : > { %1865 = vmatpush3.bf16.msra.mxu1 %v1917_v22  ;;  %1866 = vmatprep.mubr.msk.bf16.mxu1 %vm1954_vm1, %v1953_v2 }
  0x3c   : > { %1861 = vmatmul.mubr.msk.bf16.vlgmr.msra.gmra.mrb[12].mxu0 %vm322_vm0, %v1146_v23 }
  0x3d   : > { %1871 = vmatpush3.bf16.msra.mxu0 %v1918_v25  ;;  %1872 = vmatprep.mubr.msk.bf16.mxu0 %vm1954_vm1, %v1953_v2 }
  0x42   : > { %1867 = vmatmul.mubr.msk.bf16.vlgmr.msra.gmra.mrb[12].mxu1 %vm322_vm0, %v1318_v26 }
  0x44   : > { %1873 = vmatmul.mubr.msk.bf16.vlgmr.msra.gmra.mrb[16].mxu0 %vm322_vm0, %v1450_v27 }
  0xe9   : > { %v398_v29 = vpop.f32.mrb[0].mxu0 }
  0xea   : > { %v405_v32 = vadd.f32 %v398_v29, %v329_v28  ;;  %v1826_v33 = vpop.f32.mrb[1].mxu0 }
  0xeb   : > { %v401_v34 = vpop.f32.mrb[2].mxu0 }
  0xec   : > { %407 = vst.msk [vmem:[#allocation2] sm:$0xff] %vm322_vm0, %v405_v32  ;;  %v406_v8 = vadd.f32 %v401_v34, %v330_v31  ;;  %v1827_v30 = vpop.f32.mrb[3].mxu0 }
  0xee   : > { %408 = vst.msk [vmem:[#allocation2 + $0x8] sm:$0xff] %vm322_vm0, %v406_v8 }
  0xf3   : > { %v512_v35 = vld [vmem:[#allocation2] sm:$0xff] }
  0xf5   : > { %v513_v36 = vld [vmem:[#allocation2 + $0x8] sm:$0xff] }
  0xfd   : > { %v577_v2 = vpop.f32.mrb[0].mxu1 }
  0xfe   : > { %v584_v37 = vadd.f32 %v577_v2, %v512_v35  ;;  %v1832_v38 = vpop.f32.mrb[1].mxu1  ;;  %v1797_v35 = vld [vmem:[%s2240_s3] ss:$0 sm:$0xff] }
  0xff   : > { %v580_v40 = vpop.f32.mrb[2].mxu1  ;;  %v716_v41 = vpop.f32.mrb[4].mxu0 }
 0x100   : > { %586 = vst.msk [vmem:[#allocation2] sm:$0xff] %vm322_vm0, %v584_v37  ;;  %v585_v42 = vadd.f32 %v580_v40, %v513_v36  ;;  %v1833_v43 = vpop.f32.mrb[3].mxu1  ;;  %v1838_v44 = vpop.f32.mrb[5].mxu0 }
 0x101   : > { %v719_v45 = vpop.f32.mrb[6].mxu0 }
 0x102   : > { %587 = vst.msk [vmem:[#allocation2 + $0x8] sm:$0xff] %vm322_vm0, %v585_v42  ;;  %v1839_v46 = vpop.f32.mrb[7].mxu0 }
 0x105   : > { %v801_v47 = vpop.f32.mrb[4].mxu1 }
 0x106   : > { %v1844_v48 = vpop.f32.mrb[5].mxu1 }
 0x107   : > { %v651_v49 = vld [vmem:[#allocation2] sm:$0xff]  ;;  %v804_v50 = vpop.f32.mrb[6].mxu1  ;;  %v973_v53 = vpop.f32.mrb[8].mxu0 }
 0x108   : > { %v723_v51 = vadd.f32 %v716_v41, %v651_v49  ;;  %v1845_v52 = vpop.f32.mrb[7].mxu1  ;;  %v1850_v55 = vpop.f32.mrb[9].mxu0 }
 0x109   : > { %v652_v54 = vld [vmem:[#allocation2 + $0x8] sm:$0xff]  ;;  %v976_v57 = vpop.f32.mrb[10].mxu0 }
 0x10a   : > { %725 = vst.msk [vmem:[#allocation2] sm:$0xff] %vm322_vm0, %v723_v51  ;;  %v724_v56 = vadd.f32 %v719_v45, %v652_v54  ;;  %v1851_v58 = vpop.f32.mrb[11].mxu0 }
 0x10c   : > { %726 = vst.msk [vmem:[#allocation2 + $0x8] sm:$0xff] %vm322_vm0, %v724_v56 }
 0x10d   : > { %v1105_v59 = vpop.f32.mrb[8].mxu1 }
 0x10e   : > { %v1856_v60 = vpop.f32.mrb[9].mxu1 }
 0x10f   : > { %v1108_v61 = vpop.f32.mrb[10].mxu1  ;;  %v1190_v0 = vpop.f32.mrb[12].mxu0  ;;  %v1570_v60 = vld [vmem:[%s305_s8] sm:$0x3] }
 0x110   : > { %v1857_v62 = vpop.f32.mrb[11].mxu1  ;;  %v1862_v3 = vpop.f32.mrb[13].mxu0 }
 0x111   : > { %v732_v1 = vld [vmem:[#allocation2] sm:$0xff]  ;;  %v1193_v5 = vpop.f32.mrb[14].mxu0 }
 0x112   : > { %v808_v4 = vadd.f32 %v801_v47, %v732_v1  ;;  %v1863_v7 = vpop.f32.mrb[15].mxu0  ;;  %v1799_v62 = vld [vmem:[%s2242_s5] ss:$0 sm:$0xff]  ;;  %v1574_v1 = vunpack.c.l.bf16 %v1570_v60 }
 0x113   : > { %v733_v6 = vld [vmem:[#allocation2 + $0x8] sm:$0xff] }
 0x114   : > { %810 = vst.msk [vmem:[#allocation2] sm:$0xff] %vm322_vm0, %v808_v4  ;;  %v809_v9 = vadd.f32 %v804_v50, %v733_v6 }
 0x115   : > { %v1362_v10 = vpop.f32.mrb[12].mxu1 }
 0x116   : > { %811 = vst.msk [vmem:[#allocation2 + $0x8] sm:$0xff] %vm322_vm0, %v809_v9  ;;  %v1868_v11 = vpop.f32.mrb[13].mxu1 }
 0x117   : > { %v1365_v12 = vpop.f32.mrb[14].mxu1  ;;  %v1494_v14 = vpop.f32.mrb[16].mxu0 }
 0x118   : > { %v1869_v13 = vpop.f32.mrb[15].mxu1  ;;  %v1874_v15 = vpop.f32.mrb[17].mxu0 }
 0x119   : > { %v1497_v16 = vpop.f32.mrb[18].mxu0 }
 0x11a   : > { %v1875_v18 = vpop.f32.mrb[19].mxu0 }
 0x11b   : > { %v908_v17 = vld [vmem:[#allocation2] sm:$0xff] }
 0x11c   : > { %v980_v19 = vadd.f32 %v973_v53, %v908_v17 }
 0x11d   : > { %v909_v20 = vld [vmem:[#allocation2 + $0x8] sm:$0xff] }
 0x11e   : > { %982 = vst.msk [vmem:[#allocation2] sm:$0xff] %vm322_vm0, %v980_v19  ;;  %v981_v21 = vadd.f32 %v976_v57, %v909_v20 }
 0x120   : > { %983 = vst.msk [vmem:[#allocation2 + $0x8] sm:$0xff] %vm322_vm0, %v981_v21 }
 0x125   : > { %v1040_v22 = vld [vmem:[#allocation2] sm:$0xff] }
 0x126   : > { %v1112_v23 = vadd.f32 %v1105_v59, %v1040_v22  ;;  %v1798_v59 = vld [vmem:[%s2241_s4] ss:$0 sm:$0xff] }
 0x127   : > { %v1041_v39 = vld [vmem:[#allocation2 + $0x8] sm:$0xff] }
 0x128   : > { %1114 = vst.msk [vmem:[#allocation2] sm:$0xff] %vm322_vm0, %v1112_v23  ;;  %v1113_v24 = vadd.f32 %v1108_v61, %v1041_v39 }
 0x12a   : > { %1115 = vst.msk [vmem:[#allocation2 + $0x8] sm:$0xff] %vm322_vm0, %v1113_v24 }
 0x12f   : > { %v1121_v25 = vld [vmem:[#allocation2] sm:$0xff] }
 0x130   : > { %v1197_v63 = vadd.f32 %v1190_v0, %v1121_v25  ;;  %v1571_v0 = vld [vmem:[%s305_s8 + $0x2] sm:$0x3] }
 0x131   : > { %v1122_v26 = vld [vmem:[#allocation2 + $0x8] sm:$0xff]  ;;  %v1575_v6 = vunpack.c.l.bf16 %v1571_v0 }
 0x132   : > { %1199 = vst.msk [vmem:[#allocation2] sm:$0xff] %vm322_vm0, %v1197_v63  ;;  %v1198_v27 = vadd.f32 %v1193_v5, %v1122_v26  ;;  %v1572_v5 = vld [vmem:[%s305_s8 + $0x4] sm:$0x3] }
 0x133   : > { %v1576_v13 = vunpack.c.l.bf16 %v1572_v5 }
 0x134   : > { %1200 = vst.msk [vmem:[#allocation2 + $0x8] sm:$0xff] %vm322_vm0, %v1198_v27 }
 0x139   : > { %v1297_v28 = vld [vmem:[#allocation2] sm:$0xff] }
 0x13a   : > { %v1369_v29 = vadd.f32 %v1362_v10, %v1297_v28  ;;  %v1573_v10 = vld [vmem:[%s305_s8 + $0x6] sm:$0x3] }
 0x13b   : > { %v1298_v31 = vld [vmem:[#allocation2 + $0x8] sm:$0xff]  ;;  %v1577_v17 = vunpack.c.l.bf16 %v1573_v10 }
 0x13c   : > { %1371 = vst.msk [vmem:[#allocation2] sm:$0xff] %vm322_vm0, %v1369_v29  ;;  %v1370_v32 = vadd.f32 %v1365_v12, %v1298_v31 }
 0x13e   : > { %1372 = vst.msk [vmem:[#allocation2 + $0x8] sm:$0xff] %vm322_vm0, %v1370_v32 }
 0x143   : > { %v1429_v33 = vld [vmem:[#allocation2] sm:$0xff] }
 0x144   : > { %v1501_v34 = vadd.f32 %v1494_v14, %v1429_v33 }
 0x145   : > { %v1430_v8 = vld [vmem:[#allocation2 + $0x8] sm:$0xff] }
 0x146   : > { %1503 = vst.msk [vmem:[#allocation2] sm:$0xff] %vm322_vm0, %v1501_v34  ;;  %v1502_v30 = vadd.f32 %v1497_v16, %v1430_v8 }
 0x148   : > { %1504 = vst.msk [vmem:[#allocation2 + $0x8] sm:$0xff] %vm322_vm0, %v1502_v30 }
 0x14d   : > { %v1508_v2 = vld [vmem:[#allocation2] sm:$0xff] }
 0x14e   : > { %v1517_v36 = vadd.f32 %v1797_v35, %v1508_v2 }
 0x14f   : > { %v1509_v37 = vld [vmem:[#allocation2 + $0x8] sm:$0xff] }
 0x150   : > { %v1521_v38 = vsel %vm322_vm0, %v1517_v36, 0.0  ;;  %v1518_v40 = vadd.f32 %v1797_v35, %v1509_v37 }
 0x151   : > { %1522 = vadd.xlane.f32.xlu0 %v1521_v38 }
 0x152   : > { %v1524_v41 = vsel %vm322_vm0, %v1518_v40, 0.0 }
 0x155   : > { %1525 = vadd.xlane.f32.xlu0 %v1524_v41 }
 0x1de   : > { %v1523_v42 = vpop.xlane.xlu0 %1522 }
 0x1df   : > { %v1528_v43 = vmul.f32 0.0625, %v1523_v42 }
 0x1e1   : > { %v1530_v44 = vsub.f32 %v1517_v36, %v1528_v43 }
 0x1e2   : > { %v1526_v45 = vpop.xlane.xlu0 %1525 }
 0x1e3   : > { %v1529_v46 = vmul.f32 0.0625, %v1526_v45  ;;  %v1532_v47 = vmul.f32 %v1530_v44, %v1530_v44 }
 0x1e5   : > { %v1531_v48 = vsub.f32 %v1518_v40, %v1529_v46  ;;  %v1534_v49 = vsel %vm322_vm0, %v1532_v47, 0.0 }
 0x1e6   : > { %1535 = vadd.xlane.f32.xlu1 %v1534_v49 }
 0x1e7   : > { %v1533_v50 = vmul.f32 %v1531_v48, %v1531_v48 }
 0x1e9   : > { %v1537_v51 = vsel %vm322_vm0, %v1533_v50, 0.0  ;;  %vm1590_vm0 = vcmask 123904  }
 0x1ea   : > { %1538 = vadd.xlane.f32.xlu1 %v1537_v51 }
 0x273   : > { %v1536_v52 = vpop.xlane.xlu1 %1535 }
 0x274   : > { %v1540_v53 = vmul.f32 0.0625, %v1536_v52 }
 0x276   : > { %v1542_v54 = vadd.f32 1e-06, %v1540_v53 }
 0x277   : > { %v1539_v55 = vpop.xlane.xlu1 %1538 }
 0x278   : > { %1919 = vrsqrt.f32 %v1542_v54  ;;  %v1541_v56 = vmul.f32 0.0625, %v1539_v55 }
 0x27a   : > { %v1543_v57 = vadd.f32 1e-06, %v1541_v56 }
 0x27c   : > { %1921 = vrsqrt.f32 %v1543_v57 }
 0x282   : > { %v1920_v58 = vpop.eup %1919 }
 0x283   : > { %v1546_v61 = vmul.f32 %v1920_v58, %v1530_v44 }
 0x285   : > { %v1554_v3 = vmul.f32 %v1798_v59, %v1546_v61 }
 0x286   : > { %v1922_v4 = vpop.eup %1921 }
 0x287   : > { %v1562_v7 = vadd.f32 %v1799_v62, %v1554_v3  ;;  %v1547_v9 = vmul.f32 %v1922_v4, %v1531_v48 }
 0x289   : > { %v1566_v11 = vcombine.high %v1562_v7, %v1562_v7  ;;  %v1578_v12 = vadd.f32 %v1574_v1, %v1562_v7  ;;  %v1555_v14 = vmul.f32 %v1798_v59, %v1547_v9 }
 0x28b   : > { %v1579_v15 = vadd.f32 %v1575_v6, %v1566_v11  ;;  %v1582_v16 = vmax.f32 %v1578_v12, 0.0  ;;  %v1563_v18 = vadd.f32 %v1799_v62, %v1555_v14 }
 0x28d   : > { %v1583_v19 = vmax.f32 %v1579_v15, 0.0  ;;  %v1586_v20 = vpack.c.bf16 %v1582_v16, %v1582_v16  ;;  %v1567_v21 = vcombine.high %v1563_v18, %v1563_v18  ;;  %v1580_v22 = vadd.f32 %v1576_v13, %v1563_v18 }
 0x28f   : > { %v1587_v23 = vpack.c.bf16 %v1583_v19, %v1583_v19  ;;  %1591 = vst.msk [vmem:[%s316_s14] sm:$0x3] %vm1590_vm0, %v1586_v20  ;;  %v1581_v39 = vadd.f32 %v1577_v17, %v1567_v21  ;;  %v1584_v24 = vmax.f32 %v1580_v22, 0.0 }
 0x291   : > { %1592 = vst.msk [vmem:[%s316_s14 + $0x2] sm:$0x3] %vm1590_vm0, %v1587_v23  ;;  %v1585_v25 = vmax.f32 %v1581_v39, 0.0  ;;  %v1588_v63 = vpack.c.bf16 %v1584_v24, %v1584_v24 }
 0x293   : > { %v1589_v26 = vpack.c.bf16 %v1585_v25, %v1585_v25  ;;  %1593 = vst.msk [vmem:[%s316_s14 + $0x4] sm:$0x3] %vm1590_vm0, %v1588_v63 }
 0x295   : > { %1594 = vst.msk [vmem:[%s316_s14 + $0x6] sm:$0x3] %vm1590_vm0, %v1589_v26 }
 0x296 PF: > { %s16_s23 = sadd.s32 1, %s1951_s23   ;;  %s2254_s21 = smov %s1947_s22 }
 0x297   : > { %p13_p5 = scmp.ge.s32.totalorder %s16_s23, 4   ;;  %s2255_s22 = smov %s2257_s24 }
 0x299   :  { %15 = sbr.rel (!%p13_p5) target bundleno = 2 (0x2), region = 98 }

// kernel: decoder_more_token.11
= control target key start
LH: loop header
LB: loop body
LE: loop exit
PB: predicated region body
PF: predicated region fallthrough
CT: control target
= control target key end

     0   :  { %s1910_s18 = smov 0   ;;  %s1912_s19 = smov 0   ;;  %s2153_s0 = inlined_call_operand.vmem [shape: bf16[2,6,6,16], index: 0, kind: input, shape index: {}]   ;;  %s2154_s1 = inlined_call_operand.vmem [shape: bf16[9,16,16], index: 1, kind: input, shape index: {}]   ;;  %s2155_s2 = inlined_call_operand.vmem [shape: f32[1,16], index: 2, kind: input, shape index: {}]   ;;  %s2156_s3 = inlined_call_operand.vmem [shape: f32[1,16], index: 3, kind: input, shape index: {}]   ;;  %s2157_s4 = inlined_call_operand.vmem [shape: f32[1,16], index: 4, kind: input, shape index: {}]   ;;  %s2158_s5 = inlined_call_operand.vmem [shape: bf16[2,4,4,16], index: 5, kind: output, shape index: {}]  }
   0x1   :  { %s1914_s20 = smov 0  }
   0x2 LB: > { %s27_s21 = sadd.s32 1, %s1871_s19  ;;  %p1624_p0 = scmp.ge.s32.totalorder %s1875_s20, 1  ;;  %s1875_s20 = sphi %s1914_s20, %s15_s20   ;;  %s1871_s19 = sphi %s1912_s19, %s2170_s19   ;;  %s1867_s18 = sphi %s1910_s18, %s2169_s18  }
   0x3   : > { %p29_p1 = scmp.ge.s32.totalorder %s27_s21, 2  ;;  %p215_p2 = scmp.lt.s32.totalorder %s1875_s20, 3 }
   0x5   : > { %s2172_s21 = smov (%p29_p1, %s27_s21), 0  ;;  %p216_p3 = pnand %p1624_p0, %p215_p2 }
   0x6   : > { %v1828_v0 = vld [vmem:[%s2154_s1] sm:$0xff] (!%p216_p3)   ;;  %v295_v1 = vlaneseq (!%p216_p3)  ;;  %v1877_v2 = vmov (!%p216_p3), 0.0   ;;  %p251_p4 = scmp.lt.s32.totalorder (!%p216_p3), %s1867_s18, 1  ;;  %vm275_vm0 = vcmask (!%p216_p3), 130048   ;;  %v1831_v3 = vld [vmem:[%s2154_s1 + $0x8] sm:$0xff] (!%p216_p3)   ;;  %vm1878_vm1 = vmmov (!%p216_p3), 0  }
   0x7   : > { %219 = sbr.rel (%p216_p3) target bundleno = 660 (0x294), region = 40  ;;  %1746 = vmatprep.subr.bf16.mxu0 (!%p216_p3), %v1877_v2  ;;  %1752 = vmatprep.subr.bf16.mxu1 (!%p216_p3), %v1877_v2  ;;  %v1879_v4 = vmov (!%p216_p3), 1983009808   ;;  %276 = vst.msk [vmem:[#allocation2] sm:$0xff] (!%p216_p3), %vm275_vm0, %v1877_v2  ;;  %277 = vst.msk [vmem:[#allocation2 + $0x8] sm:$0xff] (!%p216_p3), %vm275_vm0, %v1877_v2  ;;  %vm581_vm4 = vcmask (!%p216_p3), 1040384  }
   0x8   : > { %1747 = vmatpush3.bf16.msra.mxu0 (!%p216_p3), %v1828_v0  ;;  %1748 = vmatprep.mubr.msk.bf16.mxu0 (!%p216_p3), %vm1878_vm1, %v1877_v2  ;;  %v293_v5 = vunpack.c.l.s4 (!%p216_p3), %v1879_v4  ;;  %v296_v6 = vshrl.u32 (!%p216_p3), %v295_v1, 7  ;;  %vm402_vm2 = vsmask.f32 (!%p216_p3), 1280  ;;  %vm403_vm3 = vsmask.f32 (!%p216_p3), 3336  ;;  %v1832_v15 = vld [vmem:[%s2154_s1 + $0x10] sm:$0xff] (!%p216_p3)  }
   0x9   : > { %1753 = vmatpush3.bf16.msra.mxu1 (!%p216_p3), %v1831_v3  ;;  %1754 = vmatprep.mubr.msk.bf16.mxu1 (!%p216_p3), %vm1878_vm1, %v1877_v2  ;;  %vm405_vm5 = vsmask.f32 (!%p216_p3), 5392  ;;  %vm407_vm6 = vsmask.f32 (!%p216_p3), 7448  ;;  %vm582_vm7 = vcmask (!%p216_p3), 1042434   ;;  %vm584_vm8 = vcmask (!%p216_p3), 1044484   ;;  %vm404_vm10 = vmor (!%p216_p3), %vm402_vm2, %vm403_vm3 }
   0xa   : > { %v294_v7 = vunpack.c.0.s8 (!%p216_p3), %v293_v5  ;;  %1758 = vmatprep.subr.bf16.mxu0 (!%p216_p3), %v1877_v2  ;;  %1764 = vmatprep.subr.bf16.mxu1 (!%p216_p3), %v1877_v2  ;;  %vm586_vm9 = vcmask (!%p216_p3), 1046534   ;;  %vm1967_vm11 = vmor (!%p216_p3), %vm404_vm10, %vm405_vm5  ;;  %v1833_v34 = vld [vmem:[%s2154_s1 + $0x18] sm:$0xff] (!%p216_p3)  }
   0xb   : > { %vm1974_vm12 = vmor (!%p216_p3), %vm581_vm4, %vm582_vm7 }
   0xc   : > { %v1954_v8 = vsub.s32 (!%p216_p3), %v294_v7, %v296_v6  ;;  %vm1983_vm13 = vmor (!%p216_p3), %vm1967_vm11, %vm407_vm6 }
   0xd   : > { %vm1991_vm14 = vmor (!%p216_p3), %vm1974_vm12, %vm584_vm8 }
   0xe   : > { %s2174_s18 = smov (!%p251_p4, %s1867_s18), 1  ;;  %vm2003_vm15 = vmor %vm1991_vm14, %vm586_vm9 }
   0xf   : > { %s1800_s26 = smul.u32 24, %s2174_s18 }
  0x11   : > { %s1952_s29 = scalar_lea.vmem %s2153_s0, %s1800_s26 }
  0x12   : > { %v1847_v9 = vld.sshfl [vmem:[%s1952_s29] sm:$0xf pattern:$0x76325410] }
  0x13   : > { %v1848_v10 = vld.sshfl [vmem:[%s1952_s29 + $0x8] sm:$0xf pattern:$0x76325410] }
  0x14   : > { %v1630_v11 = vld.sshfl [vmem:[%s1952_s29] sm:$0x13 pattern:$0x76325410]  ;;  %v306_v20 = vcombine.low %v1847_v9, %v1848_v10 }
  0x15   : > { %v1631_v12 = vld.sshfl [vmem:[%s1952_s29 + $0x4] sm:$0x13 pattern:$0x76325410]  ;;  %v377_v13 = vcombine.high %v1630_v11, %v1630_v11  ;;  %v410_v14 = vshrl.u32 %v1630_v11, 16  ;;  %v413_v18 = vshll.u32 %v1630_v11, 16 }
  0x16   : > { %v1632_v16 = vld.sshfl [vmem:[%s1952_s29 + $0x8] sm:$0x13 pattern:$0x76325410]  ;;  %v385_v17 = vcombine.high %v1631_v12, %v1631_v12  ;;  %v424_v19 = vshrl.u32 %v1631_v12, 16  ;;  %v427_v29 = vshll.u32 %v1631_v12, 16  ;;  %1749 = vmatmul.mubr.msk.bf16.vlgmr.msra.gmra.mrb[0].mxu0 %vm275_vm0, %v306_v20 }
  0x17   : > { %v1633_v21 = vld.sshfl [vmem:[%s1952_s29 + $0xc] sm:$0x13 pattern:$0x76325410]  ;;  %v393_v22 = vcombine.high %v1632_v16, %v1632_v16  ;;  %v412_v23 = vrot.slane %v410_v14, 6  ;;  %v419_v24 = vshll.u32 %v377_v13, 16  ;;  %1759 = vmatpush3.bf16.msra.mxu0 %v1832_v15  ;;  %1760 = vmatprep.mubr.msk.bf16.mxu0 %vm1878_vm1, %v1877_v2 }
  0x18   : > { %v401_v25 = vcombine.high %v1633_v21, %v1633_v21  ;;  %v415_v27 = vrot.slane %v413_v18, 7  ;;  %v426_v28 = vrot.slane %v424_v19, 6  ;;  %v433_v31 = vshll.u32 %v385_v17, 16  ;;  %1770 = vmatprep.subr.bf16.mxu0 %v1877_v2 }
  0x19   : > { %v421_v30 = vrot.slane %v419_v24, 7  ;;  %v438_v32 = vshrl.u32 %v1632_v16, 16  ;;  %v441_v33 = vshll.u32 %v1632_v16, 16  ;;  %v429_v36 = vrot.slane %v427_v29, 7 }
  0x1a   : > { %v416_v35 = vor.u32 %v415_v27, %v412_v23  ;;  %v447_v37 = vshll.u32 %v393_v22, 16  ;;  %v452_v38 = vshrl.u32 %v1633_v21, 16  ;;  %v435_v40 = vrot.slane %v433_v31, 7 }
  0x1b   : > { %v440_v41 = vrot.slane %v438_v32, 6  ;;  %v443_v42 = vrot.slane %v441_v33, 7  ;;  %v455_v43 = vshll.u32 %v1633_v21, 16  ;;  %v430_v45 = vor.u32 %v429_v36, %v426_v28 }
  0x1c   : > { %v417_v44 = vrot.slane %v416_v35, 2  ;;  %v449_v46 = vrot.slane %v447_v37, 7  ;;  %v454_v47 = vrot.slane %v452_v38, 6  ;;  %v461_v51 = vshll.u32 %v401_v25, 16 }
  0x1d   : > { %v444_v49 = vor.u32 %v443_v42, %v440_v41  ;;  %v457_v50 = vrot.slane %v455_v43, 7  ;;  %v1638_v52 = vld.sshfl [vmem:[%s1952_s29] sm:$0x12 pattern:$0x76325410]  ;;  %v431_v54 = vrot.slane %v430_v45, 2 }
  0x1e   : > { %v422_v53 = vsel %vm1983_vm13, %v417_v44, %v421_v30  ;;  %v1639_v55 = vld.sshfl [vmem:[%s1952_s29 + $0x4] sm:$0x12 pattern:$0x76325410]  ;;  %v556_v56 = vcombine.high %v1638_v52, %v1638_v52  ;;  %v1642_v57 = vrot.slane %v1638_v52, 9  ;;  %v463_v60 = vrot.slane %v461_v51, 7 }
  0x1f   : > { %v445_v58 = vrot.slane %v444_v49, 2  ;;  %v458_v59 = vor.u32 %v457_v50, %v454_v47  ;;  %v1640_v61 = vld.sshfl [vmem:[%s1952_s29 + $0x8] sm:$0x12 pattern:$0x76325410]  ;;  %v564_v62 = vcombine.high %v1639_v55, %v1639_v55  ;;  %v2009_v0 = vsel %vm1983_vm13, %v431_v54, %v435_v40  ;;  %v1836_v42 = vld [vmem:[%s2154_s1 + $0x20] sm:$0xff]  }
  0x20   : > { %v1641_v1 = vld.sshfl [vmem:[%s1952_s29 + $0xc] sm:$0x12 pattern:$0x76325410]  ;;  %v572_v3 = vcombine.high %v1640_v61, %v1640_v61  ;;  %v590_v4 = vrot.slane %v556_v56, 7  ;;  %v1643_v5 = vrot.slane %v1639_v55, 9  ;;  %v470_v9 = vcombine.low %v422_v53, %v2009_v0 }
  0x21   : > { %v2014_v6 = vsel %vm1983_vm13, %v445_v58, %v449_v46  ;;  %v459_v7 = vrot.slane %v458_v59, 2  ;;  %v580_v10 = vcombine.high %v1641_v1, %v1641_v1  ;;  %v594_v12 = vrot.slane %v564_v62, 7  ;;  %v2022_v18 = vld.sshfl [vmem:[%s1952_s29 + $0x4] sm:$0xf pattern:$0x76325410] }
  0x22   : > { %v591_v11 = vsel %vm2003_vm15, %v1642_v57, %v590_v4  ;;  %v1644_v13 = vrot.slane %v1640_v61, 9  ;;  %v598_v14 = vrot.slane %v572_v3, 7  ;;  %v1645_v16 = vrot.slane %v1641_v1, 9  ;;  %v1837_v4 = vld [vmem:[%s2154_s1 + $0x28] sm:$0xff]  }
  0x23   : > { %v464_v15 = vsel %vm1983_vm13, %v459_v7, %v463_v60  ;;  %v602_v17 = vrot.slane %v580_v10, 7  ;;  %v1850_v19 = vld.sshfl [vmem:[%s1952_s29 + $0xc] sm:$0xf pattern:$0x76325410]  ;;  %v478_v22 = vrot.slane %v470_v9, %v1954_v8  ;;  %v595_v23 = vsel %vm2003_vm15, %v1643_v5, %v594_v12 }
  0x24   : > { %v1665_v20 = vld.sshfl [vmem:[%s1952_s29 + $0x10] sm:$0x13 pattern:$0x76325410]  ;;  %v471_v21 = vcombine.low %v2014_v6, %v464_v15  ;;  %v599_v24 = vsel %vm2003_vm15, %v1644_v13, %v598_v14  ;;  %v609_v27 = vcombine.low %v591_v11, %v595_v23  ;;  %v866_v49 = vcombine.low %v2009_v0, %v2014_v6 }
  0x25   : > { %v1677_v25 = vld.sshfl [vmem:[%s1952_s29 + $0x10] sm:$0x12 pattern:$0x76325410]  ;;  %v603_v26 = vsel %vm2003_vm15, %v1645_v16, %v602_v17  ;;  %v804_v28 = vcombine.high %v1665_v20, %v1665_v20  ;;  %v848_v29 = vshrl.u32 %v1665_v20, 16  ;;  %v851_v32 = vshll.u32 %v1665_v20, 16 }
  0x26   : > { %v2036_v30 = vrot.slane %v471_v21, %v1954_v8  ;;  %v610_v31 = vcombine.low %v599_v24, %v603_v26  ;;  %v617_v33 = vrot.slane %v609_v27, %v1954_v8  ;;  %v976_v41 = vcombine.high %v1677_v25, %v1677_v25  ;;  %v1701_v48 = vld.sshfl [vmem:[%s1952_s29 + $0x14] sm:$0x13 pattern:$0x76325410] }
  0x27   : > { %v850_v35 = vrot.slane %v848_v29, 6  ;;  %v857_v36 = vshll.u32 %v804_v28, 16  ;;  %v853_v40 = vrot.slane %v851_v32, 7  ;;  %v1681_v43 = vrot.slane %v1677_v25, 9  ;;  %v1838_v13 = vld [vmem:[%s2154_s1 + $0x30] sm:$0xff]   ;;  %v1842_v25 = vld [vmem:[%s2154_s1 + $0x40] sm:$0xff]  }
  0x28   : > { %v486_v37 = vcombine.low %v478_v22, %v2036_v30  ;;  %v2044_v38 = vrot.slane %v610_v31, %v1954_v8  ;;  %v991_v47 = vrot.slane %v976_v41, 7  ;;  %v1193_v50 = vcombine.high %v1701_v48, %v1701_v48  ;;  %v1713_v55 = vld.sshfl [vmem:[%s1952_s29 + $0x14] sm:$0x12 pattern:$0x76325410]  ;;  %v1841_v22 = vld [vmem:[%s2154_s1 + $0x38] sm:$0xff]  }
  0x29   : > { %v854_v45 = vor.u32 %v853_v40, %v850_v35  ;;  %v859_v46 = vrot.slane %v857_v36, 7  ;;  %v1237_v51 = vshrl.u32 %v1701_v48, 16  ;;  %v1240_v54 = vshll.u32 %v1701_v48, 16  ;;  %v282_v28 = vld [vmem:[#allocation2] sm:$0xff]  ;;  %v283_v31 = vld [vmem:[#allocation2 + $0x8] sm:$0xff] }
  0x2a   : > { %1755 = vmatmul.mubr.msk.bf16.vlgmr.msra.gmra.mrb[0].mxu1 %vm275_vm0, %v486_v37  ;;  %v625_v44 = vcombine.low %v617_v33, %v2044_v38  ;;  %v992_v53 = vsel %vm2003_vm15, %v1681_v43, %v991_v47  ;;  %v710_v56 = vcombine.low %v2022_v18, %v1850_v19  ;;  %v998_v57 = vcombine.low %v595_v23, %v599_v24  ;;  %v1851_v10 = vld.sshfl [vmem:[%s1952_s29 + $0x8] sm:$0xf pattern:$0x76325410] }
  0x2b   : > { %1765 = vmatpush3.bf16.msra.mxu1 %v1833_v34  ;;  %1766 = vmatprep.mubr.msk.bf16.mxu1 %vm1878_vm1, %v1877_v2  ;;  %v855_v52 = vrot.slane %v854_v45, 2  ;;  %v1239_v58 = vrot.slane %v1237_v51, 6  ;;  %v1246_v59 = vshll.u32 %v1193_v50, 16  ;;  %v999_v61 = vcombine.low %v603_v26, %v992_v53 }
  0x2c   : > { %1761 = vmatmul.mubr.msk.bf16.vlgmr.msra.gmra.mrb[4].mxu0 %vm275_vm0, %v625_v44  ;;  %1776 = vmatprep.subr.bf16.mxu1 %v1877_v2  ;;  %v1242_v62 = vrot.slane %v1240_v54, 7  ;;  %v1365_v0 = vcombine.high %v1713_v55, %v1713_v55  ;;  %v874_v3 = vrot.slane %v866_v49, %v1954_v8  ;;  %v1006_v9 = vrot.slane %v998_v57, %v1954_v8  ;;  %v1852_v11 = vld.sshfl [vmem:[%s1952_s29 + $0x10] sm:$0xf pattern:$0x76325410]  ;;  %s1727_s29 = sshll.u32 %s2174_s18, 3 }
  0x2d   : > { %1771 = vmatpush3.bf16.msra.mxu0 %v1836_v42  ;;  %1772 = vmatprep.mubr.msk.bf16.mxu0 %vm1878_vm1, %v1877_v2  ;;  %v860_v60 = vsel %vm1983_vm13, %v855_v52, %v859_v46  ;;  %v1248_v6 = vrot.slane %v1246_v59, 7  ;;  %v1013_v12 = vrot.slane %v999_v61, %v1954_v8  ;;  %v1099_v23 = vcombine.low %v1851_v10, %v1852_v11  ;;  %s269_s7 = scalar_lea.vmem %s2158_s5, %s1727_s29 }
  0x2e   : > { %1782 = vmatprep.subr.bf16.mxu0 %v1877_v2  ;;  %v867_v1 = vcombine.low %v464_v15, %v860_v60  ;;  %v1243_v5 = vor.u32 %v1242_v62, %v1239_v58  ;;  %v1717_v15 = vrot.slane %v1713_v55, 9  ;;  %v1380_v16 = vrot.slane %v1365_v0, 7 }
  0x2f   : > { %v1014_v19 = vcombine.low %v1006_v9, %v1013_v12 }
  0x30   : > { %v881_v7 = vrot.slane %v867_v1, %v1954_v8  ;;  %v1244_v14 = vrot.slane %v1243_v5, 2  ;;  %v1381_v21 = vsel %vm2003_vm15, %v1717_v15, %v1380_v16 }
  0x31   : > { %v1388_v39 = vcombine.low %v992_v53, %v1381_v21 }
  0x32   : > { %1767 = vmatmul.mubr.msk.bf16.vlgmr.msra.gmra.mrb[4].mxu1 %vm275_vm0, %v710_v56  ;;  %v882_v17 = vcombine.low %v874_v3, %v881_v7  ;;  %v1249_v18 = vsel %vm1983_vm13, %v1244_v14, %v1248_v6 }
  0x33   : > { %1777 = vmatpush3.bf16.msra.mxu1 %v1837_v4  ;;  %1778 = vmatprep.mubr.msk.bf16.mxu1 %vm1878_vm1, %v1877_v2  ;;  %v1256_v20 = vcombine.low %v860_v60, %v1249_v18  ;;  %v1402_v63 = vrot.slane %v1388_v39, %v1954_v8 }
  0x34   : > { %1788 = vmatprep.subr.bf16.mxu1 %v1877_v2  ;;  %1773 = vmatmul.mubr.msk.bf16.vlgmr.msra.gmra.mrb[8].mxu0 %vm275_vm0, %v882_v17 }
  0x35   : > { %1783 = vmatpush3.bf16.msra.mxu0 %v1838_v13  ;;  %1784 = vmatprep.mubr.msk.bf16.mxu0 %vm1878_vm1, %v1877_v2  ;;  %v1270_v24 = vrot.slane %v1256_v20, %v1954_v8  ;;  %v1403_v27 = vcombine.low %v2044_v38, %v1402_v63 }
  0x36   : > { %1794 = vmatprep.subr.bf16.mxu0 %v1877_v2 }
  0x37   : > { %v1271_v26 = vcombine.low %v2036_v30, %v1270_v24 }
  0x3a   : > { %1779 = vmatmul.mubr.msk.bf16.vlgmr.msra.gmra.mrb[8].mxu1 %vm275_vm0, %v1014_v19 }
  0x3b   : > { %1789 = vmatpush3.bf16.msra.mxu1 %v1841_v22  ;;  %1790 = vmatprep.mubr.msk.bf16.mxu1 %vm1878_vm1, %v1877_v2 }
  0x3c   : > { %1785 = vmatmul.mubr.msk.bf16.vlgmr.msra.gmra.mrb[12].mxu0 %vm275_vm0, %v1099_v23 }
  0x3d   : > { %1795 = vmatpush3.bf16.msra.mxu0 %v1842_v25  ;;  %1796 = vmatprep.mubr.msk.bf16.mxu0 %vm1878_vm1, %v1877_v2 }
  0x42   : > { %1791 = vmatmul.mubr.msk.bf16.vlgmr.msra.gmra.mrb[12].mxu1 %vm275_vm0, %v1271_v26 }
  0x44   : > { %1797 = vmatmul.mubr.msk.bf16.vlgmr.msra.gmra.mrb[16].mxu0 %vm275_vm0, %v1403_v27 }
  0xe9   : > { %v351_v29 = vpop.f32.mrb[0].mxu0 }
  0xea   : > { %v358_v32 = vadd.f32 %v351_v29, %v282_v28  ;;  %v1750_v33 = vpop.f32.mrb[1].mxu0 }
  0xeb   : > { %v354_v34 = vpop.f32.mrb[2].mxu0 }
  0xec   : > { %360 = vst.msk [vmem:[#allocation2] sm:$0xff] %vm275_vm0, %v358_v32  ;;  %v359_v8 = vadd.f32 %v354_v34, %v283_v31  ;;  %v1751_v30 = vpop.f32.mrb[3].mxu0 }
  0xee   : > { %361 = vst.msk [vmem:[#allocation2 + $0x8] sm:$0xff] %vm275_vm0, %v359_v8 }
  0xf3   : > { %v465_v35 = vld [vmem:[#allocation2] sm:$0xff] }
  0xf5   : > { %v466_v36 = vld [vmem:[#allocation2 + $0x8] sm:$0xff] }
  0xfd   : > { %v530_v2 = vpop.f32.mrb[0].mxu1 }
  0xfe   : > { %v537_v37 = vadd.f32 %v530_v2, %v465_v35  ;;  %v1756_v38 = vpop.f32.mrb[1].mxu1  ;;  %v1722_v35 = vld [vmem:[%s2155_s2] ss:$0 sm:$0xff] }
  0xff   : > { %v533_v40 = vpop.f32.mrb[2].mxu1  ;;  %v669_v41 = vpop.f32.mrb[4].mxu0 }
 0x100   : > { %539 = vst.msk [vmem:[#allocation2] sm:$0xff] %vm275_vm0, %v537_v37  ;;  %v538_v42 = vadd.f32 %v533_v40, %v466_v36  ;;  %v1757_v43 = vpop.f32.mrb[3].mxu1  ;;  %v1762_v44 = vpop.f32.mrb[5].mxu0 }
 0x101   : > { %v672_v45 = vpop.f32.mrb[6].mxu0 }
 0x102   : > { %540 = vst.msk [vmem:[#allocation2 + $0x8] sm:$0xff] %vm275_vm0, %v538_v42  ;;  %v1763_v46 = vpop.f32.mrb[7].mxu0 }
 0x105   : > { %v754_v47 = vpop.f32.mrb[4].mxu1 }
 0x106   : > { %v1768_v48 = vpop.f32.mrb[5].mxu1 }
 0x107   : > { %v604_v49 = vld [vmem:[#allocation2] sm:$0xff]  ;;  %v757_v50 = vpop.f32.mrb[6].mxu1  ;;  %v926_v53 = vpop.f32.mrb[8].mxu0 }
 0x108   : > { %v676_v51 = vadd.f32 %v669_v41, %v604_v49  ;;  %v1769_v52 = vpop.f32.mrb[7].mxu1  ;;  %v1774_v55 = vpop.f32.mrb[9].mxu0 }
 0x109   : > { %v605_v54 = vld [vmem:[#allocation2 + $0x8] sm:$0xff]  ;;  %v929_v57 = vpop.f32.mrb[10].mxu0 }
 0x10a   : > { %678 = vst.msk [vmem:[#allocation2] sm:$0xff] %vm275_vm0, %v676_v51  ;;  %v677_v56 = vadd.f32 %v672_v45, %v605_v54  ;;  %v1775_v58 = vpop.f32.mrb[11].mxu0 }
 0x10c   : > { %679 = vst.msk [vmem:[#allocation2 + $0x8] sm:$0xff] %vm275_vm0, %v677_v56 }
 0x10d   : > { %v1058_v59 = vpop.f32.mrb[8].mxu1 }
 0x10e   : > { %v1780_v60 = vpop.f32.mrb[9].mxu1 }
 0x10f   : > { %v1061_v61 = vpop.f32.mrb[10].mxu1  ;;  %v1143_v0 = vpop.f32.mrb[12].mxu0 }
 0x110   : > { %v1781_v62 = vpop.f32.mrb[11].mxu1  ;;  %v1786_v3 = vpop.f32.mrb[13].mxu0 }
 0x111   : > { %v685_v1 = vld [vmem:[#allocation2] sm:$0xff]  ;;  %v1146_v5 = vpop.f32.mrb[14].mxu0 }
 0x112   : > { %v761_v4 = vadd.f32 %v754_v47, %v685_v1  ;;  %v1787_v7 = vpop.f32.mrb[15].mxu0 }
 0x113   : > { %v686_v6 = vld [vmem:[#allocation2 + $0x8] sm:$0xff] }
 0x114   : > { %763 = vst.msk [vmem:[#allocation2] sm:$0xff] %vm275_vm0, %v761_v4  ;;  %v762_v9 = vadd.f32 %v757_v50, %v686_v6 }
 0x115   : > { %v1315_v10 = vpop.f32.mrb[12].mxu1 }
 0x116   : > { %764 = vst.msk [vmem:[#allocation2 + $0x8] sm:$0xff] %vm275_vm0, %v762_v9  ;;  %v1792_v11 = vpop.f32.mrb[13].mxu1 }
 0x117   : > { %v1318_v12 = vpop.f32.mrb[14].mxu1  ;;  %v1447_v14 = vpop.f32.mrb[16].mxu0 }
 0x118   : > { %v1793_v13 = vpop.f32.mrb[15].mxu1  ;;  %v1798_v15 = vpop.f32.mrb[17].mxu0 }
 0x119   : > { %v1450_v16 = vpop.f32.mrb[18].mxu0 }
 0x11a   : > { %v1799_v18 = vpop.f32.mrb[19].mxu0 }
 0x11b   : > { %v861_v17 = vld [vmem:[#allocation2] sm:$0xff] }
 0x11c   : > { %v933_v19 = vadd.f32 %v926_v53, %v861_v17 }
 0x11d   : > { %v862_v20 = vld [vmem:[#allocation2 + $0x8] sm:$0xff] }
 0x11e   : > { %935 = vst.msk [vmem:[#allocation2] sm:$0xff] %vm275_vm0, %v933_v19  ;;  %v934_v21 = vadd.f32 %v929_v57, %v862_v20 }
 0x120   : > { %936 = vst.msk [vmem:[#allocation2 + $0x8] sm:$0xff] %vm275_vm0, %v934_v21 }
 0x125   : > { %v993_v22 = vld [vmem:[#allocation2] sm:$0xff] }
 0x126   : > { %v1065_v23 = vadd.f32 %v1058_v59, %v993_v22  ;;  %v1723_v59 = vld [vmem:[%s2156_s3] ss:$0 sm:$0xff] }
 0x127   : > { %v994_v39 = vld [vmem:[#allocation2 + $0x8] sm:$0xff] }
 0x128   : > { %1067 = vst.msk [vmem:[#allocation2] sm:$0xff] %vm275_vm0, %v1065_v23  ;;  %v1066_v24 = vadd.f32 %v1061_v61, %v994_v39  ;;  %v1724_v61 = vld [vmem:[%s2157_s4] ss:$0 sm:$0xff] }
 0x12a   : > { %1068 = vst.msk [vmem:[#allocation2 + $0x8] sm:$0xff] %vm275_vm0, %v1066_v24 }
 0x12f   : > { %v1074_v25 = vld [vmem:[#allocation2] sm:$0xff] }
 0x130   : > { %v1150_v63 = vadd.f32 %v1143_v0, %v1074_v25 }
 0x131   : > { %v1075_v26 = vld [vmem:[#allocation2 + $0x8] sm:$0xff] }
 0x132   : > { %1152 = vst.msk [vmem:[#allocation2] sm:$0xff] %vm275_vm0, %v1150_v63  ;;  %v1151_v27 = vadd.f32 %v1146_v5, %v1075_v26 }
 0x134   : > { %1153 = vst.msk [vmem:[#allocation2 + $0x8] sm:$0xff] %vm275_vm0, %v1151_v27 }
 0x139   : > { %v1250_v28 = vld [vmem:[#allocation2] sm:$0xff] }
 0x13a   : > { %v1322_v29 = vadd.f32 %v1315_v10, %v1250_v28 }
 0x13b   : > { %v1251_v31 = vld [vmem:[#allocation2 + $0x8] sm:$0xff] }
 0x13c   : > { %1324 = vst.msk [vmem:[#allocation2] sm:$0xff] %vm275_vm0, %v1322_v29  ;;  %v1323_v32 = vadd.f32 %v1318_v12, %v1251_v31 }
 0x13e   : > { %1325 = vst.msk [vmem:[#allocation2 + $0x8] sm:$0xff] %vm275_vm0, %v1323_v32 }
 0x143   : > { %v1382_v33 = vld [vmem:[#allocation2] sm:$0xff] }
 0x144   : > { %v1454_v34 = vadd.f32 %v1447_v14, %v1382_v33 }
 0x145   : > { %v1383_v8 = vld [vmem:[#allocation2 + $0x8] sm:$0xff] }
 0x146   : > { %1456 = vst.msk [vmem:[#allocation2] sm:$0xff] %vm275_vm0, %v1454_v34  ;;  %v1455_v30 = vadd.f32 %v1450_v16, %v1383_v8 }
 0x148   : > { %1457 = vst.msk [vmem:[#allocation2 + $0x8] sm:$0xff] %vm275_vm0, %v1455_v30 }
 0x14d   : > { %v1461_v2 = vld [vmem:[#allocation2] sm:$0xff] }
 0x14e   : > { %v1470_v36 = vadd.f32 %v1722_v35, %v1461_v2 }
 0x14f   : > { %v1462_v37 = vld [vmem:[#allocation2 + $0x8] sm:$0xff] }
 0x150   : > { %v1474_v38 = vsel %vm275_vm0, %v1470_v36, 0.0  ;;  %v1471_v40 = vadd.f32 %v1722_v35, %v1462_v37 }
 0x151   : > { %1475 = vadd.xlane.f32.xlu0 %v1474_v38 }
 0x152   : > { %v1477_v41 = vsel %vm275_vm0, %v1471_v40, 0.0 }
 0x155   : > { %1478 = vadd.xlane.f32.xlu0 %v1477_v41 }
 0x1de   : > { %v1476_v42 = vpop.xlane.xlu0 %1475 }
 0x1df   : > { %v1481_v43 = vmul.f32 0.0625, %v1476_v42 }
 0x1e1   : > { %v1483_v44 = vsub.f32 %v1470_v36, %v1481_v43 }
 0x1e2   : > { %v1479_v45 = vpop.xlane.xlu0 %1478 }
 0x1e3   : > { %v1482_v46 = vmul.f32 0.0625, %v1479_v45  ;;  %v1485_v47 = vmul.f32 %v1483_v44, %v1483_v44 }
 0x1e5   : > { %v1484_v48 = vsub.f32 %v1471_v40, %v1482_v46  ;;  %v1487_v49 = vsel %vm275_vm0, %v1485_v47, 0.0 }
 0x1e6   : > { %1488 = vadd.xlane.f32.xlu1 %v1487_v49 }
 0x1e7   : > { %v1486_v50 = vmul.f32 %v1484_v48, %v1484_v48 }
 0x1e9   : > { %v1490_v51 = vsel %vm275_vm0, %v1486_v50, 0.0  ;;  %vm1529_vm0 = vcmask 123904  }
 0x1ea   : > { %1491 = vadd.xlane.f32.xlu1 %v1490_v51 }
 0x273   : > { %v1489_v52 = vpop.xlane.xlu1 %1488 }
 0x274   : > { %v1493_v53 = vmul.f32 0.0625, %v1489_v52 }
 0x276   : > { %v1495_v54 = vadd.f32 1e-06, %v1493_v53 }
 0x277   : > { %v1492_v55 = vpop.xlane.xlu1 %1491 }
 0x278   : > { %1843 = vrsqrt.f32 %v1495_v54  ;;  %v1494_v56 = vmul.f32 0.0625, %v1492_v55 }
 0x27a   : > { %v1496_v57 = vadd.f32 1e-06, %v1494_v56 }
 0x27c   : > { %1845 = vrsqrt.f32 %v1496_v57 }
 0x282   : > { %v1844_v58 = vpop.eup %1843 }
 0x283   : > { %v1499_v60 = vmul.f32 %v1844_v58, %v1483_v44 }
 0x285   : > { %v1507_v62 = vmul.f32 %v1723_v59, %v1499_v60 }
 0x286   : > { %v1846_v0 = vpop.eup %1845 }
 0x287   : > { %v1515_v1 = vadd.f32 %v1724_v61, %v1507_v62  ;;  %v1500_v3 = vmul.f32 %v1846_v0, %v1484_v48 }
 0x289   : > { %v1517_v4 = vmax.f32 %v1515_v1, 0.0  ;;  %v1508_v5 = vmul.f32 %v1723_v59, %v1500_v3 }
 0x28b   : > { %v1521_v6 = vcombine.high %v1517_v4, %v1517_v4  ;;  %v1525_v7 = vpack.c.bf16 %v1517_v4, %v1517_v4  ;;  %v1516_v9 = vadd.f32 %v1724_v61, %v1508_v5 }
 0x28d   : > { %v1526_v10 = vpack.c.bf16 %v1521_v6, %v1521_v6  ;;  %1530 = vst.msk [vmem:[%s269_s7] sm:$0x3] %vm1529_vm0, %v1525_v7  ;;  %v1518_v11 = vmax.f32 %v1516_v9, 0.0 }
 0x28f   : > { %1531 = vst.msk [vmem:[%s269_s7 + $0x2] sm:$0x3] %vm1529_vm0, %v1526_v10  ;;  %v1522_v12 = vcombine.high %v1518_v11, %v1518_v11  ;;  %v1527_v13 = vpack.c.bf16 %v1518_v11, %v1518_v11 }
 0x291   : > { %v1528_v14 = vpack.c.bf16 %v1522_v12, %v1522_v12  ;;  %1532 = vst.msk [vmem:[%s269_s7 + $0x4] sm:$0x3] %vm1529_vm0, %v1527_v13 }
 0x293   : > { %1533 = vst.msk [vmem:[%s269_s7 + $0x6] sm:$0x3] %vm1529_vm0, %v1528_v14 }
 0x294 PF: > { %s15_s20 = sadd.s32 1, %s1875_s20   ;;  %s2169_s18 = smov %s1871_s19 }
 0x295   : > { %p12_p5 = scmp.ge.s32.totalorder %s15_s20, 4   ;;  %s2170_s19 = smov %s2172_s21 }
 0x297   :  { %14 = sbr.rel (!%p12_p5) target bundleno = 2 (0x2), region = 91 }

// kernel: decoder_more_token.13
= control target key start
LH: loop header
LB: loop body
LE: loop exit
PB: predicated region body
PF: predicated region fallthrough
CT: control target
= control target key end

     0   :  { %v77_v0 = vlaneseq  ;;  %vm33_vm0 = vcmask 31744   ;;  %v1066_v2 = vmov 1983009808   ;;  %v1067_v7 = vmov 0.0   ;;  %s1666_s1 = inlined_call_operand.vmem [shape: bf16[4,16,4], index: 1, kind: input, shape index: {}]   ;;  %s1667_s0 = inlined_call_operand.vmem [shape: bf16[8,4,16], index: 0, kind: input, shape index: {}]   ;;  %s1668_s2 = inlined_call_operand.vmem [shape: f32[1,4], index: 2, kind: input, shape index: {}]   ;;  %s1669_s5 = inlined_call_operand.vmem [shape: f32[1,4], index: 5, kind: input, shape index: {}]   ;;  %s1670_s3 = inlined_call_operand.vmem [shape: f32[1,4], index: 3, kind: input, shape index: {}]   ;;  %s1671_s6 = inlined_call_operand.vmem [shape: f32[1,4], index: 6, kind: input, shape index: {}]   ;;  %s1672_s4 = inlined_call_operand.vmem [shape: f32[1,4], index: 4, kind: input, shape index: {}]   ;;  %s1673_s8 = inlined_call_operand.vmem [shape: bf16[8,2,4,8], index: 8, kind: output, shape index: {1}]   ;;  %s1674_s7 = inlined_call_operand.vmem [shape: bf16[8,2,4,8], index: 7, kind: output, shape index: {0}]  }
   0x1   :  { %v1030_v1 = vld [vmem:[%s1666_s1 + $0x8] sm:$0xff]   ;;  %v75_v3 = vunpack.c.l.s4 %v1066_v2  ;;  %v50_v4 = vld [vmem:[%s1667_s0] sm:$0x3]  ;;  %v51_v5 = vld [vmem:[%s1667_s0 + $0x2] sm:$0x3]  ;;  %40 = vst.msk [vmem:[#allocation2 + $0x30] sm:$0xff] %vm33_vm0, %v1067_v7 }
   0x2   :  { %v52_v6 = vld [vmem:[%s1667_s0 + $0x4] sm:$0x3]  ;;  %34 = vst.msk [vmem:[#allocation2] sm:$0xff] %vm33_vm0, %v1067_v7  ;;  %35 = vst.msk [vmem:[#allocation2 + $0x8] sm:$0xff] %vm33_vm0, %v1067_v7  ;;  %1009 = vmatprep.subr.bf16.mxu1 %v1030_v1  ;;  %v53_v8 = vld [vmem:[%s1667_s0 + $0x6] sm:$0x3]  ;;  %v72_v9 = vcombine.low %v50_v4, %v51_v5 }
   0x3   :  { %36 = vst.msk [vmem:[#allocation2 + $0x10] sm:$0xff] %vm33_vm0, %v1067_v7  ;;  %37 = vst.msk [vmem:[#allocation2 + $0x18] sm:$0xff] %vm33_vm0, %v1067_v7  ;;  %v76_v10 = vunpack.c.0.s8 %v75_v3  ;;  %v78_v11 = vshrl.u32 %v77_v0, 7  ;;  %v54_v12 = vld [vmem:[%s1667_s0 + $0x8] sm:$0x3]  ;;  %v1031_v13 = vld [vmem:[%s1666_s1 + $0x18] sm:$0xff]   ;;  %1010 = vmatpush3.bf16.msra.mxu1 %v1030_v1  ;;  %v73_v14 = vcombine.low %v52_v6, %v53_v8 }
   0x4   :  { %38 = vst.msk [vmem:[#allocation2 + $0x20] sm:$0xff] %vm33_vm0, %v1067_v7  ;;  %39 = vst.msk [vmem:[#allocation2 + $0x28] sm:$0xff] %vm33_vm0, %v1067_v7  ;;  %v55_v15 = vld [vmem:[%s1667_s0 + $0xa] sm:$0x3]  ;;  %v56_v16 = vld [vmem:[%s1667_s0 + $0xc] sm:$0x3]  ;;  %1021 = vmatprep.subr.bf16.mxu1 %v1031_v13 }
   0x5   :  { %41 = vst.msk [vmem:[#allocation2 + $0x38] sm:$0xff] %vm33_vm0, %v1067_v7  ;;  %42 = vst.msk [vmem:[#allocation2 + $0x40] sm:$0xff] %vm33_vm0, %v1067_v7  ;;  %v57_v17 = vld [vmem:[%s1667_s0 + $0xe] sm:$0x3]  ;;  %v79_v18 = vsub.s32 %v76_v10, %v78_v11  ;;  %v89_v19 = vcombine.low %v54_v12, %v55_v15  ;;  %v1032_v21 = vld [vmem:[%s1666_s1] sm:$0xff]   ;;  %vm112_vm1 = vcmask 130048  }
   0x6   :  { %43 = vst.msk [vmem:[#allocation2 + $0x48] sm:$0xff] %vm33_vm0, %v1067_v7  ;;  %44 = vst.msk [vmem:[#allocation2 + $0x50] sm:$0xff] %vm33_vm0, %v1067_v7  ;;  %v90_v20 = vcombine.low %v56_v16, %v57_v17  ;;  %v1033_v26 = vld [vmem:[%s1666_s1 + $0x10] sm:$0xff]   ;;  %1003 = vmatprep.subr.bf16.mxu0 %v1032_v21  ;;  %v1177_v59 = vld [vmem:[%s1668_s2] ss:$0 sm:$0xff]  ;;  %vm661_vm2 = vcmask 58368  }
   0x7   :  { %45 = vst.msk [vmem:[#allocation2 + $0x58] sm:$0xff] %vm33_vm0, %v1067_v7  ;;  %46 = vst.msk [vmem:[#allocation2 + $0x60] sm:$0xff] %vm33_vm0, %v1067_v7  ;;  %v80_v22 = vrot.slane %v72_v9, %v79_v18  ;;  %v87_v23 = vrot.slane %v73_v14, %v79_v18  ;;  %v97_v24 = vrot.slane %v89_v19, %v79_v18  ;;  %1004 = vmatpush3.bf16.msra.mxu0 %v1032_v21 }
   0x8   :  { %47 = vst.msk [vmem:[#allocation2 + $0x68] sm:$0xff] %vm33_vm0, %v1067_v7  ;;  %48 = vst.msk [vmem:[#allocation2 + $0x70] sm:$0xff] %vm33_vm0, %v1067_v7  ;;  %v104_v25 = vrot.slane %v90_v20, %v79_v18  ;;  %1015 = vmatprep.subr.bf16.mxu0 %v1033_v26  ;;  %v180_v29 = vld [vmem:[#allocation2 + $0x30] sm:$0xff] }
   0x9   :  { %49 = vst.msk [vmem:[#allocation2 + $0x78] sm:$0xff] %vm33_vm0, %v1067_v7  ;;  %v88_v27 = vcombine.low %v80_v22, %v87_v23  ;;  %v58_v32 = vld [vmem:[#allocation2] sm:$0xff]  ;;  %v59_v42 = vld [vmem:[#allocation2 + $0x8] sm:$0xff] }
   0xa   :  { %v105_v28 = vcombine.low %v97_v24, %v104_v25  ;;  %v60_v30 = vld [vmem:[#allocation2 + $0x10] sm:$0xff]  ;;  %v61_v36 = vld [vmem:[#allocation2 + $0x18] sm:$0xff] }
   0xb   :  { %1011 = vmatprep.mubr.msk.bf16.mxu1 %vm112_vm1, %v88_v27  ;;  %1005 = vmatprep.mubr.msk.bf16.mxu0 %vm112_vm1, %v88_v27  ;;  %v178_v31 = vld [vmem:[#allocation2 + $0x20] sm:$0xff]  ;;  %v179_v39 = vld [vmem:[#allocation2 + $0x28] sm:$0xff] }
   0xc   :  { %1012 = vmatmul.mubr.msk.bf16.vlgmr.msra.gmra.mrb[0].mxu1 %vm112_vm1, %v105_v28  ;;  %1006 = vmatmul.mubr.msk.bf16.vlgmr.msra.gmra.mrb[0].mxu0 %vm112_vm1, %v105_v28  ;;  %v181_v34 = vld [vmem:[#allocation2 + $0x38] sm:$0xff]  ;;  %v249_v56 = vld [vmem:[#allocation2 + $0x40] sm:$0xff] }
   0xd   :  { %1022 = vmatpush3.bf16.msra.mxu1 %v1031_v13  ;;  %1023 = vmatprep.mubr.msk.bf16.mxu1 %vm112_vm1, %v88_v27  ;;  %v251_v54 = vld [vmem:[#allocation2 + $0x50] sm:$0xff]  ;;  %v250_v3 = vld [vmem:[#allocation2 + $0x48] sm:$0xff] }
   0xe   :  { %1016 = vmatpush3.bf16.msra.mxu0 %v1033_v26  ;;  %1017 = vmatprep.mubr.msk.bf16.mxu0 %vm112_vm1, %v88_v27  ;;  %v320_v55 = vld [vmem:[#allocation2 + $0x60] sm:$0xff]  ;;  %v252_v61 = vld [vmem:[#allocation2 + $0x58] sm:$0xff] }
   0xf   :  { %v322_v53 = vld [vmem:[#allocation2 + $0x70] sm:$0xff]  ;;  %v321_v0 = vld [vmem:[#allocation2 + $0x68] sm:$0xff] }
  0x10   :  { %v323_v58 = vld [vmem:[#allocation2 + $0x78] sm:$0xff] }
  0x14   :  { %1024 = vmatmul.mubr.msk.bf16.vlgmr.msra.gmra.mrb[4].mxu1 %vm112_vm1, %v105_v28  ;;  %1018 = vmatmul.mubr.msk.bf16.vlgmr.msra.gmra.mrb[4].mxu0 %vm112_vm1, %v105_v28 }
  0xdf   :  { %v1013_v33 = vpop.f32.mrb[0].mxu1  ;;  %v1007_v35 = vpop.f32.mrb[0].mxu0 }
  0xe0   :  { %v242_v37 = vadd.f32 %v1013_v33, %v180_v29  ;;  %v225_v38 = vpop.f32.mrb[1].mxu1  ;;  %v170_v40 = vadd.f32 %v1007_v35, %v60_v30  ;;  %v153_v41 = vpop.f32.mrb[1].mxu0 }
  0xe1   :  { %v240_v43 = vadd.f32 %v225_v38, %v178_v31  ;;  %v1014_v44 = vpop.f32.mrb[2].mxu1  ;;  %v168_v45 = vadd.f32 %v153_v41, %v58_v32  ;;  %v1008_v46 = vpop.f32.mrb[2].mxu0 }
  0xe2   :  { %246 = vst.msk [vmem:[#allocation2 + $0x30] sm:$0xff] %vm33_vm0, %v242_v37  ;;  %v243_v47 = vadd.f32 %v1014_v44, %v181_v34  ;;  %v228_v48 = vpop.f32.mrb[3].mxu1  ;;  %175 = vst.msk [vmem:[#allocation2 + $0x10] sm:$0xff] %vm33_vm0, %v170_v40  ;;  %v171_v49 = vadd.f32 %v1008_v46, %v61_v36  ;;  %v156_v50 = vpop.f32.mrb[3].mxu0 }
  0xe3   :  { %244 = vst.msk [vmem:[#allocation2 + $0x20] sm:$0xff] %vm33_vm0, %v240_v43  ;;  %v241_v51 = vadd.f32 %v228_v48, %v179_v39  ;;  %173 = vst.msk [vmem:[#allocation2] sm:$0xff] %vm33_vm0, %v168_v45  ;;  %v169_v52 = vadd.f32 %v156_v50, %v59_v42 }
  0xe4   :  { %247 = vst.msk [vmem:[#allocation2 + $0x38] sm:$0xff] %vm33_vm0, %v243_v47  ;;  %176 = vst.msk [vmem:[#allocation2 + $0x18] sm:$0xff] %vm33_vm0, %v171_v49 }
  0xe5   :  { %245 = vst.msk [vmem:[#allocation2 + $0x28] sm:$0xff] %vm33_vm0, %v241_v51  ;;  %174 = vst.msk [vmem:[#allocation2 + $0x8] sm:$0xff] %vm33_vm0, %v169_v52 }
  0xe7   :  { %v1025_v57 = vpop.f32.mrb[4].mxu1  ;;  %v1019_v60 = vpop.f32.mrb[4].mxu0 }
  0xe8   :  { %v384_v62 = vadd.f32 %v1025_v57, %v322_v53  ;;  %v367_v63 = vpop.f32.mrb[5].mxu1  ;;  %v313_v1 = vadd.f32 %v1019_v60, %v251_v54  ;;  %v296_v2 = vpop.f32.mrb[5].mxu0 }
  0xe9   :  { %v382_v4 = vadd.f32 %v367_v63, %v320_v55  ;;  %v1026_v5 = vpop.f32.mrb[6].mxu1  ;;  %v511_v6 = vld [vmem:[#allocation2 + $0x30] sm:$0xff]  ;;  %v311_v7 = vadd.f32 %v296_v2, %v249_v56  ;;  %v1020_v8 = vpop.f32.mrb[6].mxu0 }
  0xea   :  { %388 = vst.msk [vmem:[#allocation2 + $0x70] sm:$0xff] %vm33_vm0, %v384_v62  ;;  %v385_v9 = vadd.f32 %v1026_v5, %v323_v58  ;;  %v370_v10 = vpop.f32.mrb[7].mxu1  ;;  %v1181_v11 = vadd.f32 %v1177_v59, %v511_v6  ;;  %v509_v12 = vld [vmem:[#allocation2 + $0x20] sm:$0xff]  ;;  %317 = vst.msk [vmem:[#allocation2 + $0x50] sm:$0xff] %vm33_vm0, %v313_v1  ;;  %v314_v13 = vadd.f32 %v1020_v8, %v252_v61  ;;  %v299_v14 = vpop.f32.mrb[7].mxu0  ;;  %v400_v40 = vld [vmem:[#allocation2 + $0x10] sm:$0xff] }
  0xeb   :  { %386 = vst.msk [vmem:[#allocation2 + $0x60] sm:$0xff] %vm33_vm0, %v382_v4  ;;  %v383_v15 = vadd.f32 %v370_v10, %v321_v0  ;;  %v1186_v16 = vadd.f32 %v1177_v59, %v509_v12  ;;  %v512_v17 = vld [vmem:[#allocation2 + $0x38] sm:$0xff]  ;;  %315 = vst.msk [vmem:[#allocation2 + $0x40] sm:$0xff] %vm33_vm0, %v311_v7  ;;  %v312_v18 = vadd.f32 %v299_v14, %v250_v3  ;;  %v398_v32 = vld [vmem:[#allocation2] sm:$0xff] }
  0xec   :  { %389 = vst.msk [vmem:[#allocation2 + $0x78] sm:$0xff] %vm33_vm0, %v385_v9  ;;  %v523_v19 = vsel %vm33_vm0, %v1181_v11, 0.0  ;;  %v1193_v20 = vadd.f32 %v1177_v59, %v512_v17  ;;  %v510_v21 = vld [vmem:[#allocation2 + $0x28] sm:$0xff]  ;;  %318 = vst.msk [vmem:[#allocation2 + $0x58] sm:$0xff] %vm33_vm0, %v314_v13  ;;  %v1226_v39 = vadd.f32 %v1177_v59, %v398_v32  ;;  %v401_v43 = vld [vmem:[#allocation2 + $0x18] sm:$0xff]  ;;  %v1236_v45 = vadd.f32 %v1177_v59, %v400_v40 }
  0xed   :  { %387 = vst.msk [vmem:[#allocation2 + $0x68] sm:$0xff] %vm33_vm0, %v383_v15  ;;  %524 = vadd.xlane.f32.xlu1 %v523_v19  ;;  %v517_v22 = vsel %vm33_vm0, %v1186_v16, 0.0  ;;  %v1200_v23 = vadd.f32 %v1177_v59, %v510_v21  ;;  %316 = vst.msk [vmem:[#allocation2 + $0x48] sm:$0xff] %vm33_vm0, %v312_v18  ;;  %v399_v36 = vld [vmem:[#allocation2 + $0x8] sm:$0xff]  ;;  %v1241_v48 = vadd.f32 %v1177_v59, %v401_v43 }
  0xee   :  { %518 = vadd.xlane.f32.xlu0 %v517_v22  ;;  %v526_v24 = vsel %vm33_vm0, %v1193_v20, 0.0  ;;  %v1231_v42 = vadd.f32 %v1177_v59, %v399_v36  ;;  %v412_v44 = vsel %vm33_vm0, %v1226_v39, 0.0  ;;  %v418_v50 = vsel %vm33_vm0, %v1236_v45, 0.0 }
  0xef   :  { %v520_v25 = vsel %vm33_vm0, %v1200_v23, 0.0  ;;  %v421_v53 = vsel %vm33_vm0, %v1241_v48, 0.0 }
  0xf0   :  { %v415_v47 = vsel %vm33_vm0, %v1231_v42, 0.0 }
  0xf1   :  { %527 = vadd.xlane.f32.xlu1 %v526_v24  ;;  %v768_v26 = vld [vmem:[#allocation2 + $0x70] sm:$0xff] }
  0xf2   :  { %521 = vadd.xlane.f32.xlu0 %v520_v25  ;;  %v766_v27 = vld [vmem:[#allocation2 + $0x60] sm:$0xff]  ;;  %v1211_v29 = vadd.f32 %v1177_v59, %v768_v26  ;;  %v688_v52 = vld [vmem:[#allocation2 + $0x50] sm:$0xff] }
  0xf3   :  { %v1208_v28 = vadd.f32 %v1177_v59, %v766_v27  ;;  %v769_v30 = vld [vmem:[#allocation2 + $0x78] sm:$0xff]  ;;  %v686_v46 = vld [vmem:[#allocation2 + $0x40] sm:$0xff]  ;;  %v1256_v57 = vadd.f32 %v1177_v59, %v688_v52 }
  0xf4   :  { %v767_v31 = vld [vmem:[#allocation2 + $0x68] sm:$0xff]  ;;  %v1219_v35 = vadd.f32 %v1177_v59, %v769_v30  ;;  %v780_v38 = vsel %vm33_vm0, %v1211_v29, 0.0  ;;  %v1246_v51 = vadd.f32 %v1177_v59, %v686_v46  ;;  %v689_v55 = vld [vmem:[#allocation2 + $0x58] sm:$0xff] }
  0xf5   :  { %v774_v33 = vsel %vm33_vm0, %v1208_v28, 0.0  ;;  %v1216_v34 = vadd.f32 %v1177_v59, %v767_v31  ;;  %v687_v49 = vld [vmem:[#allocation2 + $0x48] sm:$0xff]  ;;  %v1261_v60 = vadd.f32 %v1177_v59, %v689_v55  ;;  %v700_v61 = vsel %vm33_vm0, %v1256_v57, 0.0 }
  0xf6   :  { %775 = vadd.xlane.f32.xlu0 %v774_v33  ;;  %v783_v41 = vsel %vm33_vm0, %v1219_v35, 0.0  ;;  %v1251_v54 = vadd.f32 %v1177_v59, %v687_v49  ;;  %v694_v56 = vsel %vm33_vm0, %v1246_v51, 0.0 }
  0xf7   :  { %v777_v37 = vsel %vm33_vm0, %v1216_v34, 0.0  ;;  %v703_v62 = vsel %vm33_vm0, %v1261_v60, 0.0 }
  0xf8   :  { %778 = vadd.xlane.f32.xlu1 %v777_v37  ;;  %v697_v58 = vsel %vm33_vm0, %v1251_v54, 0.0 }
  0xfa   :  { %781 = vadd.xlane.f32.xlu0 %v780_v38 }
  0xfc   :  { %784 = vadd.xlane.f32.xlu1 %v783_v41 }
  0xfe   :  { %413 = vadd.xlane.f32.xlu0 %v412_v44 }
 0x100   :  { %416 = vadd.xlane.f32.xlu1 %v415_v47 }
 0x102   :  { %419 = vadd.xlane.f32.xlu0 %v418_v50 }
 0x104   :  { %422 = vadd.xlane.f32.xlu1 %v421_v53 }
 0x106   :  { %695 = vadd.xlane.f32.xlu0 %v694_v56 }
 0x108   :  { %698 = vadd.xlane.f32.xlu1 %v697_v58 }
 0x10a   :  { %701 = vadd.xlane.f32.xlu0 %v700_v61 }
 0x10c   :  { %704 = vadd.xlane.f32.xlu1 %v703_v62 }
 0x17a   :  { %v525_v63 = vpop.xlane.xlu1 %524 }
 0x17b   :  { %v531_v0 = vmul.f32 0.25, %v525_v63  ;;  %v519_v1 = vpop.xlane.xlu0 %518 }
 0x17c   :  { %v529_v2 = vmul.f32 0.25, %v519_v1 }
 0x17d   :  { %v1268_v3 = vsub.f32 %v1181_v11, %v531_v0 }
 0x17e   :  { %v1271_v59 = vsub.f32 %v1186_v16, %v529_v2  ;;  %v528_v4 = vpop.xlane.xlu1 %527 }
 0x17f   :  { %v532_v5 = vmul.f32 0.25, %v528_v4  ;;  %v522_v6 = vpop.xlane.xlu0 %521  ;;  %v539_v7 = vmul.f32 %v1268_v3, %v1268_v3 }
 0x180   :  { %v530_v8 = vmul.f32 0.25, %v522_v6  ;;  %v537_v12 = vmul.f32 %v1271_v59, %v1271_v59 }
 0x181   :  { %v1276_v9 = vsub.f32 %v1193_v20, %v532_v5  ;;  %v547_v10 = vsel %vm33_vm0, %v539_v7, 0.0 }
 0x182   :  { %v1282_v11 = vsub.f32 %v1200_v23, %v530_v8  ;;  %548 = vadd.xlane.f32.xlu0 %v547_v10  ;;  %v541_v17 = vsel %vm33_vm0, %v537_v12, 0.0 }
 0x183   :  { %v776_v13 = vpop.xlane.xlu0 %775  ;;  %v540_v14 = vmul.f32 %v1276_v9, %v1276_v9 }
 0x184   :  { %v786_v15 = vmul.f32 0.25, %v776_v13  ;;  %v538_v19 = vmul.f32 %v1282_v11, %v1282_v11 }
 0x185   :  { %v779_v16 = vpop.xlane.xlu1 %778  ;;  %v550_v18 = vsel %vm33_vm0, %v540_v14, 0.0 }
 0x186   :  { %v1291_v20 = vsub.f32 %v1208_v28, %v786_v15  ;;  %v787_v21 = vmul.f32 0.25, %v779_v16  ;;  %542 = vadd.xlane.f32.xlu0 %v541_v17  ;;  %551 = vadd.xlane.f32.xlu1 %v550_v18  ;;  %v544_v27 = vsel %vm33_vm0, %v538_v19, 0.0 }
 0x187   :  { %v782_v22 = vpop.xlane.xlu0 %781 }
 0x188   :  { %v1294_v23 = vsub.f32 %v1216_v34, %v787_v21  ;;  %v788_v24 = vmul.f32 0.25, %v782_v22  ;;  %v794_v25 = vmul.f32 %v1291_v20, %v1291_v20 }
 0x189   :  { %v785_v26 = vpop.xlane.xlu1 %784 }
 0x18a   :  { %v1300_v30 = vsub.f32 %v1211_v29, %v788_v24  ;;  %v789_v31 = vmul.f32 0.25, %v785_v26  ;;  %545 = vadd.xlane.f32.xlu1 %v544_v27  ;;  %v798_v28 = vsel %vm33_vm0, %v794_v25, 0.0  ;;  %v795_v32 = vmul.f32 %v1294_v23, %v1294_v23 }
 0x18b   :  { %v414_v33 = vpop.xlane.xlu0 %413  ;;  %799 = vadd.xlane.f32.xlu0 %v798_v28 }
 0x18c   :  { %v1306_v34 = vsub.f32 %v1219_v35, %v789_v31  ;;  %v425_v36 = vmul.f32 0.25, %v414_v33  ;;  %v801_v37 = vsel %vm33_vm0, %v795_v32, 0.0  ;;  %v796_v38 = vmul.f32 %v1300_v30, %v1300_v30 }
 0x18d   :  { %v417_v29 = vpop.xlane.xlu1 %416 }
 0x18e   :  { %v1312_v40 = vsub.f32 %v1226_v39, %v425_v36  ;;  %v426_v41 = vmul.f32 0.25, %v417_v29  ;;  %802 = vadd.xlane.f32.xlu1 %v801_v37  ;;  %v804_v43 = vsel %vm33_vm0, %v796_v38, 0.0  ;;  %v797_v44 = vmul.f32 %v1306_v34, %v1306_v34 }
 0x18f   :  { %v420_v46 = vpop.xlane.xlu0 %419  ;;  %805 = vadd.xlane.f32.xlu0 %v804_v43 }
 0x190   :  { %v1318_v35 = vsub.f32 %v1231_v42, %v426_v41  ;;  %v427_v47 = vmul.f32 0.25, %v420_v46  ;;  %v807_v49 = vsel %vm33_vm0, %v797_v44, 0.0  ;;  %v433_v50 = vmul.f32 %v1312_v40, %v1312_v40 }
 0x191   :  { %v423_v39 = vpop.xlane.xlu1 %422 }
 0x192   :  { %v1324_v52 = vsub.f32 %v1236_v45, %v427_v47  ;;  %v428_v53 = vmul.f32 0.25, %v423_v39  ;;  %808 = vadd.xlane.f32.xlu1 %v807_v49  ;;  %v437_v55 = vsel %vm33_vm0, %v433_v50, 0.0  ;;  %v434_v56 = vmul.f32 %v1318_v35, %v1318_v35  ;;  %v1366_v49 = vld [vmem:[%s1669_s5] ss:$0 sm:$0xff] }
 0x193   :  { %438 = vadd.xlane.f32.xlu0 %v437_v55  ;;  %v696_v42 = vpop.xlane.xlu0 %695  ;;  %v1371_v50 = vld [vmem:[%s1670_s3] ss:$0 sm:$0xff]  ;;  %s1068_s3 = smov 4  }
 0x194   :  { %v1330_v58 = vsub.f32 %v1241_v48, %v428_v53  ;;  %v706_v61 = vmul.f32 0.25, %v696_v42  ;;  %v440_v62 = vsel %vm33_vm0, %v434_v56, 0.0  ;;  %v435_v63 = vmul.f32 %v1324_v52, %v1324_v52 }
 0x195   :  { %v699_v45 = vpop.xlane.xlu1 %698 }
 0x196   :  { %v1336_v0 = vsub.f32 %v1246_v51, %v706_v61  ;;  %441 = vadd.xlane.f32.xlu1 %v440_v62  ;;  %v443_v1 = vsel %vm33_vm0, %v435_v63, 0.0  ;;  %v436_v2 = vmul.f32 %v1330_v58, %v1330_v58  ;;  %v707_v48 = vmul.f32 0.25, %v699_v45  ;;  %v1377_v61 = vld [vmem:[%s1671_s6] ss:$0 sm:$0xff] }
 0x197   :  { %444 = vadd.xlane.f32.xlu0 %v443_v1  ;;  %v702_v4 = vpop.xlane.xlu0 %701  ;;  %v1382_v62 = vld [vmem:[%s1672_s4] ss:$0 sm:$0xff] }
 0x198   :  { %v708_v5 = vmul.f32 0.25, %v702_v4  ;;  %v446_v6 = vsel %vm33_vm0, %v436_v2, 0.0  ;;  %v714_v7 = vmul.f32 %v1336_v0, %v1336_v0  ;;  %v1349_v13 = vsub.f32 %v1251_v54, %v707_v48 }
 0x199   :  { %v705_v8 = vpop.xlane.xlu1 %704 }
 0x19a   :  { %v1345_v10 = vsub.f32 %v1256_v57, %v708_v5  ;;  %v709_v51 = vmul.f32 0.25, %v705_v8  ;;  %447 = vadd.xlane.f32.xlu1 %v446_v6  ;;  %v718_v12 = vsel %vm33_vm0, %v714_v7, 0.0  ;;  %v715_v18 = vmul.f32 %v1349_v13, %v1349_v13 }
 0x19b   :  { %719 = vadd.xlane.f32.xlu0 %v718_v12 }
 0x19c   :  { %v1352_v14 = vsub.f32 %v1261_v60, %v709_v51  ;;  %v716_v15 = vmul.f32 %v1345_v10, %v1345_v10  ;;  %v721_v54 = vsel %vm33_vm0, %v715_v18, 0.0 }
 0x19e   :  { %v724_v16 = vsel %vm33_vm0, %v716_v15, 0.0  ;;  %v717_v57 = vmul.f32 %v1352_v14, %v1352_v14 }
 0x19f   :  { %725 = vadd.xlane.f32.xlu0 %v724_v16 }
 0x1a0   :  { %v727_v17 = vsel %vm33_vm0, %v717_v57, 0.0 }
 0x1a1   :  { %728 = vadd.xlane.f32.xlu1 %v727_v17 }
 0x1a5   :  { %722 = vadd.xlane.f32.xlu1 %v721_v54 }
 0x20f   :  { %v549_v60 = vpop.xlane.xlu0 %548 }
 0x210   :  { %v555_v19 = vmul.f32 0.25, %v549_v60 }
 0x212   :  { %v559_v21 = vadd.f32 1e-06, %v555_v19 }
 0x213   :  { %v543_v22 = vpop.xlane.xlu0 %542  ;;  %v552_v24 = vpop.xlane.xlu1 %551 }
 0x214   :  { %1034 = vrsqrt.f32 %v559_v21  ;;  %v553_v25 = vmul.f32 0.25, %v543_v22  ;;  %v556_v26 = vmul.f32 0.25, %v552_v24 }
 0x216   :  { %v557_v27 = vadd.f32 1e-06, %v553_v25  ;;  %v560_v31 = vadd.f32 1e-06, %v556_v26 }
 0x217   :  { %v546_v28 = vpop.xlane.xlu1 %545 }
 0x218   :  { %1036 = vrsqrt.f32 %v557_v27  ;;  %v554_v32 = vmul.f32 0.25, %v546_v28  ;;  %v800_v33 = vpop.xlane.xlu0 %799 }
 0x219   :  { %1038 = vrsqrt.f32 %v560_v31  ;;  %v810_v36 = vmul.f32 0.25, %v800_v33 }
 0x21a   :  { %v558_v37 = vadd.f32 1e-06, %v554_v32 }
 0x21b   :  { %v814_v38 = vadd.f32 1e-06, %v810_v36  ;;  %v803_v29 = vpop.xlane.xlu1 %802 }
 0x21c   :  { %1040 = vrsqrt.f32 %v558_v37  ;;  %v811_v41 = vmul.f32 0.25, %v803_v29  ;;  %v806_v43 = vpop.xlane.xlu0 %805 }
 0x21d   :  { %1042 = vrsqrt.f32 %v814_v38  ;;  %v812_v44 = vmul.f32 0.25, %v806_v43 }
 0x21e   :  { %v1035_v46 = vpop.eup %1034  ;;  %v815_v47 = vadd.f32 1e-06, %v811_v41 }
 0x21f   :  { %v816_v39 = vadd.f32 1e-06, %v812_v44  ;;  %v809_v53 = vpop.xlane.xlu1 %808  ;;  %v567_v55 = vmul.f32 %v1035_v46, %v1268_v3 }
 0x220   :  { %1044 = vrsqrt.f32 %v815_v47  ;;  %v813_v56 = vmul.f32 0.25, %v809_v53  ;;  %v439_v42 = vpop.xlane.xlu0 %438 }
 0x221   :  { %1046 = vrsqrt.f32 %v816_v39  ;;  %v449_v63 = vmul.f32 0.25, %v439_v42  ;;  %v583_v45 = vmul.f32 %v1366_v49, %v567_v55  ;;  %v571_v1 = vmul.f32 %v1371_v50, %v567_v55 }
 0x222   :  { %v1037_v3 = vpop.eup %1036  ;;  %v817_v2 = vadd.f32 1e-06, %v813_v56 }
 0x223   :  { %v1039_v4 = vpop.eup %1038  ;;  %v453_v48 = vadd.f32 1e-06, %v449_v63  ;;  %v442_v5 = vpop.xlane.xlu1 %441  ;;  %v587_v6 = vadd.f32 %v1377_v61, %v583_v45  ;;  %v575_v7 = vadd.f32 %v1382_v62, %v571_v1  ;;  %v565_v8 = vmul.f32 %v1037_v3, %v1271_v59 }
 0x224   :  { %1048 = vrsqrt.f32 %v817_v2  ;;  %v450_v51 = vmul.f32 0.25, %v442_v5  ;;  %v445_v12 = vpop.xlane.xlu0 %444  ;;  %v568_v15 = vmul.f32 %v1039_v4, %v1276_v9 }
 0x225   :  { %1050 = vrsqrt.f32 %v453_v48  ;;  %v451_v16 = vmul.f32 0.25, %v445_v12  ;;  %629 = vrot.lane.b32.xlu0 %v587_v6, %s1068_s3  ;;  %v579_v57 = vmax.f32 %v575_v7, 0.0  ;;  %v581_v17 = vmul.f32 %v1366_v49, %v565_v8 }
 0x226   :  { %v1041_v18 = vpop.eup %1040  ;;  %v454_v54 = vadd.f32 1e-06, %v450_v51  ;;  %v584_v60 = vmul.f32 %v1366_v49, %v568_v15  ;;  %v569_v19 = vmul.f32 %v1371_v50, %v565_v8  ;;  %v572_v25 = vmul.f32 %v1371_v50, %v568_v15 }
 0x227   :  { %v1043_v59 = vpop.eup %1042  ;;  %v455_v21 = vadd.f32 1e-06, %v451_v16  ;;  %597 = vrot.lane.b32.xlu1 %v579_v57, %s1068_s3  ;;  %v448_v22 = vpop.xlane.xlu1 %447  ;;  %v585_v9 = vadd.f32 %v1377_v61, %v581_v17  ;;  %v566_v24 = vmul.f32 %v1041_v18, %v1282_v11 }
 0x228   :  { %1052 = vrsqrt.f32 %v454_v54  ;;  %v452_v26 = vmul.f32 0.25, %v448_v22  ;;  %v720_v27 = vpop.xlane.xlu0 %719  ;;  %v588_v31 = vadd.f32 %v1377_v61, %v584_v60  ;;  %v573_v28 = vadd.f32 %v1382_v62, %v569_v19 }
 0x229   :  { %1054 = vrsqrt.f32 %v455_v21  ;;  %v730_v32 = vmul.f32 0.25, %v720_v27  ;;  %625 = vrot.lane.b32.xlu0 %v585_v9, %s1068_s3  ;;  %v582_v33 = vmul.f32 %v1366_v49, %v566_v24  ;;  %v822_v36 = vmul.f32 %v1043_v59, %v1291_v20 }
 0x22a   :  { %v1045_v37 = vpop.eup %1044  ;;  %v456_v38 = vadd.f32 1e-06, %v452_v26  ;;  %v570_v11 = vmul.f32 %v1371_v50, %v566_v24  ;;  %v577_v43 = vmax.f32 %v573_v28, 0.0  ;;  %v576_v55 = vadd.f32 %v1382_v62, %v572_v25 }
 0x22b   :  { %v1047_v29 = vpop.eup %1046  ;;  %v734_v41 = vadd.f32 1e-06, %v730_v32  ;;  %631 = vrot.lane.b32.xlu1 %v588_v31, %s1068_s3  ;;  %v838_v44 = vmul.f32 %v1366_v49, %v822_v36  ;;  %v826_v46 = vmul.f32 %v1371_v50, %v822_v36  ;;  %v586_v20 = vadd.f32 %v1377_v61, %v582_v33 }
 0x22c   :  { %1056 = vrsqrt.f32 %v456_v38  ;;  %v726_v47 = vpop.xlane.xlu0 %725  ;;  %v824_v39 = vmul.f32 %v1047_v29, %v1300_v30  ;;  %v574_v45 = vadd.f32 %v1382_v62, %v570_v11  ;;  %v823_v1 = vmul.f32 %v1045_v37, %v1294_v23 }
 0x22d   :  { %1058 = vrsqrt.f32 %v734_v41  ;;  %v732_v53 = vmul.f32 0.25, %v726_v47  ;;  %593 = vrot.lane.b32.xlu0 %v577_v43, %s1068_s3  ;;  %v842_v30 = vadd.f32 %v1377_v61, %v838_v44  ;;  %v830_v48 = vadd.f32 %v1382_v62, %v826_v46 }
 0x22e   :  { %v1049_v56 = vpop.eup %1048  ;;  %v729_v42 = vpop.xlane.xlu1 %728  ;;  %v828_v63 = vmul.f32 %v1371_v50, %v824_v39  ;;  %v580_v8 = vmax.f32 %v576_v55, 0.0  ;;  %v839_v23 = vmul.f32 %v1366_v49, %v823_v1  ;;  %v578_v16 = vmax.f32 %v574_v45, 0.0 }
 0x22f   :  { %v1051_v3 = vpop.eup %1050  ;;  %v736_v2 = vadd.f32 1e-06, %v732_v53  ;;  %v733_v4 = vmul.f32 0.25, %v729_v42  ;;  %627 = vrot.lane.b32.xlu1 %v586_v20, %s1068_s3  ;;  %v1419_v6 = vmul.f32 %v1049_v56, %v1306_v34  ;;  %v834_v34 = vmax.f32 %v830_v48, 0.0 }
 0x230   :  { %v832_v5 = vadd.f32 %v1382_v62, %v828_v63  ;;  %v461_v57 = vmul.f32 %v1051_v3, %v1312_v40  ;;  %v840_v54 = vmul.f32 %v1366_v49, %v824_v39  ;;  %v843_v40 = vadd.f32 %v1377_v61, %v839_v23 }
 0x231   :  { %1060 = vrsqrt.f32 %v736_v2  ;;  %v737_v7 = vadd.f32 1e-06, %v733_v4  ;;  %882 = vrot.lane.b32.xlu0 %v842_v30, %s1068_s3  ;;  %v829_v60 = vmul.f32 %v1371_v50, %v1419_v6  ;;  %v827_v9 = vmul.f32 %v1371_v50, %v823_v1 }
 0x232   :  { %v1053_v51 = vpop.eup %1052  ;;  %v723_v12 = vpop.xlane.xlu1 %722  ;;  %v836_v15 = vmax.f32 %v832_v5, 0.0  ;;  %v495_v59 = vmul.f32 %v1366_v49, %v461_v57  ;;  %v471_v21 = vmul.f32 %v1371_v50, %v461_v57 }
 0x233   :  { %v1055_v17 = vpop.eup %1054  ;;  %1062 = vrsqrt.f32 %v737_v7  ;;  %v731_v18 = vmul.f32 0.25, %v723_v12  ;;  %599 = vrot.lane.b32.xlu1 %v580_v8, %s1068_s3  ;;  %v462_v24 = vmul.f32 %v1053_v51, %v1318_v35  ;;  %v833_v36 = vadd.f32 %v1382_v62, %v829_v60 }
 0x234   :  { %v463_v19 = vmul.f32 %v1055_v17, %v1324_v52  ;;  %v1438_v52 = vadd.f32 %v1377_v61, %v495_v59  ;;  %v1441_v31 = vadd.f32 %v1382_v62, %v471_v21  ;;  %v831_v45 = vadd.f32 %v1382_v62, %v827_v9 }
 0x235   :  { %v735_v22 = vadd.f32 1e-06, %v731_v18  ;;  %854 = vrot.lane.b32.xlu0 %v836_v15, %s1068_s3  ;;  %v496_v33 = vmul.f32 %v1366_v49, %v462_v24  ;;  %v472_v35 = vmul.f32 %v1371_v50, %v462_v24  ;;  %v837_v63 = vmax.f32 %v833_v36, 0.0 }
 0x236   :  { %v1057_v25 = vpop.eup %1056  ;;  %v497_v26 = vmul.f32 %v1366_v49, %v463_v19  ;;  %v473_v27 = vmul.f32 %v1371_v50, %v463_v19  ;;  %v835_v7 = vmax.f32 %v831_v45, 0.0  ;;  %v841_v8 = vmul.f32 %v1366_v49, %v1419_v6 }
 0x237   :  { %v1059_v28 = vpop.eup %1058  ;;  %1064 = vrsqrt.f32 %v735_v22  ;;  %595 = vrot.lane.b32.xlu1 %v578_v16, %s1068_s3  ;;  %v464_v32 = vmul.f32 %v1057_v25, %v1330_v58  ;;  %v1454_v41 = vadd.f32 %v1377_v61, %v496_v33  ;;  %v1458_v43 = vadd.f32 %v1382_v62, %v472_v35 }
 0x238   :  { %v507_v37 = vadd.f32 %v1377_v61, %v497_v26  ;;  %v483_v38 = vadd.f32 %v1382_v62, %v473_v27  ;;  %v742_v11 = vmul.f32 %v1059_v28, %v1336_v0  ;;  %v844_v0 = vadd.f32 %v1377_v61, %v840_v54 }
 0x239   :  { %850 = vrot.lane.b32.xlu0 %v834_v34, %s1068_s3  ;;  %v498_v29 = vmul.f32 %v1366_v49, %v464_v32  ;;  %v474_v58 = vmul.f32 %v1371_v50, %v464_v32  ;;  %v845_v16 = vadd.f32 %v1377_v61, %v841_v8  ;;  %v485_v25 = vmax.f32 %v1441_v31, 0.0 }
 0x23a   :  { %v758_v44 = vmul.f32 %v1366_v49, %v742_v11  ;;  %v746_v46 = vmul.f32 %v1371_v50, %v742_v11  ;;  %v487_v18 = vmax.f32 %v483_v38, 0.0 }
 0x23b   :  { %v1061_v47 = vpop.eup %1060  ;;  %884 = vrot.lane.b32.xlu1 %v843_v40, %s1068_s3  ;;  %v508_v39 = vadd.f32 %v1377_v61, %v498_v29  ;;  %v1466_v53 = vadd.f32 %v1382_v62, %v474_v58 }
 0x23c   :  { %v1469_v20 = vadd.f32 %v1377_v61, %v758_v44  ;;  %v744_v55 = vmul.f32 %v1061_v47, %v1345_v10  ;;  %v1473_v56 = vadd.f32 %v1382_v62, %v746_v46 }
 0x23d   :  { %v1063_v42 = vpop.eup %1062  ;;  %886 = vrot.lane.b32.xlu0 %v844_v0, %s1068_s3  ;;  %v488_v46 = vmax.f32 %v1466_v53, 0.0 }
 0x23e   :  { %v748_v1 = vmul.f32 %v1371_v50, %v744_v55  ;;  %v760_v3 = vmul.f32 %v1366_v49, %v744_v55  ;;  %v745_v2 = vmul.f32 %v1063_v42, %v1352_v14 }
 0x23f   :  { %856 = vrot.lane.b32.xlu1 %v837_v63, %s1068_s3 }
 0x240   :  { %v1482_v4 = vadd.f32 %v1382_v62, %v748_v1  ;;  %v1485_v10 = vadd.f32 %v1377_v61, %v760_v3  ;;  %v749_v30 = vmul.f32 %v1371_v50, %v745_v2  ;;  %v761_v48 = vmul.f32 %v1366_v49, %v745_v2 }
 0x241   :  { %v1065_v5 = vpop.eup %1064  ;;  %v486_v3 = vmax.f32 %v1458_v43, 0.0 }
 0x242   :  { %v743_v23 = vmul.f32 %v1065_v5, %v1349_v13  ;;  %v1493_v14 = vadd.f32 %v1382_v62, %v749_v30  ;;  %v1496_v51 = vadd.f32 %v1377_v61, %v761_v48 }
 0x243   :  { %852 = vrot.lane.b32.xlu1 %v835_v7, %s1068_s3  ;;  %v754_v7 = vmax.f32 %v1473_v56, 0.0 }
 0x244   :  { %v759_v12 = vmul.f32 %v1366_v49, %v743_v23  ;;  %v747_v15 = vmul.f32 %v1371_v50, %v743_v23 }
 0x246   :  { %v1503_v57 = vadd.f32 %v1377_v61, %v759_v12  ;;  %v1506_v6 = vadd.f32 %v1382_v62, %v747_v15 }
 0x247   :  { %888 = vrot.lane.b32.xlu1 %v845_v16, %s1068_s3 }
 0x297   :  { %v630_v13 = vpop.permute.xlu0 %629 }
 0x298   :  { %v639_v17 = vsel %vm33_vm0, %v507_v37, %v630_v13 }
 0x299   :  { %v647_v34 = vcombine.high %v639_v17, %v639_v17  ;;  %v674_v54 = vpack.c.bf16 %v639_v17, %v639_v17  ;;  %v598_v49 = vpop.permute.xlu1 %597 }
 0x29a   :  { %v607_v50 = vsel %vm33_vm0, %v487_v18, %v598_v49 }
 0x29b   :  { %v675_v60 = vpack.c.bf16 %v647_v34, %v647_v34  ;;  %682 = vst.msk [vmem:[%s1673_s8 + $0x10] sm:$0x3] %vm661_vm2, %v674_v54  ;;  %v615_v61 = vcombine.high %v607_v50, %v607_v50  ;;  %v657_v62 = vpack.c.bf16 %v607_v50, %v607_v50  ;;  %v626_v19 = vpop.permute.xlu0 %625 }
 0x29c   :  { %v637_v59 = vsel %vm33_vm0, %v1438_v52, %v626_v19 }
 0x29d   :  { %683 = vst.msk [vmem:[%s1673_s8 + $0x14] sm:$0x3] %vm661_vm2, %v675_v60  ;;  %v658_v21 = vpack.c.bf16 %v615_v61, %v615_v61  ;;  %666 = vst.msk [vmem:[%s1674_s7 + $0x10] sm:$0x3] %vm661_vm2, %v657_v62  ;;  %v645_v22 = vcombine.high %v637_v59, %v637_v59  ;;  %v670_v40 = vpack.c.bf16 %v637_v59, %v637_v59  ;;  %v632_v9 = vpop.permute.xlu1 %631  ;;  %v757_v61 = vmax.f32 %v1493_v14, 0.0 }
 0x29e   :  { %v640_v24 = vsel %vm33_vm0, %v508_v39, %v632_v9 }
 0x29f   :  { %667 = vst.msk [vmem:[%s1674_s7 + $0x14] sm:$0x3] %vm661_vm2, %v658_v21  ;;  %v671_v26 = vpack.c.bf16 %v645_v22, %v645_v22  ;;  %678 = vst.msk [vmem:[%s1673_s8] sm:$0x3] %vm661_vm2, %v670_v40  ;;  %v648_v27 = vcombine.high %v640_v24, %v640_v24  ;;  %v676_v52 = vpack.c.bf16 %v640_v24, %v640_v24  ;;  %v594_v28 = vpop.permute.xlu0 %593  ;;  %v755_v40 = vmax.f32 %v1506_v6, 0.0 }
 0x2a0   :  { %v605_v32 = vsel %vm33_vm0, %v485_v25, %v594_v28 }
 0x2a1   :  { %679 = vst.msk [vmem:[%s1673_s8 + $0x4] sm:$0x3] %vm661_vm2, %v671_v26  ;;  %v677_v31 = vpack.c.bf16 %v648_v27, %v648_v27  ;;  %684 = vst.msk [vmem:[%s1673_s8 + $0x18] sm:$0x3] %vm661_vm2, %v676_v52  ;;  %v613_v33 = vcombine.high %v605_v32, %v605_v32  ;;  %v653_v35 = vpack.c.bf16 %v605_v32, %v605_v32  ;;  %v628_v36 = vpop.permute.xlu1 %627 }
 0x2a2   :  { %v638_v37 = vsel %vm33_vm0, %v1454_v41, %v628_v36 }
 0x2a3   :  { %685 = vst.msk [vmem:[%s1673_s8 + $0x1c] sm:$0x3] %vm661_vm2, %v677_v31  ;;  %v654_v38 = vpack.c.bf16 %v613_v33, %v613_v33  ;;  %662 = vst.msk [vmem:[%s1674_s7] sm:$0x3] %vm661_vm2, %v653_v35  ;;  %v646_v11 = vcombine.high %v638_v37, %v638_v37  ;;  %v672_v29 = vpack.c.bf16 %v638_v37, %v638_v37  ;;  %v883_v58 = vpop.permute.xlu0 %882 }
 0x2a4   :  { %v894_v44 = vsel %vm33_vm0, %v1469_v20, %v883_v58  ;;  %v756_v20 = vmax.f32 %v1482_v4, 0.0 }
 0x2a5   :  { %663 = vst.msk [vmem:[%s1674_s7 + $0x4] sm:$0x3] %vm661_vm2, %v654_v38  ;;  %v673_v41 = vpack.c.bf16 %v646_v11, %v646_v11  ;;  %680 = vst.msk [vmem:[%s1673_s8 + $0x8] sm:$0x3] %vm661_vm2, %v672_v29  ;;  %v902_v47 = vcombine.high %v894_v44, %v894_v44  ;;  %v927_v0 = vpack.c.bf16 %v894_v44, %v894_v44  ;;  %v600_v39 = vpop.permute.xlu1 %599 }
 0x2a6   :  { %v608_v55 = vsel %vm33_vm0, %v488_v46, %v600_v39 }
 0x2a7   :  { %681 = vst.msk [vmem:[%s1673_s8 + $0xc] sm:$0x3] %vm661_vm2, %v673_v41  ;;  %v928_v53 = vpack.c.bf16 %v902_v47, %v902_v47  ;;  %983 = vst.msk [vmem:[%s1673_s8 + $0x2] sm:$0x3] %vm661_vm2, %v927_v0  ;;  %v616_v42 = vcombine.high %v608_v55, %v608_v55  ;;  %v659_v63 = vpack.c.bf16 %v608_v55, %v608_v55  ;;  %v855_v45 = vpop.permute.xlu0 %854 }
 0x2a8   :  { %v864_v1 = vsel %vm33_vm0, %v756_v20, %v855_v45 }
 0x2a9   :  { %984 = vst.msk [vmem:[%s1673_s8 + $0x6] sm:$0x3] %vm661_vm2, %v928_v53  ;;  %v660_v2 = vpack.c.bf16 %v616_v42, %v616_v42  ;;  %668 = vst.msk [vmem:[%s1674_s7 + $0x18] sm:$0x3] %vm661_vm2, %v659_v63  ;;  %v872_v4 = vcombine.high %v864_v1, %v864_v1  ;;  %v914_v30 = vpack.c.bf16 %v864_v1, %v864_v1  ;;  %v596_v48 = vpop.permute.xlu1 %595 }
 0x2aa   :  { %v606_v5 = vsel %vm33_vm0, %v486_v3, %v596_v48 }
 0x2ab   :  { %669 = vst.msk [vmem:[%s1674_s7 + $0x1c] sm:$0x3] %vm661_vm2, %v660_v2  ;;  %v915_v43 = vpack.c.bf16 %v872_v4, %v872_v4  ;;  %979 = vst.msk [vmem:[%s1674_s7 + $0x12] sm:$0x3] %vm661_vm2, %v914_v30  ;;  %v614_v8 = vcombine.high %v606_v5, %v606_v5  ;;  %v655_v23 = vpack.c.bf16 %v606_v5, %v606_v5  ;;  %v851_v12 = vpop.permute.xlu0 %850 }
 0x2ac   :  { %v862_v15 = vsel %vm33_vm0, %v754_v7, %v851_v12 }
 0x2ad   :  { %980 = vst.msk [vmem:[%s1674_s7 + $0x16] sm:$0x3] %vm661_vm2, %v915_v43  ;;  %v656_v56 = vpack.c.bf16 %v614_v8, %v614_v8  ;;  %664 = vst.msk [vmem:[%s1674_s7 + $0x8] sm:$0x3] %vm661_vm2, %v655_v23  ;;  %v870_v16 = vcombine.high %v862_v15, %v862_v15  ;;  %v910_v13 = vpack.c.bf16 %v862_v15, %v862_v15  ;;  %v885_v17 = vpop.permute.xlu1 %884 }
 0x2ae   :  { %v895_v18 = vsel %vm33_vm0, %v1503_v57, %v885_v17 }
 0x2af   :  { %665 = vst.msk [vmem:[%s1674_s7 + $0xc] sm:$0x3] %vm661_vm2, %v656_v56  ;;  %v911_v34 = vpack.c.bf16 %v870_v16, %v870_v16  ;;  %975 = vst.msk [vmem:[%s1674_s7 + $0x2] sm:$0x3] %vm661_vm2, %v910_v13  ;;  %v903_v54 = vcombine.high %v895_v18, %v895_v18  ;;  %v929_v49 = vpack.c.bf16 %v895_v18, %v895_v18  ;;  %v887_v50 = vpop.permute.xlu0 %886 }
 0x2b0   :  { %v896_v60 = vsel %vm33_vm0, %v1485_v10, %v887_v50 }
 0x2b1   :  { %976 = vst.msk [vmem:[%s1674_s7 + $0x6] sm:$0x3] %vm661_vm2, %v911_v34  ;;  %v930_v57 = vpack.c.bf16 %v903_v54, %v903_v54  ;;  %985 = vst.msk [vmem:[%s1673_s8 + $0xa] sm:$0x3] %vm661_vm2, %v929_v49  ;;  %v904_v62 = vcombine.high %v896_v60, %v896_v60  ;;  %v931_v19 = vpack.c.bf16 %v896_v60, %v896_v60  ;;  %v857_v59 = vpop.permute.xlu1 %856 }
 0x2b2   :  { %v865_v21 = vsel %vm33_vm0, %v757_v61, %v857_v59 }
 0x2b3   :  { %986 = vst.msk [vmem:[%s1673_s8 + $0xe] sm:$0x3] %vm661_vm2, %v930_v57  ;;  %v932_v10 = vpack.c.bf16 %v904_v62, %v904_v62  ;;  %987 = vst.msk [vmem:[%s1673_s8 + $0x12] sm:$0x3] %vm661_vm2, %v931_v19  ;;  %v873_v14 = vcombine.high %v865_v21, %v865_v21  ;;  %v916_v22 = vpack.c.bf16 %v865_v21, %v865_v21 }
 0x2b5   :  { %988 = vst.msk [vmem:[%s1673_s8 + $0x16] sm:$0x3] %vm661_vm2, %v932_v10  ;;  %v917_v9 = vpack.c.bf16 %v873_v14, %v873_v14  ;;  %981 = vst.msk [vmem:[%s1674_s7 + $0x1a] sm:$0x3] %vm661_vm2, %v916_v22  ;;  %v853_v24 = vpop.permute.xlu1 %852 }
 0x2b6   :  { %v863_v25 = vsel %vm33_vm0, %v755_v40, %v853_v24 }
 0x2b7   :  { %982 = vst.msk [vmem:[%s1674_s7 + $0x1e] sm:$0x3] %vm661_vm2, %v917_v9  ;;  %v871_v6 = vcombine.high %v863_v25, %v863_v25  ;;  %v912_v26 = vpack.c.bf16 %v863_v25, %v863_v25 }
 0x2b9   :  { %v913_v27 = vpack.c.bf16 %v871_v6, %v871_v6  ;;  %977 = vst.msk [vmem:[%s1674_s7 + $0xa] sm:$0x3] %vm661_vm2, %v912_v26  ;;  %v889_v52 = vpop.permute.xlu1 %888 }
 0x2ba   :  { %v897_v28 = vsel %vm33_vm0, %v1496_v51, %v889_v52 }
 0x2bb   :  { %978 = vst.msk [vmem:[%s1674_s7 + $0xe] sm:$0x3] %vm661_vm2, %v913_v27  ;;  %v905_v32 = vcombine.high %v897_v28, %v897_v28  ;;  %v933_v31 = vpack.c.bf16 %v897_v28, %v897_v28 }
 0x2bd   :  { %v934_v33 = vpack.c.bf16 %v905_v32, %v905_v32  ;;  %989 = vst.msk [vmem:[%s1673_s8 + $0x1a] sm:$0x3] %vm661_vm2, %v933_v31 }
 0x2bf   :  { %990 = vst.msk [vmem:[%s1673_s8 + $0x1e] sm:$0x3] %vm661_vm2, %v934_v33 }

// kernel: decoder_more_token.15
= control target key start
LH: loop header
LB: loop body
LE: loop exit
PB: predicated region body
PF: predicated region fallthrough
CT: control target
= control target key end

     0   :  { %s2700_s18 = smov 0   ;;  %s2702_s19 = smov 0   ;;  %s3234_s0 = inlined_call_operand.vmem [shape: bf16[2,10,10,4], index: 0, kind: input, shape index: {}]   ;;  %s3235_s1 = inlined_call_operand.vmem [shape: bf16[9,4,4], index: 1, kind: input, shape index: {}]   ;;  %s3236_s2 = inlined_call_operand.vmem [shape: f32[1,4], index: 2, kind: input, shape index: {}]   ;;  %s3237_s3 = inlined_call_operand.vmem [shape: f32[1,4], index: 3, kind: input, shape index: {}]   ;;  %s3238_s4 = inlined_call_operand.vmem [shape: f32[1,4], index: 4, kind: input, shape index: {}]   ;;  %s3239_s5 = inlined_call_operand.vmem [shape: bf16[2,8,8,4], index: 5, kind: output, shape index: {}]  }
   0x1   :  { %s2704_s20 = smov 0  }
   0x2 LB: > { %s27_s21 = sadd.s32 1, %s2663_s19  ;;  %p2250_p0 = scmp.ge.s32.totalorder %s2667_s20, 1  ;;  %s2667_s20 = sphi %s2704_s20, %s15_s20   ;;  %s2663_s19 = sphi %s2702_s19, %s3245_s19   ;;  %s2659_s18 = sphi %s2700_s18, %s3244_s18  }
   0x3   : > { %p29_p1 = scmp.ge.s32.totalorder %s27_s21, 2  ;;  %p213_p2 = scmp.lt.s32.totalorder %s2667_s20, 3 }
   0x5   : > { %s3247_s21 = smov (%p29_p1, %s27_s21), 0  ;;  %p214_p3 = pnand %p2250_p0, %p213_p2 }
   0x6   : > { %v295_v0 = vld [vmem:[%s3235_s1] sm:$0x3] (!%p214_p3)  ;;  %vm329_vm0 = vcmask (!%p214_p3), 1041408   ;;  %p248_p4 = scmp.lt.s32.totalorder (!%p214_p3), %s2659_s18, 1  ;;  %v2262_v2 = vld [vmem:[%s3235_s1 + $0x2] sm:$0x3] (!%p214_p3) }
   0x7   : > { %217 = sbr.rel (%p214_p3) target bundleno = 668 (0x29c), region = 40  ;;  %2581 = vmatprep.subr.msk.bf16.mxu0 (!%p214_p3), %vm329_vm0, %v295_v0  ;;  %2582 = vmatprep.subr.msk.bf16.mxu1 (!%p214_p3), %vm329_vm0, %v295_v0  ;;  %v331_v1 = vsel (!%p214_p3), %vm329_vm0, %v295_v0, 0  ;;  %v2279_v3 = vld [vmem:[%s3235_s1 + $0x4] sm:$0x3] (!%p214_p3)  ;;  %vm270_vm1 = vcmask (!%p214_p3), 31744   ;;  %v2669_v6 = vmov (!%p214_p3), 0.0  }
   0x8   : > { %2490 = vmatpush3.bf16.msra.mxu0 (!%p214_p3), %v331_v1  ;;  %2580 = vmatpush3.bf16.msra.mxu1 (!%p214_p3), %v331_v1  ;;  %v2296_v4 = vld [vmem:[%s3235_s1 + $0x6] sm:$0x3] (!%p214_p3)  ;;  %v2321_v5 = vld [vmem:[%s3235_s1 + $0x8] sm:$0x3] (!%p214_p3)  ;;  %273 = vst.msk [vmem:[#allocation2 + $0x10] sm:$0xff] (!%p214_p3), %vm270_vm1, %v2669_v6  ;;  %271 = vst.msk [vmem:[#allocation2] sm:$0xff] (!%p214_p3), %vm270_vm1, %v2669_v6 }
   0x9   : > { %2583 = vmatprep.subr.msk.bf16.mxu1 (!%p214_p3), %vm329_vm0, %v2262_v2  ;;  %2584 = vmatprep.subr.msk.bf16.mxu0 (!%p214_p3), %vm329_vm0, %v2279_v3  ;;  %272 = vst.msk [vmem:[#allocation2 + $0x8] sm:$0xff] (!%p214_p3), %vm270_vm1, %v2669_v6  ;;  %274 = vst.msk [vmem:[#allocation2 + $0x18] sm:$0xff] (!%p214_p3), %vm270_vm1, %v2669_v6  ;;  %v580_v7 = vsel (!%p214_p3), %vm329_vm0, %v2262_v2, 0  ;;  %vm430_vm2 = vsmask.f32 (!%p214_p3), 3328  ;;  %v765_v8 = vsel (!%p214_p3), %vm329_vm0, %v2279_v3, 0 }
   0xa   : > { %275 = vst.msk [vmem:[#allocation2 + $0x20] sm:$0xff] (!%p214_p3), %vm270_vm1, %v2669_v6  ;;  %276 = vst.msk [vmem:[#allocation2 + $0x28] sm:$0xff] (!%p214_p3), %vm270_vm1, %v2669_v6  ;;  %vm431_vm3 = vsmask.f32 (!%p214_p3), 7440  ;;  %v2757_v9 = vsel (!%p214_p3), %vm329_vm0, %v2296_v4, 0  ;;  %v2760_v10 = vsel (!%p214_p3), %vm329_vm0, %v2321_v5, 0 }
   0xb   : > { %277 = vst.msk [vmem:[#allocation2 + $0x30] sm:$0xff] (!%p214_p3), %vm270_vm1, %v2669_v6  ;;  %278 = vst.msk [vmem:[#allocation2 + $0x38] sm:$0xff] (!%p214_p3), %vm270_vm1, %v2669_v6  ;;  %vm695_vm4 = vcmask (!%p214_p3), 1042432   ;;  %vm696_vm5 = vcmask (!%p214_p3), 1046532   ;;  %vm2151_vm8 = vcmask (!%p214_p3), 27648  }
   0xc   : > { %vm2783_vm6 = vmor (!%p214_p3), %vm430_vm2, %vm431_vm3 }
   0xd   : > { %vm2802_vm7 = vmor (!%p214_p3), %vm695_vm4, %vm696_vm5 }
   0xe   : > { %s3249_s18 = smov (!%p248_p4, %s2659_s18), 1 }
   0xf   : > { %s2591_s7 = smul.u32 80, %s3249_s18  ;;  %s2443_s29 = sshll.u32 %s3249_s18, 5 }
  0x11   : > { %s2753_s10 = scalar_lea.vmem %s3234_s0, %s2591_s7  ;;  %s3196_s7 = scalar_lea.vmem %s3239_s5, %s2443_s29 }
  0x12   : > { %v2617_v11 = vld [vmem:[%s2753_s10] ss:$8 sps:$4 sm:$0xff]   ;;  %v2619_v13 = vld [vmem:[%s2753_s10 + $0x10] ss:$8 sps:$4 sm:$0xff]   ;;  %v415_v16 = vld [vmem:[%s2753_s10 + $0x4] sm:$0x1] }
  0x13   : > { %v2618_v12 = vld [vmem:[%s2753_s10 + $0x20] ss:$8 sps:$4 sm:$0xff]   ;;  %2491 = vmatprep.mubr.msk.bf16.mxu0 %vm270_vm1, %v2617_v11  ;;  %v2620_v14 = vld [vmem:[%s2753_s10 + $0x30] ss:$8 sps:$4 sm:$0xff]   ;;  %v417_v18 = vld [vmem:[%s2753_s10 + $0xc] sm:$0x1] }
  0x14   : > { %2495 = vmatprep.mubr.msk.bf16.mxu1 %vm270_vm1, %v2618_v12  ;;  %2492 = vmatmul.mubr.msk.bf16.vlgmr.msra.gmra.mrb[0].mxu0 %vm270_vm1, %v2619_v13  ;;  %v414_v15 = vld [vmem:[%s2753_s10] sm:$0xf]  ;;  %v416_v17 = vld [vmem:[%s2753_s10 + $0x8] sm:$0xf]  ;;  %v443_v21 = vshll.u32 %v415_v16, 16  ;;  %v457_v24 = vshll.u32 %v417_v18, 16 }
  0x15   : > { %2496 = vmatmul.mubr.msk.bf16.vlgmr.msra.gmra.mrb[0].mxu1 %vm270_vm1, %v2620_v14  ;;  %v434_v19 = vshrl.u32 %v414_v15, 16  ;;  %v437_v20 = vshll.u32 %v414_v15, 16  ;;  %v448_v22 = vshrl.u32 %v416_v17, 16  ;;  %2510 = vmatpush3.bf16.msra.mxu0 %v765_v8  ;;  %v451_v23 = vshll.u32 %v416_v17, 16  ;;  %v418_v25 = vld [vmem:[%s2753_s10 + $0x10] sm:$0xf] }
  0x16   : > { %2500 = vmatpush3.bf16.msra.mxu1 %v580_v7  ;;  %v419_v26 = vld [vmem:[%s2753_s10 + $0x14] sm:$0x1]  ;;  %2586 = vmatprep.subr.msk.bf16.mxu0 %vm329_vm0, %v2321_v5  ;;  %v445_v29 = vrot.slane %v443_v21, 5  ;;  %v420_v31 = vld [vmem:[%s2753_s10 + $0x18] sm:$0xf]  ;;  %v459_v33 = vrot.slane %v457_v24, 5 }
  0x17   : > { %v436_v27 = vrot.slane %v434_v19, 4  ;;  %v439_v28 = vrot.slane %v437_v20, 5  ;;  %v450_v30 = vrot.slane %v448_v22, 4  ;;  %2585 = vmatprep.subr.msk.bf16.mxu1 %vm329_vm0, %v2296_v4  ;;  %v453_v32 = vrot.slane %v451_v23, 5  ;;  %v421_v34 = vld [vmem:[%s2753_s10 + $0x1c] sm:$0x1] }
  0x18   : > { %v462_v35 = vshrl.u32 %v418_v25, 16  ;;  %v465_v36 = vshll.u32 %v418_v25, 16  ;;  %v471_v38 = vshll.u32 %v419_v26, 16  ;;  %v476_v39 = vshrl.u32 %v420_v31, 16  ;;  %v422_v41 = vld [vmem:[%s2753_s10 + $0x20] sm:$0xf] }
  0x19   : > { %v440_v37 = vor.u32 %v439_v28, %v436_v27  ;;  %v479_v40 = vshll.u32 %v420_v31, 16  ;;  %v454_v43 = vor.u32 %v453_v32, %v450_v30  ;;  %v485_v46 = vshll.u32 %v421_v34, 16  ;;  %v423_v47 = vld [vmem:[%s2753_s10 + $0x24] sm:$0x1]  ;;  %v424_v52 = vld [vmem:[%s2753_s10 + $0x28] sm:$0xf] }
  0x1a   : > { %v464_v44 = vrot.slane %v462_v35, 4  ;;  %v467_v45 = vrot.slane %v465_v36, 5  ;;  %v473_v49 = vrot.slane %v471_v38, 5  ;;  %v478_v50 = vrot.slane %v476_v39, 4  ;;  %v425_v56 = vld [vmem:[%s2753_s10 + $0x2c] sm:$0x1] }
  0x1b   : > { %v441_v48 = vrot.slane %v440_v37, 4  ;;  %v481_v51 = vrot.slane %v479_v40, 5  ;;  %v455_v53 = vrot.slane %v454_v43, 4  ;;  %v487_v55 = vrot.slane %v485_v46, 5  ;;  %v663_v62 = vld [vmem:[%s2753_s10] sm:$0xe] }
  0x1c   : > { %v468_v54 = vor.u32 %v467_v45, %v464_v44  ;;  %v490_v57 = vshrl.u32 %v422_v41, 16  ;;  %v493_v60 = vshll.u32 %v422_v41, 16  ;;  %v499_v61 = vshll.u32 %v423_v47, 16  ;;  %v664_v63 = vld [vmem:[%s2753_s10 + $0x4] sm:$0x1] }
  0x1d   : > { %v446_v58 = vsel %vm2783_vm6, %v441_v48, %v445_v29  ;;  %v482_v59 = vor.u32 %v481_v51, %v478_v50  ;;  %v460_v0 = vsel %vm2783_vm6, %v455_v53, %v459_v33  ;;  %v504_v3 = vshrl.u32 %v424_v52, 16  ;;  %v665_v4 = vld [vmem:[%s2753_s10 + $0x8] sm:$0xe]  ;;  %v666_v11 = vld [vmem:[%s2753_s10 + $0xc] sm:$0x1] }
  0x1e   : > { %v469_v1 = vrot.slane %v468_v54, 4  ;;  %v492_v2 = vrot.slane %v490_v57, 4  ;;  %v2263_v5 = vcombine.low %v446_v58, %v460_v0  ;;  %v495_v7 = vrot.slane %v493_v60, 5  ;;  %v426_v17 = vld [vmem:[%s2753_s10 + $0x30] sm:$0xf] }
  0x1f   : > { %v483_v6 = vrot.slane %v482_v59, 4  ;;  %v501_v8 = vrot.slane %v499_v61, 5  ;;  %v506_v13 = vrot.slane %v504_v3, 4  ;;  %v507_v14 = vshll.u32 %v424_v52, 16  ;;  %v427_v22 = vld [vmem:[%s2753_s10 + $0x34] sm:$0x1] }
  0x20   : > { %v474_v12 = vsel %vm2783_vm6, %v469_v1, %v473_v49  ;;  %v513_v15 = vshll.u32 %v425_v56, 16  ;;  %2501 = vmatprep.mubr.msk.bf16.mxu1 %vm270_vm1, %v2263_v5  ;;  %v496_v19 = vor.u32 %v495_v7, %v492_v2  ;;  %v2271_v20 = vrot.slane %v663_v62, 9  ;;  %v428_v23 = vld [vmem:[%s2753_s10 + $0x38] sm:$0xf]  ;;  %v2815_v24 = vld [vmem:[%s3235_s1 + $0xa] sm:$0x3] }
  0x21   : > { %v488_v18 = vsel %vm2783_vm6, %v483_v6, %v487_v55  ;;  %v700_v21 = vrot.slane %v664_v63, 5  ;;  %v509_v26 = vrot.slane %v507_v14, 5  ;;  %v2272_v28 = vrot.slane %v665_v4, 9  ;;  %v429_v29 = vld [vmem:[%s2753_s10 + $0x3c] sm:$0x1] }
  0x22   : > { %v2264_v25 = vcombine.low %v474_v12, %v488_v18  ;;  %v515_v27 = vrot.slane %v513_v15, 5  ;;  %v497_v30 = vrot.slane %v496_v19, 4  ;;  %v704_v32 = vrot.slane %v666_v11, 5  ;;  %v667_v34 = vld [vmem:[%s2753_s10 + $0x10] sm:$0xe] }
  0x23   : > { %v701_v31 = vsel %vm2802_vm7, %v2271_v20, %v700_v21  ;;  %v518_v33 = vshrl.u32 %v426_v17, 16  ;;  %v510_v35 = vor.u32 %v509_v26, %v506_v13  ;;  %v521_v36 = vshll.u32 %v426_v17, 16  ;;  %v668_v39 = vld [vmem:[%s2753_s10 + $0x14] sm:$0x1]  ;;  %v669_v45 = vld [vmem:[%s2753_s10 + $0x18] sm:$0xe] }
  0x24   : > { %2502 = vmatmul.mubr.msk.bf16.vlgmr.msra.gmra.mrb[4].mxu1 %vm270_vm1, %v2264_v25  ;;  %v527_v37 = vshll.u32 %v427_v22, 16  ;;  %v532_v38 = vshrl.u32 %v428_v23, 16  ;;  %v502_v40 = vsel %vm2783_vm6, %v497_v30, %v501_v8  ;;  %v705_v41 = vsel %vm2802_vm7, %v2272_v28, %v704_v32  ;;  %v670_v46 = vld [vmem:[%s2753_s10 + $0x1c] sm:$0x1]  ;;  %v671_v51 = vld [vmem:[%s2753_s10 + $0x20] sm:$0xe] }
  0x25   : > { %2520 = vmatpush3.bf16.msra.mxu1 %v2757_v9  ;;  %v520_v43 = vrot.slane %v518_v33, 4  ;;  %v535_v44 = vshll.u32 %v428_v23, 16  ;;  %v511_v47 = vrot.slane %v510_v35, 4  ;;  %v2280_v48 = vcombine.low %v701_v31, %v705_v41  ;;  %v672_v55 = vld [vmem:[%s2753_s10 + $0x24] sm:$0x1] }
  0x26   : > { %v523_v49 = vrot.slane %v521_v36, 5  ;;  %v529_v50 = vrot.slane %v527_v37, 5  ;;  %2587 = vmatprep.subr.msk.bf16.mxu1 %vm329_vm0, %v2815_v24  ;;  %v534_v9 = vrot.slane %v532_v38, 4  ;;  %v541_v53 = vshll.u32 %v429_v29, 16  ;;  %v673_v60 = vld [vmem:[%s2753_s10 + $0x28] sm:$0xe] }
  0x27   : > { %v537_v52 = vrot.slane %v535_v44, 5  ;;  %v2273_v54 = vrot.slane %v667_v34, 9  ;;  %v516_v56 = vsel %vm2783_vm6, %v511_v47, %v515_v27  ;;  %2511 = vmatprep.mubr.msk.bf16.mxu0 %vm270_vm1, %v2280_v48  ;;  %v708_v58 = vrot.slane %v668_v39, 5  ;;  %v674_v61 = vld [vmem:[%s2753_s10 + $0x2c] sm:$0x1] }
  0x28   : > { %v524_v57 = vor.u32 %v523_v49, %v520_v43  ;;  %v2274_v59 = vrot.slane %v669_v45, 9  ;;  %v2265_v62 = vcombine.low %v502_v40, %v516_v56  ;;  %v543_v0 = vrot.slane %v541_v53, 5  ;;  %v675_v2 = vld [vmem:[%s2753_s10 + $0x30] sm:$0xe]  ;;  %v676_v3 = vld [vmem:[%s2753_s10 + $0x34] sm:$0x1] }
  0x29   : > { %v538_v63 = vor.u32 %v537_v52, %v534_v9  ;;  %v712_v1 = vrot.slane %v670_v46, 5  ;;  %v709_v5 = vsel %vm2802_vm7, %v2273_v54, %v708_v58  ;;  %v2275_v6 = vrot.slane %v671_v51, 9  ;;  %v677_v8 = vld [vmem:[%s2753_s10 + $0x38] sm:$0xe]  ;;  %v678_v15 = vld [vmem:[%s2753_s10 + $0x3c] sm:$0x1] }
  0x2a   : > { %v525_v4 = vrot.slane %v524_v57, 4  ;;  %v716_v7 = vrot.slane %v672_v55, 5  ;;  %2505 = vmatprep.mubr.msk.bf16.mxu1 %vm270_vm1, %v2265_v62  ;;  %v2276_v13 = vrot.slane %v673_v60, 9  ;;  %v720_v14 = vrot.slane %v674_v61, 5  ;;  %v2371_v17 = vld [vmem:[%s3235_s1 + $0xc] sm:$0x3] }
  0x2b   : > { %v539_v11 = vrot.slane %v538_v63, 4  ;;  %v713_v12 = vsel %vm2802_vm7, %v2274_v59, %v712_v1  ;;  %v2854_v18 = vld [vmem:[%s3235_s1 + $0xe] sm:$0x3]  ;;  %v2277_v22 = vrot.slane %v675_v2, 9  ;;  %v724_v26 = vrot.slane %v676_v3, 5 }
  0x2c   : > { %v530_v19 = vsel %vm2783_vm6, %v525_v4, %v529_v50  ;;  %v2281_v20 = vcombine.low %v709_v5, %v713_v12  ;;  %v717_v21 = vsel %vm2802_vm7, %v2275_v6, %v716_v7  ;;  %v721_v25 = vsel %vm2802_vm7, %v2276_v13, %v720_v14  ;;  %v2621_v28 = vld [vmem:[%s2753_s10 + $0x8] ss:$8 sps:$4 sm:$0xff]   ;;  %v2306_v37 = vld [vmem:[%s2753_s10 + $0xc] sm:$0x1]  ;;  %v2622_v39 = vld [vmem:[%s2753_s10 + $0x18] ss:$8 sps:$4 sm:$0xff]  }
  0x2d   : > { %v544_v23 = vsel %vm2783_vm6, %v539_v11, %v543_v0  ;;  %v2278_v27 = vrot.slane %v677_v8, 9  ;;  %v2282_v30 = vcombine.low %v717_v21, %v721_v25  ;;  %v728_v31 = vrot.slane %v678_v15, 5  ;;  %v2307_v38 = vld [vmem:[%s2753_s10 + $0x10] sm:$0xf]  ;;  %v2308_v40 = vld [vmem:[%s2753_s10 + $0x14] sm:$0x1] }
  0x2e   : > { %v2266_v29 = vcombine.low %v530_v19, %v544_v23  ;;  %2512 = vmatmul.mubr.msk.bf16.vlgmr.msra.gmra.mrb[4].mxu0 %vm270_vm1, %v2281_v20  ;;  %v725_v32 = vsel %vm2802_vm7, %v2277_v22, %v724_v26  ;;  %v1328_v33 = vsel %vm329_vm0, %v2815_v24, 0  ;;  %v2876_v35 = vsel %vm329_vm0, %v2371_v17, 0  ;;  %v2305_v24 = vld [vmem:[%s2753_s10 + $0x8] sm:$0xf]  ;;  %v2309_v49 = vld [vmem:[%s2753_s10 + $0x18] sm:$0xf] }
  0x2f   : > { %2530 = vmatpush3.bf16.msra.mxu0 %v2760_v10  ;;  %2515 = vmatprep.mubr.msk.bf16.mxu0 %vm270_vm1, %v2282_v30  ;;  %v729_v34 = vsel %vm2802_vm7, %v2278_v27, %v728_v31  ;;  %v2880_v10 = vsel %vm329_vm0, %v2854_v18, 0  ;;  %v1000_v41 = vshrl.u32 %v2305_v24, 16  ;;  %v1003_v43 = vshll.u32 %v2305_v24, 16  ;;  %v2623_v46 = vld [vmem:[%s2753_s10 + $0x28] ss:$8 sps:$4 sm:$0xff]  }
  0x30   : > { %2506 = vmatmul.mubr.msk.bf16.gmra.mrb[8].mxu1 %vm270_vm1, %v2266_v29  ;;  %v2283_v36 = vcombine.low %v725_v32, %v729_v34  ;;  %2588 = vmatprep.subr.msk.bf16.mxu0 %vm329_vm0, %v2371_v17  ;;  %v1009_v44 = vshll.u32 %v2306_v37, 16  ;;  %v1014_v45 = vshrl.u32 %v2307_v38, 16  ;;  %v1017_v47 = vshll.u32 %v2307_v38, 16  ;;  %v2310_v50 = vld [vmem:[%s2753_s10 + $0x1c] sm:$0x1] }
  0x31   : > { %2521 = vmatprep.mubr.msk.bf16.mxu1 %vm270_vm1, %v2621_v28  ;;  %v1023_v48 = vshll.u32 %v2308_v40, 16  ;;  %v1002_v51 = vrot.slane %v1000_v41, 4  ;;  %v1005_v9 = vrot.slane %v1003_v43, 5  ;;  %v2311_v54 = vld [vmem:[%s2753_s10 + $0x20] sm:$0xf]  ;;  %v1028_v58 = vshrl.u32 %v2309_v49, 16 }
  0x32   : > { %v1011_v52 = vrot.slane %v1009_v44, 5  ;;  %v1016_v53 = vrot.slane %v1014_v45, 4  ;;  %v1019_v55 = vrot.slane %v1017_v47, 5  ;;  %v2312_v57 = vld [vmem:[%s2753_s10 + $0x24] sm:$0x1]  ;;  %v1031_v59 = vshll.u32 %v2309_v49, 16 }
  0x33   : > { %v1025_v56 = vrot.slane %v1023_v48, 5  ;;  %v1006_v60 = vor.u32 %v1005_v9, %v1002_v51  ;;  %v1037_v61 = vshll.u32 %v2310_v50, 16  ;;  %v1042_v62 = vshrl.u32 %v2311_v54, 16  ;;  %v2313_v0 = vld [vmem:[%s2753_s10 + $0x28] sm:$0xf] }
  0x34   : > { %v1045_v63 = vshll.u32 %v2311_v54, 16  ;;  %v1020_v1 = vor.u32 %v1019_v55, %v1016_v53  ;;  %v1030_v2 = vrot.slane %v1028_v58, 4  ;;  %v1033_v3 = vrot.slane %v1031_v59, 5  ;;  %v2314_v5 = vld [vmem:[%s2753_s10 + $0x2c] sm:$0x1] }
  0x35   : > { %v1051_v4 = vshll.u32 %v2312_v57, 16  ;;  %v1007_v6 = vrot.slane %v1006_v60, 4  ;;  %v1039_v7 = vrot.slane %v1037_v61, 5  ;;  %v1044_v8 = vrot.slane %v1042_v62, 4  ;;  %v2315_v12 = vld [vmem:[%s2753_s10 + $0x30] sm:$0xf] }
  0x36   : > { %2516 = vmatmul.mubr.msk.bf16.gmra.mrb[8].mxu0 %vm270_vm1, %v2283_v36  ;;  %v1047_v11 = vrot.slane %v1045_v63, 5  ;;  %v1021_v13 = vrot.slane %v1020_v1, 4  ;;  %v1034_v14 = vor.u32 %v1033_v3, %v1030_v2  ;;  %v1056_v17 = vshrl.u32 %v2313_v0, 16  ;;  %v2624_v19 = vld [vmem:[%s2753_s10 + $0x38] ss:$8 sps:$4 sm:$0xff]  }
  0x37   : > { %v1053_v15 = vrot.slane %v1051_v4, 5  ;;  %v1012_v20 = vsel %vm2783_vm6, %v1007_v6, %v1011_v52  ;;  %v2316_v22 = vld [vmem:[%s2753_s10 + $0x34] sm:$0x1]  ;;  %v1059_v23 = vshll.u32 %v2313_v0, 16  ;;  %v1065_v25 = vshll.u32 %v2314_v5, 16 }
  0x38   : > { %2522 = vmatmul.mubr.msk.bf16.vlgmr.msra.gmra.mrb[12].mxu1 %vm270_vm1, %v2622_v39  ;;  %v1048_v21 = vor.u32 %v1047_v11, %v1044_v8  ;;  %v2317_v26 = vld [vmem:[%s2753_s10 + $0x38] sm:$0xf]  ;;  %v1026_v27 = vsel %vm2783_vm6, %v1021_v13, %v1025_v56  ;;  %v1035_v28 = vrot.slane %v1034_v14, 4  ;;  %v1058_v29 = vrot.slane %v1056_v17, 4  ;;  %v2318_v31 = vld [vmem:[%s2753_s10 + $0x3c] sm:$0x1] }
  0x39   : > { %2540 = vmatpush3.bf16.msra.mxu1 %v1328_v33  ;;  %2525 = vmatprep.mubr.msk.bf16.mxu1 %vm270_vm1, %v2623_v46  ;;  %v1070_v30 = vshrl.u32 %v2315_v12, 16  ;;  %v2322_v32 = vcombine.low %v1012_v20, %v1026_v27  ;;  %v1061_v34 = vrot.slane %v1059_v23, 5  ;;  %v1067_v36 = vrot.slane %v1065_v25, 5  ;;  %v2319_v24 = vld [vmem:[%s2753_s10 + $0x40] sm:$0xf] }
  0x3a   : > { %2589 = vmatprep.subr.msk.bf16.mxu1 %vm329_vm0, %v2854_v18  ;;  %v1049_v33 = vrot.slane %v1048_v21, 4  ;;  %v1040_v37 = vsel %vm2783_vm6, %v1035_v28, %v1039_v7  ;;  %v1073_v18 = vshll.u32 %v2315_v12, 16  ;;  %v1079_v39 = vshll.u32 %v2316_v22, 16  ;;  %v2320_v40 = vld [vmem:[%s2753_s10 + $0x44] sm:$0x1] }
  0x3b   : > { %v1072_v38 = vrot.slane %v1070_v30, 4  ;;  %2531 = vmatprep.mubr.msk.bf16.mxu0 %vm270_vm1, %v2322_v32  ;;  %v1062_v43 = vor.u32 %v1061_v34, %v1058_v29  ;;  %v1084_v44 = vshrl.u32 %v2317_v26, 16  ;;  %v1087_v45 = vshll.u32 %v2317_v26, 16  ;;  %v2330_v46 = vld [vmem:[%s2753_s10 + $0x8] sm:$0xe] }
  0x3c   : > { %v1054_v41 = vsel %vm2783_vm6, %v1049_v33, %v1053_v15  ;;  %v2331_v47 = vld [vmem:[%s2753_s10 + $0xc] sm:$0x1]  ;;  %v2922_v48 = vld [vmem:[%s3235_s1 + $0x10] sm:$0x3]  ;;  %v1075_v50 = vrot.slane %v1073_v18, 5  ;;  %v1081_v51 = vrot.slane %v1079_v39, 5 }
  0x3d   : > { %v2323_v49 = vcombine.low %v1040_v37, %v1054_v41  ;;  %v1093_v9 = vshll.u32 %v2318_v31, 16  ;;  %v2332_v52 = vld [vmem:[%s2753_s10 + $0x10] sm:$0xe]  ;;  %v2333_v53 = vld [vmem:[%s2753_s10 + $0x14] sm:$0x1]  ;;  %v1063_v54 = vrot.slane %v1062_v43, 4 }
  0x3e   : > { %v1086_v55 = vrot.slane %v1084_v44, 4  ;;  %v1089_v56 = vrot.slane %v1087_v45, 5  ;;  %v1098_v57 = vshrl.u32 %v2319_v24, 16  ;;  %v2334_v58 = vld [vmem:[%s2753_s10 + $0x18] sm:$0xe]  ;;  %v1076_v59 = vor.u32 %v1075_v50, %v1072_v38 }
  0x3f   : > { %2532 = vmatmul.mubr.msk.bf16.vlgmr.msra.gmra.mrb[12].mxu0 %vm270_vm1, %v2323_v49  ;;  %v1095_v60 = vrot.slane %v1093_v9, 5  ;;  %v1101_v61 = vshll.u32 %v2319_v24, 16  ;;  %v1107_v62 = vshll.u32 %v2320_v40, 16  ;;  %v2335_v63 = vld [vmem:[%s2753_s10 + $0x1c] sm:$0x1]  ;;  %v1068_v0 = vsel %vm2783_vm6, %v1063_v54, %v1067_v36 }
  0x40   : > { %2526 = vmatmul.mubr.msk.bf16.gmra.mrb[16].mxu1 %vm270_vm1, %v2624_v19  ;;  %2550 = vmatpush3.bf16.msra.mxu0 %v2876_v35  ;;  %v1090_v1 = vor.u32 %v1089_v56, %v1086_v55  ;;  %v1100_v2 = vrot.slane %v1098_v57, 4  ;;  %v2346_v3 = vrot.slane %v2330_v46, 9  ;;  %v2336_v4 = vld [vmem:[%s2753_s10 + $0x20] sm:$0xe]  ;;  %v2337_v5 = vld [vmem:[%s2753_s10 + $0x24] sm:$0x1] }
  0x41   : > { %v1077_v6 = vrot.slane %v1076_v59, 4  ;;  %v1103_v7 = vrot.slane %v1101_v61, 5  ;;  %v1109_v8 = vrot.slane %v1107_v62, 5  ;;  %v1263_v11 = vrot.slane %v2331_v47, 5  ;;  %v2338_v12 = vld [vmem:[%s2753_s10 + $0x28] sm:$0xe]  ;;  %2590 = vmatprep.subr.msk.bf16.mxu0 %vm329_vm0, %v2922_v48 }
  0x42   : > { %v1091_v35 = vrot.slane %v1090_v1, 4  ;;  %v2347_v13 = vrot.slane %v2332_v52, 9  ;;  %v1267_v14 = vrot.slane %v2333_v53, 5  ;;  %v2348_v15 = vrot.slane %v2334_v58, 9  ;;  %v2339_v17 = vld [vmem:[%s2753_s10 + $0x2c] sm:$0x1] }
  0x43   : > { %v1082_v19 = vsel %vm2783_vm6, %v1077_v6, %v1081_v51  ;;  %v1104_v20 = vor.u32 %v1103_v7, %v1100_v2  ;;  %v1264_v21 = vsel %vm2802_vm7, %v2346_v3, %v1263_v11  ;;  %v1271_v22 = vrot.slane %v2335_v63, 5  ;;  %v2340_v23 = vld [vmem:[%s2753_s10 + $0x30] sm:$0xe]  ;;  %v2341_v25 = vld [vmem:[%s2753_s10 + $0x34] sm:$0x1] }
  0x44   : > { %v2324_v26 = vcombine.low %v1068_v0, %v1082_v19  ;;  %v1096_v27 = vsel %vm2783_vm6, %v1091_v35, %v1095_v60  ;;  %v1268_v28 = vsel %vm2802_vm7, %v2347_v13, %v1267_v14  ;;  %v2349_v29 = vrot.slane %v2336_v4, 9  ;;  %v2342_v30 = vld [vmem:[%s2753_s10 + $0x38] sm:$0xe]  ;;  %v2343_v31 = vld [vmem:[%s2753_s10 + $0x3c] sm:$0x1] }
  0x45   : > { %v1105_v32 = vrot.slane %v1104_v20, 4  ;;  %v2355_v33 = vcombine.low %v1264_v21, %v1268_v28  ;;  %v1272_v34 = vsel %vm2802_vm7, %v2348_v15, %v1271_v22  ;;  %v1275_v36 = vrot.slane %v2337_v5, 5  ;;  %v2344_v24 = vld [vmem:[%s2753_s10 + $0x40] sm:$0xe]  ;;  %v2345_v37 = vld [vmem:[%s2753_s10 + $0x44] sm:$0x1] }
  0x46   : > { %2535 = vmatprep.mubr.msk.bf16.mxu0 %vm270_vm1, %v2324_v26  ;;  %v2350_v38 = vrot.slane %v2338_v12, 9  ;;  %v1279_v18 = vrot.slane %v2339_v17, 5  ;;  %v2351_v39 = vrot.slane %v2340_v23, 9  ;;  %v1283_v40 = vrot.slane %v2341_v25, 5  ;;  %v2625_v51 = vld [vmem:[%s2753_s10 + $0x10] ss:$8 sps:$4 sm:$0xff]  }
  0x47   : > { %v1110_v41 = vsel %vm2783_vm6, %v1105_v32, %v1109_v8  ;;  %2541 = vmatprep.mubr.msk.bf16.mxu1 %vm270_vm1, %v2355_v33  ;;  %v1276_v43 = vsel %vm2802_vm7, %v2349_v29, %v1275_v36  ;;  %v2352_v44 = vrot.slane %v2342_v30, 9  ;;  %v1287_v45 = vrot.slane %v2343_v31, 5  ;;  %v2380_v57 = vld [vmem:[%s2753_s10 + $0x10] sm:$0xf]  ;;  %v2381_v58 = vld [vmem:[%s2753_s10 + $0x14] sm:$0x1] }
  0x48   : > { %v2325_v46 = vcombine.low %v1096_v27, %v1110_v41  ;;  %v2356_v47 = vcombine.low %v1272_v34, %v1276_v43  ;;  %v1280_v49 = vsel %vm2802_vm7, %v2350_v38, %v1279_v18  ;;  %v1284_v50 = vsel %vm2802_vm7, %v2351_v39, %v1283_v40  ;;  %v2626_v59 = vld [vmem:[%s2753_s10 + $0x20] ss:$8 sps:$4 sm:$0xff]   ;;  %v2383_v60 = vld [vmem:[%s2753_s10 + $0x1c] sm:$0x1]  ;;  %v2627_v63 = vld [vmem:[%s2753_s10 + $0x30] ss:$8 sps:$4 sm:$0xff]  }
  0x49   : > { %v2357_v9 = vcombine.low %v1280_v49, %v1284_v50  ;;  %v2353_v52 = vrot.slane %v2344_v24, 9  ;;  %v1291_v53 = vrot.slane %v2345_v37, 5  ;;  %v1288_v54 = vsel %vm2802_vm7, %v2352_v44, %v1287_v45  ;;  %v2384_v4 = vld [vmem:[%s2753_s10 + $0x20] sm:$0xf]  ;;  %v2385_v7 = vld [vmem:[%s2753_s10 + $0x24] sm:$0x1] }
  0x4a   : > { %2536 = vmatmul.mubr.msk.bf16.gmra.mrb[16].mxu0 %vm270_vm1, %v2325_v46  ;;  %2542 = vmatmul.mubr.msk.bf16.vlgmr.msra.gmra.mrb[20].mxu1 %vm270_vm1, %v2356_v47  ;;  %v1891_v56 = vsel %vm329_vm0, %v2922_v48, 0  ;;  %v1563_v61 = vshrl.u32 %v2380_v57, 16  ;;  %v1566_v62 = vshll.u32 %v2380_v57, 16  ;;  %v1572_v0 = vshll.u32 %v2381_v58, 16  ;;  %v2386_v8 = vld [vmem:[%s2753_s10 + $0x28] sm:$0xf] }
  0x4b   : > { %2560 = vmatpush3.bf16.msra.mxu1 %v2880_v10  ;;  %2545 = vmatprep.mubr.msk.bf16.mxu1 %vm270_vm1, %v2357_v9  ;;  %v1292_v55 = vsel %vm2802_vm7, %v2353_v52, %v1291_v53  ;;  %v2382_v10 = vld [vmem:[%s2753_s10 + $0x18] sm:$0xf]  ;;  %v1586_v3 = vshll.u32 %v2383_v60, 16  ;;  %v2387_v14 = vld [vmem:[%s2753_s10 + $0x2c] sm:$0x1]  ;;  %v1591_v17 = vshrl.u32 %v2384_v4, 16 }
  0x4c   : > { %2551 = vmatprep.mubr.msk.bf16.mxu0 %vm270_vm1, %v2625_v51  ;;  %v1577_v1 = vshrl.u32 %v2382_v10, 16  ;;  %v1580_v2 = vshll.u32 %v2382_v10, 16  ;;  %v2358_v48 = vcombine.low %v1288_v54, %v1292_v55  ;;  %v1565_v5 = vrot.slane %v1563_v61, 4  ;;  %v2388_v21 = vld [vmem:[%s2753_s10 + $0x30] sm:$0xf] }
  0x4d   : > { %v1568_v6 = vrot.slane %v1566_v62, 5  ;;  %v1574_v11 = vrot.slane %v1572_v0, 5  ;;  %v1588_v13 = vrot.slane %v1586_v3, 5  ;;  %v1594_v19 = vshll.u32 %v2384_v4, 16  ;;  %v2389_v27 = vld [vmem:[%s2753_s10 + $0x34] sm:$0x1] }
  0x4e   : > { %v1579_v12 = vrot.slane %v1577_v1, 4  ;;  %v1582_v35 = vrot.slane %v1580_v2, 5  ;;  %v1600_v20 = vshll.u32 %v2385_v7, 16  ;;  %v1605_v23 = vshrl.u32 %v2386_v8, 16  ;;  %v2390_v32 = vld [vmem:[%s2753_s10 + $0x38] sm:$0xf] }
  0x4f   : > { %v1569_v15 = vor.u32 %v1568_v6, %v1565_v5  ;;  %v1608_v25 = vshll.u32 %v2386_v8, 16  ;;  %v1614_v26 = vshll.u32 %v2387_v14, 16  ;;  %v1593_v29 = vrot.slane %v1591_v17, 4  ;;  %v2628_v37 = vld [vmem:[%s2753_s10 + $0x40] ss:$8 sps:$4 sm:$0xff]  }
  0x50   : > { %v1583_v22 = vor.u32 %v1582_v35, %v1579_v12  ;;  %v1596_v30 = vrot.slane %v1594_v19, 5  ;;  %v1602_v31 = vrot.slane %v1600_v20, 5  ;;  %v1607_v34 = vrot.slane %v1605_v23, 4  ;;  %v2391_v39 = vld [vmem:[%s2753_s10 + $0x3c] sm:$0x1] }
  0x51   : > { %v1570_v28 = vrot.slane %v1569_v15, 4  ;;  %v1610_v36 = vrot.slane %v1608_v25, 5  ;;  %v1616_v24 = vrot.slane %v1614_v26, 5  ;;  %v1619_v40 = vshrl.u32 %v2388_v21, 16  ;;  %v2392_v47 = vld [vmem:[%s2753_s10 + $0x40] sm:$0xf] }
  0x52   : > { %2546 = vmatmul.mubr.msk.bf16.gmra.mrb[24].mxu1 %vm270_vm1, %v2358_v48  ;;  %2552 = vmatmul.mubr.msk.bf16.vlgmr.msra.gmra.mrb[20].mxu0 %vm270_vm1, %v2626_v59  ;;  %v1584_v33 = vrot.slane %v1583_v22, 4  ;;  %v1597_v18 = vor.u32 %v1596_v30, %v1593_v29  ;;  %v1622_v41 = vshll.u32 %v2388_v21, 16  ;;  %v1628_v45 = vshll.u32 %v2389_v27, 16  ;;  %v2393_v49 = vld [vmem:[%s2753_s10 + $0x44] sm:$0x1] }
  0x53   : > { %2570 = vmatpush3.bf16.msra.mxu0 %v1891_v56  ;;  %2555 = vmatprep.mubr.msk.bf16.mxu0 %vm270_vm1, %v2627_v63  ;;  %v1575_v38 = vsel %vm2783_vm6, %v1570_v28, %v1574_v11  ;;  %v1611_v44 = vor.u32 %v1610_v36, %v1607_v34  ;;  %v1633_v46 = vshrl.u32 %v2390_v32, 16  ;;  %v1621_v9 = vrot.slane %v1619_v40, 4  ;;  %v2394_v53 = vld [vmem:[%s2753_s10 + $0x48] sm:$0xf]  ;;  %v2395_v58 = vld [vmem:[%s2753_s10 + $0x4c] sm:$0x1] }
  0x54   : > { %v1589_v43 = vsel %vm2783_vm6, %v1584_v33, %v1588_v13  ;;  %v1598_v51 = vrot.slane %v1597_v18, 4  ;;  %v1624_v52 = vrot.slane %v1622_v41, 5  ;;  %v1630_v55 = vrot.slane %v1628_v45, 5  ;;  %v2405_v62 = vld [vmem:[%s2753_s10 + $0x10] sm:$0xe] }
  0x55   : > { %v2397_v50 = vcombine.low %v1575_v38, %v1589_v43  ;;  %v1612_v54 = vrot.slane %v1611_v44, 4  ;;  %v1635_v56 = vrot.slane %v1633_v46, 4  ;;  %v1636_v57 = vshll.u32 %v2390_v32, 16  ;;  %v2406_v63 = vld [vmem:[%s2753_s10 + $0x14] sm:$0x1] }
  0x56   : > { %v1603_v59 = vsel %vm2783_vm6, %v1598_v51, %v1602_v31  ;;  %v1625_v10 = vor.u32 %v1624_v52, %v1621_v9  ;;  %v1642_v60 = vshll.u32 %v2391_v39, 16  ;;  %v1647_v61 = vshrl.u32 %v2392_v47, 16  ;;  %v2407_v4 = vld [vmem:[%s2753_s10 + $0x18] sm:$0xe]  ;;  %v2408_v48 = vld [vmem:[%s2753_s10 + $0x1c] sm:$0x1] }
  0x57   : > { %2561 = vmatprep.mubr.msk.bf16.mxu1 %vm270_vm1, %v2397_v50  ;;  %v1617_v0 = vsel %vm2783_vm6, %v1612_v54, %v1616_v24  ;;  %v1638_v1 = vrot.slane %v1636_v57, 5  ;;  %v1650_v2 = vshll.u32 %v2392_v47, 16  ;;  %v1656_v3 = vshll.u32 %v2393_v49, 16  ;;  %v2409_v11 = vld [vmem:[%s2753_s10 + $0x20] sm:$0xe] }
  0x58   : > { %v2398_v5 = vcombine.low %v1603_v59, %v1617_v0  ;;  %v1626_v6 = vrot.slane %v1625_v10, 4  ;;  %v1644_v7 = vrot.slane %v1642_v60, 5  ;;  %v1649_v8 = vrot.slane %v1647_v61, 4  ;;  %v2410_v15 = vld [vmem:[%s2753_s10 + $0x24] sm:$0x1] }
  0x59   : > { %v1639_v12 = vor.u32 %v1638_v1, %v1635_v56  ;;  %v1652_v35 = vrot.slane %v1650_v2, 5  ;;  %v1658_v13 = vrot.slane %v1656_v3, 5  ;;  %v1661_v14 = vshrl.u32 %v2394_v53, 16  ;;  %v2411_v22 = vld [vmem:[%s2753_s10 + $0x28] sm:$0xe] }
  0x5a   : > { %2556 = vmatmul.mubr.msk.bf16.gmra.mrb[24].mxu0 %vm270_vm1, %v2628_v37  ;;  %2562 = vmatmul.mubr.msk.bf16.vlgmr.msra.gmra.mrb[28].mxu1 %vm270_vm1, %v2398_v5  ;;  %v1631_v17 = vsel %vm2783_vm6, %v1626_v6, %v1630_v55  ;;  %v1664_v19 = vshll.u32 %v2394_v53, 16  ;;  %v1670_v20 = vshll.u32 %v2395_v58, 16  ;;  %v2421_v21 = vrot.slane %v2405_v62, 9  ;;  %v2412_v28 = vld [vmem:[%s2753_s10 + $0x2c] sm:$0x1]  ;;  %v289_v6 = vld [vmem:[#allocation2 + $0x10] sm:$0xff] }
  0x5b   : > { %v1640_v23 = vrot.slane %v1639_v12, 4  ;;  %v1653_v25 = vor.u32 %v1652_v35, %v1649_v8  ;;  %v1663_v26 = vrot.slane %v1661_v14, 4  ;;  %v1826_v27 = vrot.slane %v2406_v63, 5  ;;  %v2413_v33 = vld [vmem:[%s2753_s10 + $0x30] sm:$0xe]  ;;  %v287_v8 = vld [vmem:[#allocation2] sm:$0xff] }
  0x5c   : > { %v1666_v29 = vrot.slane %v1664_v19, 5  ;;  %v1672_v30 = vrot.slane %v1670_v20, 5  ;;  %v2422_v31 = vrot.slane %v2407_v4, 9  ;;  %v1830_v32 = vrot.slane %v2408_v48, 5  ;;  %v2414_v38 = vld [vmem:[%s2753_s10 + $0x34] sm:$0x1] }
  0x5d   : > { %v1645_v34 = vsel %vm2783_vm6, %v1640_v23, %v1644_v7  ;;  %v1654_v36 = vrot.slane %v1653_v25, 4  ;;  %v1827_v24 = vsel %vm2802_vm7, %v2421_v21, %v1826_v27  ;;  %v2423_v37 = vrot.slane %v2409_v11, 9  ;;  %v2415_v18 = vld [vmem:[%s2753_s10 + $0x38] sm:$0xe]  ;;  %v2416_v44 = vld [vmem:[%s2753_s10 + $0x3c] sm:$0x1] }
  0x5e   : > { %v2399_v39 = vcombine.low %v1631_v17, %v1645_v34  ;;  %v1667_v40 = vor.u32 %v1666_v29, %v1663_v26  ;;  %v1831_v41 = vsel %vm2802_vm7, %v2422_v31, %v1830_v32  ;;  %v1834_v43 = vrot.slane %v2410_v15, 5  ;;  %v2417_v45 = vld [vmem:[%s2753_s10 + $0x40] sm:$0xe]  ;;  %v2418_v51 = vld [vmem:[%s2753_s10 + $0x44] sm:$0x1]  ;;  %v293_v7 = vld [vmem:[#allocation2 + $0x30] sm:$0xff] }
  0x5f   : > { %v1659_v46 = vsel %vm2783_vm6, %v1654_v36, %v1658_v13  ;;  %v2430_v47 = vcombine.low %v1827_v24, %v1831_v41  ;;  %v2424_v49 = vrot.slane %v2411_v22, 9  ;;  %v1838_v50 = vrot.slane %v2412_v28, 5  ;;  %v2419_v9 = vld [vmem:[%s2753_s10 + $0x48] sm:$0xe]  ;;  %v2420_v56 = vld [vmem:[%s2753_s10 + $0x4c] sm:$0x1] }
  0x60   : > { %2565 = vmatprep.mubr.msk.bf16.mxu1 %vm270_vm1, %v2399_v39  ;;  %v1668_v52 = vrot.slane %v1667_v40, 4  ;;  %v1835_v53 = vsel %vm2802_vm7, %v2423_v37, %v1834_v43  ;;  %v2425_v54 = vrot.slane %v2413_v33, 9  ;;  %v1842_v55 = vrot.slane %v2414_v38, 5  ;;  %v291_v12 = vld [vmem:[#allocation2 + $0x20] sm:$0xff]  ;;  %v290_v35 = vld [vmem:[#allocation2 + $0x18] sm:$0xff]  ;;  %v288_v19 = vld [vmem:[#allocation2 + $0x8] sm:$0xff] }
  0x61   : > { %2571 = vmatprep.mubr.msk.bf16.mxu0 %vm270_vm1, %v2430_v47  ;;  %v1839_v57 = vsel %vm2802_vm7, %v2424_v49, %v1838_v50  ;;  %v2426_v58 = vrot.slane %v2415_v18, 9  ;;  %v1846_v59 = vrot.slane %v2416_v44, 5  ;;  %v2427_v10 = vrot.slane %v2417_v45, 9  ;;  %v294_v17 = vld [vmem:[#allocation2 + $0x38] sm:$0xff]  ;;  %v292_v23 = vld [vmem:[#allocation2 + $0x28] sm:$0xff] }
  0x62   : > { %v1673_v60 = vsel %vm2783_vm6, %v1668_v52, %v1672_v30  ;;  %v2431_v61 = vcombine.low %v1835_v53, %v1839_v57  ;;  %v1843_v62 = vsel %vm2802_vm7, %v2425_v54, %v1842_v55  ;;  %v1850_v63 = vrot.slane %v2418_v51, 5 }
  0x63   : > { %v2400_v0 = vcombine.low %v1659_v46, %v1673_v60  ;;  %v1847_v1 = vsel %vm2802_vm7, %v2426_v58, %v1846_v59  ;;  %v2428_v2 = vrot.slane %v2419_v9, 9  ;;  %v1854_v3 = vrot.slane %v2420_v56, 5 }
  0x64   : > { %2572 = vmatmul.mubr.msk.bf16.vlgmr.msra.gmra.mrb[28].mxu0 %vm270_vm1, %v2431_v61  ;;  %v2432_v4 = vcombine.low %v1843_v62, %v1847_v1  ;;  %v1851_v42 = vsel %vm2802_vm7, %v2427_v10, %v1850_v63 }
  0x65   : > { %2566 = vmatmul.mubr.msk.bf16.gmra.mrb[32].mxu1 %vm270_vm1, %v2400_v0  ;;  %v1855_v48 = vsel %vm2802_vm7, %v2428_v2, %v1854_v3 }
  0x66   : > { %2575 = vmatprep.mubr.msk.bf16.mxu0 %vm270_vm1, %v2432_v4  ;;  %v2433_v5 = vcombine.low %v1851_v42, %v1855_v48 }
  0x6c   : > { %2576 = vmatmul.mubr.msk.bf16.gmra.mrb[32].mxu0 %vm270_vm1, %v2433_v5 }
  0xe7   : > { %v2493_v11 = vpop.f32.mrb[0].mxu0 }
  0xe8   : > { %v400_v13 = vadd.f32 %v2493_v11, %v289_v6  ;;  %v2497_v14 = vpop.f32.mrb[0].mxu1  ;;  %v367_v15 = vpop.f32.mrb[1].mxu0 }
  0xe9   : > { %v404_v20 = vadd.f32 %v2497_v14, %v293_v7  ;;  %v398_v21 = vadd.f32 %v367_v15, %v287_v8  ;;  %v383_v16 = vpop.f32.mrb[1].mxu1  ;;  %v2494_v22 = vpop.f32.mrb[2].mxu0 }
  0xea   : > { %408 = vst.msk [vmem:[#allocation2 + $0x10] sm:$0xff] %vm270_vm1, %v400_v13  ;;  %v402_v25 = vadd.f32 %v383_v16, %v291_v12  ;;  %v401_v26 = vadd.f32 %v2494_v22, %v290_v35  ;;  %v2498_v27 = vpop.f32.mrb[2].mxu1  ;;  %v370_v28 = vpop.f32.mrb[3].mxu0 }
  0xeb   : > { %412 = vst.msk [vmem:[#allocation2 + $0x30] sm:$0xff] %vm270_vm1, %v404_v20  ;;  %406 = vst.msk [vmem:[#allocation2] sm:$0xff] %vm270_vm1, %v398_v21  ;;  %v405_v29 = vadd.f32 %v2498_v27, %v294_v17  ;;  %v399_v30 = vadd.f32 %v370_v28, %v288_v19  ;;  %v386_v31 = vpop.f32.mrb[3].mxu1 }
  0xec   : > { %410 = vst.msk [vmem:[#allocation2 + $0x20] sm:$0xff] %vm270_vm1, %v402_v25  ;;  %409 = vst.msk [vmem:[#allocation2 + $0x18] sm:$0xff] %vm270_vm1, %v401_v26  ;;  %v403_v32 = vadd.f32 %v386_v31, %v292_v23 }
  0xed   : > { %413 = vst.msk [vmem:[#allocation2 + $0x38] sm:$0xff] %vm270_vm1, %v405_v29  ;;  %407 = vst.msk [vmem:[#allocation2 + $0x8] sm:$0xff] %vm270_vm1, %v399_v30 }
  0xee   : > { %411 = vst.msk [vmem:[#allocation2 + $0x28] sm:$0xff] %vm270_vm1, %v403_v32 }
  0xf1   : > { %v547_v33 = vld [vmem:[#allocation2 + $0x10] sm:$0xff] }
  0xf2   : > { %v545_v34 = vld [vmem:[#allocation2] sm:$0xff]  ;;  %v551_v51 = vld [vmem:[#allocation2 + $0x30] sm:$0xff] }
  0xf3   : > { %v548_v24 = vld [vmem:[#allocation2 + $0x18] sm:$0xff]  ;;  %v549_v56 = vld [vmem:[#allocation2 + $0x20] sm:$0xff] }
  0xf4   : > { %v546_v18 = vld [vmem:[#allocation2 + $0x8] sm:$0xff]  ;;  %v552_v61 = vld [vmem:[#allocation2 + $0x38] sm:$0xff] }
  0xf5   : > { %v550_v1 = vld [vmem:[#allocation2 + $0x28] sm:$0xff] }
  0xf7   : > { %v2503_v36 = vpop.f32.mrb[4].mxu1 }
  0xf8   : > { %v649_v37 = vadd.f32 %v2503_v36, %v547_v33  ;;  %v616_v38 = vpop.f32.mrb[5].mxu1 }
  0xf9   : > { %v647_v39 = vadd.f32 %v616_v38, %v545_v34  ;;  %v2504_v40 = vpop.f32.mrb[6].mxu1 }
  0xfa   : > { %657 = vst.msk [vmem:[#allocation2 + $0x10] sm:$0xff] %vm270_vm1, %v649_v37  ;;  %v650_v41 = vadd.f32 %v2504_v40, %v548_v24  ;;  %v619_v43 = vpop.f32.mrb[7].mxu1 }
  0xfb   : > { %655 = vst.msk [vmem:[#allocation2] sm:$0xff] %vm270_vm1, %v647_v39  ;;  %v648_v44 = vadd.f32 %v619_v43, %v546_v18 }
  0xfc   : > { %658 = vst.msk [vmem:[#allocation2 + $0x18] sm:$0xff] %vm270_vm1, %v650_v41 }
  0xfd   : > { %656 = vst.msk [vmem:[#allocation2 + $0x8] sm:$0xff] %vm270_vm1, %v648_v44 }
 0x101   : > { %v732_v45 = vld [vmem:[#allocation2 + $0x10] sm:$0xff]  ;;  %v2513_v46 = vpop.f32.mrb[4].mxu0 }
 0x102   : > { %v834_v47 = vadd.f32 %v2513_v46, %v732_v45  ;;  %v730_v49 = vld [vmem:[#allocation2] sm:$0xff]  ;;  %v801_v50 = vpop.f32.mrb[5].mxu0 }
 0x103   : > { %v2507_v9 = vpop.f32.mrb[8].mxu1  ;;  %v832_v52 = vadd.f32 %v801_v50, %v730_v49  ;;  %v733_v53 = vld [vmem:[#allocation2 + $0x18] sm:$0xff]  ;;  %v2514_v54 = vpop.f32.mrb[6].mxu0 }
 0x104   : > { %v653_v55 = vadd.f32 %v2507_v9, %v551_v51  ;;  %842 = vst.msk [vmem:[#allocation2 + $0x10] sm:$0xff] %vm270_vm1, %v834_v47  ;;  %v632_v57 = vpop.f32.mrb[9].mxu1  ;;  %v835_v58 = vadd.f32 %v2514_v54, %v733_v53  ;;  %v731_v59 = vld [vmem:[#allocation2 + $0x8] sm:$0xff]  ;;  %v804_v10 = vpop.f32.mrb[7].mxu0 }
 0x105   : > { %v651_v60 = vadd.f32 %v632_v57, %v549_v56  ;;  %840 = vst.msk [vmem:[#allocation2] sm:$0xff] %vm270_vm1, %v832_v52  ;;  %v2508_v62 = vpop.f32.mrb[10].mxu1  ;;  %v833_v63 = vadd.f32 %v804_v10, %v731_v59 }
 0x106   : > { %661 = vst.msk [vmem:[#allocation2 + $0x30] sm:$0xff] %vm270_vm1, %v653_v55  ;;  %v654_v0 = vadd.f32 %v2508_v62, %v552_v61  ;;  %843 = vst.msk [vmem:[#allocation2 + $0x18] sm:$0xff] %vm270_vm1, %v835_v58  ;;  %v635_v2 = vpop.f32.mrb[11].mxu1 }
 0x107   : > { %659 = vst.msk [vmem:[#allocation2 + $0x20] sm:$0xff] %vm270_vm1, %v651_v60  ;;  %v652_v3 = vadd.f32 %v635_v2, %v550_v1  ;;  %841 = vst.msk [vmem:[#allocation2 + $0x8] sm:$0xff] %vm270_vm1, %v833_v63 }
 0x108   : > { %662 = vst.msk [vmem:[#allocation2 + $0x38] sm:$0xff] %vm270_vm1, %v654_v0 }
 0x109   : > { %660 = vst.msk [vmem:[#allocation2 + $0x28] sm:$0xff] %vm270_vm1, %v652_v3  ;;  %v2517_v4 = vpop.f32.mrb[8].mxu0 }
 0x10a   : > { %v817_v42 = vpop.f32.mrb[9].mxu0 }
 0x10b   : > { %v859_v48 = vld [vmem:[#allocation2 + $0x10] sm:$0xff]  ;;  %v2523_v5 = vpop.f32.mrb[12].mxu1  ;;  %v2518_v6 = vpop.f32.mrb[10].mxu0 }
 0x10c   : > { %v969_v7 = vadd.f32 %v2523_v5, %v859_v48  ;;  %v857_v8 = vld [vmem:[#allocation2] sm:$0xff]  ;;  %v936_v11 = vpop.f32.mrb[13].mxu1  ;;  %v820_v12 = vpop.f32.mrb[11].mxu0 }
 0x10d   : > { %v736_v35 = vld [vmem:[#allocation2 + $0x30] sm:$0xff]  ;;  %v967_v13 = vadd.f32 %v936_v11, %v857_v8  ;;  %v860_v14 = vld [vmem:[#allocation2 + $0x18] sm:$0xff]  ;;  %v2524_v15 = vpop.f32.mrb[14].mxu1 }
 0x10e   : > { %v838_v17 = vadd.f32 %v2517_v4, %v736_v35  ;;  %v734_v19 = vld [vmem:[#allocation2 + $0x20] sm:$0xff]  ;;  %977 = vst.msk [vmem:[#allocation2 + $0x10] sm:$0xff] %vm270_vm1, %v969_v7  ;;  %v970_v20 = vadd.f32 %v2524_v15, %v860_v14  ;;  %v858_v21 = vld [vmem:[#allocation2 + $0x8] sm:$0xff]  ;;  %v939_v16 = vpop.f32.mrb[15].mxu1 }
 0x10f   : > { %v836_v22 = vadd.f32 %v817_v42, %v734_v19  ;;  %v737_v23 = vld [vmem:[#allocation2 + $0x38] sm:$0xff]  ;;  %975 = vst.msk [vmem:[#allocation2] sm:$0xff] %vm270_vm1, %v967_v13  ;;  %v968_v25 = vadd.f32 %v939_v16, %v858_v21 }
 0x110   : > { %846 = vst.msk [vmem:[#allocation2 + $0x30] sm:$0xff] %vm270_vm1, %v838_v17  ;;  %v839_v26 = vadd.f32 %v2518_v6, %v737_v23  ;;  %v735_v27 = vld [vmem:[#allocation2 + $0x28] sm:$0xff]  ;;  %978 = vst.msk [vmem:[#allocation2 + $0x18] sm:$0xff] %vm270_vm1, %v970_v20 }
 0x111   : > { %844 = vst.msk [vmem:[#allocation2 + $0x20] sm:$0xff] %vm270_vm1, %v836_v22  ;;  %v837_v28 = vadd.f32 %v820_v12, %v735_v27  ;;  %976 = vst.msk [vmem:[#allocation2 + $0x8] sm:$0xff] %vm270_vm1, %v968_v25 }
 0x112   : > { %847 = vst.msk [vmem:[#allocation2 + $0x38] sm:$0xff] %vm270_vm1, %v839_v26  ;;  %v2533_v31 = vpop.f32.mrb[12].mxu0 }
 0x113   : > { %845 = vst.msk [vmem:[#allocation2 + $0x28] sm:$0xff] %vm270_vm1, %v837_v28  ;;  %v2527_v29 = vpop.f32.mrb[16].mxu1  ;;  %v1182_v34 = vpop.f32.mrb[13].mxu0 }
 0x114   : > { %v952_v30 = vpop.f32.mrb[17].mxu1  ;;  %v2534_v38 = vpop.f32.mrb[14].mxu0 }
 0x115   : > { %v1113_v32 = vld [vmem:[#allocation2 + $0x10] sm:$0xff]  ;;  %v2528_v33 = vpop.f32.mrb[18].mxu1  ;;  %v1185_v41 = vpop.f32.mrb[15].mxu0 }
 0x116   : > { %v1215_v36 = vadd.f32 %v2533_v31, %v1113_v32  ;;  %v1111_v24 = vld [vmem:[#allocation2] sm:$0xff]  ;;  %v955_v37 = vpop.f32.mrb[19].mxu1 }
 0x117   : > { %v863_v18 = vld [vmem:[#allocation2 + $0x30] sm:$0xff]  ;;  %v1213_v39 = vadd.f32 %v1182_v34, %v1111_v24  ;;  %v1114_v40 = vld [vmem:[#allocation2 + $0x18] sm:$0xff] }
 0x118   : > { %v973_v43 = vadd.f32 %v2527_v29, %v863_v18  ;;  %v861_v44 = vld [vmem:[#allocation2 + $0x20] sm:$0xff]  ;;  %1223 = vst.msk [vmem:[#allocation2 + $0x10] sm:$0xff] %vm270_vm1, %v1215_v36  ;;  %v1216_v45 = vadd.f32 %v2534_v38, %v1114_v40  ;;  %v1112_v46 = vld [vmem:[#allocation2 + $0x8] sm:$0xff] }
 0x119   : > { %v971_v47 = vadd.f32 %v952_v30, %v861_v44  ;;  %v864_v49 = vld [vmem:[#allocation2 + $0x38] sm:$0xff]  ;;  %1221 = vst.msk [vmem:[#allocation2] sm:$0xff] %vm270_vm1, %v1213_v39  ;;  %v1214_v50 = vadd.f32 %v1185_v41, %v1112_v46 }
 0x11a   : > { %981 = vst.msk [vmem:[#allocation2 + $0x30] sm:$0xff] %vm270_vm1, %v973_v43  ;;  %v974_v51 = vadd.f32 %v2528_v33, %v864_v49  ;;  %v862_v9 = vld [vmem:[#allocation2 + $0x28] sm:$0xff]  ;;  %1224 = vst.msk [vmem:[#allocation2 + $0x18] sm:$0xff] %vm270_vm1, %v1216_v45 }
 0x11b   : > { %979 = vst.msk [vmem:[#allocation2 + $0x20] sm:$0xff] %vm270_vm1, %v971_v47  ;;  %v972_v52 = vadd.f32 %v955_v37, %v862_v9  ;;  %1222 = vst.msk [vmem:[#allocation2 + $0x8] sm:$0xff] %vm270_vm1, %v1214_v50 }
 0x11c   : > { %982 = vst.msk [vmem:[#allocation2 + $0x38] sm:$0xff] %vm270_vm1, %v974_v51 }
 0x11d   : > { %980 = vst.msk [vmem:[#allocation2 + $0x28] sm:$0xff] %vm270_vm1, %v972_v52  ;;  %v2537_v53 = vpop.f32.mrb[16].mxu0  ;;  %v2543_v55 = vpop.f32.mrb[20].mxu1 }
 0x11e   : > { %v1198_v56 = vpop.f32.mrb[17].mxu0  ;;  %v1364_v59 = vpop.f32.mrb[21].mxu1 }
 0x11f   : > { %v1295_v54 = vld [vmem:[#allocation2 + $0x10] sm:$0xff]  ;;  %v2538_v60 = vpop.f32.mrb[18].mxu0  ;;  %v2544_v63 = vpop.f32.mrb[22].mxu1 }
 0x120   : > { %v1397_v57 = vadd.f32 %v2543_v55, %v1295_v54  ;;  %v1293_v58 = vld [vmem:[#allocation2] sm:$0xff]  ;;  %v1201_v2 = vpop.f32.mrb[19].mxu0  ;;  %v1367_v42 = vpop.f32.mrb[23].mxu1 }
 0x121   : > { %v1117_v10 = vld [vmem:[#allocation2 + $0x30] sm:$0xff]  ;;  %v1395_v61 = vadd.f32 %v1364_v59, %v1293_v58  ;;  %v1296_v62 = vld [vmem:[#allocation2 + $0x18] sm:$0xff] }
 0x122   : > { %v1219_v0 = vadd.f32 %v2537_v53, %v1117_v10  ;;  %v1115_v1 = vld [vmem:[#allocation2 + $0x20] sm:$0xff]  ;;  %1405 = vst.msk [vmem:[#allocation2 + $0x10] sm:$0xff] %vm270_vm1, %v1397_v57  ;;  %v1398_v3 = vadd.f32 %v2544_v63, %v1296_v62  ;;  %v1294_v4 = vld [vmem:[#allocation2 + $0x8] sm:$0xff] }
 0x123   : > { %v1217_v48 = vadd.f32 %v1198_v56, %v1115_v1  ;;  %v1118_v5 = vld [vmem:[#allocation2 + $0x38] sm:$0xff]  ;;  %1403 = vst.msk [vmem:[#allocation2] sm:$0xff] %vm270_vm1, %v1395_v61  ;;  %v1396_v6 = vadd.f32 %v1367_v42, %v1294_v4 }
 0x124   : > { %1227 = vst.msk [vmem:[#allocation2 + $0x30] sm:$0xff] %vm270_vm1, %v1219_v0  ;;  %v1220_v7 = vadd.f32 %v2538_v60, %v1118_v5  ;;  %v1116_v8 = vld [vmem:[#allocation2 + $0x28] sm:$0xff]  ;;  %1406 = vst.msk [vmem:[#allocation2 + $0x18] sm:$0xff] %vm270_vm1, %v1398_v3 }
 0x125   : > { %1225 = vst.msk [vmem:[#allocation2 + $0x20] sm:$0xff] %vm270_vm1, %v1217_v48  ;;  %v1218_v11 = vadd.f32 %v1201_v2, %v1116_v8  ;;  %1404 = vst.msk [vmem:[#allocation2 + $0x8] sm:$0xff] %vm270_vm1, %v1396_v6  ;;  %v2547_v12 = vpop.f32.mrb[24].mxu1  ;;  %v2553_v35 = vpop.f32.mrb[20].mxu0 }
 0x126   : > { %1228 = vst.msk [vmem:[#allocation2 + $0x38] sm:$0xff] %vm270_vm1, %v1220_v7  ;;  %v1380_v13 = vpop.f32.mrb[25].mxu1  ;;  %v1499_v14 = vpop.f32.mrb[21].mxu0 }
 0x127   : > { %1226 = vst.msk [vmem:[#allocation2 + $0x28] sm:$0xff] %vm270_vm1, %v1218_v11  ;;  %v2548_v17 = vpop.f32.mrb[26].mxu1  ;;  %v2554_v19 = vpop.f32.mrb[22].mxu0 }
 0x128   : > { %v1383_v16 = vpop.f32.mrb[27].mxu1  ;;  %v1502_v22 = vpop.f32.mrb[23].mxu0 }
 0x129   : > { %v1422_v15 = vld [vmem:[#allocation2 + $0x10] sm:$0xff] }
 0x12a   : > { %v1532_v20 = vadd.f32 %v2553_v35, %v1422_v15  ;;  %v1420_v21 = vld [vmem:[#allocation2] sm:$0xff] }
 0x12b   : > { %v1299_v23 = vld [vmem:[#allocation2 + $0x30] sm:$0xff]  ;;  %v1530_v25 = vadd.f32 %v1499_v14, %v1420_v21  ;;  %v1423_v26 = vld [vmem:[#allocation2 + $0x18] sm:$0xff] }
 0x12c   : > { %v1401_v27 = vadd.f32 %v2547_v12, %v1299_v23  ;;  %v1297_v28 = vld [vmem:[#allocation2 + $0x20] sm:$0xff]  ;;  %1540 = vst.msk [vmem:[#allocation2 + $0x10] sm:$0xff] %vm270_vm1, %v1532_v20  ;;  %v1533_v29 = vadd.f32 %v2554_v19, %v1423_v26  ;;  %v1421_v30 = vld [vmem:[#allocation2 + $0x8] sm:$0xff] }
 0x12d   : > { %v1399_v31 = vadd.f32 %v1380_v13, %v1297_v28  ;;  %v1300_v32 = vld [vmem:[#allocation2 + $0x38] sm:$0xff]  ;;  %1538 = vst.msk [vmem:[#allocation2] sm:$0xff] %vm270_vm1, %v1530_v25  ;;  %v1531_v33 = vadd.f32 %v1502_v22, %v1421_v30  ;;  %v2557_v37 = vpop.f32.mrb[24].mxu0  ;;  %v2563_v18 = vpop.f32.mrb[28].mxu1  ;;  %v2438_v23 = vld [vmem:[%s3236_s2] ss:$0 sm:$0xff] }
 0x12e   : > { %1409 = vst.msk [vmem:[#allocation2 + $0x30] sm:$0xff] %vm270_vm1, %v1401_v27  ;;  %v1402_v34 = vadd.f32 %v2548_v17, %v1300_v32  ;;  %v1298_v36 = vld [vmem:[#allocation2 + $0x28] sm:$0xff]  ;;  %1541 = vst.msk [vmem:[#allocation2 + $0x18] sm:$0xff] %vm270_vm1, %v1533_v29  ;;  %v1515_v38 = vpop.f32.mrb[25].mxu0  ;;  %v1745_v40 = vpop.f32.mrb[29].mxu1 }
 0x12f   : > { %1407 = vst.msk [vmem:[#allocation2 + $0x20] sm:$0xff] %vm270_vm1, %v1399_v31  ;;  %v1400_v24 = vadd.f32 %v1383_v16, %v1298_v36  ;;  %1539 = vst.msk [vmem:[#allocation2 + $0x8] sm:$0xff] %vm270_vm1, %v1531_v33  ;;  %v2558_v39 = vpop.f32.mrb[26].mxu0  ;;  %v2564_v44 = vpop.f32.mrb[30].mxu1 }
 0x130   : > { %1410 = vst.msk [vmem:[#allocation2 + $0x38] sm:$0xff] %vm270_vm1, %v1402_v34  ;;  %v1518_v41 = vpop.f32.mrb[27].mxu0  ;;  %v1748_v47 = vpop.f32.mrb[31].mxu1 }
 0x131   : > { %1408 = vst.msk [vmem:[#allocation2 + $0x28] sm:$0xff] %vm270_vm1, %v1400_v24 }
 0x133   : > { %v1676_v43 = vld [vmem:[#allocation2 + $0x10] sm:$0xff] }
 0x134   : > { %v1778_v45 = vadd.f32 %v2563_v18, %v1676_v43  ;;  %v1674_v46 = vld [vmem:[#allocation2] sm:$0xff] }
 0x135   : > { %v1426_v49 = vld [vmem:[#allocation2 + $0x30] sm:$0xff]  ;;  %v1776_v50 = vadd.f32 %v1745_v40, %v1674_v46  ;;  %v1677_v51 = vld [vmem:[#allocation2 + $0x18] sm:$0xff] }
 0x136   : > { %v1536_v9 = vadd.f32 %v2557_v37, %v1426_v49  ;;  %v1424_v52 = vld [vmem:[#allocation2 + $0x20] sm:$0xff]  ;;  %1786 = vst.msk [vmem:[#allocation2 + $0x10] sm:$0xff] %vm270_vm1, %v1778_v45  ;;  %v1779_v53 = vadd.f32 %v2564_v44, %v1677_v51  ;;  %v1675_v54 = vld [vmem:[#allocation2 + $0x8] sm:$0xff] }
 0x137   : > { %v1534_v55 = vadd.f32 %v1515_v38, %v1424_v52  ;;  %v1427_v56 = vld [vmem:[#allocation2 + $0x38] sm:$0xff]  ;;  %1784 = vst.msk [vmem:[#allocation2] sm:$0xff] %vm270_vm1, %v1776_v50  ;;  %v1777_v57 = vadd.f32 %v1748_v47, %v1675_v54  ;;  %v2573_v60 = vpop.f32.mrb[28].mxu0 }
 0x138   : > { %1544 = vst.msk [vmem:[#allocation2 + $0x30] sm:$0xff] %vm270_vm1, %v1536_v9  ;;  %v1537_v58 = vadd.f32 %v2558_v39, %v1427_v56  ;;  %v1425_v59 = vld [vmem:[#allocation2 + $0x28] sm:$0xff]  ;;  %1787 = vst.msk [vmem:[#allocation2 + $0x18] sm:$0xff] %vm270_vm1, %v1779_v53  ;;  %v2567_v61 = vpop.f32.mrb[32].mxu1  ;;  %v1927_v62 = vpop.f32.mrb[29].mxu0 }
 0x139   : > { %1542 = vst.msk [vmem:[#allocation2 + $0x20] sm:$0xff] %vm270_vm1, %v1534_v55  ;;  %v1535_v10 = vadd.f32 %v1518_v41, %v1425_v59  ;;  %1785 = vst.msk [vmem:[#allocation2 + $0x8] sm:$0xff] %vm270_vm1, %v1777_v57  ;;  %v1761_v63 = vpop.f32.mrb[33].mxu1  ;;  %v2574_v1 = vpop.f32.mrb[30].mxu0 }
 0x13a   : > { %1545 = vst.msk [vmem:[#allocation2 + $0x38] sm:$0xff] %vm270_vm1, %v1537_v58  ;;  %v2568_v3 = vpop.f32.mrb[34].mxu1  ;;  %v1930_v42 = vpop.f32.mrb[31].mxu0 }
 0x13b   : > { %1543 = vst.msk [vmem:[#allocation2 + $0x28] sm:$0xff] %vm270_vm1, %v1535_v10  ;;  %v1764_v6 = vpop.f32.mrb[35].mxu1 }
 0x13d   : > { %v1858_v0 = vld [vmem:[#allocation2 + $0x10] sm:$0xff] }
 0x13e   : > { %v1960_v2 = vadd.f32 %v2573_v60, %v1858_v0  ;;  %v1856_v4 = vld [vmem:[#allocation2] sm:$0xff] }
 0x13f   : > { %v1680_v48 = vld [vmem:[#allocation2 + $0x30] sm:$0xff]  ;;  %v1958_v5 = vadd.f32 %v1927_v62, %v1856_v4  ;;  %v1859_v7 = vld [vmem:[#allocation2 + $0x18] sm:$0xff]  ;;  %v2577_v21 = vpop.f32.mrb[32].mxu0 }
 0x140   : > { %v1782_v8 = vadd.f32 %v2567_v61, %v1680_v48  ;;  %v1678_v11 = vld [vmem:[#allocation2 + $0x20] sm:$0xff]  ;;  %1968 = vst.msk [vmem:[#allocation2 + $0x10] sm:$0xff] %vm270_vm1, %v1960_v2  ;;  %v1961_v12 = vadd.f32 %v2574_v1, %v1859_v7  ;;  %v1857_v35 = vld [vmem:[#allocation2 + $0x8] sm:$0xff]  ;;  %v1943_v16 = vpop.f32.mrb[33].mxu0 }
 0x141   : > { %v1780_v13 = vadd.f32 %v1761_v63, %v1678_v11  ;;  %v1681_v14 = vld [vmem:[#allocation2 + $0x38] sm:$0xff]  ;;  %1966 = vst.msk [vmem:[#allocation2] sm:$0xff] %vm270_vm1, %v1958_v5  ;;  %v1959_v15 = vadd.f32 %v1930_v42, %v1857_v35  ;;  %v2578_v22 = vpop.f32.mrb[34].mxu0 }
 0x142   : > { %1790 = vst.msk [vmem:[#allocation2 + $0x30] sm:$0xff] %vm270_vm1, %v1782_v8  ;;  %v1783_v17 = vadd.f32 %v2568_v3, %v1681_v14  ;;  %v1679_v19 = vld [vmem:[#allocation2 + $0x28] sm:$0xff]  ;;  %1969 = vst.msk [vmem:[#allocation2 + $0x18] sm:$0xff] %vm270_vm1, %v1961_v12  ;;  %v1946_v25 = vpop.f32.mrb[35].mxu0 }
 0x143   : > { %1788 = vst.msk [vmem:[#allocation2 + $0x20] sm:$0xff] %vm270_vm1, %v1780_v13  ;;  %v1781_v20 = vadd.f32 %v1764_v6, %v1679_v19  ;;  %1967 = vst.msk [vmem:[#allocation2 + $0x8] sm:$0xff] %vm270_vm1, %v1959_v15 }
 0x144   : > { %1791 = vst.msk [vmem:[#allocation2 + $0x38] sm:$0xff] %vm270_vm1, %v1783_v17 }
 0x145   : > { %1789 = vst.msk [vmem:[#allocation2 + $0x28] sm:$0xff] %vm270_vm1, %v1781_v20 }
 0x147   : > { %v1979_v26 = vld [vmem:[#allocation2 + $0x10] sm:$0xff] }
 0x148   : > { %v1994_v27 = vadd.f32 %v2438_v23, %v1979_v26  ;;  %v1977_v28 = vld [vmem:[#allocation2] sm:$0xff] }
 0x149   : > { %v1862_v29 = vld [vmem:[#allocation2 + $0x30] sm:$0xff]  ;;  %v1992_v30 = vadd.f32 %v2438_v23, %v1977_v28  ;;  %v1980_v31 = vld [vmem:[#allocation2 + $0x18] sm:$0xff] }
 0x14a   : > { %v1964_v32 = vadd.f32 %v2577_v21, %v1862_v29  ;;  %v1860_v33 = vld [vmem:[#allocation2 + $0x20] sm:$0xff]  ;;  %v2008_v34 = vsel %vm270_vm1, %v1994_v27, 0.0  ;;  %v1995_v36 = vadd.f32 %v2438_v23, %v1980_v31  ;;  %v1978_v24 = vld [vmem:[#allocation2 + $0x8] sm:$0xff] }
 0x14b   : > { %v1962_v37 = vadd.f32 %v1943_v16, %v1860_v33  ;;  %v1863_v38 = vld [vmem:[#allocation2 + $0x38] sm:$0xff]  ;;  %2009 = vadd.xlane.f32.xlu1 %v2008_v34  ;;  %v2002_v18 = vsel %vm270_vm1, %v1992_v30, 0.0  ;;  %v1993_v39 = vadd.f32 %v2438_v23, %v1978_v24 }
 0x14c   : > { %1972 = vst.msk [vmem:[#allocation2 + $0x30] sm:$0xff] %vm270_vm1, %v1964_v32  ;;  %v1965_v40 = vadd.f32 %v2578_v22, %v1863_v38  ;;  %v1861_v41 = vld [vmem:[#allocation2 + $0x28] sm:$0xff]  ;;  %2003 = vadd.xlane.f32.xlu0 %v2002_v18  ;;  %v2011_v44 = vsel %vm270_vm1, %v1995_v36, 0.0 }
 0x14d   : > { %1970 = vst.msk [vmem:[#allocation2 + $0x20] sm:$0xff] %vm270_vm1, %v1962_v37  ;;  %v1963_v43 = vadd.f32 %v1946_v25, %v1861_v41  ;;  %v2005_v45 = vsel %vm270_vm1, %v1993_v39, 0.0 }
 0x14e   : > { %1973 = vst.msk [vmem:[#allocation2 + $0x38] sm:$0xff] %vm270_vm1, %v1965_v40 }
 0x14f   : > { %1971 = vst.msk [vmem:[#allocation2 + $0x28] sm:$0xff] %vm270_vm1, %v1963_v43  ;;  %2012 = vadd.xlane.f32.xlu1 %v2011_v44 }
 0x150   : > { %2006 = vadd.xlane.f32.xlu0 %v2005_v45 }
 0x153   : > { %v1983_v47 = vld [vmem:[#allocation2 + $0x30] sm:$0xff] }
 0x154   : > { %v1981_v46 = vld [vmem:[#allocation2 + $0x20] sm:$0xff]  ;;  %v1998_v53 = vadd.f32 %v2438_v23, %v1983_v47 }
 0x155   : > { %v1996_v49 = vadd.f32 %v2438_v23, %v1981_v46  ;;  %v1984_v51 = vld [vmem:[#allocation2 + $0x38] sm:$0xff] }
 0x156   : > { %v1982_v50 = vld [vmem:[#allocation2 + $0x28] sm:$0xff]  ;;  %v1999_v55 = vadd.f32 %v2438_v23, %v1984_v51  ;;  %v2020_v56 = vsel %vm270_vm1, %v1998_v53, 0.0 }
 0x157   : > { %v2014_v9 = vsel %vm270_vm1, %v1996_v49, 0.0  ;;  %v1997_v52 = vadd.f32 %v2438_v23, %v1982_v50  ;;  %v3182_v50 = vld [vmem:[%s3237_s3] ss:$0 sm:$0xff] }
 0x158   : > { %2015 = vadd.xlane.f32.xlu0 %v2014_v9  ;;  %v2023_v57 = vsel %vm270_vm1, %v1999_v55, 0.0 }
 0x159   : > { %v2017_v54 = vsel %vm270_vm1, %v1997_v52, 0.0 }
 0x15a   : > { %2018 = vadd.xlane.f32.xlu1 %v2017_v54  ;;  %v2440_v54 = vld [vmem:[%s3238_s4] ss:$0 sm:$0xff] }
 0x15c   : > { %2021 = vadd.xlane.f32.xlu0 %v2020_v56 }
 0x15e   : > { %2024 = vadd.xlane.f32.xlu1 %v2023_v57 }
 0x1d8   : > { %v2010_v58 = vpop.xlane.xlu1 %2009 }
 0x1d9   : > { %v2029_v59 = vmul.f32 0.25, %v2010_v58  ;;  %v2004_v10 = vpop.xlane.xlu0 %2003 }
 0x1da   : > { %v2027_v60 = vmul.f32 0.25, %v2004_v10 }
 0x1db   : > { %v3139_v61 = vsub.f32 %v1994_v27, %v2029_v59 }
 0x1dc   : > { %v3141_v62 = vsub.f32 %v1992_v30, %v2027_v60  ;;  %v2013_v63 = vpop.xlane.xlu1 %2012 }
 0x1dd   : > { %v2030_v0 = vmul.f32 0.25, %v2013_v63  ;;  %v2007_v1 = vpop.xlane.xlu0 %2006  ;;  %v2045_v2 = vmul.f32 %v3139_v61, %v3139_v61 }
 0x1de   : > { %v2028_v3 = vmul.f32 0.25, %v2007_v1  ;;  %v2043_v48 = vmul.f32 %v3141_v62, %v3141_v62 }
 0x1df   : > { %v3145_v4 = vsub.f32 %v1995_v36, %v2030_v0  ;;  %v2057_v42 = vsel %vm270_vm1, %v2045_v2, 0.0 }
 0x1e0   : > { %v3150_v5 = vsub.f32 %v1993_v39, %v2028_v3  ;;  %2058 = vadd.xlane.f32.xlu0 %v2057_v42  ;;  %v2051_v8 = vsel %vm270_vm1, %v2043_v48, 0.0 }
 0x1e1   : > { %v2046_v6 = vmul.f32 %v3145_v4, %v3145_v4 }
 0x1e2   : > { %v2044_v11 = vmul.f32 %v3150_v5, %v3150_v5 }
 0x1e3   : > { %v2060_v7 = vsel %vm270_vm1, %v2046_v6, 0.0 }
 0x1e4   : > { %2061 = vadd.xlane.f32.xlu1 %v2060_v7  ;;  %2052 = vadd.xlane.f32.xlu0 %v2051_v8  ;;  %v2054_v14 = vsel %vm270_vm1, %v2044_v11, 0.0 }
 0x1e5   : > { %v2016_v12 = vpop.xlane.xlu0 %2015 }
 0x1e6   : > { %v2031_v35 = vmul.f32 0.25, %v2016_v12 }
 0x1e7   : > { %v2019_v13 = vpop.xlane.xlu1 %2018 }
 0x1e8   : > { %v3159_v15 = vsub.f32 %v1996_v49, %v2031_v35  ;;  %v2032_v17 = vmul.f32 0.25, %v2019_v13  ;;  %2055 = vadd.xlane.f32.xlu1 %v2054_v14 }
 0x1e9   : > { %v2022_v19 = vpop.xlane.xlu0 %2021 }
 0x1ea   : > { %v3161_v20 = vsub.f32 %v1997_v52, %v2032_v17  ;;  %v2033_v21 = vmul.f32 0.25, %v2022_v19  ;;  %v2047_v16 = vmul.f32 %v3159_v15, %v3159_v15 }
 0x1eb   : > { %v2025_v22 = vpop.xlane.xlu1 %2024 }
 0x1ec   : > { %v3165_v23 = vsub.f32 %v1998_v53, %v2033_v21  ;;  %v2034_v25 = vmul.f32 0.25, %v2025_v22  ;;  %v2063_v26 = vsel %vm270_vm1, %v2047_v16, 0.0  ;;  %v2048_v27 = vmul.f32 %v3161_v20, %v3161_v20 }
 0x1ed   : > { %2064 = vadd.xlane.f32.xlu0 %v2063_v26 }
 0x1ee   : > { %v3170_v28 = vsub.f32 %v1999_v55, %v2034_v25  ;;  %v2066_v29 = vsel %vm270_vm1, %v2048_v27, 0.0  ;;  %v2049_v30 = vmul.f32 %v3165_v23, %v3165_v23 }
 0x1ef   : > { %2067 = vadd.xlane.f32.xlu1 %v2066_v29 }
 0x1f0   : > { %v2069_v31 = vsel %vm270_vm1, %v2049_v30, 0.0  ;;  %v2050_v32 = vmul.f32 %v3170_v28, %v3170_v28 }
 0x1f1   : > { %2070 = vadd.xlane.f32.xlu0 %v2069_v31 }
 0x1f2   : > { %v2072_v33 = vsel %vm270_vm1, %v2050_v32, 0.0 }
 0x1f3   : > { %2073 = vadd.xlane.f32.xlu1 %v2072_v33 }
 0x26d   : > { %v2059_v34 = vpop.xlane.xlu0 %2058 }
 0x26e   : > { %v2077_v36 = vmul.f32 0.25, %v2059_v34 }
 0x270   : > { %v2085_v24 = vadd.f32 1e-06, %v2077_v36 }
 0x271   : > { %v2062_v37 = vpop.xlane.xlu1 %2061  ;;  %v2053_v38 = vpop.xlane.xlu0 %2052 }
 0x272   : > { %2629 = vrsqrt.f32 %v2085_v24  ;;  %v2078_v18 = vmul.f32 0.25, %v2062_v37  ;;  %v2075_v39 = vmul.f32 0.25, %v2053_v38 }
 0x274   : > { %v2086_v40 = vadd.f32 1e-06, %v2078_v18  ;;  %v2083_v41 = vadd.f32 1e-06, %v2075_v39 }
 0x275   : > { %v2056_v43 = vpop.xlane.xlu1 %2055 }
 0x276   : > { %2631 = vrsqrt.f32 %v2086_v40  ;;  %v2076_v44 = vmul.f32 0.25, %v2056_v43 }
 0x277   : > { %2633 = vrsqrt.f32 %v2083_v41 }
 0x278   : > { %v2084_v45 = vadd.f32 1e-06, %v2076_v44 }
 0x27a   : > { %2635 = vrsqrt.f32 %v2084_v45  ;;  %v2065_v46 = vpop.xlane.xlu0 %2064 }
 0x27b   : > { %v2079_v47 = vmul.f32 0.25, %v2065_v46 }
 0x27c   : > { %v2630_v49 = vpop.eup %2629  ;;  %v2068_v51 = vpop.xlane.xlu1 %2067 }
 0x27d   : > { %v2101_v9 = vmul.f32 %v2630_v49, %v3139_v61  ;;  %v2087_v52 = vadd.f32 1e-06, %v2079_v47  ;;  %v2080_v53 = vmul.f32 0.25, %v2068_v51 }
 0x27e   : > { %v2071_v55 = vpop.xlane.xlu0 %2070 }
 0x27f   : > { %v2115_v56 = vmul.f32 %v3182_v50, %v2101_v9  ;;  %2637 = vrsqrt.f32 %v2087_v52  ;;  %v2088_v57 = vadd.f32 1e-06, %v2080_v53  ;;  %v2081_v58 = vmul.f32 0.25, %v2071_v55 }
 0x280   : > { %v2632_v59 = vpop.eup %2631  ;;  %v2074_v10 = vpop.xlane.xlu1 %2073 }
 0x281   : > { %v2634_v60 = vpop.eup %2633  ;;  %v2129_v63 = vadd.f32 %v2440_v54, %v2115_v56  ;;  %v2102_v0 = vmul.f32 %v2632_v59, %v3145_v4  ;;  %2639 = vrsqrt.f32 %v2088_v57  ;;  %v2089_v61 = vadd.f32 1e-06, %v2081_v58 }
 0x282   : > { %v2099_v1 = vmul.f32 %v2634_v60, %v3141_v62  ;;  %v2082_v2 = vmul.f32 0.25, %v2074_v10 }
 0x283   : > { %v2137_v3 = vmax.f32 %v2129_v63, 0.0  ;;  %v2116_v42 = vmul.f32 %v3182_v50, %v2102_v0  ;;  %2641 = vrsqrt.f32 %v2089_v61 }
 0x284   : > { %v2636_v48 = vpop.eup %2635  ;;  %v2113_v6 = vmul.f32 %v3182_v50, %v2099_v1  ;;  %v2090_v4 = vadd.f32 1e-06, %v2082_v2 }
 0x285   : > { %v2145_v7 = vpack.c.bf16 %v2137_v3, %v2137_v3  ;;  %v2130_v8 = vadd.f32 %v2440_v54, %v2116_v42  ;;  %v2100_v62 = vmul.f32 %v2636_v48, %v3150_v5 }
 0x286   : > { %v2127_v11 = vadd.f32 %v2440_v54, %v2113_v6  ;;  %2643 = vrsqrt.f32 %v2090_v4 }
 0x287   : > { %2154 = vst.msk [vmem:[%s3196_s7 + $0x8] sm:$0xf] %vm2151_vm8, %v2145_v7  ;;  %v2138_v12 = vmax.f32 %v2130_v8, 0.0  ;;  %v2114_v35 = vmul.f32 %v3182_v50, %v2100_v62 }
 0x288   : > { %v2135_v13 = vmax.f32 %v2127_v11, 0.0 }
 0x289   : > { %v2638_v14 = vpop.eup %2637  ;;  %v2146_v17 = vpack.c.bf16 %v2138_v12, %v2138_v12  ;;  %v2128_v19 = vadd.f32 %v2440_v54, %v2114_v35 }
 0x28a   : > { %v2143_v21 = vpack.c.bf16 %v2135_v13, %v2135_v13  ;;  %v2103_v16 = vmul.f32 %v2638_v14, %v3159_v15 }
 0x28b   : > { %v2640_v22 = vpop.eup %2639  ;;  %2155 = vst.msk [vmem:[%s3196_s7 + $0xc] sm:$0xf] %vm2151_vm8, %v2146_v17  ;;  %v2136_v25 = vmax.f32 %v2128_v19, 0.0 }
 0x28c   : > { %2152 = vst.msk [vmem:[%s3196_s7] sm:$0xf] %vm2151_vm8, %v2143_v21  ;;  %v2117_v5 = vmul.f32 %v3182_v50, %v2103_v16  ;;  %v2104_v26 = vmul.f32 %v2640_v22, %v3161_v20 }
 0x28d   : > { %v2642_v27 = vpop.eup %2641  ;;  %v2144_v29 = vpack.c.bf16 %v2136_v25, %v2136_v25 }
 0x28e   : > { %v2131_v30 = vadd.f32 %v2440_v54, %v2117_v5  ;;  %v2118_v31 = vmul.f32 %v3182_v50, %v2104_v26  ;;  %v2105_v32 = vmul.f32 %v2642_v27, %v3165_v23 }
 0x28f   : > { %2153 = vst.msk [vmem:[%s3196_s7 + $0x4] sm:$0xf] %vm2151_vm8, %v2144_v29 }
 0x290   : > { %v2644_v15 = vpop.eup %2643  ;;  %v2139_v33 = vmax.f32 %v2131_v30, 0.0  ;;  %v2132_v34 = vadd.f32 %v2440_v54, %v2118_v31  ;;  %v2119_v36 = vmul.f32 %v3182_v50, %v2105_v32 }
 0x291   : > { %v2106_v20 = vmul.f32 %v2644_v15, %v3170_v28 }
 0x292   : > { %v2147_v24 = vpack.c.bf16 %v2139_v33, %v2139_v33  ;;  %v2140_v37 = vmax.f32 %v2132_v34, 0.0  ;;  %v2133_v38 = vadd.f32 %v2440_v54, %v2119_v36 }
 0x293   : > { %v2120_v18 = vmul.f32 %v3182_v50, %v2106_v20 }
 0x294   : > { %2156 = vst.msk [vmem:[%s3196_s7 + $0x10] sm:$0xf] %vm2151_vm8, %v2147_v24  ;;  %v2148_v39 = vpack.c.bf16 %v2140_v37, %v2140_v37  ;;  %v2141_v23 = vmax.f32 %v2133_v38, 0.0 }
 0x295   : > { %v2134_v40 = vadd.f32 %v2440_v54, %v2120_v18 }
 0x296   : > { %2157 = vst.msk [vmem:[%s3196_s7 + $0x14] sm:$0xf] %vm2151_vm8, %v2148_v39  ;;  %v2149_v41 = vpack.c.bf16 %v2141_v23, %v2141_v23 }
 0x297   : > { %v2142_v43 = vmax.f32 %v2134_v40, 0.0 }
 0x298   : > { %2158 = vst.msk [vmem:[%s3196_s7 + $0x18] sm:$0xf] %vm2151_vm8, %v2149_v41 }
 0x299   : > { %v2150_v44 = vpack.c.bf16 %v2142_v43, %v2142_v43 }
 0x29b   : > { %2159 = vst.msk [vmem:[%s3196_s7 + $0x1c] sm:$0xf] %vm2151_vm8, %v2150_v44 }
 0x29c PF: > { %s15_s20 = sadd.s32 1, %s2667_s20   ;;  %s3244_s18 = smov %s2663_s19 }
 0x29d   : > { %p12_p5 = scmp.ge.s32.totalorder %s15_s20, 4   ;;  %s3245_s19 = smov %s3247_s21 }
 0x29f   :  { %14 = sbr.rel (!%p12_p5) target bundleno = 2 (0x2), region = 91 }

// kernel: decoder_more_token.14
= control target key start
LH: loop header
LB: loop body
LE: loop exit
PB: predicated region body
PF: predicated region fallthrough
CT: control target
= control target key end

     0   :  { %s2810_s21 = smov 0   ;;  %s2812_s22 = smov 0   ;;  %s3367_s0 = inlined_call_operand.vmem [shape: bf16[2,10,10,4], index: 0, kind: input, shape index: {}]   ;;  %s3368_s1 = inlined_call_operand.vmem [shape: bf16[2,8,8,4], index: 1, kind: input, shape index: {}]   ;;  %s3369_s2 = inlined_call_operand.vmem [shape: bf16[9,4,4], index: 2, kind: input, shape index: {}]   ;;  %s3370_s3 = inlined_call_operand.vmem [shape: f32[1,4], index: 3, kind: input, shape index: {}]   ;;  %s3371_s4 = inlined_call_operand.vmem [shape: f32[1,4], index: 4, kind: input, shape index: {}]   ;;  %s3372_s5 = inlined_call_operand.vmem [shape: f32[1,4], index: 5, kind: input, shape index: {}]   ;;  %s3373_s6 = inlined_call_operand.vmem [shape: bf16[2,8,8,4], index: 6, kind: output, shape index: {}]  }
   0x1   :  { %s2814_s23 = smov 0  }
   0x2 LB: > { %s28_s24 = sadd.s32 1, %s2768_s22  ;;  %p2333_p0 = scmp.ge.s32.totalorder %s2772_s23, 1  ;;  %s2772_s23 = sphi %s2814_s23, %s16_s23   ;;  %s2768_s22 = sphi %s2812_s22, %s3379_s22   ;;  %s2764_s21 = sphi %s2810_s21, %s3378_s21  }
   0x3   : > { %p30_p1 = scmp.ge.s32.totalorder %s28_s24, 2  ;;  %p248_p2 = scmp.lt.s32.totalorder %s2772_s23, 3 }
   0x5   : > { %s3381_s24 = smov (%p30_p1, %s28_s24), 0  ;;  %p249_p3 = pnand %p2333_p0, %p248_p2 }
   0x6   : > { %v342_v0 = vld [vmem:[%s3369_s2] sm:$0x3] (!%p249_p3)  ;;  %vm376_vm0 = vcmask (!%p249_p3), 1041408   ;;  %p290_p4 = scmp.lt.s32.totalorder (!%p249_p3), %s2764_s21, 1  ;;  %v2347_v2 = vld [vmem:[%s3369_s2 + $0x2] sm:$0x3] (!%p249_p3) }
   0x7   : > { %252 = sbr.rel (%p249_p3) target bundleno = 670 (0x29e), region = 44  ;;  %2686 = vmatprep.subr.msk.bf16.mxu0 (!%p249_p3), %vm376_vm0, %v342_v0  ;;  %2687 = vmatprep.subr.msk.bf16.mxu1 (!%p249_p3), %vm376_vm0, %v342_v0  ;;  %v378_v1 = vsel (!%p249_p3), %vm376_vm0, %v342_v0, 0  ;;  %v2364_v3 = vld [vmem:[%s3369_s2 + $0x4] sm:$0x3] (!%p249_p3)  ;;  %vm317_vm1 = vcmask (!%p249_p3), 31744   ;;  %v2774_v6 = vmov (!%p249_p3), 0.0  }
   0x8   : > { %2595 = vmatpush3.bf16.msra.mxu0 (!%p249_p3), %v378_v1  ;;  %2685 = vmatpush3.bf16.msra.mxu1 (!%p249_p3), %v378_v1  ;;  %v2381_v4 = vld [vmem:[%s3369_s2 + $0x6] sm:$0x3] (!%p249_p3)  ;;  %v2406_v5 = vld [vmem:[%s3369_s2 + $0x8] sm:$0x3] (!%p249_p3)  ;;  %320 = vst.msk [vmem:[#allocation2 + $0x10] sm:$0xff] (!%p249_p3), %vm317_vm1, %v2774_v6  ;;  %318 = vst.msk [vmem:[#allocation2] sm:$0xff] (!%p249_p3), %vm317_vm1, %v2774_v6 }
   0x9   : > { %2688 = vmatprep.subr.msk.bf16.mxu1 (!%p249_p3), %vm376_vm0, %v2347_v2  ;;  %2689 = vmatprep.subr.msk.bf16.mxu0 (!%p249_p3), %vm376_vm0, %v2364_v3  ;;  %319 = vst.msk [vmem:[#allocation2 + $0x8] sm:$0xff] (!%p249_p3), %vm317_vm1, %v2774_v6  ;;  %321 = vst.msk [vmem:[#allocation2 + $0x18] sm:$0xff] (!%p249_p3), %vm317_vm1, %v2774_v6  ;;  %v627_v7 = vsel (!%p249_p3), %vm376_vm0, %v2347_v2, 0  ;;  %vm477_vm2 = vsmask.f32 (!%p249_p3), 3328  ;;  %v812_v8 = vsel (!%p249_p3), %vm376_vm0, %v2364_v3, 0 }
   0xa   : > { %322 = vst.msk [vmem:[#allocation2 + $0x20] sm:$0xff] (!%p249_p3), %vm317_vm1, %v2774_v6  ;;  %323 = vst.msk [vmem:[#allocation2 + $0x28] sm:$0xff] (!%p249_p3), %vm317_vm1, %v2774_v6  ;;  %vm478_vm3 = vsmask.f32 (!%p249_p3), 7440  ;;  %v2867_v9 = vsel (!%p249_p3), %vm376_vm0, %v2381_v4, 0  ;;  %v2870_v10 = vsel (!%p249_p3), %vm376_vm0, %v2406_v5, 0 }
   0xb   : > { %324 = vst.msk [vmem:[#allocation2 + $0x30] sm:$0xff] (!%p249_p3), %vm317_vm1, %v2774_v6  ;;  %325 = vst.msk [vmem:[#allocation2 + $0x38] sm:$0xff] (!%p249_p3), %vm317_vm1, %v2774_v6  ;;  %vm742_vm4 = vcmask (!%p249_p3), 1042432   ;;  %vm743_vm5 = vcmask (!%p249_p3), 1046532   ;;  %vm2222_vm8 = vcmask (!%p249_p3), 27648  }
   0xc   : > { %vm2893_vm6 = vmor (!%p249_p3), %vm477_vm2, %vm478_vm3 }
   0xd   : > { %vm2912_vm7 = vmor (!%p249_p3), %vm742_vm4, %vm743_vm5 }
   0xe   : > { %s3383_s21 = smov (!%p290_p4, %s2764_s21), 1 }
   0xf   : > { %s2696_s11 = smul.u32 80, %s3383_s21  ;;  %s2528_s29 = sshll.u32 %s3383_s21, 5 }
  0x10   : > { %s3295_s8 = scalar_lea.vmem %s3368_s1, %s2528_s29  ;;  %s3323_s15 = scalar_lea.vmem %s3373_s6, %s2528_s29 }
  0x11   : > { %s2863_s14 = scalar_lea.vmem %s3367_s0, %s2696_s11 }
  0x12   : > { %v2722_v11 = vld [vmem:[%s2863_s14] ss:$8 sps:$4 sm:$0xff]   ;;  %v2724_v13 = vld [vmem:[%s2863_s14 + $0x10] ss:$8 sps:$4 sm:$0xff]   ;;  %v462_v16 = vld [vmem:[%s2863_s14 + $0x4] sm:$0x1] }
  0x13   : > { %v2723_v12 = vld [vmem:[%s2863_s14 + $0x20] ss:$8 sps:$4 sm:$0xff]   ;;  %2596 = vmatprep.mubr.msk.bf16.mxu0 %vm317_vm1, %v2722_v11  ;;  %v2725_v14 = vld [vmem:[%s2863_s14 + $0x30] ss:$8 sps:$4 sm:$0xff]   ;;  %v464_v18 = vld [vmem:[%s2863_s14 + $0xc] sm:$0x1] }
  0x14   : > { %2600 = vmatprep.mubr.msk.bf16.mxu1 %vm317_vm1, %v2723_v12  ;;  %2597 = vmatmul.mubr.msk.bf16.vlgmr.msra.gmra.mrb[0].mxu0 %vm317_vm1, %v2724_v13  ;;  %v461_v15 = vld [vmem:[%s2863_s14] sm:$0xf]  ;;  %v463_v17 = vld [vmem:[%s2863_s14 + $0x8] sm:$0xf]  ;;  %v490_v21 = vshll.u32 %v462_v16, 16  ;;  %v504_v24 = vshll.u32 %v464_v18, 16 }
  0x15   : > { %2601 = vmatmul.mubr.msk.bf16.vlgmr.msra.gmra.mrb[0].mxu1 %vm317_vm1, %v2725_v14  ;;  %v481_v19 = vshrl.u32 %v461_v15, 16  ;;  %v484_v20 = vshll.u32 %v461_v15, 16  ;;  %v495_v22 = vshrl.u32 %v463_v17, 16  ;;  %2615 = vmatpush3.bf16.msra.mxu0 %v812_v8  ;;  %v498_v23 = vshll.u32 %v463_v17, 16  ;;  %v465_v25 = vld [vmem:[%s2863_s14 + $0x10] sm:$0xf] }
  0x16   : > { %2605 = vmatpush3.bf16.msra.mxu1 %v627_v7  ;;  %v466_v26 = vld [vmem:[%s2863_s14 + $0x14] sm:$0x1]  ;;  %2691 = vmatprep.subr.msk.bf16.mxu0 %vm376_vm0, %v2406_v5  ;;  %v492_v29 = vrot.slane %v490_v21, 5  ;;  %v467_v31 = vld [vmem:[%s2863_s14 + $0x18] sm:$0xf]  ;;  %v506_v33 = vrot.slane %v504_v24, 5 }
  0x17   : > { %v483_v27 = vrot.slane %v481_v19, 4  ;;  %v486_v28 = vrot.slane %v484_v20, 5  ;;  %v497_v30 = vrot.slane %v495_v22, 4  ;;  %2690 = vmatprep.subr.msk.bf16.mxu1 %vm376_vm0, %v2381_v4  ;;  %v500_v32 = vrot.slane %v498_v23, 5  ;;  %v468_v34 = vld [vmem:[%s2863_s14 + $0x1c] sm:$0x1] }
  0x18   : > { %v509_v35 = vshrl.u32 %v465_v25, 16  ;;  %v512_v36 = vshll.u32 %v465_v25, 16  ;;  %v518_v38 = vshll.u32 %v466_v26, 16  ;;  %v523_v39 = vshrl.u32 %v467_v31, 16  ;;  %v469_v41 = vld [vmem:[%s2863_s14 + $0x20] sm:$0xf] }
  0x19   : > { %v487_v37 = vor.u32 %v486_v28, %v483_v27  ;;  %v526_v40 = vshll.u32 %v467_v31, 16  ;;  %v501_v43 = vor.u32 %v500_v32, %v497_v30  ;;  %v532_v46 = vshll.u32 %v468_v34, 16  ;;  %v470_v47 = vld [vmem:[%s2863_s14 + $0x24] sm:$0x1]  ;;  %v471_v52 = vld [vmem:[%s2863_s14 + $0x28] sm:$0xf] }
  0x1a   : > { %v511_v44 = vrot.slane %v509_v35, 4  ;;  %v514_v45 = vrot.slane %v512_v36, 5  ;;  %v520_v49 = vrot.slane %v518_v38, 5  ;;  %v525_v50 = vrot.slane %v523_v39, 4  ;;  %v472_v56 = vld [vmem:[%s2863_s14 + $0x2c] sm:$0x1] }
  0x1b   : > { %v488_v48 = vrot.slane %v487_v37, 4  ;;  %v528_v51 = vrot.slane %v526_v40, 5  ;;  %v502_v53 = vrot.slane %v501_v43, 4  ;;  %v534_v55 = vrot.slane %v532_v46, 5  ;;  %v710_v62 = vld [vmem:[%s2863_s14] sm:$0xe] }
  0x1c   : > { %v515_v54 = vor.u32 %v514_v45, %v511_v44  ;;  %v537_v57 = vshrl.u32 %v469_v41, 16  ;;  %v540_v60 = vshll.u32 %v469_v41, 16  ;;  %v546_v61 = vshll.u32 %v470_v47, 16  ;;  %v711_v63 = vld [vmem:[%s2863_s14 + $0x4] sm:$0x1] }
  0x1d   : > { %v493_v58 = vsel %vm2893_vm6, %v488_v48, %v492_v29  ;;  %v529_v59 = vor.u32 %v528_v51, %v525_v50  ;;  %v507_v0 = vsel %vm2893_vm6, %v502_v53, %v506_v33  ;;  %v551_v3 = vshrl.u32 %v471_v52, 16  ;;  %v712_v4 = vld [vmem:[%s2863_s14 + $0x8] sm:$0xe]  ;;  %v713_v11 = vld [vmem:[%s2863_s14 + $0xc] sm:$0x1] }
  0x1e   : > { %v516_v1 = vrot.slane %v515_v54, 4  ;;  %v539_v2 = vrot.slane %v537_v57, 4  ;;  %v2348_v5 = vcombine.low %v493_v58, %v507_v0  ;;  %v542_v7 = vrot.slane %v540_v60, 5  ;;  %v473_v17 = vld [vmem:[%s2863_s14 + $0x30] sm:$0xf] }
  0x1f   : > { %v530_v6 = vrot.slane %v529_v59, 4  ;;  %v548_v8 = vrot.slane %v546_v61, 5  ;;  %v553_v13 = vrot.slane %v551_v3, 4  ;;  %v554_v14 = vshll.u32 %v471_v52, 16  ;;  %v474_v22 = vld [vmem:[%s2863_s14 + $0x34] sm:$0x1] }
  0x20   : > { %v521_v12 = vsel %vm2893_vm6, %v516_v1, %v520_v49  ;;  %v560_v15 = vshll.u32 %v472_v56, 16  ;;  %2606 = vmatprep.mubr.msk.bf16.mxu1 %vm317_vm1, %v2348_v5  ;;  %v543_v19 = vor.u32 %v542_v7, %v539_v2  ;;  %v2356_v20 = vrot.slane %v710_v62, 9  ;;  %v475_v23 = vld [vmem:[%s2863_s14 + $0x38] sm:$0xf]  ;;  %v2925_v24 = vld [vmem:[%s3369_s2 + $0xa] sm:$0x3] }
  0x21   : > { %v535_v18 = vsel %vm2893_vm6, %v530_v6, %v534_v55  ;;  %v747_v21 = vrot.slane %v711_v63, 5  ;;  %v556_v26 = vrot.slane %v554_v14, 5  ;;  %v2357_v28 = vrot.slane %v712_v4, 9  ;;  %v476_v29 = vld [vmem:[%s2863_s14 + $0x3c] sm:$0x1] }
  0x22   : > { %v2349_v25 = vcombine.low %v521_v12, %v535_v18  ;;  %v562_v27 = vrot.slane %v560_v15, 5  ;;  %v544_v30 = vrot.slane %v543_v19, 4  ;;  %v751_v32 = vrot.slane %v713_v11, 5  ;;  %v714_v34 = vld [vmem:[%s2863_s14 + $0x10] sm:$0xe] }
  0x23   : > { %v748_v31 = vsel %vm2912_vm7, %v2356_v20, %v747_v21  ;;  %v565_v33 = vshrl.u32 %v473_v17, 16  ;;  %v557_v35 = vor.u32 %v556_v26, %v553_v13  ;;  %v568_v36 = vshll.u32 %v473_v17, 16  ;;  %v715_v39 = vld [vmem:[%s2863_s14 + $0x14] sm:$0x1]  ;;  %v716_v45 = vld [vmem:[%s2863_s14 + $0x18] sm:$0xe] }
  0x24   : > { %2607 = vmatmul.mubr.msk.bf16.vlgmr.msra.gmra.mrb[4].mxu1 %vm317_vm1, %v2349_v25  ;;  %v574_v37 = vshll.u32 %v474_v22, 16  ;;  %v579_v38 = vshrl.u32 %v475_v23, 16  ;;  %v549_v40 = vsel %vm2893_vm6, %v544_v30, %v548_v8  ;;  %v752_v41 = vsel %vm2912_vm7, %v2357_v28, %v751_v32  ;;  %v717_v46 = vld [vmem:[%s2863_s14 + $0x1c] sm:$0x1]  ;;  %v718_v51 = vld [vmem:[%s2863_s14 + $0x20] sm:$0xe] }
  0x25   : > { %2625 = vmatpush3.bf16.msra.mxu1 %v2867_v9  ;;  %v567_v43 = vrot.slane %v565_v33, 4  ;;  %v582_v44 = vshll.u32 %v475_v23, 16  ;;  %v558_v47 = vrot.slane %v557_v35, 4  ;;  %v2365_v48 = vcombine.low %v748_v31, %v752_v41  ;;  %v719_v55 = vld [vmem:[%s2863_s14 + $0x24] sm:$0x1] }
  0x26   : > { %v570_v49 = vrot.slane %v568_v36, 5  ;;  %v576_v50 = vrot.slane %v574_v37, 5  ;;  %2692 = vmatprep.subr.msk.bf16.mxu1 %vm376_vm0, %v2925_v24  ;;  %v581_v9 = vrot.slane %v579_v38, 4  ;;  %v588_v53 = vshll.u32 %v476_v29, 16  ;;  %v720_v60 = vld [vmem:[%s2863_s14 + $0x28] sm:$0xe] }
  0x27   : > { %v584_v52 = vrot.slane %v582_v44, 5  ;;  %v2358_v54 = vrot.slane %v714_v34, 9  ;;  %v563_v56 = vsel %vm2893_vm6, %v558_v47, %v562_v27  ;;  %2616 = vmatprep.mubr.msk.bf16.mxu0 %vm317_vm1, %v2365_v48  ;;  %v755_v58 = vrot.slane %v715_v39, 5  ;;  %v721_v61 = vld [vmem:[%s2863_s14 + $0x2c] sm:$0x1] }
  0x28   : > { %v571_v57 = vor.u32 %v570_v49, %v567_v43  ;;  %v2359_v59 = vrot.slane %v716_v45, 9  ;;  %v2350_v62 = vcombine.low %v549_v40, %v563_v56  ;;  %v590_v0 = vrot.slane %v588_v53, 5  ;;  %v722_v2 = vld [vmem:[%s2863_s14 + $0x30] sm:$0xe]  ;;  %v723_v3 = vld [vmem:[%s2863_s14 + $0x34] sm:$0x1] }
  0x29   : > { %v585_v63 = vor.u32 %v584_v52, %v581_v9  ;;  %v759_v1 = vrot.slane %v717_v46, 5  ;;  %v756_v5 = vsel %vm2912_vm7, %v2358_v54, %v755_v58  ;;  %v2360_v6 = vrot.slane %v718_v51, 9  ;;  %v724_v8 = vld [vmem:[%s2863_s14 + $0x38] sm:$0xe]  ;;  %v725_v15 = vld [vmem:[%s2863_s14 + $0x3c] sm:$0x1] }
  0x2a   : > { %v572_v4 = vrot.slane %v571_v57, 4  ;;  %v763_v7 = vrot.slane %v719_v55, 5  ;;  %2610 = vmatprep.mubr.msk.bf16.mxu1 %vm317_vm1, %v2350_v62  ;;  %v2361_v13 = vrot.slane %v720_v60, 9  ;;  %v767_v14 = vrot.slane %v721_v61, 5  ;;  %v2456_v17 = vld [vmem:[%s3369_s2 + $0xc] sm:$0x3] }
  0x2b   : > { %v586_v11 = vrot.slane %v585_v63, 4  ;;  %v760_v12 = vsel %vm2912_vm7, %v2359_v59, %v759_v1  ;;  %v2964_v18 = vld [vmem:[%s3369_s2 + $0xe] sm:$0x3]  ;;  %v2362_v22 = vrot.slane %v722_v2, 9  ;;  %v771_v26 = vrot.slane %v723_v3, 5 }
  0x2c   : > { %v577_v19 = vsel %vm2893_vm6, %v572_v4, %v576_v50  ;;  %v2366_v20 = vcombine.low %v756_v5, %v760_v12  ;;  %v764_v21 = vsel %vm2912_vm7, %v2360_v6, %v763_v7  ;;  %v768_v25 = vsel %vm2912_vm7, %v2361_v13, %v767_v14  ;;  %v2726_v28 = vld [vmem:[%s2863_s14 + $0x8] ss:$8 sps:$4 sm:$0xff]   ;;  %v2391_v37 = vld [vmem:[%s2863_s14 + $0xc] sm:$0x1]  ;;  %v2727_v39 = vld [vmem:[%s2863_s14 + $0x18] ss:$8 sps:$4 sm:$0xff]  }
  0x2d   : > { %v591_v23 = vsel %vm2893_vm6, %v586_v11, %v590_v0  ;;  %v2363_v27 = vrot.slane %v724_v8, 9  ;;  %v2367_v30 = vcombine.low %v764_v21, %v768_v25  ;;  %v775_v31 = vrot.slane %v725_v15, 5  ;;  %v2392_v38 = vld [vmem:[%s2863_s14 + $0x10] sm:$0xf]  ;;  %v2393_v40 = vld [vmem:[%s2863_s14 + $0x14] sm:$0x1] }
  0x2e   : > { %v2351_v29 = vcombine.low %v577_v19, %v591_v23  ;;  %2617 = vmatmul.mubr.msk.bf16.vlgmr.msra.gmra.mrb[4].mxu0 %vm317_vm1, %v2366_v20  ;;  %v772_v32 = vsel %vm2912_vm7, %v2362_v22, %v771_v26  ;;  %v1375_v33 = vsel %vm376_vm0, %v2925_v24, 0  ;;  %v2986_v35 = vsel %vm376_vm0, %v2456_v17, 0  ;;  %v2390_v24 = vld [vmem:[%s2863_s14 + $0x8] sm:$0xf]  ;;  %v2394_v49 = vld [vmem:[%s2863_s14 + $0x18] sm:$0xf] }
  0x2f   : > { %2635 = vmatpush3.bf16.msra.mxu0 %v2870_v10  ;;  %2620 = vmatprep.mubr.msk.bf16.mxu0 %vm317_vm1, %v2367_v30  ;;  %v776_v34 = vsel %vm2912_vm7, %v2363_v27, %v775_v31  ;;  %v2990_v10 = vsel %vm376_vm0, %v2964_v18, 0  ;;  %v1047_v41 = vshrl.u32 %v2390_v24, 16  ;;  %v1050_v43 = vshll.u32 %v2390_v24, 16  ;;  %v2728_v46 = vld [vmem:[%s2863_s14 + $0x28] ss:$8 sps:$4 sm:$0xff]  }
  0x30   : > { %2611 = vmatmul.mubr.msk.bf16.gmra.mrb[8].mxu1 %vm317_vm1, %v2351_v29  ;;  %v2368_v36 = vcombine.low %v772_v32, %v776_v34  ;;  %2693 = vmatprep.subr.msk.bf16.mxu0 %vm376_vm0, %v2456_v17  ;;  %v1056_v44 = vshll.u32 %v2391_v37, 16  ;;  %v1061_v45 = vshrl.u32 %v2392_v38, 16  ;;  %v1064_v47 = vshll.u32 %v2392_v38, 16  ;;  %v2395_v50 = vld [vmem:[%s2863_s14 + $0x1c] sm:$0x1] }
  0x31   : > { %2626 = vmatprep.mubr.msk.bf16.mxu1 %vm317_vm1, %v2726_v28  ;;  %v1070_v48 = vshll.u32 %v2393_v40, 16  ;;  %v1049_v51 = vrot.slane %v1047_v41, 4  ;;  %v1052_v9 = vrot.slane %v1050_v43, 5  ;;  %v2396_v54 = vld [vmem:[%s2863_s14 + $0x20] sm:$0xf]  ;;  %v1075_v58 = vshrl.u32 %v2394_v49, 16 }
  0x32   : > { %v1058_v52 = vrot.slane %v1056_v44, 5  ;;  %v1063_v53 = vrot.slane %v1061_v45, 4  ;;  %v1066_v55 = vrot.slane %v1064_v47, 5  ;;  %v2397_v57 = vld [vmem:[%s2863_s14 + $0x24] sm:$0x1]  ;;  %v1078_v59 = vshll.u32 %v2394_v49, 16 }
  0x33   : > { %v1072_v56 = vrot.slane %v1070_v48, 5  ;;  %v1053_v60 = vor.u32 %v1052_v9, %v1049_v51  ;;  %v1084_v61 = vshll.u32 %v2395_v50, 16  ;;  %v1089_v62 = vshrl.u32 %v2396_v54, 16  ;;  %v2398_v0 = vld [vmem:[%s2863_s14 + $0x28] sm:$0xf] }
  0x34   : > { %v1092_v63 = vshll.u32 %v2396_v54, 16  ;;  %v1067_v1 = vor.u32 %v1066_v55, %v1063_v53  ;;  %v1077_v2 = vrot.slane %v1075_v58, 4  ;;  %v1080_v3 = vrot.slane %v1078_v59, 5  ;;  %v2399_v5 = vld [vmem:[%s2863_s14 + $0x2c] sm:$0x1] }
  0x35   : > { %v1098_v4 = vshll.u32 %v2397_v57, 16  ;;  %v1054_v6 = vrot.slane %v1053_v60, 4  ;;  %v1086_v7 = vrot.slane %v1084_v61, 5  ;;  %v1091_v8 = vrot.slane %v1089_v62, 4  ;;  %v2400_v12 = vld [vmem:[%s2863_s14 + $0x30] sm:$0xf] }
  0x36   : > { %2621 = vmatmul.mubr.msk.bf16.gmra.mrb[8].mxu0 %vm317_vm1, %v2368_v36  ;;  %v1094_v11 = vrot.slane %v1092_v63, 5  ;;  %v1068_v13 = vrot.slane %v1067_v1, 4  ;;  %v1081_v14 = vor.u32 %v1080_v3, %v1077_v2  ;;  %v1103_v17 = vshrl.u32 %v2398_v0, 16  ;;  %v2729_v19 = vld [vmem:[%s2863_s14 + $0x38] ss:$8 sps:$4 sm:$0xff]  }
  0x37   : > { %v1100_v15 = vrot.slane %v1098_v4, 5  ;;  %v1059_v20 = vsel %vm2893_vm6, %v1054_v6, %v1058_v52  ;;  %v2401_v22 = vld [vmem:[%s2863_s14 + $0x34] sm:$0x1]  ;;  %v1106_v23 = vshll.u32 %v2398_v0, 16  ;;  %v1112_v25 = vshll.u32 %v2399_v5, 16 }
  0x38   : > { %2627 = vmatmul.mubr.msk.bf16.vlgmr.msra.gmra.mrb[12].mxu1 %vm317_vm1, %v2727_v39  ;;  %v1095_v21 = vor.u32 %v1094_v11, %v1091_v8  ;;  %v2402_v26 = vld [vmem:[%s2863_s14 + $0x38] sm:$0xf]  ;;  %v1073_v27 = vsel %vm2893_vm6, %v1068_v13, %v1072_v56  ;;  %v1082_v28 = vrot.slane %v1081_v14, 4  ;;  %v1105_v29 = vrot.slane %v1103_v17, 4  ;;  %v2403_v31 = vld [vmem:[%s2863_s14 + $0x3c] sm:$0x1] }
  0x39   : > { %2645 = vmatpush3.bf16.msra.mxu1 %v1375_v33  ;;  %2630 = vmatprep.mubr.msk.bf16.mxu1 %vm317_vm1, %v2728_v46  ;;  %v1117_v30 = vshrl.u32 %v2400_v12, 16  ;;  %v2407_v32 = vcombine.low %v1059_v20, %v1073_v27  ;;  %v1108_v34 = vrot.slane %v1106_v23, 5  ;;  %v1114_v36 = vrot.slane %v1112_v25, 5  ;;  %v2404_v24 = vld [vmem:[%s2863_s14 + $0x40] sm:$0xf] }
  0x3a   : > { %2694 = vmatprep.subr.msk.bf16.mxu1 %vm376_vm0, %v2964_v18  ;;  %v1096_v33 = vrot.slane %v1095_v21, 4  ;;  %v1087_v37 = vsel %vm2893_vm6, %v1082_v28, %v1086_v7  ;;  %v1120_v18 = vshll.u32 %v2400_v12, 16  ;;  %v1126_v39 = vshll.u32 %v2401_v22, 16  ;;  %v2405_v40 = vld [vmem:[%s2863_s14 + $0x44] sm:$0x1] }
  0x3b   : > { %v1119_v38 = vrot.slane %v1117_v30, 4  ;;  %2636 = vmatprep.mubr.msk.bf16.mxu0 %vm317_vm1, %v2407_v32  ;;  %v1109_v43 = vor.u32 %v1108_v34, %v1105_v29  ;;  %v1131_v44 = vshrl.u32 %v2402_v26, 16  ;;  %v1134_v45 = vshll.u32 %v2402_v26, 16  ;;  %v2415_v46 = vld [vmem:[%s2863_s14 + $0x8] sm:$0xe] }
  0x3c   : > { %v1101_v41 = vsel %vm2893_vm6, %v1096_v33, %v1100_v15  ;;  %v2416_v47 = vld [vmem:[%s2863_s14 + $0xc] sm:$0x1]  ;;  %v3032_v48 = vld [vmem:[%s3369_s2 + $0x10] sm:$0x3]  ;;  %v1122_v50 = vrot.slane %v1120_v18, 5  ;;  %v1128_v51 = vrot.slane %v1126_v39, 5 }
  0x3d   : > { %v2408_v49 = vcombine.low %v1087_v37, %v1101_v41  ;;  %v1140_v9 = vshll.u32 %v2403_v31, 16  ;;  %v2417_v52 = vld [vmem:[%s2863_s14 + $0x10] sm:$0xe]  ;;  %v2418_v53 = vld [vmem:[%s2863_s14 + $0x14] sm:$0x1]  ;;  %v1110_v54 = vrot.slane %v1109_v43, 4 }
  0x3e   : > { %v1133_v55 = vrot.slane %v1131_v44, 4  ;;  %v1136_v56 = vrot.slane %v1134_v45, 5  ;;  %v1145_v57 = vshrl.u32 %v2404_v24, 16  ;;  %v2419_v58 = vld [vmem:[%s2863_s14 + $0x18] sm:$0xe]  ;;  %v1123_v59 = vor.u32 %v1122_v50, %v1119_v38 }
  0x3f   : > { %2637 = vmatmul.mubr.msk.bf16.vlgmr.msra.gmra.mrb[12].mxu0 %vm317_vm1, %v2408_v49  ;;  %v1142_v60 = vrot.slane %v1140_v9, 5  ;;  %v1148_v61 = vshll.u32 %v2404_v24, 16  ;;  %v1154_v62 = vshll.u32 %v2405_v40, 16  ;;  %v2420_v63 = vld [vmem:[%s2863_s14 + $0x1c] sm:$0x1]  ;;  %v1115_v0 = vsel %vm2893_vm6, %v1110_v54, %v1114_v36 }
  0x40   : > { %2631 = vmatmul.mubr.msk.bf16.gmra.mrb[16].mxu1 %vm317_vm1, %v2729_v19  ;;  %2655 = vmatpush3.bf16.msra.mxu0 %v2986_v35  ;;  %v1137_v1 = vor.u32 %v1136_v56, %v1133_v55  ;;  %v1147_v2 = vrot.slane %v1145_v57, 4  ;;  %v2431_v3 = vrot.slane %v2415_v46, 9  ;;  %v2421_v4 = vld [vmem:[%s2863_s14 + $0x20] sm:$0xe]  ;;  %v2422_v5 = vld [vmem:[%s2863_s14 + $0x24] sm:$0x1] }
  0x41   : > { %v1124_v6 = vrot.slane %v1123_v59, 4  ;;  %v1150_v7 = vrot.slane %v1148_v61, 5  ;;  %v1156_v8 = vrot.slane %v1154_v62, 5  ;;  %v1310_v11 = vrot.slane %v2416_v47, 5  ;;  %v2423_v12 = vld [vmem:[%s2863_s14 + $0x28] sm:$0xe]  ;;  %2695 = vmatprep.subr.msk.bf16.mxu0 %vm376_vm0, %v3032_v48 }
  0x42   : > { %v1138_v35 = vrot.slane %v1137_v1, 4  ;;  %v2432_v13 = vrot.slane %v2417_v52, 9  ;;  %v1314_v14 = vrot.slane %v2418_v53, 5  ;;  %v2433_v15 = vrot.slane %v2419_v58, 9  ;;  %v2424_v17 = vld [vmem:[%s2863_s14 + $0x2c] sm:$0x1] }
  0x43   : > { %v1129_v19 = vsel %vm2893_vm6, %v1124_v6, %v1128_v51  ;;  %v1151_v20 = vor.u32 %v1150_v7, %v1147_v2  ;;  %v1311_v21 = vsel %vm2912_vm7, %v2431_v3, %v1310_v11  ;;  %v1318_v22 = vrot.slane %v2420_v63, 5  ;;  %v2425_v23 = vld [vmem:[%s2863_s14 + $0x30] sm:$0xe]  ;;  %v2426_v25 = vld [vmem:[%s2863_s14 + $0x34] sm:$0x1] }
  0x44   : > { %v2409_v26 = vcombine.low %v1115_v0, %v1129_v19  ;;  %v1143_v27 = vsel %vm2893_vm6, %v1138_v35, %v1142_v60  ;;  %v1315_v28 = vsel %vm2912_vm7, %v2432_v13, %v1314_v14  ;;  %v2434_v29 = vrot.slane %v2421_v4, 9  ;;  %v2427_v30 = vld [vmem:[%s2863_s14 + $0x38] sm:$0xe]  ;;  %v2428_v31 = vld [vmem:[%s2863_s14 + $0x3c] sm:$0x1] }
  0x45   : > { %v1152_v32 = vrot.slane %v1151_v20, 4  ;;  %v2440_v33 = vcombine.low %v1311_v21, %v1315_v28  ;;  %v1319_v34 = vsel %vm2912_vm7, %v2433_v15, %v1318_v22  ;;  %v1322_v36 = vrot.slane %v2422_v5, 5  ;;  %v2429_v24 = vld [vmem:[%s2863_s14 + $0x40] sm:$0xe]  ;;  %v2430_v37 = vld [vmem:[%s2863_s14 + $0x44] sm:$0x1] }
  0x46   : > { %2640 = vmatprep.mubr.msk.bf16.mxu0 %vm317_vm1, %v2409_v26  ;;  %v2435_v38 = vrot.slane %v2423_v12, 9  ;;  %v1326_v18 = vrot.slane %v2424_v17, 5  ;;  %v2436_v39 = vrot.slane %v2425_v23, 9  ;;  %v1330_v40 = vrot.slane %v2426_v25, 5  ;;  %v2730_v51 = vld [vmem:[%s2863_s14 + $0x10] ss:$8 sps:$4 sm:$0xff]  }
  0x47   : > { %v1157_v41 = vsel %vm2893_vm6, %v1152_v32, %v1156_v8  ;;  %2646 = vmatprep.mubr.msk.bf16.mxu1 %vm317_vm1, %v2440_v33  ;;  %v1323_v43 = vsel %vm2912_vm7, %v2434_v29, %v1322_v36  ;;  %v2437_v44 = vrot.slane %v2427_v30, 9  ;;  %v1334_v45 = vrot.slane %v2428_v31, 5  ;;  %v2465_v57 = vld [vmem:[%s2863_s14 + $0x10] sm:$0xf]  ;;  %v2466_v58 = vld [vmem:[%s2863_s14 + $0x14] sm:$0x1] }
  0x48   : > { %v2410_v46 = vcombine.low %v1143_v27, %v1157_v41  ;;  %v2441_v47 = vcombine.low %v1319_v34, %v1323_v43  ;;  %v1327_v49 = vsel %vm2912_vm7, %v2435_v38, %v1326_v18  ;;  %v1331_v50 = vsel %vm2912_vm7, %v2436_v39, %v1330_v40  ;;  %v2731_v59 = vld [vmem:[%s2863_s14 + $0x20] ss:$8 sps:$4 sm:$0xff]   ;;  %v2468_v60 = vld [vmem:[%s2863_s14 + $0x1c] sm:$0x1]  ;;  %v2732_v63 = vld [vmem:[%s2863_s14 + $0x30] ss:$8 sps:$4 sm:$0xff]  }
  0x49   : > { %v2442_v9 = vcombine.low %v1327_v49, %v1331_v50  ;;  %v2438_v52 = vrot.slane %v2429_v24, 9  ;;  %v1338_v53 = vrot.slane %v2430_v37, 5  ;;  %v1335_v54 = vsel %vm2912_vm7, %v2437_v44, %v1334_v45  ;;  %v2469_v4 = vld [vmem:[%s2863_s14 + $0x20] sm:$0xf]  ;;  %v2470_v7 = vld [vmem:[%s2863_s14 + $0x24] sm:$0x1] }
  0x4a   : > { %2641 = vmatmul.mubr.msk.bf16.gmra.mrb[16].mxu0 %vm317_vm1, %v2410_v46  ;;  %2647 = vmatmul.mubr.msk.bf16.vlgmr.msra.gmra.mrb[20].mxu1 %vm317_vm1, %v2441_v47  ;;  %v1938_v56 = vsel %vm376_vm0, %v3032_v48, 0  ;;  %v1610_v61 = vshrl.u32 %v2465_v57, 16  ;;  %v1613_v62 = vshll.u32 %v2465_v57, 16  ;;  %v1619_v0 = vshll.u32 %v2466_v58, 16  ;;  %v2471_v8 = vld [vmem:[%s2863_s14 + $0x28] sm:$0xf] }
  0x4b   : > { %2665 = vmatpush3.bf16.msra.mxu1 %v2990_v10  ;;  %2650 = vmatprep.mubr.msk.bf16.mxu1 %vm317_vm1, %v2442_v9  ;;  %v1339_v55 = vsel %vm2912_vm7, %v2438_v52, %v1338_v53  ;;  %v2467_v10 = vld [vmem:[%s2863_s14 + $0x18] sm:$0xf]  ;;  %v1633_v3 = vshll.u32 %v2468_v60, 16  ;;  %v2472_v14 = vld [vmem:[%s2863_s14 + $0x2c] sm:$0x1]  ;;  %v1638_v17 = vshrl.u32 %v2469_v4, 16 }
  0x4c   : > { %2656 = vmatprep.mubr.msk.bf16.mxu0 %vm317_vm1, %v2730_v51  ;;  %v1624_v1 = vshrl.u32 %v2467_v10, 16  ;;  %v1627_v2 = vshll.u32 %v2467_v10, 16  ;;  %v2443_v48 = vcombine.low %v1335_v54, %v1339_v55  ;;  %v1612_v5 = vrot.slane %v1610_v61, 4  ;;  %v2473_v21 = vld [vmem:[%s2863_s14 + $0x30] sm:$0xf] }
  0x4d   : > { %v1615_v6 = vrot.slane %v1613_v62, 5  ;;  %v1621_v11 = vrot.slane %v1619_v0, 5  ;;  %v1635_v13 = vrot.slane %v1633_v3, 5  ;;  %v1641_v19 = vshll.u32 %v2469_v4, 16  ;;  %v2474_v27 = vld [vmem:[%s2863_s14 + $0x34] sm:$0x1] }
  0x4e   : > { %v1626_v12 = vrot.slane %v1624_v1, 4  ;;  %v1629_v35 = vrot.slane %v1627_v2, 5  ;;  %v1647_v20 = vshll.u32 %v2470_v7, 16  ;;  %v1652_v23 = vshrl.u32 %v2471_v8, 16  ;;  %v2475_v32 = vld [vmem:[%s2863_s14 + $0x38] sm:$0xf] }
  0x4f   : > { %v1616_v15 = vor.u32 %v1615_v6, %v1612_v5  ;;  %v1655_v25 = vshll.u32 %v2471_v8, 16  ;;  %v1661_v26 = vshll.u32 %v2472_v14, 16  ;;  %v1640_v29 = vrot.slane %v1638_v17, 4  ;;  %v2733_v37 = vld [vmem:[%s2863_s14 + $0x40] ss:$8 sps:$4 sm:$0xff]  }
  0x50   : > { %v1630_v22 = vor.u32 %v1629_v35, %v1626_v12  ;;  %v1643_v30 = vrot.slane %v1641_v19, 5  ;;  %v1649_v31 = vrot.slane %v1647_v20, 5  ;;  %v1654_v34 = vrot.slane %v1652_v23, 4  ;;  %v2476_v39 = vld [vmem:[%s2863_s14 + $0x3c] sm:$0x1] }
  0x51   : > { %v1617_v28 = vrot.slane %v1616_v15, 4  ;;  %v1657_v36 = vrot.slane %v1655_v25, 5  ;;  %v1663_v24 = vrot.slane %v1661_v26, 5  ;;  %v1666_v40 = vshrl.u32 %v2473_v21, 16  ;;  %v2477_v47 = vld [vmem:[%s2863_s14 + $0x40] sm:$0xf] }
  0x52   : > { %2651 = vmatmul.mubr.msk.bf16.gmra.mrb[24].mxu1 %vm317_vm1, %v2443_v48  ;;  %2657 = vmatmul.mubr.msk.bf16.vlgmr.msra.gmra.mrb[20].mxu0 %vm317_vm1, %v2731_v59  ;;  %v1631_v33 = vrot.slane %v1630_v22, 4  ;;  %v1644_v18 = vor.u32 %v1643_v30, %v1640_v29  ;;  %v1669_v41 = vshll.u32 %v2473_v21, 16  ;;  %v1675_v45 = vshll.u32 %v2474_v27, 16  ;;  %v2478_v49 = vld [vmem:[%s2863_s14 + $0x44] sm:$0x1] }
  0x53   : > { %2675 = vmatpush3.bf16.msra.mxu0 %v1938_v56  ;;  %2660 = vmatprep.mubr.msk.bf16.mxu0 %vm317_vm1, %v2732_v63  ;;  %v1622_v38 = vsel %vm2893_vm6, %v1617_v28, %v1621_v11  ;;  %v1658_v44 = vor.u32 %v1657_v36, %v1654_v34  ;;  %v1680_v46 = vshrl.u32 %v2475_v32, 16  ;;  %v1668_v9 = vrot.slane %v1666_v40, 4  ;;  %v2479_v53 = vld [vmem:[%s2863_s14 + $0x48] sm:$0xf]  ;;  %v2480_v58 = vld [vmem:[%s2863_s14 + $0x4c] sm:$0x1] }
  0x54   : > { %v1636_v43 = vsel %vm2893_vm6, %v1631_v33, %v1635_v13  ;;  %v1645_v51 = vrot.slane %v1644_v18, 4  ;;  %v1671_v52 = vrot.slane %v1669_v41, 5  ;;  %v1677_v55 = vrot.slane %v1675_v45, 5  ;;  %v2490_v62 = vld [vmem:[%s2863_s14 + $0x10] sm:$0xe] }
  0x55   : > { %v2482_v50 = vcombine.low %v1622_v38, %v1636_v43  ;;  %v1659_v54 = vrot.slane %v1658_v44, 4  ;;  %v1682_v56 = vrot.slane %v1680_v46, 4  ;;  %v1683_v57 = vshll.u32 %v2475_v32, 16  ;;  %v2491_v63 = vld [vmem:[%s2863_s14 + $0x14] sm:$0x1] }
  0x56   : > { %v1650_v59 = vsel %vm2893_vm6, %v1645_v51, %v1649_v31  ;;  %v1672_v10 = vor.u32 %v1671_v52, %v1668_v9  ;;  %v1689_v60 = vshll.u32 %v2476_v39, 16  ;;  %v1694_v61 = vshrl.u32 %v2477_v47, 16  ;;  %v2492_v4 = vld [vmem:[%s2863_s14 + $0x18] sm:$0xe]  ;;  %v2493_v48 = vld [vmem:[%s2863_s14 + $0x1c] sm:$0x1] }
  0x57   : > { %2666 = vmatprep.mubr.msk.bf16.mxu1 %vm317_vm1, %v2482_v50  ;;  %v1664_v0 = vsel %vm2893_vm6, %v1659_v54, %v1663_v24  ;;  %v1685_v1 = vrot.slane %v1683_v57, 5  ;;  %v1697_v2 = vshll.u32 %v2477_v47, 16  ;;  %v1703_v3 = vshll.u32 %v2478_v49, 16  ;;  %v2494_v11 = vld [vmem:[%s2863_s14 + $0x20] sm:$0xe] }
  0x58   : > { %v2483_v5 = vcombine.low %v1650_v59, %v1664_v0  ;;  %v1673_v6 = vrot.slane %v1672_v10, 4  ;;  %v1691_v7 = vrot.slane %v1689_v60, 5  ;;  %v1696_v8 = vrot.slane %v1694_v61, 4  ;;  %v2495_v15 = vld [vmem:[%s2863_s14 + $0x24] sm:$0x1] }
  0x59   : > { %v1686_v12 = vor.u32 %v1685_v1, %v1682_v56  ;;  %v1699_v35 = vrot.slane %v1697_v2, 5  ;;  %v1705_v13 = vrot.slane %v1703_v3, 5  ;;  %v1708_v14 = vshrl.u32 %v2479_v53, 16  ;;  %v2496_v22 = vld [vmem:[%s2863_s14 + $0x28] sm:$0xe] }
  0x5a   : > { %2661 = vmatmul.mubr.msk.bf16.gmra.mrb[24].mxu0 %vm317_vm1, %v2733_v37  ;;  %2667 = vmatmul.mubr.msk.bf16.vlgmr.msra.gmra.mrb[28].mxu1 %vm317_vm1, %v2483_v5  ;;  %v1678_v17 = vsel %vm2893_vm6, %v1673_v6, %v1677_v55  ;;  %v1711_v19 = vshll.u32 %v2479_v53, 16  ;;  %v1717_v20 = vshll.u32 %v2480_v58, 16  ;;  %v2506_v21 = vrot.slane %v2490_v62, 9  ;;  %v2497_v28 = vld [vmem:[%s2863_s14 + $0x2c] sm:$0x1]  ;;  %v336_v6 = vld [vmem:[#allocation2 + $0x10] sm:$0xff] }
  0x5b   : > { %v1687_v23 = vrot.slane %v1686_v12, 4  ;;  %v1700_v25 = vor.u32 %v1699_v35, %v1696_v8  ;;  %v1710_v26 = vrot.slane %v1708_v14, 4  ;;  %v1873_v27 = vrot.slane %v2491_v63, 5  ;;  %v2498_v33 = vld [vmem:[%s2863_s14 + $0x30] sm:$0xe]  ;;  %v334_v8 = vld [vmem:[#allocation2] sm:$0xff] }
  0x5c   : > { %v1713_v29 = vrot.slane %v1711_v19, 5  ;;  %v1719_v30 = vrot.slane %v1717_v20, 5  ;;  %v2507_v31 = vrot.slane %v2492_v4, 9  ;;  %v1877_v32 = vrot.slane %v2493_v48, 5  ;;  %v2499_v38 = vld [vmem:[%s2863_s14 + $0x34] sm:$0x1] }
  0x5d   : > { %v1692_v34 = vsel %vm2893_vm6, %v1687_v23, %v1691_v7  ;;  %v1701_v36 = vrot.slane %v1700_v25, 4  ;;  %v1874_v24 = vsel %vm2912_vm7, %v2506_v21, %v1873_v27  ;;  %v2508_v37 = vrot.slane %v2494_v11, 9  ;;  %v2500_v18 = vld [vmem:[%s2863_s14 + $0x38] sm:$0xe]  ;;  %v2501_v44 = vld [vmem:[%s2863_s14 + $0x3c] sm:$0x1] }
  0x5e   : > { %v2484_v39 = vcombine.low %v1678_v17, %v1692_v34  ;;  %v1714_v40 = vor.u32 %v1713_v29, %v1710_v26  ;;  %v1878_v41 = vsel %vm2912_vm7, %v2507_v31, %v1877_v32  ;;  %v1881_v43 = vrot.slane %v2495_v15, 5  ;;  %v2502_v45 = vld [vmem:[%s2863_s14 + $0x40] sm:$0xe]  ;;  %v2503_v51 = vld [vmem:[%s2863_s14 + $0x44] sm:$0x1]  ;;  %v340_v7 = vld [vmem:[#allocation2 + $0x30] sm:$0xff] }
  0x5f   : > { %v1706_v46 = vsel %vm2893_vm6, %v1701_v36, %v1705_v13  ;;  %v2515_v47 = vcombine.low %v1874_v24, %v1878_v41  ;;  %v2509_v49 = vrot.slane %v2496_v22, 9  ;;  %v1885_v50 = vrot.slane %v2497_v28, 5  ;;  %v2504_v9 = vld [vmem:[%s2863_s14 + $0x48] sm:$0xe]  ;;  %v2505_v56 = vld [vmem:[%s2863_s14 + $0x4c] sm:$0x1] }
  0x60   : > { %2670 = vmatprep.mubr.msk.bf16.mxu1 %vm317_vm1, %v2484_v39  ;;  %v1715_v52 = vrot.slane %v1714_v40, 4  ;;  %v1882_v53 = vsel %vm2912_vm7, %v2508_v37, %v1881_v43  ;;  %v2510_v54 = vrot.slane %v2498_v33, 9  ;;  %v1889_v55 = vrot.slane %v2499_v38, 5  ;;  %v338_v12 = vld [vmem:[#allocation2 + $0x20] sm:$0xff]  ;;  %v337_v35 = vld [vmem:[#allocation2 + $0x18] sm:$0xff]  ;;  %v335_v19 = vld [vmem:[#allocation2 + $0x8] sm:$0xff] }
  0x61   : > { %2676 = vmatprep.mubr.msk.bf16.mxu0 %vm317_vm1, %v2515_v47  ;;  %v1886_v57 = vsel %vm2912_vm7, %v2509_v49, %v1885_v50  ;;  %v2511_v58 = vrot.slane %v2500_v18, 9  ;;  %v1893_v59 = vrot.slane %v2501_v44, 5  ;;  %v2512_v10 = vrot.slane %v2502_v45, 9  ;;  %v341_v17 = vld [vmem:[#allocation2 + $0x38] sm:$0xff]  ;;  %v339_v23 = vld [vmem:[#allocation2 + $0x28] sm:$0xff] }
  0x62   : > { %v1720_v60 = vsel %vm2893_vm6, %v1715_v52, %v1719_v30  ;;  %v2516_v61 = vcombine.low %v1882_v53, %v1886_v57  ;;  %v1890_v62 = vsel %vm2912_vm7, %v2510_v54, %v1889_v55  ;;  %v1897_v63 = vrot.slane %v2503_v51, 5 }
  0x63   : > { %v2485_v0 = vcombine.low %v1706_v46, %v1720_v60  ;;  %v1894_v1 = vsel %vm2912_vm7, %v2511_v58, %v1893_v59  ;;  %v2513_v2 = vrot.slane %v2504_v9, 9  ;;  %v1901_v3 = vrot.slane %v2505_v56, 5 }
  0x64   : > { %2677 = vmatmul.mubr.msk.bf16.vlgmr.msra.gmra.mrb[28].mxu0 %vm317_vm1, %v2516_v61  ;;  %v2517_v4 = vcombine.low %v1890_v62, %v1894_v1  ;;  %v1898_v42 = vsel %vm2912_vm7, %v2512_v10, %v1897_v63 }
  0x65   : > { %2671 = vmatmul.mubr.msk.bf16.gmra.mrb[32].mxu1 %vm317_vm1, %v2485_v0  ;;  %v1902_v48 = vsel %vm2912_vm7, %v2513_v2, %v1901_v3 }
  0x66   : > { %2680 = vmatprep.mubr.msk.bf16.mxu0 %vm317_vm1, %v2517_v4  ;;  %v2518_v5 = vcombine.low %v1898_v42, %v1902_v48 }
  0x6c   : > { %2681 = vmatmul.mubr.msk.bf16.gmra.mrb[32].mxu0 %vm317_vm1, %v2518_v5 }
  0xe7   : > { %v2598_v11 = vpop.f32.mrb[0].mxu0 }
  0xe8   : > { %v447_v13 = vadd.f32 %v2598_v11, %v336_v6  ;;  %v2602_v14 = vpop.f32.mrb[0].mxu1  ;;  %v414_v15 = vpop.f32.mrb[1].mxu0 }
  0xe9   : > { %v451_v20 = vadd.f32 %v2602_v14, %v340_v7  ;;  %v445_v21 = vadd.f32 %v414_v15, %v334_v8  ;;  %v430_v16 = vpop.f32.mrb[1].mxu1  ;;  %v2599_v22 = vpop.f32.mrb[2].mxu0 }
  0xea   : > { %455 = vst.msk [vmem:[#allocation2 + $0x10] sm:$0xff] %vm317_vm1, %v447_v13  ;;  %v449_v25 = vadd.f32 %v430_v16, %v338_v12  ;;  %v448_v26 = vadd.f32 %v2599_v22, %v337_v35  ;;  %v2603_v27 = vpop.f32.mrb[2].mxu1  ;;  %v417_v28 = vpop.f32.mrb[3].mxu0 }
  0xeb   : > { %459 = vst.msk [vmem:[#allocation2 + $0x30] sm:$0xff] %vm317_vm1, %v451_v20  ;;  %453 = vst.msk [vmem:[#allocation2] sm:$0xff] %vm317_vm1, %v445_v21  ;;  %v452_v29 = vadd.f32 %v2603_v27, %v341_v17  ;;  %v446_v30 = vadd.f32 %v417_v28, %v335_v19  ;;  %v433_v31 = vpop.f32.mrb[3].mxu1 }
  0xec   : > { %457 = vst.msk [vmem:[#allocation2 + $0x20] sm:$0xff] %vm317_vm1, %v449_v25  ;;  %456 = vst.msk [vmem:[#allocation2 + $0x18] sm:$0xff] %vm317_vm1, %v448_v26  ;;  %v450_v32 = vadd.f32 %v433_v31, %v339_v23 }
  0xed   : > { %460 = vst.msk [vmem:[#allocation2 + $0x38] sm:$0xff] %vm317_vm1, %v452_v29  ;;  %454 = vst.msk [vmem:[#allocation2 + $0x8] sm:$0xff] %vm317_vm1, %v446_v30 }
  0xee   : > { %458 = vst.msk [vmem:[#allocation2 + $0x28] sm:$0xff] %vm317_vm1, %v450_v32 }
  0xf1   : > { %v594_v33 = vld [vmem:[#allocation2 + $0x10] sm:$0xff] }
  0xf2   : > { %v592_v34 = vld [vmem:[#allocation2] sm:$0xff]  ;;  %v598_v51 = vld [vmem:[#allocation2 + $0x30] sm:$0xff] }
  0xf3   : > { %v595_v24 = vld [vmem:[#allocation2 + $0x18] sm:$0xff]  ;;  %v596_v56 = vld [vmem:[#allocation2 + $0x20] sm:$0xff] }
  0xf4   : > { %v593_v18 = vld [vmem:[#allocation2 + $0x8] sm:$0xff]  ;;  %v599_v61 = vld [vmem:[#allocation2 + $0x38] sm:$0xff] }
  0xf5   : > { %v597_v1 = vld [vmem:[#allocation2 + $0x28] sm:$0xff] }
  0xf7   : > { %v2608_v36 = vpop.f32.mrb[4].mxu1 }
  0xf8   : > { %v696_v37 = vadd.f32 %v2608_v36, %v594_v33  ;;  %v663_v38 = vpop.f32.mrb[5].mxu1 }
  0xf9   : > { %v694_v39 = vadd.f32 %v663_v38, %v592_v34  ;;  %v2609_v40 = vpop.f32.mrb[6].mxu1 }
  0xfa   : > { %704 = vst.msk [vmem:[#allocation2 + $0x10] sm:$0xff] %vm317_vm1, %v696_v37  ;;  %v697_v41 = vadd.f32 %v2609_v40, %v595_v24  ;;  %v666_v43 = vpop.f32.mrb[7].mxu1 }
  0xfb   : > { %702 = vst.msk [vmem:[#allocation2] sm:$0xff] %vm317_vm1, %v694_v39  ;;  %v695_v44 = vadd.f32 %v666_v43, %v593_v18 }
  0xfc   : > { %705 = vst.msk [vmem:[#allocation2 + $0x18] sm:$0xff] %vm317_vm1, %v697_v41 }
  0xfd   : > { %703 = vst.msk [vmem:[#allocation2 + $0x8] sm:$0xff] %vm317_vm1, %v695_v44 }
 0x101   : > { %v779_v45 = vld [vmem:[#allocation2 + $0x10] sm:$0xff]  ;;  %v2618_v46 = vpop.f32.mrb[4].mxu0 }
 0x102   : > { %v881_v47 = vadd.f32 %v2618_v46, %v779_v45  ;;  %v777_v49 = vld [vmem:[#allocation2] sm:$0xff]  ;;  %v848_v50 = vpop.f32.mrb[5].mxu0 }
 0x103   : > { %v2612_v9 = vpop.f32.mrb[8].mxu1  ;;  %v879_v52 = vadd.f32 %v848_v50, %v777_v49  ;;  %v780_v53 = vld [vmem:[#allocation2 + $0x18] sm:$0xff]  ;;  %v2619_v54 = vpop.f32.mrb[6].mxu0 }
 0x104   : > { %v700_v55 = vadd.f32 %v2612_v9, %v598_v51  ;;  %889 = vst.msk [vmem:[#allocation2 + $0x10] sm:$0xff] %vm317_vm1, %v881_v47  ;;  %v679_v57 = vpop.f32.mrb[9].mxu1  ;;  %v882_v58 = vadd.f32 %v2619_v54, %v780_v53  ;;  %v778_v59 = vld [vmem:[#allocation2 + $0x8] sm:$0xff]  ;;  %v851_v10 = vpop.f32.mrb[7].mxu0 }
 0x105   : > { %v698_v60 = vadd.f32 %v679_v57, %v596_v56  ;;  %887 = vst.msk [vmem:[#allocation2] sm:$0xff] %vm317_vm1, %v879_v52  ;;  %v2613_v62 = vpop.f32.mrb[10].mxu1  ;;  %v880_v63 = vadd.f32 %v851_v10, %v778_v59 }
 0x106   : > { %708 = vst.msk [vmem:[#allocation2 + $0x30] sm:$0xff] %vm317_vm1, %v700_v55  ;;  %v701_v0 = vadd.f32 %v2613_v62, %v599_v61  ;;  %890 = vst.msk [vmem:[#allocation2 + $0x18] sm:$0xff] %vm317_vm1, %v882_v58  ;;  %v682_v2 = vpop.f32.mrb[11].mxu1 }
 0x107   : > { %706 = vst.msk [vmem:[#allocation2 + $0x20] sm:$0xff] %vm317_vm1, %v698_v60  ;;  %v699_v3 = vadd.f32 %v682_v2, %v597_v1  ;;  %888 = vst.msk [vmem:[#allocation2 + $0x8] sm:$0xff] %vm317_vm1, %v880_v63 }
 0x108   : > { %709 = vst.msk [vmem:[#allocation2 + $0x38] sm:$0xff] %vm317_vm1, %v701_v0 }
 0x109   : > { %707 = vst.msk [vmem:[#allocation2 + $0x28] sm:$0xff] %vm317_vm1, %v699_v3  ;;  %v2622_v4 = vpop.f32.mrb[8].mxu0 }
 0x10a   : > { %v864_v42 = vpop.f32.mrb[9].mxu0 }
 0x10b   : > { %v906_v48 = vld [vmem:[#allocation2 + $0x10] sm:$0xff]  ;;  %v2628_v5 = vpop.f32.mrb[12].mxu1  ;;  %v2623_v6 = vpop.f32.mrb[10].mxu0 }
 0x10c   : > { %v1016_v7 = vadd.f32 %v2628_v5, %v906_v48  ;;  %v904_v8 = vld [vmem:[#allocation2] sm:$0xff]  ;;  %v983_v11 = vpop.f32.mrb[13].mxu1  ;;  %v867_v12 = vpop.f32.mrb[11].mxu0 }
 0x10d   : > { %v783_v35 = vld [vmem:[#allocation2 + $0x30] sm:$0xff]  ;;  %v1014_v13 = vadd.f32 %v983_v11, %v904_v8  ;;  %v907_v14 = vld [vmem:[#allocation2 + $0x18] sm:$0xff]  ;;  %v2629_v15 = vpop.f32.mrb[14].mxu1 }
 0x10e   : > { %v885_v17 = vadd.f32 %v2622_v4, %v783_v35  ;;  %v781_v19 = vld [vmem:[#allocation2 + $0x20] sm:$0xff]  ;;  %1024 = vst.msk [vmem:[#allocation2 + $0x10] sm:$0xff] %vm317_vm1, %v1016_v7  ;;  %v1017_v20 = vadd.f32 %v2629_v15, %v907_v14  ;;  %v905_v21 = vld [vmem:[#allocation2 + $0x8] sm:$0xff]  ;;  %v986_v16 = vpop.f32.mrb[15].mxu1 }
 0x10f   : > { %v883_v22 = vadd.f32 %v864_v42, %v781_v19  ;;  %v784_v23 = vld [vmem:[#allocation2 + $0x38] sm:$0xff]  ;;  %1022 = vst.msk [vmem:[#allocation2] sm:$0xff] %vm317_vm1, %v1014_v13  ;;  %v1015_v25 = vadd.f32 %v986_v16, %v905_v21 }
 0x110   : > { %893 = vst.msk [vmem:[#allocation2 + $0x30] sm:$0xff] %vm317_vm1, %v885_v17  ;;  %v886_v26 = vadd.f32 %v2623_v6, %v784_v23  ;;  %v782_v27 = vld [vmem:[#allocation2 + $0x28] sm:$0xff]  ;;  %1025 = vst.msk [vmem:[#allocation2 + $0x18] sm:$0xff] %vm317_vm1, %v1017_v20 }
 0x111   : > { %891 = vst.msk [vmem:[#allocation2 + $0x20] sm:$0xff] %vm317_vm1, %v883_v22  ;;  %v884_v28 = vadd.f32 %v867_v12, %v782_v27  ;;  %1023 = vst.msk [vmem:[#allocation2 + $0x8] sm:$0xff] %vm317_vm1, %v1015_v25 }
 0x112   : > { %894 = vst.msk [vmem:[#allocation2 + $0x38] sm:$0xff] %vm317_vm1, %v886_v26  ;;  %v2638_v31 = vpop.f32.mrb[12].mxu0 }
 0x113   : > { %892 = vst.msk [vmem:[#allocation2 + $0x28] sm:$0xff] %vm317_vm1, %v884_v28  ;;  %v2632_v29 = vpop.f32.mrb[16].mxu1  ;;  %v1229_v34 = vpop.f32.mrb[13].mxu0 }
 0x114   : > { %v999_v30 = vpop.f32.mrb[17].mxu1  ;;  %v2639_v38 = vpop.f32.mrb[14].mxu0 }
 0x115   : > { %v1160_v32 = vld [vmem:[#allocation2 + $0x10] sm:$0xff]  ;;  %v2633_v33 = vpop.f32.mrb[18].mxu1  ;;  %v1232_v41 = vpop.f32.mrb[15].mxu0 }
 0x116   : > { %v1262_v36 = vadd.f32 %v2638_v31, %v1160_v32  ;;  %v1158_v24 = vld [vmem:[#allocation2] sm:$0xff]  ;;  %v1002_v37 = vpop.f32.mrb[19].mxu1 }
 0x117   : > { %v910_v18 = vld [vmem:[#allocation2 + $0x30] sm:$0xff]  ;;  %v1260_v39 = vadd.f32 %v1229_v34, %v1158_v24  ;;  %v1161_v40 = vld [vmem:[#allocation2 + $0x18] sm:$0xff] }
 0x118   : > { %v1020_v43 = vadd.f32 %v2632_v29, %v910_v18  ;;  %v908_v44 = vld [vmem:[#allocation2 + $0x20] sm:$0xff]  ;;  %1270 = vst.msk [vmem:[#allocation2 + $0x10] sm:$0xff] %vm317_vm1, %v1262_v36  ;;  %v1263_v45 = vadd.f32 %v2639_v38, %v1161_v40  ;;  %v1159_v46 = vld [vmem:[#allocation2 + $0x8] sm:$0xff] }
 0x119   : > { %v1018_v47 = vadd.f32 %v999_v30, %v908_v44  ;;  %v911_v49 = vld [vmem:[#allocation2 + $0x38] sm:$0xff]  ;;  %1268 = vst.msk [vmem:[#allocation2] sm:$0xff] %vm317_vm1, %v1260_v39  ;;  %v1261_v50 = vadd.f32 %v1232_v41, %v1159_v46 }
 0x11a   : > { %1028 = vst.msk [vmem:[#allocation2 + $0x30] sm:$0xff] %vm317_vm1, %v1020_v43  ;;  %v1021_v51 = vadd.f32 %v2633_v33, %v911_v49  ;;  %v909_v9 = vld [vmem:[#allocation2 + $0x28] sm:$0xff]  ;;  %1271 = vst.msk [vmem:[#allocation2 + $0x18] sm:$0xff] %vm317_vm1, %v1263_v45 }
 0x11b   : > { %1026 = vst.msk [vmem:[#allocation2 + $0x20] sm:$0xff] %vm317_vm1, %v1018_v47  ;;  %v1019_v52 = vadd.f32 %v1002_v37, %v909_v9  ;;  %1269 = vst.msk [vmem:[#allocation2 + $0x8] sm:$0xff] %vm317_vm1, %v1261_v50 }
 0x11c   : > { %1029 = vst.msk [vmem:[#allocation2 + $0x38] sm:$0xff] %vm317_vm1, %v1021_v51 }
 0x11d   : > { %1027 = vst.msk [vmem:[#allocation2 + $0x28] sm:$0xff] %vm317_vm1, %v1019_v52  ;;  %v2642_v53 = vpop.f32.mrb[16].mxu0  ;;  %v2648_v55 = vpop.f32.mrb[20].mxu1 }
 0x11e   : > { %v1245_v56 = vpop.f32.mrb[17].mxu0  ;;  %v1411_v59 = vpop.f32.mrb[21].mxu1 }
 0x11f   : > { %v1342_v54 = vld [vmem:[#allocation2 + $0x10] sm:$0xff]  ;;  %v2643_v60 = vpop.f32.mrb[18].mxu0  ;;  %v2649_v63 = vpop.f32.mrb[22].mxu1 }
 0x120   : > { %v1444_v57 = vadd.f32 %v2648_v55, %v1342_v54  ;;  %v1340_v58 = vld [vmem:[#allocation2] sm:$0xff]  ;;  %v1248_v2 = vpop.f32.mrb[19].mxu0  ;;  %v1414_v42 = vpop.f32.mrb[23].mxu1 }
 0x121   : > { %v1164_v10 = vld [vmem:[#allocation2 + $0x30] sm:$0xff]  ;;  %v1442_v61 = vadd.f32 %v1411_v59, %v1340_v58  ;;  %v1343_v62 = vld [vmem:[#allocation2 + $0x18] sm:$0xff] }
 0x122   : > { %v1266_v0 = vadd.f32 %v2642_v53, %v1164_v10  ;;  %v1162_v1 = vld [vmem:[#allocation2 + $0x20] sm:$0xff]  ;;  %1452 = vst.msk [vmem:[#allocation2 + $0x10] sm:$0xff] %vm317_vm1, %v1444_v57  ;;  %v1445_v3 = vadd.f32 %v2649_v63, %v1343_v62  ;;  %v1341_v4 = vld [vmem:[#allocation2 + $0x8] sm:$0xff] }
 0x123   : > { %v1264_v48 = vadd.f32 %v1245_v56, %v1162_v1  ;;  %v1165_v5 = vld [vmem:[#allocation2 + $0x38] sm:$0xff]  ;;  %1450 = vst.msk [vmem:[#allocation2] sm:$0xff] %vm317_vm1, %v1442_v61  ;;  %v1443_v6 = vadd.f32 %v1414_v42, %v1341_v4 }
 0x124   : > { %1274 = vst.msk [vmem:[#allocation2 + $0x30] sm:$0xff] %vm317_vm1, %v1266_v0  ;;  %v1267_v7 = vadd.f32 %v2643_v60, %v1165_v5  ;;  %v1163_v8 = vld [vmem:[#allocation2 + $0x28] sm:$0xff]  ;;  %1453 = vst.msk [vmem:[#allocation2 + $0x18] sm:$0xff] %vm317_vm1, %v1445_v3 }
 0x125   : > { %1272 = vst.msk [vmem:[#allocation2 + $0x20] sm:$0xff] %vm317_vm1, %v1264_v48  ;;  %v1265_v11 = vadd.f32 %v1248_v2, %v1163_v8  ;;  %1451 = vst.msk [vmem:[#allocation2 + $0x8] sm:$0xff] %vm317_vm1, %v1443_v6  ;;  %v2652_v12 = vpop.f32.mrb[24].mxu1  ;;  %v2658_v35 = vpop.f32.mrb[20].mxu0 }
 0x126   : > { %1275 = vst.msk [vmem:[#allocation2 + $0x38] sm:$0xff] %vm317_vm1, %v1267_v7  ;;  %v1427_v13 = vpop.f32.mrb[25].mxu1  ;;  %v1546_v14 = vpop.f32.mrb[21].mxu0 }
 0x127   : > { %1273 = vst.msk [vmem:[#allocation2 + $0x28] sm:$0xff] %vm317_vm1, %v1265_v11  ;;  %v2653_v17 = vpop.f32.mrb[26].mxu1  ;;  %v2659_v19 = vpop.f32.mrb[22].mxu0 }
 0x128   : > { %v1430_v16 = vpop.f32.mrb[27].mxu1  ;;  %v1549_v22 = vpop.f32.mrb[23].mxu0 }
 0x129   : > { %v1469_v15 = vld [vmem:[#allocation2 + $0x10] sm:$0xff] }
 0x12a   : > { %v1579_v20 = vadd.f32 %v2658_v35, %v1469_v15  ;;  %v1467_v21 = vld [vmem:[#allocation2] sm:$0xff] }
 0x12b   : > { %v1346_v23 = vld [vmem:[#allocation2 + $0x30] sm:$0xff]  ;;  %v1577_v25 = vadd.f32 %v1546_v14, %v1467_v21  ;;  %v1470_v26 = vld [vmem:[#allocation2 + $0x18] sm:$0xff] }
 0x12c   : > { %v1448_v27 = vadd.f32 %v2652_v12, %v1346_v23  ;;  %v1344_v28 = vld [vmem:[#allocation2 + $0x20] sm:$0xff]  ;;  %1587 = vst.msk [vmem:[#allocation2 + $0x10] sm:$0xff] %vm317_vm1, %v1579_v20  ;;  %v1580_v29 = vadd.f32 %v2659_v19, %v1470_v26  ;;  %v1468_v30 = vld [vmem:[#allocation2 + $0x8] sm:$0xff] }
 0x12d   : > { %v1446_v31 = vadd.f32 %v1427_v13, %v1344_v28  ;;  %v1347_v32 = vld [vmem:[#allocation2 + $0x38] sm:$0xff]  ;;  %1585 = vst.msk [vmem:[#allocation2] sm:$0xff] %vm317_vm1, %v1577_v25  ;;  %v1578_v33 = vadd.f32 %v1549_v22, %v1468_v30  ;;  %v2662_v37 = vpop.f32.mrb[24].mxu0  ;;  %v2668_v18 = vpop.f32.mrb[28].mxu1  ;;  %v2523_v23 = vld [vmem:[%s3370_s3] ss:$0 sm:$0xff] }
 0x12e   : > { %1456 = vst.msk [vmem:[#allocation2 + $0x30] sm:$0xff] %vm317_vm1, %v1448_v27  ;;  %v1449_v34 = vadd.f32 %v2653_v17, %v1347_v32  ;;  %v1345_v36 = vld [vmem:[#allocation2 + $0x28] sm:$0xff]  ;;  %1588 = vst.msk [vmem:[#allocation2 + $0x18] sm:$0xff] %vm317_vm1, %v1580_v29  ;;  %v1562_v38 = vpop.f32.mrb[25].mxu0  ;;  %v1792_v40 = vpop.f32.mrb[29].mxu1 }
 0x12f   : > { %1454 = vst.msk [vmem:[#allocation2 + $0x20] sm:$0xff] %vm317_vm1, %v1446_v31  ;;  %v1447_v24 = vadd.f32 %v1430_v16, %v1345_v36  ;;  %1586 = vst.msk [vmem:[#allocation2 + $0x8] sm:$0xff] %vm317_vm1, %v1578_v33  ;;  %v2663_v39 = vpop.f32.mrb[26].mxu0  ;;  %v2669_v44 = vpop.f32.mrb[30].mxu1 }
 0x130   : > { %1457 = vst.msk [vmem:[#allocation2 + $0x38] sm:$0xff] %vm317_vm1, %v1449_v34  ;;  %v1565_v41 = vpop.f32.mrb[27].mxu0  ;;  %v1795_v47 = vpop.f32.mrb[31].mxu1 }
 0x131   : > { %1455 = vst.msk [vmem:[#allocation2 + $0x28] sm:$0xff] %vm317_vm1, %v1447_v24 }
 0x133   : > { %v1723_v43 = vld [vmem:[#allocation2 + $0x10] sm:$0xff] }
 0x134   : > { %v1825_v45 = vadd.f32 %v2668_v18, %v1723_v43  ;;  %v1721_v46 = vld [vmem:[#allocation2] sm:$0xff] }
 0x135   : > { %v1473_v49 = vld [vmem:[#allocation2 + $0x30] sm:$0xff]  ;;  %v1823_v50 = vadd.f32 %v1792_v40, %v1721_v46  ;;  %v1724_v51 = vld [vmem:[#allocation2 + $0x18] sm:$0xff] }
 0x136   : > { %v1583_v9 = vadd.f32 %v2662_v37, %v1473_v49  ;;  %v1471_v52 = vld [vmem:[#allocation2 + $0x20] sm:$0xff]  ;;  %1833 = vst.msk [vmem:[#allocation2 + $0x10] sm:$0xff] %vm317_vm1, %v1825_v45  ;;  %v1826_v53 = vadd.f32 %v2669_v44, %v1724_v51  ;;  %v1722_v54 = vld [vmem:[#allocation2 + $0x8] sm:$0xff] }
 0x137   : > { %v1581_v55 = vadd.f32 %v1562_v38, %v1471_v52  ;;  %v1474_v56 = vld [vmem:[#allocation2 + $0x38] sm:$0xff]  ;;  %1831 = vst.msk [vmem:[#allocation2] sm:$0xff] %vm317_vm1, %v1823_v50  ;;  %v1824_v57 = vadd.f32 %v1795_v47, %v1722_v54  ;;  %v2678_v60 = vpop.f32.mrb[28].mxu0 }
 0x138   : > { %1591 = vst.msk [vmem:[#allocation2 + $0x30] sm:$0xff] %vm317_vm1, %v1583_v9  ;;  %v1584_v58 = vadd.f32 %v2663_v39, %v1474_v56  ;;  %v1472_v59 = vld [vmem:[#allocation2 + $0x28] sm:$0xff]  ;;  %1834 = vst.msk [vmem:[#allocation2 + $0x18] sm:$0xff] %vm317_vm1, %v1826_v53  ;;  %v2672_v61 = vpop.f32.mrb[32].mxu1  ;;  %v1974_v62 = vpop.f32.mrb[29].mxu0 }
 0x139   : > { %1589 = vst.msk [vmem:[#allocation2 + $0x20] sm:$0xff] %vm317_vm1, %v1581_v55  ;;  %v1582_v10 = vadd.f32 %v1565_v41, %v1472_v59  ;;  %1832 = vst.msk [vmem:[#allocation2 + $0x8] sm:$0xff] %vm317_vm1, %v1824_v57  ;;  %v1808_v63 = vpop.f32.mrb[33].mxu1  ;;  %v2679_v1 = vpop.f32.mrb[30].mxu0 }
 0x13a   : > { %1592 = vst.msk [vmem:[#allocation2 + $0x38] sm:$0xff] %vm317_vm1, %v1584_v58  ;;  %v2673_v3 = vpop.f32.mrb[34].mxu1  ;;  %v1977_v42 = vpop.f32.mrb[31].mxu0 }
 0x13b   : > { %1590 = vst.msk [vmem:[#allocation2 + $0x28] sm:$0xff] %vm317_vm1, %v1582_v10  ;;  %v1811_v6 = vpop.f32.mrb[35].mxu1 }
 0x13d   : > { %v1905_v0 = vld [vmem:[#allocation2 + $0x10] sm:$0xff] }
 0x13e   : > { %v2007_v2 = vadd.f32 %v2678_v60, %v1905_v0  ;;  %v1903_v4 = vld [vmem:[#allocation2] sm:$0xff] }
 0x13f   : > { %v1727_v48 = vld [vmem:[#allocation2 + $0x30] sm:$0xff]  ;;  %v2005_v5 = vadd.f32 %v1974_v62, %v1903_v4  ;;  %v1906_v7 = vld [vmem:[#allocation2 + $0x18] sm:$0xff]  ;;  %v2682_v21 = vpop.f32.mrb[32].mxu0 }
 0x140   : > { %v1829_v8 = vadd.f32 %v2672_v61, %v1727_v48  ;;  %v1725_v11 = vld [vmem:[#allocation2 + $0x20] sm:$0xff]  ;;  %2015 = vst.msk [vmem:[#allocation2 + $0x10] sm:$0xff] %vm317_vm1, %v2007_v2  ;;  %v2008_v12 = vadd.f32 %v2679_v1, %v1906_v7  ;;  %v1904_v35 = vld [vmem:[#allocation2 + $0x8] sm:$0xff]  ;;  %v1990_v16 = vpop.f32.mrb[33].mxu0 }
 0x141   : > { %v1827_v13 = vadd.f32 %v1808_v63, %v1725_v11  ;;  %v1728_v14 = vld [vmem:[#allocation2 + $0x38] sm:$0xff]  ;;  %2013 = vst.msk [vmem:[#allocation2] sm:$0xff] %vm317_vm1, %v2005_v5  ;;  %v2006_v15 = vadd.f32 %v1977_v42, %v1904_v35  ;;  %v2683_v22 = vpop.f32.mrb[34].mxu0 }
 0x142   : > { %1837 = vst.msk [vmem:[#allocation2 + $0x30] sm:$0xff] %vm317_vm1, %v1829_v8  ;;  %v1830_v17 = vadd.f32 %v2673_v3, %v1728_v14  ;;  %v1726_v19 = vld [vmem:[#allocation2 + $0x28] sm:$0xff]  ;;  %2016 = vst.msk [vmem:[#allocation2 + $0x18] sm:$0xff] %vm317_vm1, %v2008_v12  ;;  %v1993_v25 = vpop.f32.mrb[35].mxu0 }
 0x143   : > { %1835 = vst.msk [vmem:[#allocation2 + $0x20] sm:$0xff] %vm317_vm1, %v1827_v13  ;;  %v1828_v20 = vadd.f32 %v1811_v6, %v1726_v19  ;;  %2014 = vst.msk [vmem:[#allocation2 + $0x8] sm:$0xff] %vm317_vm1, %v2006_v15 }
 0x144   : > { %1838 = vst.msk [vmem:[#allocation2 + $0x38] sm:$0xff] %vm317_vm1, %v1830_v17 }
 0x145   : > { %1836 = vst.msk [vmem:[#allocation2 + $0x28] sm:$0xff] %vm317_vm1, %v1828_v20 }
 0x147   : > { %v2026_v26 = vld [vmem:[#allocation2 + $0x10] sm:$0xff] }
 0x148   : > { %v2041_v27 = vadd.f32 %v2523_v23, %v2026_v26  ;;  %v2024_v28 = vld [vmem:[#allocation2] sm:$0xff] }
 0x149   : > { %v1909_v29 = vld [vmem:[#allocation2 + $0x30] sm:$0xff]  ;;  %v2039_v30 = vadd.f32 %v2523_v23, %v2024_v28  ;;  %v2027_v31 = vld [vmem:[#allocation2 + $0x18] sm:$0xff] }
 0x14a   : > { %v2011_v32 = vadd.f32 %v2682_v21, %v1909_v29  ;;  %v1907_v33 = vld [vmem:[#allocation2 + $0x20] sm:$0xff]  ;;  %v2055_v34 = vsel %vm317_vm1, %v2041_v27, 0.0  ;;  %v2042_v36 = vadd.f32 %v2523_v23, %v2027_v31  ;;  %v2025_v24 = vld [vmem:[#allocation2 + $0x8] sm:$0xff] }
 0x14b   : > { %v2009_v37 = vadd.f32 %v1990_v16, %v1907_v33  ;;  %v1910_v38 = vld [vmem:[#allocation2 + $0x38] sm:$0xff]  ;;  %2056 = vadd.xlane.f32.xlu1 %v2055_v34  ;;  %v2049_v18 = vsel %vm317_vm1, %v2039_v30, 0.0  ;;  %v2040_v39 = vadd.f32 %v2523_v23, %v2025_v24 }
 0x14c   : > { %2019 = vst.msk [vmem:[#allocation2 + $0x30] sm:$0xff] %vm317_vm1, %v2011_v32  ;;  %v2012_v40 = vadd.f32 %v2683_v22, %v1910_v38  ;;  %v1908_v41 = vld [vmem:[#allocation2 + $0x28] sm:$0xff]  ;;  %2050 = vadd.xlane.f32.xlu0 %v2049_v18  ;;  %v2058_v44 = vsel %vm317_vm1, %v2042_v36, 0.0 }
 0x14d   : > { %2017 = vst.msk [vmem:[#allocation2 + $0x20] sm:$0xff] %vm317_vm1, %v2009_v37  ;;  %v2010_v43 = vadd.f32 %v1993_v25, %v1908_v41  ;;  %v2052_v45 = vsel %vm317_vm1, %v2040_v39, 0.0 }
 0x14e   : > { %2020 = vst.msk [vmem:[#allocation2 + $0x38] sm:$0xff] %vm317_vm1, %v2012_v40 }
 0x14f   : > { %2018 = vst.msk [vmem:[#allocation2 + $0x28] sm:$0xff] %vm317_vm1, %v2010_v43  ;;  %2059 = vadd.xlane.f32.xlu1 %v2058_v44 }
 0x150   : > { %2053 = vadd.xlane.f32.xlu0 %v2052_v45 }
 0x153   : > { %v2030_v47 = vld [vmem:[#allocation2 + $0x30] sm:$0xff] }
 0x154   : > { %v2028_v46 = vld [vmem:[#allocation2 + $0x20] sm:$0xff]  ;;  %v2045_v53 = vadd.f32 %v2523_v23, %v2030_v47  ;;  %v2546_v47 = vld [vmem:[%s3295_s8 + $0x8] sm:$0xff]  }
 0x155   : > { %v2043_v49 = vadd.f32 %v2523_v23, %v2028_v46  ;;  %v2031_v51 = vld [vmem:[#allocation2 + $0x38] sm:$0xff] }
 0x156   : > { %v2029_v50 = vld [vmem:[#allocation2 + $0x28] sm:$0xff]  ;;  %v2046_v55 = vadd.f32 %v2523_v23, %v2031_v51  ;;  %v2067_v56 = vsel %vm317_vm1, %v2045_v53, 0.0  ;;  %v3301_v51 = vld [vmem:[%s3371_s4] ss:$0 sm:$0xff] }
 0x157   : > { %v2061_v9 = vsel %vm317_vm1, %v2043_v49, 0.0  ;;  %v2044_v52 = vadd.f32 %v2523_v23, %v2029_v50 }
 0x158   : > { %2062 = vadd.xlane.f32.xlu0 %v2061_v9  ;;  %v2070_v57 = vsel %vm317_vm1, %v2046_v55, 0.0 }
 0x159   : > { %v2064_v54 = vsel %vm317_vm1, %v2044_v52, 0.0 }
 0x15a   : > { %2065 = vadd.xlane.f32.xlu1 %v2064_v54 }
 0x15c   : > { %2068 = vadd.xlane.f32.xlu0 %v2067_v56  ;;  %v2536_v56 = vunpack.c.l.bf16 %v2546_v47 }
 0x15e   : > { %2071 = vadd.xlane.f32.xlu1 %v2070_v57 }
 0x1d8   : > { %v2057_v58 = vpop.xlane.xlu1 %2056 }
 0x1d9   : > { %v2076_v59 = vmul.f32 0.25, %v2057_v58  ;;  %v2051_v10 = vpop.xlane.xlu0 %2050 }
 0x1da   : > { %v2074_v60 = vmul.f32 0.25, %v2051_v10 }
 0x1db   : > { %v3249_v61 = vsub.f32 %v2041_v27, %v2076_v59 }
 0x1dc   : > { %v3251_v62 = vsub.f32 %v2039_v30, %v2074_v60  ;;  %v2060_v63 = vpop.xlane.xlu1 %2059 }
 0x1dd   : > { %v2077_v0 = vmul.f32 0.25, %v2060_v63  ;;  %v2054_v1 = vpop.xlane.xlu0 %2053  ;;  %v2092_v2 = vmul.f32 %v3249_v61, %v3249_v61 }
 0x1de   : > { %v2075_v3 = vmul.f32 0.25, %v2054_v1  ;;  %v2090_v48 = vmul.f32 %v3251_v62, %v3251_v62 }
 0x1df   : > { %v3255_v4 = vsub.f32 %v2042_v36, %v2077_v0  ;;  %v2104_v42 = vsel %vm317_vm1, %v2092_v2, 0.0  ;;  %v2531_v2 = vld [vmem:[%s3295_s8] sm:$0xff]  }
 0x1e0   : > { %v3260_v5 = vsub.f32 %v2040_v39, %v2075_v3  ;;  %2105 = vadd.xlane.f32.xlu0 %v2104_v42  ;;  %v2098_v8 = vsel %vm317_vm1, %v2090_v48, 0.0 }
 0x1e1   : > { %v2093_v6 = vmul.f32 %v3255_v4, %v3255_v4 }
 0x1e2   : > { %v2091_v11 = vmul.f32 %v3260_v5, %v3260_v5 }
 0x1e3   : > { %v2107_v7 = vsel %vm317_vm1, %v2093_v6, 0.0 }
 0x1e4   : > { %2108 = vadd.xlane.f32.xlu1 %v2107_v7  ;;  %2099 = vadd.xlane.f32.xlu0 %v2098_v8  ;;  %v2101_v14 = vsel %vm317_vm1, %v2091_v11, 0.0  ;;  %v2537_v7 = vunpack.c.h.bf16 %v2546_v47 }
 0x1e5   : > { %v2063_v12 = vpop.xlane.xlu0 %2062 }
 0x1e6   : > { %v2078_v35 = vmul.f32 0.25, %v2063_v12  ;;  %v2532_v12 = vunpack.c.l.bf16 %v2531_v2 }
 0x1e7   : > { %v2066_v13 = vpop.xlane.xlu1 %2065 }
 0x1e8   : > { %v3269_v15 = vsub.f32 %v2043_v49, %v2078_v35  ;;  %v2079_v17 = vmul.f32 0.25, %v2066_v13  ;;  %2102 = vadd.xlane.f32.xlu1 %v2101_v14 }
 0x1e9   : > { %v2069_v19 = vpop.xlane.xlu0 %2068 }
 0x1ea   : > { %v3271_v20 = vsub.f32 %v2044_v52, %v2079_v17  ;;  %v2080_v21 = vmul.f32 0.25, %v2069_v19  ;;  %v2094_v16 = vmul.f32 %v3269_v15, %v3269_v15 }
 0x1eb   : > { %v2072_v22 = vpop.xlane.xlu1 %2071 }
 0x1ec   : > { %v3275_v23 = vsub.f32 %v2045_v53, %v2080_v21  ;;  %v2081_v25 = vmul.f32 0.25, %v2072_v22  ;;  %v2110_v26 = vsel %vm317_vm1, %v2094_v16, 0.0  ;;  %v2095_v27 = vmul.f32 %v3271_v20, %v3271_v20 }
 0x1ed   : > { %2111 = vadd.xlane.f32.xlu0 %v2110_v26  ;;  %v2533_v16 = vunpack.c.h.bf16 %v2531_v2 }
 0x1ee   : > { %v3280_v28 = vsub.f32 %v2046_v55, %v2081_v25  ;;  %v2113_v29 = vsel %vm317_vm1, %v2095_v27, 0.0  ;;  %v2096_v30 = vmul.f32 %v3275_v23, %v3275_v23  ;;  %v3307_v55 = vld [vmem:[%s3372_s5] ss:$0 sm:$0xff] }
 0x1ef   : > { %2114 = vadd.xlane.f32.xlu1 %v2113_v29  ;;  %v2547_v29 = vld [vmem:[%s3295_s8 + $0x10] sm:$0xff]  }
 0x1f0   : > { %v2116_v31 = vsel %vm317_vm1, %v2096_v30, 0.0  ;;  %v2097_v32 = vmul.f32 %v3280_v28, %v3280_v28 }
 0x1f1   : > { %2117 = vadd.xlane.f32.xlu0 %v2116_v31 }
 0x1f2   : > { %v2119_v33 = vsel %vm317_vm1, %v2097_v32, 0.0 }
 0x1f3   : > { %2120 = vadd.xlane.f32.xlu1 %v2119_v33 }
 0x26d   : > { %v2106_v34 = vpop.xlane.xlu0 %2105 }
 0x26e   : > { %v2124_v36 = vmul.f32 0.25, %v2106_v34 }
 0x270   : > { %v2132_v24 = vadd.f32 1e-06, %v2124_v36 }
 0x271   : > { %v2109_v37 = vpop.xlane.xlu1 %2108  ;;  %v2100_v38 = vpop.xlane.xlu0 %2099 }
 0x272   : > { %2734 = vrsqrt.f32 %v2132_v24  ;;  %v2125_v18 = vmul.f32 0.25, %v2109_v37  ;;  %v2122_v39 = vmul.f32 0.25, %v2100_v38  ;;  %v2540_v24 = vunpack.c.l.bf16 %v2547_v29 }
 0x274   : > { %v2133_v40 = vadd.f32 1e-06, %v2125_v18  ;;  %v2130_v41 = vadd.f32 1e-06, %v2122_v39 }
 0x275   : > { %v2103_v43 = vpop.xlane.xlu1 %2102 }
 0x276   : > { %2736 = vrsqrt.f32 %v2133_v40  ;;  %v2123_v44 = vmul.f32 0.25, %v2103_v43  ;;  %v2548_v40 = vld [vmem:[%s3295_s8 + $0x18] sm:$0xff]  }
 0x277   : > { %2738 = vrsqrt.f32 %v2130_v41 }
 0x278   : > { %v2131_v45 = vadd.f32 1e-06, %v2123_v44 }
 0x27a   : > { %2740 = vrsqrt.f32 %v2131_v45  ;;  %v2112_v46 = vpop.xlane.xlu0 %2111 }
 0x27b   : > { %v2126_v49 = vmul.f32 0.25, %v2112_v46 }
 0x27c   : > { %v2735_v50 = vpop.eup %2734  ;;  %v2115_v9 = vpop.xlane.xlu1 %2114 }
 0x27d   : > { %v2148_v52 = vmul.f32 %v2735_v50, %v3249_v61  ;;  %v2134_v53 = vadd.f32 1e-06, %v2126_v49  ;;  %v2127_v54 = vmul.f32 0.25, %v2115_v9  ;;  %v2544_v49 = vunpack.c.l.bf16 %v2548_v40 }
 0x27e   : > { %v2118_v57 = vpop.xlane.xlu0 %2117 }
 0x27f   : > { %v2162_v58 = vmul.f32 %v3301_v51, %v2148_v52  ;;  %2742 = vrsqrt.f32 %v2134_v53  ;;  %v2135_v59 = vadd.f32 1e-06, %v2127_v54  ;;  %v2128_v10 = vmul.f32 0.25, %v2118_v57 }
 0x280   : > { %v2737_v60 = vpop.eup %2736  ;;  %v2121_v63 = vpop.xlane.xlu1 %2120 }
 0x281   : > { %v2739_v0 = vpop.eup %2738  ;;  %v2176_v1 = vadd.f32 %v3307_v55, %v2162_v58  ;;  %v2149_v61 = vmul.f32 %v2737_v60, %v3255_v4  ;;  %2744 = vrsqrt.f32 %v2135_v59  ;;  %v2136_v3 = vadd.f32 1e-06, %v2128_v10 }
 0x282   : > { %v2146_v42 = vmul.f32 %v2739_v0, %v3251_v62  ;;  %v2129_v48 = vmul.f32 0.25, %v2121_v63 }
 0x283   : > { %v2200_v6 = vadd.f32 %v2536_v56, %v2176_v1  ;;  %v2163_v8 = vmul.f32 %v3301_v51, %v2149_v61  ;;  %2746 = vrsqrt.f32 %v2136_v3 }
 0x284   : > { %v2741_v11 = vpop.eup %2740  ;;  %v2160_v35 = vmul.f32 %v3301_v51, %v2146_v42  ;;  %v2137_v13 = vadd.f32 1e-06, %v2129_v48 }
 0x285   : > { %v2208_v14 = vmax.f32 %v2200_v6, 0.0  ;;  %v2177_v4 = vadd.f32 %v3307_v55, %v2163_v8  ;;  %v2147_v17 = vmul.f32 %v2741_v11, %v3260_v5 }
 0x286   : > { %v2174_v62 = vadd.f32 %v3307_v55, %v2160_v35  ;;  %2748 = vrsqrt.f32 %v2137_v13 }
 0x287   : > { %v2216_v19 = vpack.c.bf16 %v2208_v14, %v2208_v14  ;;  %v2201_v21 = vadd.f32 %v2537_v7, %v2177_v4  ;;  %v2161_v22 = vmul.f32 %v3301_v51, %v2147_v17 }
 0x288   : > { %v2198_v25 = vadd.f32 %v2532_v12, %v2174_v62 }
 0x289   : > { %v2743_v26 = vpop.eup %2742  ;;  %2225 = vst.msk [vmem:[%s3323_s15 + $0x8] sm:$0xf] %vm2222_vm8, %v2216_v19  ;;  %v2209_v5 = vmax.f32 %v2201_v21, 0.0  ;;  %v2175_v27 = vadd.f32 %v3307_v55, %v2161_v22 }
 0x28a   : > { %v2206_v30 = vmax.f32 %v2198_v25, 0.0  ;;  %v2150_v31 = vmul.f32 %v2743_v26, %v3269_v15  ;;  %v2541_v15 = vunpack.c.h.bf16 %v2547_v29 }
 0x28b   : > { %v2745_v32 = vpop.eup %2744  ;;  %v2217_v33 = vpack.c.bf16 %v2209_v5, %v2209_v5  ;;  %v2199_v34 = vadd.f32 %v2533_v16, %v2175_v27 }
 0x28c   : > { %v2214_v36 = vpack.c.bf16 %v2206_v30, %v2206_v30  ;;  %v2164_v37 = vmul.f32 %v3301_v51, %v2150_v31  ;;  %v2151_v38 = vmul.f32 %v2745_v32, %v3271_v20 }
 0x28d   : > { %v2747_v18 = vpop.eup %2746  ;;  %2226 = vst.msk [vmem:[%s3323_s15 + $0xc] sm:$0xf] %vm2222_vm8, %v2217_v33  ;;  %v2207_v39 = vmax.f32 %v2199_v34, 0.0 }
 0x28e   : > { %2223 = vst.msk [vmem:[%s3323_s15] sm:$0xf] %vm2222_vm8, %v2214_v36  ;;  %v2178_v41 = vadd.f32 %v3307_v55, %v2164_v37  ;;  %v2165_v43 = vmul.f32 %v3301_v51, %v2151_v38  ;;  %v2152_v44 = vmul.f32 %v2747_v18, %v3275_v23  ;;  %v2545_v23 = vunpack.c.h.bf16 %v2548_v40 }
 0x28f   : > { %v2215_v45 = vpack.c.bf16 %v2207_v39, %v2207_v39 }
 0x290   : > { %v2749_v46 = vpop.eup %2748  ;;  %v2202_v47 = vadd.f32 %v2540_v24, %v2178_v41  ;;  %v2179_v20 = vadd.f32 %v3307_v55, %v2165_v43  ;;  %v2166_v50 = vmul.f32 %v3301_v51, %v2152_v44 }
 0x291   : > { %2224 = vst.msk [vmem:[%s3323_s15 + $0x4] sm:$0xf] %vm2222_vm8, %v2215_v45  ;;  %v2153_v9 = vmul.f32 %v2749_v46, %v3280_v28 }
 0x292   : > { %v2210_v52 = vmax.f32 %v2202_v47, 0.0  ;;  %v2203_v53 = vadd.f32 %v2541_v15, %v2179_v20  ;;  %v2180_v54 = vadd.f32 %v3307_v55, %v2166_v50 }
 0x293   : > { %v2167_v56 = vmul.f32 %v3301_v51, %v2153_v9 }
 0x294   : > { %v2218_v57 = vpack.c.bf16 %v2210_v52, %v2210_v52  ;;  %v2211_v58 = vmax.f32 %v2203_v53, 0.0  ;;  %v2204_v59 = vadd.f32 %v2544_v49, %v2180_v54 }
 0x295   : > { %v2181_v10 = vadd.f32 %v3307_v55, %v2167_v56 }
 0x296   : > { %2227 = vst.msk [vmem:[%s3323_s15 + $0x10] sm:$0xf] %vm2222_vm8, %v2218_v57  ;;  %v2219_v60 = vpack.c.bf16 %v2211_v58, %v2211_v58  ;;  %v2212_v63 = vmax.f32 %v2204_v59, 0.0 }
 0x297   : > { %v2205_v0 = vadd.f32 %v2545_v23, %v2181_v10 }
 0x298   : > { %2228 = vst.msk [vmem:[%s3323_s15 + $0x14] sm:$0xf] %vm2222_vm8, %v2219_v60  ;;  %v2220_v28 = vpack.c.bf16 %v2212_v63, %v2212_v63 }
 0x299   : > { %v2213_v1 = vmax.f32 %v2205_v0, 0.0 }
 0x29a   : > { %2229 = vst.msk [vmem:[%s3323_s15 + $0x18] sm:$0xf] %vm2222_vm8, %v2220_v28 }
 0x29b   : > { %v2221_v61 = vpack.c.bf16 %v2213_v1, %v2213_v1 }
 0x29d   : > { %2230 = vst.msk [vmem:[%s3323_s15 + $0x1c] sm:$0xf] %vm2222_vm8, %v2221_v61 }
 0x29e PF: > { %s16_s23 = sadd.s32 1, %s2772_s23   ;;  %s3378_s21 = smov %s2768_s22 }
 0x29f   : > { %p13_p5 = scmp.ge.s32.totalorder %s16_s23, 4   ;;  %s3379_s22 = smov %s3381_s24 }
 0x2a1   :  { %15 = sbr.rel (!%p13_p5) target bundleno = 2 (0x2), region = 98 }

// kernel: decoder_more_token.17
= control target key start
LH: loop header
LB: loop body
LE: loop exit
PB: predicated region body
PF: predicated region fallthrough
CT: control target
= control target key end

     0   :  { %s2472_s14 = smov 0   ;;  %s2474_s15 = smov 0   ;;  %s2934_s0 = inlined_call_operand.vmem [shape: bf16[2,10,10,4], index: 0, kind: input, shape index: {}]   ;;  %s2935_s1 = inlined_call_operand.vmem [shape: bf16[9,4,1], index: 1, kind: input, shape index: {}]   ;;  %s2936_s2 = inlined_call_operand.<no memory space> [shape: f32[1,1], index: 2, kind: input, shape index: {}]   ;;  %s2937_s3 = inlined_call_operand.vmem [shape: f32[2,8,8,1], index: 3, kind: output, shape index: {}]  }
   0x1   :  { %v8_v0 = vstv %s2936_s2  ;;  %s2476_s16 = smov 0  }
   0x2   :  { %9 = vst [vmem:[#allocation3] sm:$0x1] %v8_v0 }
   0x3 LB: > { %s27_s2 = sadd.s32 1, %s2442_s15  ;;  %p2047_p0 = scmp.ge.s32.totalorder %s2446_s16, 1  ;;  %s2446_s16 = sphi %s2476_s16, %s15_s16   ;;  %s2442_s15 = sphi %s2474_s15, %s2943_s15   ;;  %s2438_s14 = sphi %s2472_s14, %s2942_s14  }
   0x4   : > { %p29_p1 = scmp.ge.s32.totalorder %s27_s2, 2  ;;  %p165_p2 = scmp.lt.s32.totalorder %s2446_s16, 3 }
   0x6   : > { %s2945_s2 = smov (%p29_p1, %s27_s2), 0  ;;  %p166_p3 = pnand %p2047_p0, %p165_p2 }
   0x7   : > { %v243_v1 = vld [vmem:[%s2935_s1] sm:$0x3] (!%p166_p3)  ;;  %vm277_vm0 = vcmask (!%p166_p3), 1041408   ;;  %p196_p4 = scmp.lt.s32.totalorder (!%p166_p3), %s2438_s14, 1  ;;  %v2059_v3 = vld [vmem:[%s2935_s1 + $0x2] sm:$0x3] (!%p166_p3) }
   0x8   : > { %169 = sbr.rel (%p166_p3) target bundleno = 350 (0x15e), region = 32  ;;  %2376 = vmatprep.subr.msk.bf16.mxu0 (!%p166_p3), %vm277_vm0, %v243_v1  ;;  %2377 = vmatprep.subr.msk.bf16.mxu1 (!%p166_p3), %vm277_vm0, %v243_v1  ;;  %v279_v2 = vsel (!%p166_p3), %vm277_vm0, %v243_v1, 0  ;;  %v2076_v4 = vld [vmem:[%s2935_s1 + $0x4] sm:$0x3] (!%p166_p3)  ;;  %v2093_v5 = vld [vmem:[%s2935_s1 + $0x6] sm:$0x3] (!%p166_p3) }
   0x9   : > { %2285 = vmatpush3.bf16.msra.mxu0 (!%p166_p3), %v279_v2  ;;  %2375 = vmatpush3.bf16.msra.mxu1 (!%p166_p3), %v279_v2  ;;  %v2118_v6 = vld [vmem:[%s2935_s1 + $0x8] sm:$0x3] (!%p166_p3)  ;;  %vm218_vm1 = vcmask (!%p166_p3), 7168   ;;  %vm264_vm2 = vcmask (!%p166_p3), 31744   ;;  %v529_v7 = vsel (!%p166_p3), %vm277_vm0, %v2059_v3, 0  ;;  %v2448_v8 = vmov (!%p166_p3), 0.0  }
   0xa   : > { %2378 = vmatprep.subr.msk.bf16.mxu1 (!%p166_p3), %vm277_vm0, %v2059_v3  ;;  %2379 = vmatprep.subr.msk.bf16.mxu0 (!%p166_p3), %vm277_vm0, %v2076_v4  ;;  %221 = vst.msk [vmem:[#allocation2 + $0x10] sm:$0xff] (!%p166_p3), %vm218_vm1, %v2448_v8  ;;  %219 = vst.msk [vmem:[#allocation2] sm:$0xff] (!%p166_p3), %vm218_vm1, %v2448_v8  ;;  %vm379_vm3 = vsmask.f32 (!%p166_p3), 3328  ;;  %vm380_vm4 = vsmask.f32 (!%p166_p3), 7440 }
   0xb   : > { %220 = vst.msk [vmem:[#allocation2 + $0x8] sm:$0xff] (!%p166_p3), %vm218_vm1, %v2448_v8  ;;  %222 = vst.msk [vmem:[#allocation2 + $0x18] sm:$0xff] (!%p166_p3), %vm218_vm1, %v2448_v8  ;;  %v714_v9 = vsel (!%p166_p3), %vm277_vm0, %v2076_v4, 0  ;;  %v2529_v10 = vsel (!%p166_p3), %vm277_vm0, %v2093_v5, 0  ;;  %v2532_v11 = vsel (!%p166_p3), %vm277_vm0, %v2118_v6, 0  ;;  %vm644_vm5 = vcmask (!%p166_p3), 1042432  }
   0xc   : > { %223 = vst.msk [vmem:[#allocation2 + $0x20] sm:$0xff] (!%p166_p3), %vm218_vm1, %v2448_v8  ;;  %224 = vst.msk [vmem:[#allocation2 + $0x28] sm:$0xff] (!%p166_p3), %vm218_vm1, %v2448_v8  ;;  %vm645_vm6 = vcmask (!%p166_p3), 1046532   ;;  %v2556_v43 = vld [vmem:[%s2935_s1 + $0xa] sm:$0x3] (!%p166_p3) }
   0xd   : > { %225 = vst.msk [vmem:[#allocation2 + $0x30] sm:$0xff] (!%p166_p3), %vm218_vm1, %v2448_v8  ;;  %226 = vst.msk [vmem:[#allocation2 + $0x38] sm:$0xff] (!%p166_p3), %vm218_vm1, %v2448_v8 }
   0xe   : > { %vm2560_vm7 = vmor (!%p166_p3), %vm379_vm3, %vm380_vm4 }
   0xf   : > { %s2947_s14 = smov (!%p196_p4, %s2438_s14), 1  ;;  %vm2569_vm8 = vmor %vm644_vm5, %vm645_vm6 }
  0x10   : > { %s2386_s27 = smul.u32 80, %s2947_s14  ;;  %s2238_s12 = sshll.u32 %s2947_s14, 6 }
  0x11   : > { %s2903_s18 = scalar_lea.vmem %s2937_s3, %s2238_s12 }
  0x12   : > { %s2525_s30 = scalar_lea.vmem %s2934_s0, %s2386_s27 }
  0x13   : > { %v2412_v12 = vld [vmem:[%s2525_s30] ss:$8 sps:$4 sm:$0xff]   ;;  %v2414_v14 = vld [vmem:[%s2525_s30 + $0x10] ss:$8 sps:$4 sm:$0xff]   ;;  %v364_v17 = vld [vmem:[%s2525_s30 + $0x4] sm:$0x1] }
  0x14   : > { %v2413_v13 = vld [vmem:[%s2525_s30 + $0x20] ss:$8 sps:$4 sm:$0xff]   ;;  %2286 = vmatprep.mubr.msk.bf16.mxu0 %vm264_vm2, %v2412_v12  ;;  %v2415_v15 = vld [vmem:[%s2525_s30 + $0x30] ss:$8 sps:$4 sm:$0xff]   ;;  %v366_v19 = vld [vmem:[%s2525_s30 + $0xc] sm:$0x1] }
  0x15   : > { %2290 = vmatprep.mubr.msk.bf16.mxu1 %vm264_vm2, %v2413_v13  ;;  %2287 = vmatmul.mubr.msk.bf16.vlgmr.msra.gmra.mrb[0].mxu0 %vm264_vm2, %v2414_v14  ;;  %v363_v16 = vld [vmem:[%s2525_s30] sm:$0xf]  ;;  %v365_v18 = vld [vmem:[%s2525_s30 + $0x8] sm:$0xf]  ;;  %v392_v22 = vshll.u32 %v364_v17, 16  ;;  %v406_v25 = vshll.u32 %v366_v19, 16 }
  0x16   : > { %2291 = vmatmul.mubr.msk.bf16.vlgmr.msra.gmra.mrb[0].mxu1 %vm264_vm2, %v2415_v15  ;;  %v383_v20 = vshrl.u32 %v363_v16, 16  ;;  %v386_v21 = vshll.u32 %v363_v16, 16  ;;  %v397_v23 = vshrl.u32 %v365_v18, 16  ;;  %2305 = vmatpush3.bf16.msra.mxu0 %v714_v9  ;;  %v400_v24 = vshll.u32 %v365_v18, 16  ;;  %v367_v26 = vld [vmem:[%s2525_s30 + $0x10] sm:$0xf] }
  0x17   : > { %2295 = vmatpush3.bf16.msra.mxu1 %v529_v7  ;;  %v368_v27 = vld [vmem:[%s2525_s30 + $0x14] sm:$0x1]  ;;  %2381 = vmatprep.subr.msk.bf16.mxu0 %vm277_vm0, %v2118_v6  ;;  %v394_v30 = vrot.slane %v392_v22, 5  ;;  %v369_v32 = vld [vmem:[%s2525_s30 + $0x18] sm:$0xf]  ;;  %v408_v34 = vrot.slane %v406_v25, 5 }
  0x18   : > { %v385_v28 = vrot.slane %v383_v20, 4  ;;  %v388_v29 = vrot.slane %v386_v21, 5  ;;  %v399_v31 = vrot.slane %v397_v23, 4  ;;  %2380 = vmatprep.subr.msk.bf16.mxu1 %vm277_vm0, %v2093_v5  ;;  %v402_v33 = vrot.slane %v400_v24, 5  ;;  %v370_v35 = vld [vmem:[%s2525_s30 + $0x1c] sm:$0x1] }
  0x19   : > { %v411_v36 = vshrl.u32 %v367_v26, 16  ;;  %v414_v37 = vshll.u32 %v367_v26, 16  ;;  %v420_v39 = vshll.u32 %v368_v27, 16  ;;  %v425_v40 = vshrl.u32 %v369_v32, 16  ;;  %v612_v42 = vld [vmem:[%s2525_s30] sm:$0xe] }
  0x1a   : > { %v389_v38 = vor.u32 %v388_v29, %v385_v28  ;;  %v428_v41 = vshll.u32 %v369_v32, 16  ;;  %v403_v45 = vor.u32 %v402_v33, %v399_v31  ;;  %v434_v48 = vshll.u32 %v370_v35, 16  ;;  %v613_v49 = vld [vmem:[%s2525_s30 + $0x4] sm:$0x1]  ;;  %v614_v54 = vld [vmem:[%s2525_s30 + $0x8] sm:$0xe] }
  0x1b   : > { %v413_v46 = vrot.slane %v411_v36, 4  ;;  %v416_v47 = vrot.slane %v414_v37, 5  ;;  %v422_v51 = vrot.slane %v420_v39, 5  ;;  %v427_v52 = vrot.slane %v425_v40, 4  ;;  %v615_v58 = vld [vmem:[%s2525_s30 + $0xc] sm:$0x1] }
  0x1c   : > { %v390_v50 = vrot.slane %v389_v38, 4  ;;  %v430_v53 = vrot.slane %v428_v41, 5  ;;  %v404_v55 = vrot.slane %v403_v45, 4  ;;  %v436_v57 = vrot.slane %v434_v48, 5  ;;  %v371_v1 = vld [vmem:[%s2525_s30 + $0x20] sm:$0xf] }
  0x1d   : > { %v417_v56 = vor.u32 %v416_v47, %v413_v46  ;;  %v2068_v60 = vrot.slane %v612_v42, 9  ;;  %v649_v63 = vrot.slane %v613_v49, 5  ;;  %v2069_v0 = vrot.slane %v614_v54, 9  ;;  %v372_v2 = vld [vmem:[%s2525_s30 + $0x24] sm:$0x1] }
  0x1e   : > { %v395_v61 = vsel %vm2560_vm7, %v390_v50, %v394_v30  ;;  %v431_v62 = vor.u32 %v430_v53, %v427_v52  ;;  %v409_v3 = vsel %vm2560_vm7, %v404_v55, %v408_v34  ;;  %v653_v5 = vrot.slane %v615_v58, 5  ;;  %v373_v6 = vld [vmem:[%s2525_s30 + $0x28] sm:$0xf]  ;;  %v374_v13 = vld [vmem:[%s2525_s30 + $0x2c] sm:$0x1] }
  0x1f   : > { %v418_v4 = vrot.slane %v417_v56, 4  ;;  %v2582_v7 = vsel %vm277_vm0, %v2556_v43, 0  ;;  %v2060_v8 = vcombine.low %v395_v61, %v409_v3  ;;  %v650_v12 = vsel %vm2569_vm8, %v2068_v60, %v649_v63  ;;  %v616_v15 = vld [vmem:[%s2525_s30 + $0x10] sm:$0xe]  ;;  %v617_v20 = vld [vmem:[%s2525_s30 + $0x14] sm:$0x1] }
  0x20   : > { %v432_v9 = vrot.slane %v431_v62, 4  ;;  %v439_v14 = vshrl.u32 %v371_v1, 16  ;;  %v654_v17 = vsel %vm2569_vm8, %v2069_v0, %v653_v5  ;;  %v442_v18 = vshll.u32 %v371_v1, 16  ;;  %v618_v21 = vld [vmem:[%s2525_s30 + $0x18] sm:$0xe] }
  0x21   : > { %v423_v16 = vsel %vm2560_vm7, %v418_v4, %v422_v51  ;;  %v448_v19 = vshll.u32 %v372_v2, 16  ;;  %2296 = vmatprep.mubr.msk.bf16.mxu1 %vm264_vm2, %v2060_v8  ;;  %v2077_v23 = vcombine.low %v650_v12, %v654_v17  ;;  %v453_v25 = vshrl.u32 %v373_v6, 16  ;;  %v619_v26 = vld [vmem:[%s2525_s30 + $0x1c] sm:$0x1]  ;;  %v375_v27 = vld [vmem:[%s2525_s30 + $0x30] sm:$0xf] }
  0x22   : > { %v437_v22 = vsel %vm2560_vm7, %v432_v9, %v436_v57  ;;  %v441_v24 = vrot.slane %v439_v14, 4  ;;  %v444_v29 = vrot.slane %v442_v18, 5  ;;  %v456_v31 = vshll.u32 %v373_v6, 16  ;;  %v376_v32 = vld [vmem:[%s2525_s30 + $0x34] sm:$0x1] }
  0x23   : > { %v2061_v28 = vcombine.low %v423_v16, %v437_v22  ;;  %v450_v30 = vrot.slane %v448_v19, 5  ;;  %2306 = vmatprep.mubr.msk.bf16.mxu0 %vm264_vm2, %v2077_v23  ;;  %v455_v33 = vrot.slane %v453_v25, 4  ;;  %v462_v34 = vshll.u32 %v374_v13, 16  ;;  %v377_v37 = vld [vmem:[%s2525_s30 + $0x38] sm:$0xf] }
  0x24   : > { %v2070_v35 = vrot.slane %v616_v15, 9  ;;  %v657_v36 = vrot.slane %v617_v20, 5  ;;  %v445_v38 = vor.u32 %v444_v29, %v441_v24  ;;  %v458_v39 = vrot.slane %v456_v31, 5  ;;  %v378_v42 = vld [vmem:[%s2525_s30 + $0x3c] sm:$0x1] }
  0x25   : > { %2297 = vmatmul.mubr.msk.bf16.vlgmr.msra.gmra.mrb[4].mxu1 %vm264_vm2, %v2061_v28  ;;  %v2071_v40 = vrot.slane %v618_v21, 9  ;;  %v661_v41 = vrot.slane %v619_v26, 5  ;;  %v620_v45 = vld [vmem:[%s2525_s30 + $0x20] sm:$0xe]  ;;  %v464_v46 = vrot.slane %v462_v34, 5  ;;  %v467_v48 = vshrl.u32 %v375_v27, 16 }
  0x26   : > { %2315 = vmatpush3.bf16.msra.mxu1 %v2529_v10  ;;  %v658_v47 = vsel %vm2569_vm8, %v2070_v35, %v657_v36  ;;  %v470_v49 = vshll.u32 %v375_v27, 16  ;;  %v621_v50 = vld [vmem:[%s2525_s30 + $0x24] sm:$0x1]  ;;  %v446_v51 = vrot.slane %v445_v38, 4  ;;  %v459_v52 = vor.u32 %v458_v39, %v455_v33  ;;  %v622_v55 = vld [vmem:[%s2525_s30 + $0x28] sm:$0xe] }
  0x27   : > { %v662_v53 = vsel %vm2569_vm8, %v2071_v40, %v661_v41  ;;  %v476_v54 = vshll.u32 %v376_v32, 16  ;;  %v623_v56 = vld [vmem:[%s2525_s30 + $0x2c] sm:$0x1]  ;;  %2382 = vmatprep.subr.msk.bf16.mxu1 %vm277_vm0, %v2556_v43  ;;  %v469_v58 = vrot.slane %v467_v48, 4  ;;  %v481_v61 = vshrl.u32 %v377_v37, 16 }
  0x28   : > { %v2168_v10 = vld [vmem:[%s2935_s1 + $0xc] sm:$0x3]  ;;  %v2078_v57 = vcombine.low %v658_v47, %v662_v53  ;;  %v472_v60 = vrot.slane %v470_v49, 5  ;;  %v624_v62 = vld [vmem:[%s2525_s30 + $0x30] sm:$0xe]  ;;  %v451_v63 = vsel %vm2560_vm7, %v446_v51, %v450_v30  ;;  %v460_v0 = vrot.slane %v459_v52, 4 }
  0x29   : > { %v478_v1 = vrot.slane %v476_v54, 5  ;;  %v484_v2 = vshll.u32 %v377_v37, 16  ;;  %v625_v3 = vld [vmem:[%s2525_s30 + $0x34] sm:$0x1]  ;;  %v483_v4 = vrot.slane %v481_v61, 4  ;;  %v490_v5 = vshll.u32 %v378_v42, 16 }
  0x2a   : > { %2307 = vmatmul.mubr.msk.bf16.vlgmr.msra.gmra.mrb[4].mxu0 %vm264_vm2, %v2078_v57  ;;  %v473_v43 = vor.u32 %v472_v60, %v469_v58  ;;  %v2072_v6 = vrot.slane %v620_v45, 9  ;;  %v626_v8 = vld [vmem:[%s2525_s30 + $0x38] sm:$0xe]  ;;  %v465_v9 = vsel %vm2560_vm7, %v460_v0, %v464_v46  ;;  %v665_v13 = vrot.slane %v621_v50, 5  ;;  %v627_v15 = vld [vmem:[%s2525_s30 + $0x3c] sm:$0x1] }
  0x2b   : > { %v486_v12 = vrot.slane %v484_v2, 5  ;;  %v2073_v14 = vrot.slane %v622_v55, 9  ;;  %2325 = vmatpush3.bf16.msra.mxu0 %v2532_v11  ;;  %v2062_v16 = vcombine.low %v451_v63, %v465_v9  ;;  %v492_v18 = vrot.slane %v490_v5, 5  ;;  %v2634_v24 = vld [vmem:[%s2935_s1 + $0xe] sm:$0x3] }
  0x2c   : > { %v474_v17 = vrot.slane %v473_v43, 4  ;;  %v669_v19 = vrot.slane %v623_v56, 5  ;;  %2383 = vmatprep.subr.msk.bf16.mxu0 %vm277_vm0, %v2168_v10  ;;  %v666_v21 = vsel %vm2569_vm8, %v2072_v6, %v665_v13  ;;  %v2074_v22 = vrot.slane %v624_v62, 9  ;;  %v2416_v36 = vld [vmem:[%s2525_s30 + $0x8] ss:$8 sps:$4 sm:$0xff]  }
  0x2d   : > { %v487_v20 = vor.u32 %v486_v12, %v483_v4  ;;  %v673_v23 = vrot.slane %v625_v3, 5  ;;  %2300 = vmatprep.mubr.msk.bf16.mxu1 %vm264_vm2, %v2062_v16  ;;  %v2075_v25 = vrot.slane %v626_v8, 9  ;;  %v677_v26 = vrot.slane %v627_v15, 5  ;;  %v2102_v37 = vld [vmem:[%s2525_s30 + $0x8] sm:$0xf] }
  0x2e   : > { %v670_v11 = vsel %vm2569_vm8, %v2073_v14, %v669_v19  ;;  %v479_v27 = vsel %vm2560_vm7, %v474_v17, %v478_v1  ;;  %v2646_v32 = vsel %vm277_vm0, %v2168_v10, 0  ;;  %v2650_v33 = vsel %vm277_vm0, %v2634_v24, 0  ;;  %v2103_v39 = vld [vmem:[%s2525_s30 + $0xc] sm:$0x1]  ;;  %v2104_v40 = vld [vmem:[%s2525_s30 + $0x10] sm:$0xf] }
  0x2f   : > { %v488_v28 = vrot.slane %v487_v20, 4  ;;  %v2079_v29 = vcombine.low %v666_v21, %v670_v11  ;;  %v674_v30 = vsel %vm2569_vm8, %v2074_v22, %v673_v23  ;;  %v678_v31 = vsel %vm2569_vm8, %v2075_v25, %v677_v26  ;;  %v2105_v41 = vld [vmem:[%s2525_s30 + $0x14] sm:$0x1]  ;;  %v2106_v48 = vld [vmem:[%s2525_s30 + $0x18] sm:$0xf] }
  0x30   : > { %v2080_v35 = vcombine.low %v674_v30, %v678_v31  ;;  %v949_v42 = vshrl.u32 %v2102_v37, 16  ;;  %v952_v45 = vshll.u32 %v2102_v37, 16  ;;  %v958_v46 = vshll.u32 %v2103_v39, 16  ;;  %v2107_v51 = vld [vmem:[%s2525_s30 + $0x1c] sm:$0x1] }
  0x31   : > { %v493_v34 = vsel %vm2560_vm7, %v488_v28, %v492_v18  ;;  %2310 = vmatprep.mubr.msk.bf16.mxu0 %vm264_vm2, %v2079_v29  ;;  %v963_v47 = vshrl.u32 %v2104_v40, 16  ;;  %v966_v49 = vshll.u32 %v2104_v40, 16  ;;  %v972_v50 = vshll.u32 %v2105_v41, 16  ;;  %v2108_v52 = vld [vmem:[%s2525_s30 + $0x20] sm:$0xf] }
  0x32   : > { %v2063_v38 = vcombine.low %v479_v27, %v493_v34  ;;  %2311 = vmatmul.mubr.msk.bf16.gmra.mrb[8].mxu0 %vm264_vm2, %v2080_v35  ;;  %v951_v53 = vrot.slane %v949_v42, 4  ;;  %v954_v54 = vrot.slane %v952_v45, 5  ;;  %v960_v55 = vrot.slane %v958_v46, 5  ;;  %v2109_v10 = vld [vmem:[%s2525_s30 + $0x24] sm:$0x1] }
  0x33   : > { %v965_v56 = vrot.slane %v963_v47, 4  ;;  %v2417_v57 = vld [vmem:[%s2525_s30 + $0x18] ss:$8 sps:$4 sm:$0xff]   ;;  %v968_v58 = vrot.slane %v966_v49, 5  ;;  %v974_v60 = vrot.slane %v972_v50, 5  ;;  %v977_v61 = vshrl.u32 %v2106_v48, 16 }
  0x34   : > { %2301 = vmatmul.mubr.msk.bf16.gmra.mrb[8].mxu1 %vm264_vm2, %v2063_v38  ;;  %v980_v62 = vshll.u32 %v2106_v48, 16  ;;  %v2418_v63 = vld [vmem:[%s2525_s30 + $0x28] ss:$8 sps:$4 sm:$0xff]   ;;  %v955_v0 = vor.u32 %v954_v54, %v951_v53  ;;  %v986_v1 = vshll.u32 %v2107_v51, 16  ;;  %v991_v2 = vshrl.u32 %v2108_v52, 16 }
  0x35   : > { %2316 = vmatprep.mubr.msk.bf16.mxu1 %vm264_vm2, %v2416_v36  ;;  %v994_v3 = vshll.u32 %v2108_v52, 16  ;;  %v2110_v43 = vld [vmem:[%s2525_s30 + $0x28] sm:$0xf]  ;;  %v969_v4 = vor.u32 %v968_v58, %v965_v56  ;;  %v979_v5 = vrot.slane %v977_v61, 4  ;;  %v1000_v8 = vshll.u32 %v2109_v10, 16 }
  0x36   : > { %v982_v6 = vrot.slane %v980_v62, 5  ;;  %v2111_v9 = vld [vmem:[%s2525_s30 + $0x2c] sm:$0x1]  ;;  %v956_v12 = vrot.slane %v955_v0, 4  ;;  %v988_v13 = vrot.slane %v986_v1, 5  ;;  %v993_v14 = vrot.slane %v991_v2, 4 }
  0x37   : > { %v996_v15 = vrot.slane %v994_v3, 5  ;;  %v2112_v16 = vld [vmem:[%s2525_s30 + $0x30] sm:$0xf]  ;;  %v970_v17 = vrot.slane %v969_v4, 4  ;;  %v1002_v19 = vrot.slane %v1000_v8, 5  ;;  %v1005_v20 = vshrl.u32 %v2110_v43, 16 }
  0x38   : > { %v983_v18 = vor.u32 %v982_v6, %v979_v5  ;;  %v961_v21 = vsel %vm2560_vm7, %v956_v12, %v960_v55  ;;  %v2113_v23 = vld [vmem:[%s2525_s30 + $0x34] sm:$0x1]  ;;  %v1008_v11 = vshll.u32 %v2110_v43, 16  ;;  %v1014_v25 = vshll.u32 %v2111_v9, 16  ;;  %v2114_v26 = vld [vmem:[%s2525_s30 + $0x38] sm:$0xf] }
  0x39   : > { %v997_v22 = vor.u32 %v996_v15, %v993_v14  ;;  %v975_v27 = vsel %vm2560_vm7, %v970_v17, %v974_v60  ;;  %v1007_v29 = vrot.slane %v1005_v20, 4  ;;  %v1019_v30 = vshrl.u32 %v2112_v16, 16  ;;  %v2115_v31 = vld [vmem:[%s2525_s30 + $0x3c] sm:$0x1]  ;;  %v2116_v38 = vld [vmem:[%s2525_s30 + $0x40] sm:$0xf] }
  0x3a   : > { %v984_v28 = vrot.slane %v983_v18, 4  ;;  %v2119_v34 = vcombine.low %v961_v21, %v975_v27  ;;  %v1010_v36 = vrot.slane %v1008_v11, 5  ;;  %v1016_v37 = vrot.slane %v1014_v25, 5  ;;  %v2419_v39 = vld [vmem:[%s2525_s30 + $0x38] ss:$8 sps:$4 sm:$0xff]  }
  0x3b   : > { %v998_v35 = vrot.slane %v997_v22, 4  ;;  %v1021_v41 = vrot.slane %v1019_v30, 4  ;;  %v1022_v42 = vshll.u32 %v2112_v16, 16  ;;  %v1028_v45 = vshll.u32 %v2113_v23, 16  ;;  %v2117_v46 = vld [vmem:[%s2525_s30 + $0x44] sm:$0x1] }
  0x3c   : > { %2317 = vmatmul.mubr.msk.bf16.vlgmr.msra.gmra.mrb[12].mxu1 %vm264_vm2, %v2417_v57  ;;  %v989_v40 = vsel %vm2560_vm7, %v984_v28, %v988_v13  ;;  %2326 = vmatprep.mubr.msk.bf16.mxu0 %vm264_vm2, %v2119_v34  ;;  %v1011_v47 = vor.u32 %v1010_v36, %v1007_v29  ;;  %v1033_v48 = vshrl.u32 %v2114_v26, 16  ;;  %v1036_v49 = vshll.u32 %v2114_v26, 16  ;;  %v2127_v50 = vld [vmem:[%s2525_s30 + $0x8] sm:$0xe]  ;;  %v2128_v51 = vld [vmem:[%s2525_s30 + $0xc] sm:$0x1] }
  0x3d   : > { %2320 = vmatprep.mubr.msk.bf16.mxu1 %vm264_vm2, %v2418_v63  ;;  %2335 = vmatpush3.bf16.msra.mxu1 %v2582_v7  ;;  %v1003_v7 = vsel %vm2560_vm7, %v998_v35, %v1002_v19  ;;  %v2697_v52 = vld [vmem:[%s2935_s1 + $0x10] sm:$0x3]  ;;  %v1024_v54 = vrot.slane %v1022_v42, 5  ;;  %v1042_v55 = vshll.u32 %v2115_v31, 16  ;;  %v2130_v10 = vld [vmem:[%s2525_s30 + $0x14] sm:$0x1] }
  0x3e   : > { %2384 = vmatprep.subr.msk.bf16.mxu1 %vm277_vm0, %v2634_v24  ;;  %v2120_v53 = vcombine.low %v989_v40, %v1003_v7  ;;  %v1030_v24 = vrot.slane %v1028_v45, 5  ;;  %v2129_v56 = vld [vmem:[%s2525_s30 + $0x10] sm:$0xe]  ;;  %v1012_v57 = vrot.slane %v1011_v47, 4  ;;  %v1035_v58 = vrot.slane %v1033_v48, 4 }
  0x3f   : > { %v1038_v60 = vrot.slane %v1036_v49, 5  ;;  %v1047_v61 = vshrl.u32 %v2116_v38, 16  ;;  %v2131_v62 = vld [vmem:[%s2525_s30 + $0x18] sm:$0xe]  ;;  %v1025_v63 = vor.u32 %v1024_v54, %v1021_v41  ;;  %v1044_v0 = vrot.slane %v1042_v55, 5 }
  0x40   : > { %2327 = vmatmul.mubr.msk.bf16.vlgmr.msra.gmra.mrb[12].mxu0 %vm264_vm2, %v2120_v53  ;;  %v1050_v1 = vshll.u32 %v2116_v38, 16  ;;  %v1056_v2 = vshll.u32 %v2117_v46, 16  ;;  %v2132_v3 = vld [vmem:[%s2525_s30 + $0x1c] sm:$0x1]  ;;  %v1017_v43 = vsel %vm2560_vm7, %v1012_v57, %v1016_v37  ;;  %v2143_v6 = vrot.slane %v2127_v50, 9 }
  0x41   : > { %2345 = vmatpush3.bf16.msra.mxu0 %v2646_v32  ;;  %v1039_v4 = vor.u32 %v1038_v60, %v1035_v58  ;;  %v1049_v5 = vrot.slane %v1047_v61, 4  ;;  %v2133_v8 = vld [vmem:[%s2525_s30 + $0x20] sm:$0xe]  ;;  %v2134_v9 = vld [vmem:[%s2525_s30 + $0x24] sm:$0x1]  ;;  %v1026_v12 = vrot.slane %v1025_v63, 4 }
  0x42   : > { %v1052_v13 = vrot.slane %v1050_v1, 5  ;;  %v1058_v14 = vrot.slane %v1056_v2, 5  ;;  %v1212_v15 = vrot.slane %v2128_v51, 5  ;;  %v2135_v16 = vld [vmem:[%s2525_s30 + $0x28] sm:$0xe]  ;;  %2385 = vmatprep.subr.msk.bf16.mxu0 %vm277_vm0, %v2697_v52  ;;  %v2144_v18 = vrot.slane %v2129_v56, 9 }
  0x43   : > { %v2136_v17 = vld [vmem:[%s2525_s30 + $0x2c] sm:$0x1]  ;;  %v1040_v32 = vrot.slane %v1039_v4, 4  ;;  %v1216_v19 = vrot.slane %v2130_v10, 5  ;;  %v2145_v20 = vrot.slane %v2131_v62, 9  ;;  %v1031_v22 = vsel %vm2560_vm7, %v1026_v12, %v1030_v24 }
  0x44   : > { %2321 = vmatmul.mubr.msk.bf16.gmra.mrb[16].mxu1 %vm264_vm2, %v2419_v39  ;;  %v2137_v21 = vld [vmem:[%s2525_s30 + $0x30] sm:$0xe]  ;;  %v1053_v23 = vor.u32 %v1052_v13, %v1049_v5  ;;  %v1213_v11 = vsel %vm2569_vm8, %v2143_v6, %v1212_v15  ;;  %v1220_v25 = vrot.slane %v2132_v3, 5  ;;  %v2138_v26 = vld [vmem:[%s2525_s30 + $0x34] sm:$0x1]  ;;  %v2121_v28 = vcombine.low %v1017_v43, %v1031_v22 }
  0x45   : > { %v2139_v27 = vld [vmem:[%s2525_s30 + $0x38] sm:$0xe]  ;;  %v1045_v29 = vsel %vm2560_vm7, %v1040_v32, %v1044_v0  ;;  %v1217_v30 = vsel %vm2569_vm8, %v2144_v18, %v1216_v19  ;;  %v2146_v31 = vrot.slane %v2133_v8, 9  ;;  %v2140_v34 = vld [vmem:[%s2525_s30 + $0x3c] sm:$0x1]  ;;  %v1224_v39 = vrot.slane %v2134_v9, 5 }
  0x46   : > { %v2141_v35 = vld [vmem:[%s2525_s30 + $0x40] sm:$0xe]  ;;  %v1054_v36 = vrot.slane %v1053_v23, 4  ;;  %v2152_v37 = vcombine.low %v1213_v11, %v1217_v30  ;;  %v1221_v38 = vsel %vm2569_vm8, %v2145_v20, %v1220_v25  ;;  %v2142_v40 = vld [vmem:[%s2525_s30 + $0x44] sm:$0x1]  ;;  %2330 = vmatprep.mubr.msk.bf16.mxu0 %vm264_vm2, %v2121_v28  ;;  %v2147_v41 = vrot.slane %v2135_v16, 9 }
  0x47   : > { %v1228_v42 = vrot.slane %v2136_v17, 5  ;;  %v2148_v45 = vrot.slane %v2137_v21, 9  ;;  %v1232_v46 = vrot.slane %v2138_v26, 5  ;;  %v1225_v47 = vsel %vm2569_vm8, %v2146_v31, %v1224_v39  ;;  %v2420_v24 = vld [vmem:[%s2525_s30 + $0x10] ss:$8 sps:$4 sm:$0xff]  }
  0x48   : > { %v1059_v7 = vsel %vm2560_vm7, %v1054_v36, %v1058_v14  ;;  %2336 = vmatprep.mubr.msk.bf16.mxu1 %vm264_vm2, %v2152_v37  ;;  %v2149_v48 = vrot.slane %v2139_v27, 9  ;;  %v1236_v49 = vrot.slane %v2140_v34, 5  ;;  %v2153_v51 = vcombine.low %v1221_v38, %v1225_v47  ;;  %v2177_v60 = vld [vmem:[%s2525_s30 + $0x10] sm:$0xf]  ;;  %v2178_v61 = vld [vmem:[%s2525_s30 + $0x14] sm:$0x1] }
  0x49   : > { %v2122_v50 = vcombine.low %v1045_v29, %v1059_v7  ;;  %v1229_v53 = vsel %vm2569_vm8, %v2147_v41, %v1228_v42  ;;  %v1233_v54 = vsel %vm2569_vm8, %v2148_v45, %v1232_v46  ;;  %v2150_v56 = vrot.slane %v2141_v35, 9  ;;  %v2179_v62 = vld [vmem:[%s2525_s30 + $0x18] sm:$0xf]  ;;  %v2421_v63 = vld [vmem:[%s2525_s30 + $0x20] ss:$8 sps:$4 sm:$0xff]  }
  0x4a   : > { %v2154_v55 = vcombine.low %v1229_v53, %v1233_v54  ;;  %v1240_v10 = vrot.slane %v2142_v40, 5  ;;  %v1237_v57 = vsel %vm2569_vm8, %v2149_v48, %v1236_v49  ;;  %v1840_v0 = vsel %vm277_vm0, %v2697_v52, 0  ;;  %v2180_v1 = vld [vmem:[%s2525_s30 + $0x1c] sm:$0x1]  ;;  %v2422_v4 = vld [vmem:[%s2525_s30 + $0x30] ss:$8 sps:$4 sm:$0xff]  }
  0x4b   : > { %2331 = vmatmul.mubr.msk.bf16.gmra.mrb[16].mxu0 %vm264_vm2, %v2122_v50  ;;  %v1512_v2 = vshrl.u32 %v2177_v60, 16  ;;  %v1515_v3 = vshll.u32 %v2177_v60, 16  ;;  %v1521_v43 = vshll.u32 %v2178_v61, 16  ;;  %v1526_v5 = vshrl.u32 %v2179_v62, 16  ;;  %v2181_v9 = vld [vmem:[%s2525_s30 + $0x20] sm:$0xf] }
  0x4c   : > { %2337 = vmatmul.mubr.msk.bf16.vlgmr.msra.gmra.mrb[20].mxu1 %vm264_vm2, %v2153_v51  ;;  %v1241_v58 = vsel %vm2569_vm8, %v2150_v56, %v1240_v10  ;;  %2346 = vmatprep.mubr.msk.bf16.mxu0 %vm264_vm2, %v2420_v24  ;;  %v1529_v6 = vshll.u32 %v2179_v62, 16  ;;  %v1535_v8 = vshll.u32 %v2180_v1, 16  ;;  %v2182_v15 = vld [vmem:[%s2525_s30 + $0x24] sm:$0x1]  ;;  %v1540_v16 = vshrl.u32 %v2181_v9, 16 }
  0x4d   : > { %2340 = vmatprep.mubr.msk.bf16.mxu1 %vm264_vm2, %v2154_v55  ;;  %2355 = vmatpush3.bf16.msra.mxu1 %v2650_v33  ;;  %v2155_v33 = vcombine.low %v1237_v57, %v1241_v58  ;;  %v1514_v12 = vrot.slane %v1512_v2, 4  ;;  %v1517_v13 = vrot.slane %v1515_v3, 5  ;;  %v1523_v14 = vrot.slane %v1521_v43, 5  ;;  %v2183_v18 = vld [vmem:[%s2525_s30 + $0x28] sm:$0xf] }
  0x4e   : > { %v1528_v17 = vrot.slane %v1526_v5, 4  ;;  %v1531_v52 = vrot.slane %v1529_v6, 5  ;;  %v1537_v32 = vrot.slane %v1535_v8, 5  ;;  %v1543_v19 = vshll.u32 %v2181_v9, 16  ;;  %v2184_v21 = vld [vmem:[%s2525_s30 + $0x2c] sm:$0x1] }
  0x4f   : > { %v1518_v20 = vor.u32 %v1517_v13, %v1514_v12  ;;  %v1542_v22 = vrot.slane %v1540_v16, 4  ;;  %v1549_v23 = vshll.u32 %v2182_v15, 16  ;;  %v1554_v11 = vshrl.u32 %v2183_v18, 16  ;;  %v2185_v29 = vld [vmem:[%s2525_s30 + $0x30] sm:$0xf] }
  0x50   : > { %v1532_v25 = vor.u32 %v1531_v52, %v1528_v17  ;;  %v1545_v26 = vrot.slane %v1543_v19, 5  ;;  %v1557_v27 = vshll.u32 %v2183_v18, 16  ;;  %v1563_v28 = vshll.u32 %v2184_v21, 16  ;;  %v2186_v35 = vld [vmem:[%s2525_s30 + $0x34] sm:$0x1] }
  0x51   : > { %v1519_v30 = vrot.slane %v1518_v20, 4  ;;  %v1551_v31 = vrot.slane %v1549_v23, 5  ;;  %v1556_v34 = vrot.slane %v1554_v11, 4  ;;  %v1568_v36 = vshrl.u32 %v2185_v29, 16  ;;  %v2187_v41 = vld [vmem:[%s2525_s30 + $0x38] sm:$0xf] }
  0x52   : > { %v1533_v37 = vrot.slane %v1532_v25, 4  ;;  %v1546_v38 = vor.u32 %v1545_v26, %v1542_v22  ;;  %v1559_v39 = vrot.slane %v1557_v27, 5  ;;  %v1565_v40 = vrot.slane %v1563_v28, 5  ;;  %v2423_v42 = vld [vmem:[%s2525_s30 + $0x40] ss:$8 sps:$4 sm:$0xff]  }
  0x53   : > { %2347 = vmatmul.mubr.msk.bf16.vlgmr.msra.gmra.mrb[20].mxu0 %vm264_vm2, %v2421_v63  ;;  %v1524_v45 = vsel %vm2560_vm7, %v1519_v30, %v1523_v14  ;;  %v2188_v46 = vld [vmem:[%s2525_s30 + $0x3c] sm:$0x1]  ;;  %v1570_v7 = vrot.slane %v1568_v36, 4  ;;  %v1571_v47 = vshll.u32 %v2185_v29, 16  ;;  %v1577_v48 = vshll.u32 %v2186_v35, 16 }
  0x54   : > { %2341 = vmatmul.mubr.msk.bf16.gmra.mrb[24].mxu1 %vm264_vm2, %v2155_v33  ;;  %2350 = vmatprep.mubr.msk.bf16.mxu0 %vm264_vm2, %v2422_v4  ;;  %v1538_v49 = vsel %vm2560_vm7, %v1533_v37, %v1537_v32  ;;  %v1547_v50 = vrot.slane %v1546_v38, 4  ;;  %v1560_v51 = vor.u32 %v1559_v39, %v1556_v34  ;;  %v1582_v53 = vshrl.u32 %v2187_v41, 16  ;;  %v2189_v54 = vld [vmem:[%s2525_s30 + $0x40] sm:$0xf]  ;;  %v2190_v24 = vld [vmem:[%s2525_s30 + $0x44] sm:$0x1] }
  0x55   : > { %2365 = vmatpush3.bf16.msra.mxu0 %v1840_v0  ;;  %v2194_v55 = vcombine.low %v1524_v45, %v1538_v49  ;;  %v1573_v56 = vrot.slane %v1571_v47, 5  ;;  %v1579_v10 = vrot.slane %v1577_v48, 5  ;;  %v1585_v57 = vshll.u32 %v2187_v41, 16  ;;  %v2191_v58 = vld [vmem:[%s2525_s30 + $0x48] sm:$0xf] }
  0x56   : > { %v1552_v60 = vsel %vm2560_vm7, %v1547_v50, %v1551_v31  ;;  %v1561_v61 = vrot.slane %v1560_v51, 4  ;;  %v1584_v62 = vrot.slane %v1582_v53, 4  ;;  %v1591_v63 = vshll.u32 %v2188_v46, 16  ;;  %v2192_v0 = vld [vmem:[%s2525_s30 + $0x4c] sm:$0x1] }
  0x57   : > { %2356 = vmatprep.mubr.msk.bf16.mxu1 %vm264_vm2, %v2194_v55  ;;  %v1574_v1 = vor.u32 %v1573_v56, %v1570_v7  ;;  %v1587_v2 = vrot.slane %v1585_v57, 5  ;;  %v1596_v3 = vshrl.u32 %v2189_v54, 16  ;;  %v1599_v43 = vshll.u32 %v2189_v54, 16  ;;  %v2202_v33 = vld [vmem:[%s2525_s30 + $0x10] sm:$0xe] }
  0x58   : > { %v1566_v4 = vsel %vm2560_vm7, %v1561_v61, %v1565_v40  ;;  %v1593_v5 = vrot.slane %v1591_v63, 5  ;;  %v1605_v6 = vshll.u32 %v2190_v24, 16  ;;  %v1610_v8 = vshrl.u32 %v2191_v58, 16  ;;  %v2203_v9 = vld [vmem:[%s2525_s30 + $0x14] sm:$0x1] }
  0x59   : > { %v2195_v12 = vcombine.low %v1552_v60, %v1566_v4  ;;  %v1575_v13 = vrot.slane %v1574_v1, 4  ;;  %v1588_v14 = vor.u32 %v1587_v2, %v1584_v62  ;;  %v1598_v15 = vrot.slane %v1596_v3, 4  ;;  %v2204_v16 = vld [vmem:[%s2525_s30 + $0x18] sm:$0xe]  ;;  %v2205_v17 = vld [vmem:[%s2525_s30 + $0x1c] sm:$0x1] }
  0x5a   : > { %v1601_v52 = vrot.slane %v1599_v43, 5  ;;  %v1607_v32 = vrot.slane %v1605_v6, 5  ;;  %v1612_v18 = vrot.slane %v1610_v8, 4  ;;  %v1613_v19 = vshll.u32 %v2191_v58, 16  ;;  %v2206_v20 = vld [vmem:[%s2525_s30 + $0x20] sm:$0xe] }
  0x5b   : > { %2351 = vmatmul.mubr.msk.bf16.gmra.mrb[24].mxu0 %vm264_vm2, %v2423_v42  ;;  %v1580_v21 = vsel %vm2560_vm7, %v1575_v13, %v1579_v10  ;;  %v1589_v22 = vrot.slane %v1588_v14, 4  ;;  %v1619_v23 = vshll.u32 %v2192_v0, 16  ;;  %v2218_v11 = vrot.slane %v2202_v33, 9  ;;  %v2207_v25 = vld [vmem:[%s2525_s30 + $0x24] sm:$0x1]  ;;  %v237_v13 = vld [vmem:[#allocation2 + $0x10] sm:$0xff] }
  0x5c   : > { %2357 = vmatmul.mubr.msk.bf16.vlgmr.msra.gmra.mrb[28].mxu1 %vm264_vm2, %v2195_v12  ;;  %v1602_v26 = vor.u32 %v1601_v52, %v1598_v15  ;;  %v1615_v27 = vrot.slane %v1613_v19, 5  ;;  %v1775_v28 = vrot.slane %v2203_v9, 5  ;;  %v2219_v29 = vrot.slane %v2204_v16, 9  ;;  %v2208_v30 = vld [vmem:[%s2525_s30 + $0x28] sm:$0xe]  ;;  %v241_v14 = vld [vmem:[#allocation2 + $0x30] sm:$0xff] }
  0x5d   : > { %v1594_v31 = vsel %vm2560_vm7, %v1589_v22, %v1593_v5  ;;  %v1621_v34 = vrot.slane %v1619_v23, 5  ;;  %v1779_v35 = vrot.slane %v2205_v17, 5  ;;  %v2209_v36 = vld [vmem:[%s2525_s30 + $0x2c] sm:$0x1]  ;;  %v2220_v37 = vrot.slane %v2206_v20, 9  ;;  %v235_v15 = vld [vmem:[#allocation2] sm:$0xff] }
  0x5e   : > { %v2196_v38 = vcombine.low %v1580_v21, %v1594_v31  ;;  %v1603_v39 = vrot.slane %v1602_v26, 4  ;;  %v1616_v40 = vor.u32 %v1615_v27, %v1612_v18  ;;  %v1776_v41 = vsel %vm2569_vm8, %v2218_v11, %v1775_v28  ;;  %v2210_v42 = vld [vmem:[%s2525_s30 + $0x30] sm:$0xe]  ;;  %v2211_v45 = vld [vmem:[%s2525_s30 + $0x34] sm:$0x1]  ;;  %v239_v17 = vld [vmem:[#allocation2 + $0x20] sm:$0xff] }
  0x5f   : > { %v1780_v46 = vsel %vm2569_vm8, %v2219_v29, %v1779_v35  ;;  %v1783_v7 = vrot.slane %v2207_v25, 5  ;;  %v2221_v47 = vrot.slane %v2208_v30, 9  ;;  %v1787_v48 = vrot.slane %v2209_v36, 5  ;;  %v2212_v49 = vld [vmem:[%s2525_s30 + $0x38] sm:$0xe]  ;;  %v236_v21 = vld [vmem:[#allocation2 + $0x8] sm:$0xff] }
  0x60   : > { %2360 = vmatprep.mubr.msk.bf16.mxu1 %vm264_vm2, %v2196_v38  ;;  %v1608_v50 = vsel %vm2560_vm7, %v1603_v39, %v1607_v32  ;;  %v1617_v51 = vrot.slane %v1616_v40, 4  ;;  %v2227_v53 = vcombine.low %v1776_v41, %v1780_v46  ;;  %v2213_v54 = vld [vmem:[%s2525_s30 + $0x3c] sm:$0x1]  ;;  %v2222_v24 = vrot.slane %v2210_v42, 9  ;;  %v2214_v55 = vld [vmem:[%s2525_s30 + $0x40] sm:$0xe] }
  0x61   : > { %v1784_v56 = vsel %vm2569_vm8, %v2220_v37, %v1783_v7  ;;  %v1788_v10 = vsel %vm2569_vm8, %v2221_v47, %v1787_v48  ;;  %v1791_v57 = vrot.slane %v2211_v45, 5  ;;  %v2223_v58 = vrot.slane %v2212_v49, 9  ;;  %v2215_v60 = vld [vmem:[%s2525_s30 + $0x44] sm:$0x1]  ;;  %v2216_v61 = vld [vmem:[%s2525_s30 + $0x48] sm:$0xe] }
  0x62   : > { %v1622_v62 = vsel %vm2560_vm7, %v1617_v51, %v1621_v34  ;;  %2366 = vmatprep.mubr.msk.bf16.mxu0 %vm264_vm2, %v2227_v53  ;;  %v2228_v63 = vcombine.low %v1784_v56, %v1788_v10  ;;  %v1795_v0 = vrot.slane %v2213_v54, 5  ;;  %v2217_v1 = vld [vmem:[%s2525_s30 + $0x4c] sm:$0x1]  ;;  %v2224_v2 = vrot.slane %v2214_v55, 9  ;;  %v238_v52 = vld [vmem:[#allocation2 + $0x18] sm:$0xff] }
  0x63   : > { %v2197_v3 = vcombine.low %v1608_v50, %v1622_v62  ;;  %v1792_v43 = vsel %vm2569_vm8, %v2222_v24, %v1791_v57  ;;  %v1799_v33 = vrot.slane %v2215_v60, 5  ;;  %v2225_v4 = vrot.slane %v2216_v61, 9  ;;  %v242_v20 = vld [vmem:[#allocation2 + $0x38] sm:$0xff]  ;;  %v240_v25 = vld [vmem:[#allocation2 + $0x28] sm:$0xff] }
  0x64   : > { %2367 = vmatmul.mubr.msk.bf16.vlgmr.msra.gmra.mrb[28].mxu0 %vm264_vm2, %v2228_v63  ;;  %v1796_v5 = vsel %vm2569_vm8, %v2223_v58, %v1795_v0  ;;  %v1803_v6 = vrot.slane %v2217_v1, 5 }
  0x65   : > { %2361 = vmatmul.mubr.msk.bf16.gmra.mrb[32].mxu1 %vm264_vm2, %v2197_v3  ;;  %v2229_v44 = vcombine.low %v1792_v43, %v1796_v5  ;;  %v1800_v8 = vsel %vm2569_vm8, %v2224_v2, %v1799_v33 }
  0x66   : > { %v1804_v9 = vsel %vm2569_vm8, %v2225_v4, %v1803_v6 }
  0x67   : > { %2370 = vmatprep.mubr.msk.bf16.mxu0 %vm264_vm2, %v2229_v44  ;;  %v2230_v12 = vcombine.low %v1800_v8, %v1804_v9 }
  0x6c   : > { %2371 = vmatmul.mubr.msk.bf16.gmra.mrb[32].mxu0 %vm264_vm2, %v2230_v12 }
  0xe8   : > { %v2288_v16 = vpop.f32.mrb[0].mxu0 }
  0xe9   : > { %v348_v32 = vadd.f32 %v2288_v16, %v237_v13  ;;  %v2292_v18 = vpop.f32.mrb[0].mxu1  ;;  %v315_v19 = vpop.f32.mrb[1].mxu0 }
  0xea   : > { %v352_v22 = vadd.f32 %v2292_v18, %v241_v14  ;;  %v346_v23 = vadd.f32 %v315_v19, %v235_v15  ;;  %v331_v59 = vpop.f32.mrb[1].mxu1  ;;  %v2289_v11 = vpop.f32.mrb[2].mxu0 }
  0xeb   : > { %357 = vst.msk [vmem:[#allocation2 + $0x10] sm:$0xff] %vm218_vm1, %v348_v32  ;;  %v350_v26 = vadd.f32 %v331_v59, %v239_v17  ;;  %v349_v27 = vadd.f32 %v2289_v11, %v238_v52  ;;  %v2293_v28 = vpop.f32.mrb[2].mxu1  ;;  %v318_v29 = vpop.f32.mrb[3].mxu0 }
  0xec   : > { %361 = vst.msk [vmem:[#allocation2 + $0x30] sm:$0xff] %vm218_vm1, %v352_v22  ;;  %355 = vst.msk [vmem:[#allocation2] sm:$0xff] %vm218_vm1, %v346_v23  ;;  %v353_v30 = vadd.f32 %v2293_v28, %v242_v20  ;;  %v347_v31 = vadd.f32 %v318_v29, %v236_v21  ;;  %v334_v34 = vpop.f32.mrb[3].mxu1 }
  0xed   : > { %359 = vst.msk [vmem:[#allocation2 + $0x20] sm:$0xff] %vm218_vm1, %v350_v26  ;;  %358 = vst.msk [vmem:[#allocation2 + $0x18] sm:$0xff] %vm218_vm1, %v349_v27  ;;  %v351_v35 = vadd.f32 %v334_v34, %v240_v25 }
  0xee   : > { %362 = vst.msk [vmem:[#allocation2 + $0x38] sm:$0xff] %vm218_vm1, %v353_v30  ;;  %356 = vst.msk [vmem:[#allocation2 + $0x8] sm:$0xff] %vm218_vm1, %v347_v31 }
  0xef   : > { %360 = vst.msk [vmem:[#allocation2 + $0x28] sm:$0xff] %vm218_vm1, %v351_v35 }
  0xf2   : > { %v496_v36 = vld [vmem:[#allocation2 + $0x10] sm:$0xff] }
  0xf3   : > { %v494_v37 = vld [vmem:[#allocation2] sm:$0xff]  ;;  %v500_v62 = vld [vmem:[#allocation2 + $0x30] sm:$0xff] }
  0xf4   : > { %v497_v39 = vld [vmem:[#allocation2 + $0x18] sm:$0xff]  ;;  %v498_v2 = vld [vmem:[#allocation2 + $0x20] sm:$0xff] }
  0xf5   : > { %v495_v42 = vld [vmem:[#allocation2 + $0x8] sm:$0xff]  ;;  %v501_v4 = vld [vmem:[#allocation2 + $0x38] sm:$0xff] }
  0xf6   : > { %v499_v8 = vld [vmem:[#allocation2 + $0x28] sm:$0xff] }
  0xf8   : > { %v2298_v38 = vpop.f32.mrb[4].mxu1 }
  0xf9   : > { %v598_v40 = vadd.f32 %v2298_v38, %v496_v36  ;;  %v565_v41 = vpop.f32.mrb[5].mxu1 }
  0xfa   : > { %v596_v45 = vadd.f32 %v565_v41, %v494_v37  ;;  %v2299_v46 = vpop.f32.mrb[6].mxu1 }
  0xfb   : > { %606 = vst.msk [vmem:[#allocation2 + $0x10] sm:$0xff] %vm218_vm1, %v598_v40  ;;  %v599_v7 = vadd.f32 %v2299_v46, %v497_v39  ;;  %v568_v47 = vpop.f32.mrb[7].mxu1 }
  0xfc   : > { %604 = vst.msk [vmem:[#allocation2] sm:$0xff] %vm218_vm1, %v596_v45  ;;  %v597_v48 = vadd.f32 %v568_v47, %v495_v42 }
  0xfd   : > { %607 = vst.msk [vmem:[#allocation2 + $0x18] sm:$0xff] %vm218_vm1, %v599_v7  ;;  %v2308_v49 = vpop.f32.mrb[4].mxu0 }
  0xfe   : > { %605 = vst.msk [vmem:[#allocation2 + $0x8] sm:$0xff] %vm218_vm1, %v597_v48  ;;  %v750_v50 = vpop.f32.mrb[5].mxu0 }
  0xff   : > { %v2309_v51 = vpop.f32.mrb[6].mxu0 }
 0x100   : > { %v753_v53 = vpop.f32.mrb[7].mxu0 }
 0x102   : > { %v681_v54 = vld [vmem:[#allocation2 + $0x10] sm:$0xff] }
 0x103   : > { %v783_v24 = vadd.f32 %v2308_v49, %v681_v54  ;;  %v679_v55 = vld [vmem:[#allocation2] sm:$0xff] }
 0x104   : > { %v781_v56 = vadd.f32 %v750_v50, %v679_v55  ;;  %v682_v10 = vld [vmem:[#allocation2 + $0x18] sm:$0xff] }
 0x105   : > { %791 = vst.msk [vmem:[#allocation2 + $0x10] sm:$0xff] %vm218_vm1, %v783_v24  ;;  %v784_v57 = vadd.f32 %v2309_v51, %v682_v10  ;;  %v680_v58 = vld [vmem:[#allocation2 + $0x8] sm:$0xff]  ;;  %v2312_v61 = vpop.f32.mrb[8].mxu0 }
 0x106   : > { %789 = vst.msk [vmem:[#allocation2] sm:$0xff] %vm218_vm1, %v781_v56  ;;  %v782_v60 = vadd.f32 %v753_v53, %v680_v58  ;;  %v766_v0 = vpop.f32.mrb[9].mxu0 }
 0x107   : > { %v2302_v63 = vpop.f32.mrb[8].mxu1  ;;  %792 = vst.msk [vmem:[#allocation2 + $0x18] sm:$0xff] %vm218_vm1, %v784_v57  ;;  %v2313_v43 = vpop.f32.mrb[10].mxu0 }
 0x108   : > { %v602_v1 = vadd.f32 %v2302_v63, %v500_v62  ;;  %v581_v3 = vpop.f32.mrb[9].mxu1  ;;  %790 = vst.msk [vmem:[#allocation2 + $0x8] sm:$0xff] %vm218_vm1, %v782_v60  ;;  %v769_v6 = vpop.f32.mrb[11].mxu0 }
 0x109   : > { %v600_v33 = vadd.f32 %v581_v3, %v498_v2  ;;  %v2303_v5 = vpop.f32.mrb[10].mxu1 }
 0x10a   : > { %610 = vst.msk [vmem:[#allocation2 + $0x30] sm:$0xff] %vm218_vm1, %v602_v1  ;;  %v603_v44 = vadd.f32 %v2303_v5, %v501_v4  ;;  %v584_v9 = vpop.f32.mrb[11].mxu1 }
 0x10b   : > { %608 = vst.msk [vmem:[#allocation2 + $0x20] sm:$0xff] %vm218_vm1, %v600_v33  ;;  %v601_v12 = vadd.f32 %v584_v9, %v499_v8 }
 0x10c   : > { %611 = vst.msk [vmem:[#allocation2 + $0x38] sm:$0xff] %vm218_vm1, %v603_v44  ;;  %v808_v13 = vld [vmem:[#allocation2 + $0x10] sm:$0xff] }
 0x10d   : > { %609 = vst.msk [vmem:[#allocation2 + $0x28] sm:$0xff] %vm218_vm1, %v601_v12  ;;  %v806_v14 = vld [vmem:[#allocation2] sm:$0xff] }
 0x10e   : > { %v809_v16 = vld [vmem:[#allocation2 + $0x18] sm:$0xff] }
 0x10f   : > { %v2318_v15 = vpop.f32.mrb[12].mxu1  ;;  %v807_v32 = vld [vmem:[#allocation2 + $0x8] sm:$0xff] }
 0x110   : > { %v918_v17 = vadd.f32 %v2318_v15, %v808_v13  ;;  %v885_v52 = vpop.f32.mrb[13].mxu1 }
 0x111   : > { %v685_v18 = vld [vmem:[#allocation2 + $0x30] sm:$0xff]  ;;  %v916_v19 = vadd.f32 %v885_v52, %v806_v14  ;;  %v2319_v20 = vpop.f32.mrb[14].mxu1 }
 0x112   : > { %v787_v21 = vadd.f32 %v2312_v61, %v685_v18  ;;  %v683_v22 = vld [vmem:[#allocation2 + $0x20] sm:$0xff]  ;;  %926 = vst.msk [vmem:[#allocation2 + $0x10] sm:$0xff] %vm218_vm1, %v918_v17  ;;  %v919_v23 = vadd.f32 %v2319_v20, %v809_v16  ;;  %v888_v59 = vpop.f32.mrb[15].mxu1 }
 0x113   : > { %v785_v11 = vadd.f32 %v766_v0, %v683_v22  ;;  %v686_v25 = vld [vmem:[#allocation2 + $0x38] sm:$0xff]  ;;  %924 = vst.msk [vmem:[#allocation2] sm:$0xff] %vm218_vm1, %v916_v19  ;;  %v917_v26 = vadd.f32 %v888_v59, %v807_v32  ;;  %v2328_v30 = vpop.f32.mrb[12].mxu0 }
 0x114   : > { %795 = vst.msk [vmem:[#allocation2 + $0x30] sm:$0xff] %vm218_vm1, %v787_v21  ;;  %v788_v27 = vadd.f32 %v2313_v43, %v686_v25  ;;  %v684_v28 = vld [vmem:[#allocation2 + $0x28] sm:$0xff]  ;;  %927 = vst.msk [vmem:[#allocation2 + $0x18] sm:$0xff] %vm218_vm1, %v919_v23  ;;  %v1131_v31 = vpop.f32.mrb[13].mxu0 }
 0x115   : > { %793 = vst.msk [vmem:[#allocation2 + $0x20] sm:$0xff] %vm218_vm1, %v785_v11  ;;  %v786_v29 = vadd.f32 %v769_v6, %v684_v28  ;;  %925 = vst.msk [vmem:[#allocation2 + $0x8] sm:$0xff] %vm218_vm1, %v917_v26  ;;  %v2329_v35 = vpop.f32.mrb[14].mxu0 }
 0x116   : > { %796 = vst.msk [vmem:[#allocation2 + $0x38] sm:$0xff] %vm218_vm1, %v788_v27  ;;  %v1134_v37 = vpop.f32.mrb[15].mxu0 }
 0x117   : > { %794 = vst.msk [vmem:[#allocation2 + $0x28] sm:$0xff] %vm218_vm1, %v786_v29  ;;  %v2322_v34 = vpop.f32.mrb[16].mxu1 }
 0x118   : > { %v901_v36 = vpop.f32.mrb[17].mxu1 }
 0x119   : > { %v2323_v38 = vpop.f32.mrb[18].mxu1  ;;  %v1062_v39 = vld [vmem:[#allocation2 + $0x10] sm:$0xff] }
 0x11a   : > { %v1164_v40 = vadd.f32 %v2328_v30, %v1062_v39  ;;  %v904_v41 = vpop.f32.mrb[19].mxu1  ;;  %v1060_v42 = vld [vmem:[#allocation2] sm:$0xff] }
 0x11b   : > { %v812_v45 = vld [vmem:[#allocation2 + $0x30] sm:$0xff]  ;;  %v1162_v46 = vadd.f32 %v1131_v31, %v1060_v42  ;;  %v1063_v7 = vld [vmem:[#allocation2 + $0x18] sm:$0xff] }
 0x11c   : > { %v922_v47 = vadd.f32 %v2322_v34, %v812_v45  ;;  %v810_v48 = vld [vmem:[#allocation2 + $0x20] sm:$0xff]  ;;  %1172 = vst.msk [vmem:[#allocation2 + $0x10] sm:$0xff] %vm218_vm1, %v1164_v40  ;;  %v1165_v49 = vadd.f32 %v2329_v35, %v1063_v7  ;;  %v1061_v50 = vld [vmem:[#allocation2 + $0x8] sm:$0xff] }
 0x11d   : > { %v920_v51 = vadd.f32 %v901_v36, %v810_v48  ;;  %v813_v53 = vld [vmem:[#allocation2 + $0x38] sm:$0xff]  ;;  %1170 = vst.msk [vmem:[#allocation2] sm:$0xff] %vm218_vm1, %v1162_v46  ;;  %v1163_v54 = vadd.f32 %v1134_v37, %v1061_v50 }
 0x11e   : > { %930 = vst.msk [vmem:[#allocation2 + $0x30] sm:$0xff] %vm218_vm1, %v922_v47  ;;  %v923_v24 = vadd.f32 %v2323_v38, %v813_v53  ;;  %v811_v55 = vld [vmem:[#allocation2 + $0x28] sm:$0xff]  ;;  %1173 = vst.msk [vmem:[#allocation2 + $0x18] sm:$0xff] %vm218_vm1, %v1165_v49  ;;  %v2332_v10 = vpop.f32.mrb[16].mxu0 }
 0x11f   : > { %928 = vst.msk [vmem:[#allocation2 + $0x20] sm:$0xff] %vm218_vm1, %v920_v51  ;;  %v921_v56 = vadd.f32 %v904_v41, %v811_v55  ;;  %1171 = vst.msk [vmem:[#allocation2 + $0x8] sm:$0xff] %vm218_vm1, %v1163_v54  ;;  %v2338_v57 = vpop.f32.mrb[20].mxu1  ;;  %v1147_v58 = vpop.f32.mrb[17].mxu0 }
 0x120   : > { %931 = vst.msk [vmem:[#allocation2 + $0x38] sm:$0xff] %vm218_vm1, %v923_v24  ;;  %v1313_v60 = vpop.f32.mrb[21].mxu1  ;;  %v2333_v61 = vpop.f32.mrb[18].mxu0 }
 0x121   : > { %929 = vst.msk [vmem:[#allocation2 + $0x28] sm:$0xff] %vm218_vm1, %v921_v56  ;;  %v2339_v62 = vpop.f32.mrb[22].mxu1  ;;  %v1150_v0 = vpop.f32.mrb[19].mxu0 }
 0x122   : > { %v1316_v1 = vpop.f32.mrb[23].mxu1 }
 0x123   : > { %v1244_v63 = vld [vmem:[#allocation2 + $0x10] sm:$0xff] }
 0x124   : > { %v1346_v2 = vadd.f32 %v2338_v57, %v1244_v63  ;;  %v1242_v3 = vld [vmem:[#allocation2] sm:$0xff] }
 0x125   : > { %v1066_v43 = vld [vmem:[#allocation2 + $0x30] sm:$0xff]  ;;  %v1344_v33 = vadd.f32 %v1313_v60, %v1242_v3  ;;  %v1245_v4 = vld [vmem:[#allocation2 + $0x18] sm:$0xff] }
 0x126   : > { %v1168_v5 = vadd.f32 %v2332_v10, %v1066_v43  ;;  %v1064_v6 = vld [vmem:[#allocation2 + $0x20] sm:$0xff]  ;;  %1354 = vst.msk [vmem:[#allocation2 + $0x10] sm:$0xff] %vm218_vm1, %v1346_v2  ;;  %v1347_v44 = vadd.f32 %v2339_v62, %v1245_v4  ;;  %v1243_v8 = vld [vmem:[#allocation2 + $0x8] sm:$0xff]  ;;  %v2348_v17 = vpop.f32.mrb[20].mxu0 }
 0x127   : > { %v1166_v9 = vadd.f32 %v1147_v58, %v1064_v6  ;;  %v1067_v12 = vld [vmem:[#allocation2 + $0x38] sm:$0xff]  ;;  %1352 = vst.msk [vmem:[#allocation2] sm:$0xff] %vm218_vm1, %v1344_v33  ;;  %v1345_v13 = vadd.f32 %v1316_v1, %v1243_v8  ;;  %v2342_v16 = vpop.f32.mrb[24].mxu1  ;;  %v1448_v18 = vpop.f32.mrb[21].mxu0 }
 0x128   : > { %1176 = vst.msk [vmem:[#allocation2 + $0x30] sm:$0xff] %vm218_vm1, %v1168_v5  ;;  %v1169_v14 = vadd.f32 %v2333_v61, %v1067_v12  ;;  %v1065_v15 = vld [vmem:[#allocation2 + $0x28] sm:$0xff]  ;;  %1355 = vst.msk [vmem:[#allocation2 + $0x18] sm:$0xff] %vm218_vm1, %v1347_v44  ;;  %v1329_v32 = vpop.f32.mrb[25].mxu1  ;;  %v2349_v20 = vpop.f32.mrb[22].mxu0 }
 0x129   : > { %1174 = vst.msk [vmem:[#allocation2 + $0x20] sm:$0xff] %vm218_vm1, %v1166_v9  ;;  %v1167_v52 = vadd.f32 %v1150_v0, %v1065_v15  ;;  %1353 = vst.msk [vmem:[#allocation2 + $0x8] sm:$0xff] %vm218_vm1, %v1345_v13  ;;  %v2343_v19 = vpop.f32.mrb[26].mxu1  ;;  %v1451_v22 = vpop.f32.mrb[23].mxu0 }
 0x12a   : > { %1177 = vst.msk [vmem:[#allocation2 + $0x38] sm:$0xff] %vm218_vm1, %v1169_v14  ;;  %v1332_v21 = vpop.f32.mrb[27].mxu1 }
 0x12b   : > { %1175 = vst.msk [vmem:[#allocation2 + $0x28] sm:$0xff] %vm218_vm1, %v1167_v52 }
 0x12d   : > { %v1371_v23 = vld [vmem:[#allocation2 + $0x10] sm:$0xff] }
 0x12e   : > { %v1481_v59 = vadd.f32 %v2348_v17, %v1371_v23  ;;  %v1369_v11 = vld [vmem:[#allocation2] sm:$0xff]  ;;  %v2352_v34 = vpop.f32.mrb[24].mxu0 }
 0x12f   : > { %v1248_v25 = vld [vmem:[#allocation2 + $0x30] sm:$0xff]  ;;  %v1479_v26 = vadd.f32 %v1448_v18, %v1369_v11  ;;  %v1372_v27 = vld [vmem:[#allocation2 + $0x18] sm:$0xff]  ;;  %v1464_v38 = vpop.f32.mrb[25].mxu0  ;;  %v2358_v42 = vpop.f32.mrb[28].mxu1 }
 0x130   : > { %v1350_v28 = vadd.f32 %v2342_v16, %v1248_v25  ;;  %v1246_v29 = vld [vmem:[#allocation2 + $0x20] sm:$0xff]  ;;  %1489 = vst.msk [vmem:[#allocation2 + $0x10] sm:$0xff] %vm218_vm1, %v1481_v59  ;;  %v1482_v30 = vadd.f32 %v2349_v20, %v1372_v27  ;;  %v1370_v31 = vld [vmem:[#allocation2 + $0x8] sm:$0xff]  ;;  %v2353_v41 = vpop.f32.mrb[26].mxu0  ;;  %v1694_v7 = vpop.f32.mrb[29].mxu1 }
 0x131   : > { %v1348_v35 = vadd.f32 %v1329_v32, %v1246_v29  ;;  %v1249_v36 = vld [vmem:[#allocation2 + $0x38] sm:$0xff]  ;;  %1487 = vst.msk [vmem:[#allocation2] sm:$0xff] %vm218_vm1, %v1479_v26  ;;  %v1480_v37 = vadd.f32 %v1451_v22, %v1370_v31  ;;  %v1467_v46 = vpop.f32.mrb[27].mxu0  ;;  %v2359_v47 = vpop.f32.mrb[30].mxu1  ;;  %v2235_v26 = vld [vmem:[#allocation3] ss:$0 sm:$0xff] }
 0x132   : > { %1358 = vst.msk [vmem:[#allocation2 + $0x30] sm:$0xff] %vm218_vm1, %v1350_v28  ;;  %v1351_v39 = vadd.f32 %v2343_v19, %v1249_v36  ;;  %v1247_v40 = vld [vmem:[#allocation2 + $0x28] sm:$0xff]  ;;  %1490 = vst.msk [vmem:[#allocation2 + $0x18] sm:$0xff] %vm218_vm1, %v1482_v30  ;;  %v1697_v48 = vpop.f32.mrb[31].mxu1 }
 0x133   : > { %1356 = vst.msk [vmem:[#allocation2 + $0x20] sm:$0xff] %vm218_vm1, %v1348_v35  ;;  %v1349_v45 = vadd.f32 %v1332_v21, %v1247_v40  ;;  %1488 = vst.msk [vmem:[#allocation2 + $0x8] sm:$0xff] %vm218_vm1, %v1480_v37 }
 0x134   : > { %1359 = vst.msk [vmem:[#allocation2 + $0x38] sm:$0xff] %vm218_vm1, %v1351_v39 }
 0x135   : > { %1357 = vst.msk [vmem:[#allocation2 + $0x28] sm:$0xff] %vm218_vm1, %v1349_v45 }
 0x137   : > { %v1625_v49 = vld [vmem:[#allocation2 + $0x10] sm:$0xff]  ;;  %v2368_v62 = vpop.f32.mrb[28].mxu0 }
 0x138   : > { %v1727_v50 = vadd.f32 %v2358_v42, %v1625_v49  ;;  %v1623_v51 = vld [vmem:[#allocation2] sm:$0xff]  ;;  %v2362_v1 = vpop.f32.mrb[32].mxu1  ;;  %v1876_v2 = vpop.f32.mrb[29].mxu0 }
 0x139   : > { %v1375_v53 = vld [vmem:[#allocation2 + $0x30] sm:$0xff]  ;;  %v1725_v54 = vadd.f32 %v1694_v7, %v1623_v51  ;;  %v1626_v24 = vld [vmem:[#allocation2 + $0x18] sm:$0xff]  ;;  %v1710_v43 = vpop.f32.mrb[33].mxu1  ;;  %v2369_v33 = vpop.f32.mrb[30].mxu0 }
 0x13a   : > { %v1485_v55 = vadd.f32 %v2352_v34, %v1375_v53  ;;  %v1373_v56 = vld [vmem:[#allocation2 + $0x20] sm:$0xff]  ;;  %1735 = vst.msk [vmem:[#allocation2 + $0x10] sm:$0xff] %vm218_vm1, %v1727_v50  ;;  %v1728_v10 = vadd.f32 %v2359_v47, %v1626_v24  ;;  %v1624_v57 = vld [vmem:[#allocation2 + $0x8] sm:$0xff]  ;;  %v2363_v4 = vpop.f32.mrb[34].mxu1  ;;  %v1879_v5 = vpop.f32.mrb[31].mxu0 }
 0x13b   : > { %v1483_v58 = vadd.f32 %v1464_v38, %v1373_v56  ;;  %v1376_v60 = vld [vmem:[#allocation2 + $0x38] sm:$0xff]  ;;  %1733 = vst.msk [vmem:[#allocation2] sm:$0xff] %vm218_vm1, %v1725_v54  ;;  %v1726_v61 = vadd.f32 %v1697_v48, %v1624_v57  ;;  %v1713_v6 = vpop.f32.mrb[35].mxu1 }
 0x13c   : > { %1493 = vst.msk [vmem:[#allocation2 + $0x30] sm:$0xff] %vm218_vm1, %v1485_v55  ;;  %v1486_v63 = vadd.f32 %v2353_v41, %v1376_v60  ;;  %v1374_v0 = vld [vmem:[#allocation2 + $0x28] sm:$0xff]  ;;  %1736 = vst.msk [vmem:[#allocation2 + $0x18] sm:$0xff] %vm218_vm1, %v1728_v10 }
 0x13d   : > { %1491 = vst.msk [vmem:[#allocation2 + $0x20] sm:$0xff] %vm218_vm1, %v1483_v58  ;;  %v1484_v3 = vadd.f32 %v1467_v46, %v1374_v0  ;;  %1734 = vst.msk [vmem:[#allocation2 + $0x8] sm:$0xff] %vm218_vm1, %v1726_v61 }
 0x13e   : > { %1494 = vst.msk [vmem:[#allocation2 + $0x38] sm:$0xff] %vm218_vm1, %v1486_v63 }
 0x13f   : > { %1492 = vst.msk [vmem:[#allocation2 + $0x28] sm:$0xff] %vm218_vm1, %v1484_v3  ;;  %v2372_v15 = vpop.f32.mrb[32].mxu0 }
 0x140   : > { %v1892_v18 = vpop.f32.mrb[33].mxu0 }
 0x141   : > { %v1807_v44 = vld [vmem:[#allocation2 + $0x10] sm:$0xff]  ;;  %v2373_v22 = vpop.f32.mrb[34].mxu0 }
 0x142   : > { %v1909_v8 = vadd.f32 %v2368_v62, %v1807_v44  ;;  %v1805_v9 = vld [vmem:[#allocation2] sm:$0xff]  ;;  %v1895_v11 = vpop.f32.mrb[35].mxu0 }
 0x143   : > { %v1629_v12 = vld [vmem:[#allocation2 + $0x30] sm:$0xff]  ;;  %v1907_v13 = vadd.f32 %v1876_v2, %v1805_v9  ;;  %v1808_v14 = vld [vmem:[#allocation2 + $0x18] sm:$0xff] }
 0x144   : > { %v1731_v16 = vadd.f32 %v2362_v1, %v1629_v12  ;;  %v1627_v17 = vld [vmem:[#allocation2 + $0x20] sm:$0xff]  ;;  %1917 = vst.msk [vmem:[#allocation2 + $0x10] sm:$0xff] %vm218_vm1, %v1909_v8  ;;  %v1910_v52 = vadd.f32 %v2369_v33, %v1808_v14  ;;  %v1806_v32 = vld [vmem:[#allocation2 + $0x8] sm:$0xff] }
 0x145   : > { %v1729_v19 = vadd.f32 %v1710_v43, %v1627_v17  ;;  %v1630_v20 = vld [vmem:[#allocation2 + $0x38] sm:$0xff]  ;;  %1915 = vst.msk [vmem:[#allocation2] sm:$0xff] %vm218_vm1, %v1907_v13  ;;  %v1908_v21 = vadd.f32 %v1879_v5, %v1806_v32 }
 0x146   : > { %1739 = vst.msk [vmem:[#allocation2 + $0x30] sm:$0xff] %vm218_vm1, %v1731_v16  ;;  %v1732_v23 = vadd.f32 %v2363_v4, %v1630_v20  ;;  %v1628_v59 = vld [vmem:[#allocation2 + $0x28] sm:$0xff]  ;;  %1918 = vst.msk [vmem:[#allocation2 + $0x18] sm:$0xff] %vm218_vm1, %v1910_v52 }
 0x147   : > { %1737 = vst.msk [vmem:[#allocation2 + $0x20] sm:$0xff] %vm218_vm1, %v1729_v19  ;;  %v1730_v25 = vadd.f32 %v1713_v6, %v1628_v59  ;;  %1916 = vst.msk [vmem:[#allocation2 + $0x8] sm:$0xff] %vm218_vm1, %v1908_v21 }
 0x148   : > { %1740 = vst.msk [vmem:[#allocation2 + $0x38] sm:$0xff] %vm218_vm1, %v1732_v23 }
 0x149   : > { %1738 = vst.msk [vmem:[#allocation2 + $0x28] sm:$0xff] %vm218_vm1, %v1730_v25 }
 0x14b   : > { %v1928_v27 = vld [vmem:[#allocation2 + $0x10] sm:$0xff] }
 0x14c   : > { %v1943_v28 = vadd.f32 %v2235_v26, %v1928_v27  ;;  %v1926_v29 = vld [vmem:[#allocation2] sm:$0xff] }
 0x14d   : > { %v1941_v30 = vadd.f32 %v2235_v26, %v1926_v29  ;;  %v1929_v31 = vld [vmem:[#allocation2 + $0x18] sm:$0xff]  ;;  %v1811_v34 = vld [vmem:[#allocation2 + $0x30] sm:$0xff] }
 0x14e   : > { %1951 = vst.msk [vmem:[%s2903_s18 + $0x10] sm:$0xff] %vm218_vm1, %v1943_v28  ;;  %v1944_v35 = vadd.f32 %v2235_v26, %v1929_v31  ;;  %v1927_v36 = vld [vmem:[#allocation2 + $0x8] sm:$0xff]  ;;  %v1913_v37 = vadd.f32 %v2372_v15, %v1811_v34  ;;  %v1809_v38 = vld [vmem:[#allocation2 + $0x20] sm:$0xff] }
 0x14f   : > { %1949 = vst.msk [vmem:[%s2903_s18] sm:$0xff] %vm218_vm1, %v1941_v30  ;;  %v1942_v39 = vadd.f32 %v2235_v26, %v1927_v36  ;;  %v1911_v40 = vadd.f32 %v1892_v18, %v1809_v38  ;;  %v1812_v41 = vld [vmem:[#allocation2 + $0x38] sm:$0xff] }
 0x150   : > { %1952 = vst.msk [vmem:[%s2903_s18 + $0x18] sm:$0xff] %vm218_vm1, %v1944_v35  ;;  %1921 = vst.msk [vmem:[#allocation2 + $0x30] sm:$0xff] %vm218_vm1, %v1913_v37  ;;  %v1914_v42 = vadd.f32 %v2373_v22, %v1812_v41  ;;  %v1810_v45 = vld [vmem:[#allocation2 + $0x28] sm:$0xff] }
 0x151   : > { %1950 = vst.msk [vmem:[%s2903_s18 + $0x8] sm:$0xff] %vm218_vm1, %v1942_v39  ;;  %1919 = vst.msk [vmem:[#allocation2 + $0x20] sm:$0xff] %vm218_vm1, %v1911_v40  ;;  %v1912_v46 = vadd.f32 %v1895_v11, %v1810_v45 }
 0x152   : > { %1922 = vst.msk [vmem:[#allocation2 + $0x38] sm:$0xff] %vm218_vm1, %v1914_v42 }
 0x153   : > { %1920 = vst.msk [vmem:[#allocation2 + $0x28] sm:$0xff] %vm218_vm1, %v1912_v46 }
 0x157   : > { %v1932_v7 = vld [vmem:[#allocation2 + $0x30] sm:$0xff] }
 0x158   : > { %v1947_v47 = vadd.f32 %v2235_v26, %v1932_v7  ;;  %v1930_v48 = vld [vmem:[#allocation2 + $0x20] sm:$0xff] }
 0x159   : > { %v1945_v49 = vadd.f32 %v2235_v26, %v1930_v48  ;;  %v1933_v50 = vld [vmem:[#allocation2 + $0x38] sm:$0xff] }
 0x15a   : > { %1955 = vst.msk [vmem:[%s2903_s18 + $0x30] sm:$0xff] %vm218_vm1, %v1947_v47  ;;  %v1948_v51 = vadd.f32 %v2235_v26, %v1933_v50  ;;  %v1931_v53 = vld [vmem:[#allocation2 + $0x28] sm:$0xff] }
 0x15b   : > { %1953 = vst.msk [vmem:[%s2903_s18 + $0x20] sm:$0xff] %vm218_vm1, %v1945_v49  ;;  %v1946_v54 = vadd.f32 %v2235_v26, %v1931_v53 }
 0x15c   : > { %1956 = vst.msk [vmem:[%s2903_s18 + $0x38] sm:$0xff] %vm218_vm1, %v1948_v51 }
 0x15d   : > { %1954 = vst.msk [vmem:[%s2903_s18 + $0x28] sm:$0xff] %vm218_vm1, %v1946_v54 }
 0x15e PF: > { %s15_s16 = sadd.s32 1, %s2446_s16   ;;  %s2942_s14 = smov %s2442_s15 }
 0x15f   : > { %p12_p5 = scmp.ge.s32.totalorder %s15_s16, 4   ;;  %s2943_s15 = smov %s2945_s2 }
 0x161   :  { %14 = sbr.rel (!%p12_p5) target bundleno = 3 (0x3), region = 83 }

</bundles_post_ra>
